<compile_context>
chip_gen: v7x
topology: tpu7x:2x2x1
jax: 0.10.0
libtpu: 0.0.40
codegen_flags: <defaults>
</compile_context>

<pallas_src>
import math

import jax
import jax.numpy as jnp
from jax import lax
from jax.experimental import pallas as pl
from jax.experimental.pallas import tpu as pltpu


# ---------------------------------------------------------------------------
# hardware-aware budgets
# ---------------------------------------------------------------------------
def _vmem_capacity_bytes():
    try:
        return int(pltpu.get_tpu_info().vmem_capacity_bytes)
    except Exception:
        return 64 * 1024 * 1024            # conservative (v7x per-TensorCore)


def _budgets():
    cap = _vmem_capacity_bytes()
    # double-buffered working-set budget / scoped-vmem limit per generation:
    #   128 MiB (v5e/v6e) -> 48 MiB / 96 MiB ; 64 MiB (v7x) -> 24 MiB / 48 MiB
    ws_budget = min(48 * 1024 * 1024, (3 * cap) // 8)
    vmem_limit = min(100 * 1024 * 1024, (3 * cap) // 4)
    return ws_budget, vmem_limit


def _tile_bytes(rows, cols, bytes_per_el=4):
    """VMEM footprint of a 2-D tile under (8, 128) tiling."""
    return (-(-rows // 8) * 8) * (-(-cols // 128) * 128) * bytes_per_el


def _pick_fb(t, cin, lp, cmid, l, budget, prefer_split):
    """Largest divisor of T whose double-buffered pass-1 blocks fit `budget`."""
    per_frame = 2 * (_tile_bytes(cin, lp) + _tile_bytes(cmid, l))
    divs = [d for d in range(1, t + 1) if t % d == 0]
    fits = [d for d in divs if d * per_frame <= budget] or [1]
    if prefer_split and t > 1:                 # keep >=2 grid steps (v7x 2 TCs)
        split = [d for d in fits if d <= t // 2]
        if split:
            return max(split)
    return max(fits)


# ---------------------------------------------------------------------------
# pass 1: spatial (1, kh, kw) conv, stride-1 geometry, + partial batch stats
# ---------------------------------------------------------------------------
def _make_spatial_kernel(kk, cin, cmid, fb, l, taps):
    """taps: static flat offsets i*Wp + j, one per spatial tap."""

    def kernel(x_ref, w_ref, m_ref, y_ref, s_ref, ss_ref):
        # x_ref : (fb, Cin, Lp)    flat padded frames (lanes = spatial)
        # w_ref : (kk, Cmid, Cin)  one (Cmid, Cin) matrix per tap
        # m_ref : (1, L)           1.0 on valid output columns, 0.0 on junk
        # y_ref : (fb, Cmid, L)    lane-dense conv output (bias-free)
        # s_ref / ss_ref : (Cmid, 1)  per-grid-step partial sum / sum-of-sq
        w_taps = [w_ref[q] for q in range(kk)]          # hoisted weight loads
        vmask = m_ref[...]

        def body(r, carry):
            s_acc, ss_acc = carry
            xf = x_ref[r]                               # (Cin, Lp)
            acc = jnp.zeros((cmid, l), jnp.float32)
            for q in range(kk):                         # static, small (kh*kw)
                tap = xf[:, taps[q]:taps[q] + l]        # static lane slice
                acc = acc + jnp.dot(w_taps[q], tap,
                                    preferred_element_type=jnp.float32)
            y_ref[r] = acc
            accm = acc * vmask                          # junk columns -> 0
            s_acc = s_acc + jnp.sum(accm, axis=-1, keepdims=True)
            ss_acc = ss_acc + jnp.sum(accm * acc, axis=-1, keepdims=True)
            return s_acc, ss_acc

        init = (jnp.zeros((cmid, 1), jnp.float32),
                jnp.zeros((cmid, 1), jnp.float32))
        s_acc, ss_acc = lax.fori_loop(0, fb, body, init, unroll=(fb <= 8))
        s_ref[...] = s_acc
        ss_ref[...] = ss_acc

    return kernel


# ---------------------------------------------------------------------------
# pass 2: fused BatchNorm(affine) + ReLU + temporal (kt,1,1) conv + bias
# ---------------------------------------------------------------------------
def _make_temporal_kernel(kt, st, pt, t_in, tout, cmid, cout, l):
    def kernel(y_ref, scale_ref, shift_ref, w_ref, b_ref, o_ref):
        # y_ref : (T, Cmid, L)   whole time axis for one batch item
        # o_ref : (Tout, Cout, L)
        scale = scale_ref[...]                          # (Cmid, 1)
        shift = shift_ref[...]
        bias = b_ref[...]                               # (Cout, 1)
        w_taps = [w_ref[dt] for dt in range(kt)]        # (Cout, Cmid) each

        def body(to, _):
            acc = jnp.zeros((cout, l), jnp.float32)
            for dt in range(kt):                        # static, small (kt)
                t_src = to * st - pt + dt
                t_clip = jnp.clip(t_src, 0, t_in - 1)
                a = jnp.maximum(y_ref[t_clip] * scale + shift, 0.0)
                contrib = jnp.dot(w_taps[dt], a,
                                  preferred_element_type=jnp.float32)
                valid = jnp.logical_and(t_src >= 0, t_src < t_in)
                acc = acc + jnp.where(valid, contrib, 0.0)
            o_ref[to] = acc + bias
            return 0

        lax.fori_loop(0, tout, body, 0, unroll=(tout <= 8))

    return kernel


# ---------------------------------------------------------------------------
# FactorisedSpatioTemporalConv forward
# ---------------------------------------------------------------------------
def forward_pallas(x, params, kernel_size, stride, padding, eps=1e-5):
    kt, kh, kw = kernel_size
    st, sh, sw = stride
    pt, ph, pw = padding
    ws = params["ws"]                                  # (Cmid, Cin, 1, kh, kw)
    gamma, beta = params["gamma"], params["beta"]
    wt, bt = params["wt"], params["bt"]                # (Cout, Cmid, kt, 1, 1)

    n, cin, t, h, w = x.shape
    cmid = ws.shape[0]
    cout = wt.shape[0]
    hp, wp = h + 2 * ph, w + 2 * pw
    ho = (hp - kh) // sh + 1
    wo = (wp - kw) // sw + 1
    ho1 = hp - kh + 1                  # pass 1 always runs at spatial stride 1
    wo1 = wp - kw + 1
    tout = (t + 2 * pt - kt) // st + 1
    l1 = ho1 * wp                      # flat output length (incl. junk cols)
    lp = hp * wp + (kw - 1)            # flat padded input length
    kk = kh * kw

    ws_budget, vmem_limit = _budgets()

    # ---- layout plumbing (cheap, input-sized) ------------------------------
    xcl = jnp.transpose(x, (0, 2, 1, 3, 4))                      # (N,T,Cin,H,W)
    xpad = jnp.pad(xcl, ((0, 0), (0, 0), (0, 0), (ph, ph), (pw, pw)))
    xflat = jnp.pad(xpad.reshape(n, t, cin, hp * wp),
                    ((0, 0), (0, 0), (0, 0), (0, kw - 1)))       # (N,T,Cin,Lp)
    wsp = jnp.transpose(ws[:, :, 0], (2, 3, 0, 1)).reshape(kk, cmid, cin)
    vmask = jnp.tile((jnp.arange(wp) < wo1).astype(jnp.float32),
                     (ho1,)).reshape(1, l1)
    taps = [i * wp + j for i in range(kh) for j in range(kw)]

    # ---- pass 1: spatial conv + per-grid-step partial batch stats ----------
    fb = _pick_fb(t, cin, lp, cmid, l1, ws_budget, prefer_split=(n == 1))
    nblk = t // fb
    y, s, ss = pl.pallas_call(
        _make_spatial_kernel(kk, cin, cmid, fb, l1, taps),
        out_shape=(
            jax.ShapeDtypeStruct((n, t, cmid, l1), jnp.float32),
            jax.ShapeDtypeStruct((n, nblk, cmid, 1), jnp.float32),
            jax.ShapeDtypeStruct((n, nblk, cmid, 1), jnp.float32),
        ),
        grid=(n, nblk),
        in_specs=[
            pl.BlockSpec((None, fb, cin, lp), lambda i, j: (i, j, 0, 0)),
            pl.BlockSpec((kk, cmid, cin), lambda i, j: (0, 0, 0)),
            pl.BlockSpec((1, l1), lambda i, j: (0, 0)),
        ],
        out_specs=(
            pl.BlockSpec((None, fb, cmid, l1), lambda i, j: (i, j, 0, 0)),
            pl.BlockSpec((None, None, cmid, 1), lambda i, j: (i, j, 0, 0)),
            pl.BlockSpec((None, None, cmid, 1), lambda i, j: (i, j, 0, 0)),
        ),
        compiler_params=pltpu.CompilerParams(
            dimension_semantics=("parallel", "parallel"),
            vmem_limit_bytes=vmem_limit),
    )(xflat, wsp, vmask)

    # ---- fold train-mode BatchNorm3d (biased batch variance) into affine ---
    # (spatial-conv bias omitted above: it cancels under batch statistics)
    if sh == 1 and sw == 1:
        cnt = n * t * ho * wo
        mean = jnp.sum(s, axis=(0, 1, 3)) / cnt
        # NOTE: E[x^2]-E[x]^2 in f32 — adequate for activations near zero.
        var = jnp.maximum(jnp.sum(ss, axis=(0, 1, 3)) / cnt - mean * mean, 0.0)
        y2 = y                                   # (N,T,Cmid,L1) with junk cols
        l2, wp_eff = l1, wp
    else:
        # TODO(synk): spatial stride > 1 subsamples the stride-1 output and
        # recomputes stats in XLA (extra y-sized HBM pass; rarely-used path).
        y5 = y.reshape(n, t, cmid, ho1, wp)[..., :wo1][:, :, :, ::sh, ::sw]
        mean = jnp.mean(y5, axis=(0, 1, 3, 4))
        var = jnp.maximum(
            jnp.mean(jnp.square(y5), axis=(0, 1, 3, 4)) - mean * mean, 0.0)
        y2 = y5.reshape(n, t, cmid, ho * wo)
        l2, wp_eff = ho * wo, wo

    inv_std = gamma / jnp.sqrt(var + eps)
    scale2 = inv_std.reshape(cmid, 1).astype(jnp.float32)
    shift2 = (beta - mean * inv_std).reshape(cmid, 1).astype(jnp.float32)

    # ---- pass 2: fused BN + ReLU + temporal conv (each y frame read once) --
    wtp = jnp.transpose(wt[:, :, :, 0, 0], (2, 0, 1))            # (kt,Cout,Cmid)
    btp = bt.reshape(cout, 1)
    # TODO(synk): for very large T*Cmid*Ho*Wo the whole-T block would need an
    # additional spatial (lane) split; fine at module-typical sizes.
    out_flat = pl.pallas_call(
        _make_temporal_kernel(kt, st, pt, t, tout, cmid, cout, l2),
        out_shape=jax.ShapeDtypeStruct((n, tout, cout, l2), jnp.float32),
        grid=(n,),
        in_specs=[
            pl.BlockSpec((None, t, cmid, l2), lambda i: (i, 0, 0, 0)),
            pl.BlockSpec((cmid, 1), lambda i: (0, 0)),
            pl.BlockSpec((cmid, 1), lambda i: (0, 0)),
            pl.BlockSpec((kt, cout, cmid), lambda i: (0, 0, 0)),
            pl.BlockSpec((cout, 1), lambda i: (0, 0)),
        ],
        out_specs=pl.BlockSpec((None, tout, cout, l2), lambda i: (i, 0, 0, 0)),
        compiler_params=pltpu.CompilerParams(
            dimension_semantics=("parallel",),
            vmem_limit_bytes=vmem_limit),
    )(y2, scale2, shift2, wtp, btp)

    # ---- strip junk columns, back to NCDHW (outer-dim permutation only) ----
    out = out_flat.reshape(n, tout, cout, ho, wp_eff)[..., :wo]
    return jnp.transpose(out, (0, 2, 1, 3, 4))


# ---------------------------------------------------------------------------
# Deterministic parameter initialisation (mirrors module __init__ shapes)
# ---------------------------------------------------------------------------
def init_params(key, in_channels, out_channels, kernel_size):
    kt, kh, kw = kernel_size
    intermed = max(
        int(math.floor(kt * kh * kw * in_channels * out_channels
                       / (kh * kw * in_channels + kt * out_channels))), 1)
    k1, k2, k3, k4, k5, k6 = jax.random.split(key, 6)
    fan_s = in_channels * 1 * kh * kw
    fan_t = intermed * kt * 1 * 1
    bound_s = 1.0 / math.sqrt(fan_s)
    bound_t = 1.0 / math.sqrt(fan_t)
    return {
        "ws": jax.random.uniform(k1, (intermed, in_channels, 1, kh, kw),
                                 jnp.float32, -bound_s, bound_s),
        "bs": jax.random.uniform(k2, (intermed,), jnp.float32, -bound_s, bound_s),
        "gamma": 1.0 + 0.1 * jax.random.normal(k3, (intermed,), jnp.float32),
        "beta": 0.1 * jax.random.normal(k4, (intermed,), jnp.float32),
        "wt": jax.random.uniform(k5, (out_channels, intermed, kt, 1, 1),
                                 jnp.float32, -bound_t, bound_t),
        "bt": jax.random.uniform(k6, (out_channels,), jnp.float32, -bound_t, bound_t),
    }


# ---------------------------------------------------------------------------
# Pure-JAX reference (lax conv) for correctness check
# ---------------------------------------------------------------------------
def reference_forward(x, params, kernel_size, stride, padding, eps=1e-5):
    kt, kh, kw = kernel_size
    st, sh, sw = stride
    pt, ph, pw = padding
    dn = ("NCDHW", "OIDHW", "NCDHW")
    y = lax.conv_general_dilated(
        x, params["ws"], window_strides=(1, sh, sw),
        padding=[(0, 0), (ph, ph), (pw, pw)], dimension_numbers=dn,
        precision=lax.Precision.HIGHEST,
    ) + params["bs"].reshape(1, -1, 1, 1, 1)
    mean = y.mean(axis=(0, 2, 3, 4), keepdims=True)
    var = ((y - mean) ** 2).mean(axis=(0, 2, 3, 4), keepdims=True)
    a = (y - mean) / jnp.sqrt(var + eps)
    a = a * params["gamma"].reshape(1, -1, 1, 1, 1) + params["beta"].reshape(1, -1, 1, 1, 1)
    a = jnp.maximum(a, 0.0)
    out = lax.conv_general_dilated(
        a, params["wt"], window_strides=(st, 1, 1),
        padding=[(pt, pt), (0, 0), (0, 0)], dimension_numbers=dn,
        precision=lax.Precision.HIGHEST,
    ) + params["bt"].reshape(1, -1, 1, 1, 1)
    return out


# ---------------------------------------------------------------------------
if __name__ == "__main__":
    in_channels, out_channels = 4, 8
    kernel_size = (3, 3, 3)
    stride = (1, 1, 1)
    padding = (1, 1, 1)
    N, T, H, W = 2, 8, 16, 16

    key = jax.random.PRNGKey(0)
    pkey, xkey = jax.random.split(key)
    params = init_params(pkey, in_channels, out_channels, kernel_size)
    x = jax.random.normal(xkey, (N, in_channels, T, H, W), jnp.float32)

    fwd = jax.jit(lambda inp: forward_pallas(inp, params, kernel_size, stride, padding))
    out = jax.block_until_ready(fwd(x))

    ref = jax.block_until_ready(
        reference_forward(x, params, kernel_size, stride, padding))

    assert out.shape == ref.shape, (out.shape, ref.shape)
    max_err = float(jnp.max(jnp.abs(out - ref)))
    assert max_err < 1e-3, f"max abs error too large: {max_err}"
    print("KERNEL_OK")
</pallas_src>

<mosaic_0001>
module attributes {stable_mosaic.version = 11 : i64} {
  func.func @kernel(%arg0: i32, %arg1: i32, %arg2: memref<1x8x4x326xf32, #tpu.memory_space<vmem>>, %arg3: memref<9x14x4xf32, #tpu.memory_space<vmem>>, %arg4: memref<1x288xf32, #tpu.memory_space<vmem>>, %arg5: memref<1x8x14x288xf32, #tpu.memory_space<vmem>>, %arg6: memref<1x1x14x1xf32, #tpu.memory_space<vmem>>, %arg7: memref<1x1x14x1xf32, #tpu.memory_space<vmem>>) attributes {dimension_semantics = [#tpu.dimension_semantics<parallel>, #tpu.dimension_semantics<parallel>], iteration_bounds = array<i64: 2, 1>, scalar_prefetch = 0 : i64, scratch_operands = 0 : i64, tpu.core_type = #tpu.core_type<tc>, window_params = [{transform_indices = @transform_0, window_bounds = array<i64: 1, 8, 4, 326>}, {pipeline_mode = #tpu.pipeline_mode<synchronous>, transform_indices = @transform_1, window_bounds = array<i64: 9, 14, 4>}, {pipeline_mode = #tpu.pipeline_mode<synchronous>, transform_indices = @transform_2, window_bounds = array<i64: 1, 288>}, {transform_indices = @transform_3, window_bounds = array<i64: 1, 8, 14, 288>}, {transform_indices = @transform_4, window_bounds = array<i64: 1, 1, 14, 1>}, {transform_indices = @transform_5, window_bounds = array<i64: 1, 1, 14, 1>}]} {
    %c0 = arith.constant 0 : index
    %c0_0 = arith.constant 0 : index
    %c0_1 = arith.constant 0 : index
    %0 = vector.load %arg3[%c0, %c0_0, %c0_1] : memref<9x14x4xf32, #tpu.memory_space<vmem>>, vector<1x14x4xf32>
    %1 = vector.shape_cast %0 : vector<1x14x4xf32> to vector<14x4xf32>
    %c1 = arith.constant 1 : index
    %c0_2 = arith.constant 0 : index
    %c0_3 = arith.constant 0 : index
    %2 = vector.load %arg3[%c1, %c0_2, %c0_3] : memref<9x14x4xf32, #tpu.memory_space<vmem>>, vector<1x14x4xf32>
    %3 = vector.shape_cast %2 : vector<1x14x4xf32> to vector<14x4xf32>
    %c2 = arith.constant 2 : index
    %c0_4 = arith.constant 0 : index
    %c0_5 = arith.constant 0 : index
    %4 = vector.load %arg3[%c2, %c0_4, %c0_5] : memref<9x14x4xf32, #tpu.memory_space<vmem>>, vector<1x14x4xf32>
    %5 = vector.shape_cast %4 : vector<1x14x4xf32> to vector<14x4xf32>
    %c3 = arith.constant 3 : index
    %c0_6 = arith.constant 0 : index
    %c0_7 = arith.constant 0 : index
    %6 = vector.load %arg3[%c3, %c0_6, %c0_7] : memref<9x14x4xf32, #tpu.memory_space<vmem>>, vector<1x14x4xf32>
    %7 = vector.shape_cast %6 : vector<1x14x4xf32> to vector<14x4xf32>
    %c4 = arith.constant 4 : index
    %c0_8 = arith.constant 0 : index
    %c0_9 = arith.constant 0 : index
    %8 = vector.load %arg3[%c4, %c0_8, %c0_9] : memref<9x14x4xf32, #tpu.memory_space<vmem>>, vector<1x14x4xf32>
    %9 = vector.shape_cast %8 : vector<1x14x4xf32> to vector<14x4xf32>
    %c5 = arith.constant 5 : index
    %c0_10 = arith.constant 0 : index
    %c0_11 = arith.constant 0 : index
    %10 = vector.load %arg3[%c5, %c0_10, %c0_11] : memref<9x14x4xf32, #tpu.memory_space<vmem>>, vector<1x14x4xf32>
    %11 = vector.shape_cast %10 : vector<1x14x4xf32> to vector<14x4xf32>
    %c6 = arith.constant 6 : index
    %c0_12 = arith.constant 0 : index
    %c0_13 = arith.constant 0 : index
    %12 = vector.load %arg3[%c6, %c0_12, %c0_13] : memref<9x14x4xf32, #tpu.memory_space<vmem>>, vector<1x14x4xf32>
    %13 = vector.shape_cast %12 : vector<1x14x4xf32> to vector<14x4xf32>
    %c7 = arith.constant 7 : index
    %c0_14 = arith.constant 0 : index
    %c0_15 = arith.constant 0 : index
    %14 = vector.load %arg3[%c7, %c0_14, %c0_15] : memref<9x14x4xf32, #tpu.memory_space<vmem>>, vector<1x14x4xf32>
    %15 = vector.shape_cast %14 : vector<1x14x4xf32> to vector<14x4xf32>
    %c8 = arith.constant 8 : index
    %c0_16 = arith.constant 0 : index
    %c0_17 = arith.constant 0 : index
    %16 = vector.load %arg3[%c8, %c0_16, %c0_17] : memref<9x14x4xf32, #tpu.memory_space<vmem>>, vector<1x14x4xf32>
    %17 = vector.shape_cast %16 : vector<1x14x4xf32> to vector<14x4xf32>
    %c0_18 = arith.constant 0 : index
    %c0_19 = arith.constant 0 : index
    %18 = vector.load %arg4[%c0_18, %c0_19] : memref<1x288xf32, #tpu.memory_space<vmem>>, vector<1x288xf32>
    %cst = arith.constant 0.000000e+00 : f32
    %19 = vector.broadcast %cst : f32 to vector<14x1xf32>
    %cst_20 = arith.constant 0.000000e+00 : f32
    %20 = vector.broadcast %cst_20 : f32 to vector<14x1xf32>
    %c0_i32 = arith.constant 0 : i32
    %c0_21 = arith.constant 0 : index
    %21 = arith.index_cast %c0_i32 : i32 to index
    %c0_22 = arith.constant 0 : index
    %c0_23 = arith.constant 0 : index
    %22 = vector.load %arg2[%c0_21, %21, %c0_22, %c0_23] : memref<1x8x4x326xf32, #tpu.memory_space<vmem>>, vector<1x1x4x326xf32>
    %23 = vector.shape_cast %22 : vector<1x1x4x326xf32> to vector<4x326xf32>
    %cst_24 = arith.constant 0.000000e+00 : f32
    %24 = vector.broadcast %cst_24 : f32 to vector<14x288xf32>
    %25 = vector.extract_strided_slice %23 {offsets = [0, 0], sizes = [4, 288], strides = [1, 1]} : vector<4x326xf32> to vector<4x288xf32>
    %cst_25 = arith.constant dense<0.000000e+00> : vector<14x288xf32>
    %26 = tpu.matmul %1, %25, %cst_25 {dimension_numbers = #tpu.dot_dimension_numbers<[1], [0], [0], [1], [0, 0, 1, 1], [], []>} : vector<14x4xf32>, vector<4x288xf32>, vector<14x288xf32> -> vector<14x288xf32>
    %27 = arith.addf %24, %26 : vector<14x288xf32>
    %28 = vector.extract_strided_slice %23 {offsets = [0, 1], sizes = [4, 288], strides = [1, 1]} : vector<4x326xf32> to vector<4x288xf32>
    %cst_26 = arith.constant dense<0.000000e+00> : vector<14x288xf32>
    %29 = tpu.matmul %3, %28, %cst_26 {dimension_numbers = #tpu.dot_dimension_numbers<[1], [0], [0], [1], [0, 0, 1, 1], [], []>} : vector<14x4xf32>, vector<4x288xf32>, vector<14x288xf32> -> vector<14x288xf32>
    %30 = arith.addf %27, %29 : vector<14x288xf32>
    %31 = vector.extract_strided_slice %23 {offsets = [0, 2], sizes = [4, 288], strides = [1, 1]} : vector<4x326xf32> to vector<4x288xf32>
    %cst_27 = arith.constant dense<0.000000e+00> : vector<14x288xf32>
    %32 = tpu.matmul %5, %31, %cst_27 {dimension_numbers = #tpu.dot_dimension_numbers<[1], [0], [0], [1], [0, 0, 1, 1], [], []>} : vector<14x4xf32>, vector<4x288xf32>, vector<14x288xf32> -> vector<14x288xf32>
    %33 = arith.addf %30, %32 : vector<14x288xf32>
    %34 = vector.extract_strided_slice %23 {offsets = [0, 18], sizes = [4, 288], strides = [1, 1]} : vector<4x326xf32> to vector<4x288xf32>
    %cst_28 = arith.constant dense<0.000000e+00> : vector<14x288xf32>
    %35 = tpu.matmul %7, %34, %cst_28 {dimension_numbers = #tpu.dot_dimension_numbers<[1], [0], [0], [1], [0, 0, 1, 1], [], []>} : vector<14x4xf32>, vector<4x288xf32>, vector<14x288xf32> -> vector<14x288xf32>
    %36 = arith.addf %33, %35 : vector<14x288xf32>
    %37 = vector.extract_strided_slice %23 {offsets = [0, 19], sizes = [4, 288], strides = [1, 1]} : vector<4x326xf32> to vector<4x288xf32>
    %cst_29 = arith.constant dense<0.000000e+00> : vector<14x288xf32>
    %38 = tpu.matmul %9, %37, %cst_29 {dimension_numbers = #tpu.dot_dimension_numbers<[1], [0], [0], [1], [0, 0, 1, 1], [], []>} : vector<14x4xf32>, vector<4x288xf32>, vector<14x288xf32> -> vector<14x288xf32>
    %39 = arith.addf %36, %38 : vector<14x288xf32>
    %40 = vector.extract_strided_slice %23 {offsets = [0, 20], sizes = [4, 288], strides = [1, 1]} : vector<4x326xf32> to vector<4x288xf32>
    %cst_30 = arith.constant dense<0.000000e+00> : vector<14x288xf32>
    %41 = tpu.matmul %11, %40, %cst_30 {dimension_numbers = #tpu.dot_dimension_numbers<[1], [0], [0], [1], [0, 0, 1, 1], [], []>} : vector<14x4xf32>, vector<4x288xf32>, vector<14x288xf32> -> vector<14x288xf32>
    %42 = arith.addf %39, %41 : vector<14x288xf32>
    %43 = vector.extract_strided_slice %23 {offsets = [0, 36], sizes = [4, 288], strides = [1, 1]} : vector<4x326xf32> to vector<4x288xf32>
    %cst_31 = arith.constant dense<0.000000e+00> : vector<14x288xf32>
    %44 = tpu.matmul %13, %43, %cst_31 {dimension_numbers = #tpu.dot_dimension_numbers<[1], [0], [0], [1], [0, 0, 1, 1], [], []>} : vector<14x4xf32>, vector<4x288xf32>, vector<14x288xf32> -> vector<14x288xf32>
    %45 = arith.addf %42, %44 : vector<14x288xf32>
    %46 = vector.extract_strided_slice %23 {offsets = [0, 37], sizes = [4, 288], strides = [1, 1]} : vector<4x326xf32> to vector<4x288xf32>
    %cst_32 = arith.constant dense<0.000000e+00> : vector<14x288xf32>
    %47 = tpu.matmul %15, %46, %cst_32 {dimension_numbers = #tpu.dot_dimension_numbers<[1], [0], [0], [1], [0, 0, 1, 1], [], []>} : vector<14x4xf32>, vector<4x288xf32>, vector<14x288xf32> -> vector<14x288xf32>
    %48 = arith.addf %45, %47 : vector<14x288xf32>
    %49 = vector.extract_strided_slice %23 {offsets = [0, 38], sizes = [4, 288], strides = [1, 1]} : vector<4x326xf32> to vector<4x288xf32>
    %cst_33 = arith.constant dense<0.000000e+00> : vector<14x288xf32>
    %50 = tpu.matmul %17, %49, %cst_33 {dimension_numbers = #tpu.dot_dimension_numbers<[1], [0], [0], [1], [0, 0, 1, 1], [], []>} : vector<14x4xf32>, vector<4x288xf32>, vector<14x288xf32> -> vector<14x288xf32>
    %51 = arith.addf %48, %50 : vector<14x288xf32>
    %c0_34 = arith.constant 0 : index
    %52 = arith.index_cast %c0_i32 : i32 to index
    %c0_35 = arith.constant 0 : index
    %c0_36 = arith.constant 0 : index
    %53 = vector.load %arg5[%c0_34, %52, %c0_35, %c0_36] : memref<1x8x14x288xf32, #tpu.memory_space<vmem>>, vector<1x1x14x288xf32>
    %54 = vector.shape_cast %53 : vector<1x1x14x288xf32> to vector<14x288xf32>
    %55 = vector.shape_cast %51 : vector<14x288xf32> to vector<1x1x14x288xf32>
    tpu.vector_store %arg5[%c0_34, %52, %c0_35, %c0_36], %55 {strides = array<i32>} : memref<1x8x14x288xf32, #tpu.memory_space<vmem>>, vector<1x1x14x288xf32>,
    %56 = vector.broadcast %18 : vector<1x288xf32> to vector<14x288xf32>
    %57 = arith.mulf %51, %56 : vector<14x288xf32>
    %cst_37 = arith.constant dense<0.000000e+00> : vector<14xf32>
    %58 = vector.multi_reduction <add>, %57, %cst_37 [1] : vector<14x288xf32> to vector<14xf32>
    %59 = vector.shape_cast %58 : vector<14xf32> to vector<14x1xf32>
    %60 = arith.addf %19, %59 : vector<14x1xf32>
    %61 = arith.mulf %57, %51 : vector<14x288xf32>
    %cst_38 = arith.constant dense<0.000000e+00> : vector<14xf32>
    %62 = vector.multi_reduction <add>, %61, %cst_38 [1] : vector<14x288xf32> to vector<14xf32>
    %63 = vector.shape_cast %62 : vector<14xf32> to vector<14x1xf32>
    %64 = arith.addf %20, %63 : vector<14x1xf32>
    %c1_i32 = arith.constant 1 : i32
    %c0_39 = arith.constant 0 : index
    %65 = arith.index_cast %c1_i32 : i32 to index
    %c0_40 = arith.constant 0 : index
    %c0_41 = arith.constant 0 : index
    %66 = vector.load %arg2[%c0_39, %65, %c0_40, %c0_41] : memref<1x8x4x326xf32, #tpu.memory_space<vmem>>, vector<1x1x4x326xf32>
    %67 = vector.shape_cast %66 : vector<1x1x4x326xf32> to vector<4x326xf32>
    %cst_42 = arith.constant 0.000000e+00 : f32
    %68 = vector.broadcast %cst_42 : f32 to vector<14x288xf32>
    %69 = vector.extract_strided_slice %67 {offsets = [0, 0], sizes = [4, 288], strides = [1, 1]} : vector<4x326xf32> to vector<4x288xf32>
    %cst_43 = arith.constant dense<0.000000e+00> : vector<14x288xf32>
    %70 = tpu.matmul %1, %69, %cst_43 {dimension_numbers = #tpu.dot_dimension_numbers<[1], [0], [0], [1], [0, 0, 1, 1], [], []>} : vector<14x4xf32>, vector<4x288xf32>, vector<14x288xf32> -> vector<14x288xf32>
    %71 = arith.addf %68, %70 : vector<14x288xf32>
    %72 = vector.extract_strided_slice %67 {offsets = [0, 1], sizes = [4, 288], strides = [1, 1]} : vector<4x326xf32> to vector<4x288xf32>
    %cst_44 = arith.constant dense<0.000000e+00> : vector<14x288xf32>
    %73 = tpu.matmul %3, %72, %cst_44 {dimension_numbers = #tpu.dot_dimension_numbers<[1], [0], [0], [1], [0, 0, 1, 1], [], []>} : vector<14x4xf32>, vector<4x288xf32>, vector<14x288xf32> -> vector<14x288xf32>
    %74 = arith.addf %71, %73 : vector<14x288xf32>
    %75 = vector.extract_strided_slice %67 {offsets = [0, 2], sizes = [4, 288], strides = [1, 1]} : vector<4x326xf32> to vector<4x288xf32>
    %cst_45 = arith.constant dense<0.000000e+00> : vector<14x288xf32>
    %76 = tpu.matmul %5, %75, %cst_45 {dimension_numbers = #tpu.dot_dimension_numbers<[1], [0], [0], [1], [0, 0, 1, 1], [], []>} : vector<14x4xf32>, vector<4x288xf32>, vector<14x288xf32> -> vector<14x288xf32>
    %77 = arith.addf %74, %76 : vector<14x288xf32>
    %78 = vector.extract_strided_slice %67 {offsets = [0, 18], sizes = [4, 288], strides = [1, 1]} : vector<4x326xf32> to vector<4x288xf32>
    %cst_46 = arith.constant dense<0.000000e+00> : vector<14x288xf32>
    %79 = tpu.matmul %7, %78, %cst_46 {dimension_numbers = #tpu.dot_dimension_numbers<[1], [0], [0], [1], [0, 0, 1, 1], [], []>} : vector<14x4xf32>, vector<4x288xf32>, vector<14x288xf32> -> vector<14x288xf32>
    %80 = arith.addf %77, %79 : vector<14x288xf32>
    %81 = vector.extract_strided_slice %67 {offsets = [0, 19], sizes = [4, 288], strides = [1, 1]} : vector<4x326xf32> to vector<4x288xf32>
    %cst_47 = arith.constant dense<0.000000e+00> : vector<14x288xf32>
    %82 = tpu.matmul %9, %81, %cst_47 {dimension_numbers = #tpu.dot_dimension_numbers<[1], [0], [0], [1], [0, 0, 1, 1], [], []>} : vector<14x4xf32>, vector<4x288xf32>, vector<14x288xf32> -> vector<14x288xf32>
    %83 = arith.addf %80, %82 : vector<14x288xf32>
    %84 = vector.extract_strided_slice %67 {offsets = [0, 20], sizes = [4, 288], strides = [1, 1]} : vector<4x326xf32> to vector<4x288xf32>
    %cst_48 = arith.constant dense<0.000000e+00> : vector<14x288xf32>
    %85 = tpu.matmul %11, %84, %cst_48 {dimension_numbers = #tpu.dot_dimension_numbers<[1], [0], [0], [1], [0, 0, 1, 1], [], []>} : vector<14x4xf32>, vector<4x288xf32>, vector<14x288xf32> -> vector<14x288xf32>
    %86 = arith.addf %83, %85 : vector<14x288xf32>
    %87 = vector.extract_strided_slice %67 {offsets = [0, 36], sizes = [4, 288], strides = [1, 1]} : vector<4x326xf32> to vector<4x288xf32>
    %cst_49 = arith.constant dense<0.000000e+00> : vector<14x288xf32>
    %88 = tpu.matmul %13, %87, %cst_49 {dimension_numbers = #tpu.dot_dimension_numbers<[1], [0], [0], [1], [0, 0, 1, 1], [], []>} : vector<14x4xf32>, vector<4x288xf32>, vector<14x288xf32> -> vector<14x288xf32>
    %89 = arith.addf %86, %88 : vector<14x288xf32>
    %90 = vector.extract_strided_slice %67 {offsets = [0, 37], sizes = [4, 288], strides = [1, 1]} : vector<4x326xf32> to vector<4x288xf32>
    %cst_50 = arith.constant dense<0.000000e+00> : vector<14x288xf32>
    %91 = tpu.matmul %15, %90, %cst_50 {dimension_numbers = #tpu.dot_dimension_numbers<[1], [0], [0], [1], [0, 0, 1, 1], [], []>} : vector<14x4xf32>, vector<4x288xf32>, vector<14x288xf32> -> vector<14x288xf32>
    %92 = arith.addf %89, %91 : vector<14x288xf32>
    %93 = vector.extract_strided_slice %67 {offsets = [0, 38], sizes = [4, 288], strides = [1, 1]} : vector<4x326xf32> to vector<4x288xf32>
    %cst_51 = arith.constant dense<0.000000e+00> : vector<14x288xf32>
    %94 = tpu.matmul %17, %93, %cst_51 {dimension_numbers = #tpu.dot_dimension_numbers<[1], [0], [0], [1], [0, 0, 1, 1], [], []>} : vector<14x4xf32>, vector<4x288xf32>, vector<14x288xf32> -> vector<14x288xf32>
    %95 = arith.addf %92, %94 : vector<14x288xf32>
    %c0_52 = arith.constant 0 : index
    %96 = arith.index_cast %c1_i32 : i32 to index
    %c0_53 = arith.constant 0 : index
    %c0_54 = arith.constant 0 : index
    %97 = vector.load %arg5[%c0_52, %96, %c0_53, %c0_54] : memref<1x8x14x288xf32, #tpu.memory_space<vmem>>, vector<1x1x14x288xf32>
    %98 = vector.shape_cast %97 : vector<1x1x14x288xf32> to vector<14x288xf32>
    %99 = vector.shape_cast %95 : vector<14x288xf32> to vector<1x1x14x288xf32>
    tpu.vector_store %arg5[%c0_52, %96, %c0_53, %c0_54], %99 {strides = array<i32>} : memref<1x8x14x288xf32, #tpu.memory_space<vmem>>, vector<1x1x14x288xf32>,
    %100 = vector.broadcast %18 : vector<1x288xf32> to vector<14x288xf32>
    %101 = arith.mulf %95, %100 : vector<14x288xf32>
    %cst_55 = arith.constant dense<0.000000e+00> : vector<14xf32>
    %102 = vector.multi_reduction <add>, %101, %cst_55 [1] : vector<14x288xf32> to vector<14xf32>
    %103 = vector.shape_cast %102 : vector<14xf32> to vector<14x1xf32>
    %104 = arith.addf %60, %103 : vector<14x1xf32>
    %105 = arith.mulf %101, %95 : vector<14x288xf32>
    %cst_56 = arith.constant dense<0.000000e+00> : vector<14xf32>
    %106 = vector.multi_reduction <add>, %105, %cst_56 [1] : vector<14x288xf32> to vector<14xf32>
    %107 = vector.shape_cast %106 : vector<14xf32> to vector<14x1xf32>
    %108 = arith.addf %64, %107 : vector<14x1xf32>
    %c2_i32 = arith.constant 2 : i32
    %c0_57 = arith.constant 0 : index
    %109 = arith.index_cast %c2_i32 : i32 to index
    %c0_58 = arith.constant 0 : index
    %c0_59 = arith.constant 0 : index
    %110 = vector.load %arg2[%c0_57, %109, %c0_58, %c0_59] : memref<1x8x4x326xf32, #tpu.memory_space<vmem>>, vector<1x1x4x326xf32>
    %111 = vector.shape_cast %110 : vector<1x1x4x326xf32> to vector<4x326xf32>
    %cst_60 = arith.constant 0.000000e+00 : f32
    %112 = vector.broadcast %cst_60 : f32 to vector<14x288xf32>
    %113 = vector.extract_strided_slice %111 {offsets = [0, 0], sizes = [4, 288], strides = [1, 1]} : vector<4x326xf32> to vector<4x288xf32>
    %cst_61 = arith.constant dense<0.000000e+00> : vector<14x288xf32>
    %114 = tpu.matmul %1, %113, %cst_61 {dimension_numbers = #tpu.dot_dimension_numbers<[1], [0], [0], [1], [0, 0, 1, 1], [], []>} : vector<14x4xf32>, vector<4x288xf32>, vector<14x288xf32> -> vector<14x288xf32>
    %115 = arith.addf %112, %114 : vector<14x288xf32>
    %116 = vector.extract_strided_slice %111 {offsets = [0, 1], sizes = [4, 288], strides = [1, 1]} : vector<4x326xf32> to vector<4x288xf32>
    %cst_62 = arith.constant dense<0.000000e+00> : vector<14x288xf32>
    %117 = tpu.matmul %3, %116, %cst_62 {dimension_numbers = #tpu.dot_dimension_numbers<[1], [0], [0], [1], [0, 0, 1, 1], [], []>} : vector<14x4xf32>, vector<4x288xf32>, vector<14x288xf32> -> vector<14x288xf32>
    %118 = arith.addf %115, %117 : vector<14x288xf32>
    %119 = vector.extract_strided_slice %111 {offsets = [0, 2], sizes = [4, 288], strides = [1, 1]} : vector<4x326xf32> to vector<4x288xf32>
    %cst_63 = arith.constant dense<0.000000e+00> : vector<14x288xf32>
    %120 = tpu.matmul %5, %119, %cst_63 {dimension_numbers = #tpu.dot_dimension_numbers<[1], [0], [0], [1], [0, 0, 1, 1], [], []>} : vector<14x4xf32>, vector<4x288xf32>, vector<14x288xf32> -> vector<14x288xf32>
    %121 = arith.addf %118, %120 : vector<14x288xf32>
    %122 = vector.extract_strided_slice %111 {offsets = [0, 18], sizes = [4, 288], strides = [1, 1]} : vector<4x326xf32> to vector<4x288xf32>
    %cst_64 = arith.constant dense<0.000000e+00> : vector<14x288xf32>
    %123 = tpu.matmul %7, %122, %cst_64 {dimension_numbers = #tpu.dot_dimension_numbers<[1], [0], [0], [1], [0, 0, 1, 1], [], []>} : vector<14x4xf32>, vector<4x288xf32>, vector<14x288xf32> -> vector<14x288xf32>
    %124 = arith.addf %121, %123 : vector<14x288xf32>
    %125 = vector.extract_strided_slice %111 {offsets = [0, 19], sizes = [4, 288], strides = [1, 1]} : vector<4x326xf32> to vector<4x288xf32>
    %cst_65 = arith.constant dense<0.000000e+00> : vector<14x288xf32>
    %126 = tpu.matmul %9, %125, %cst_65 {dimension_numbers = #tpu.dot_dimension_numbers<[1], [0], [0], [1], [0, 0, 1, 1], [], []>} : vector<14x4xf32>, vector<4x288xf32>, vector<14x288xf32> -> vector<14x288xf32>
    %127 = arith.addf %124, %126 : vector<14x288xf32>
    %128 = vector.extract_strided_slice %111 {offsets = [0, 20], sizes = [4, 288], strides = [1, 1]} : vector<4x326xf32> to vector<4x288xf32>
    %cst_66 = arith.constant dense<0.000000e+00> : vector<14x288xf32>
    %129 = tpu.matmul %11, %128, %cst_66 {dimension_numbers = #tpu.dot_dimension_numbers<[1], [0], [0], [1], [0, 0, 1, 1], [], []>} : vector<14x4xf32>, vector<4x288xf32>, vector<14x288xf32> -> vector<14x288xf32>
    %130 = arith.addf %127, %129 : vector<14x288xf32>
    %131 = vector.extract_strided_slice %111 {offsets = [0, 36], sizes = [4, 288], strides = [1, 1]} : vector<4x326xf32> to vector<4x288xf32>
    %cst_67 = arith.constant dense<0.000000e+00> : vector<14x288xf32>
    %132 = tpu.matmul %13, %131, %cst_67 {dimension_numbers = #tpu.dot_dimension_numbers<[1], [0], [0], [1], [0, 0, 1, 1], [], []>} : vector<14x4xf32>, vector<4x288xf32>, vector<14x288xf32> -> vector<14x288xf32>
    %133 = arith.addf %130, %132 : vector<14x288xf32>
    %134 = vector.extract_strided_slice %111 {offsets = [0, 37], sizes = [4, 288], strides = [1, 1]} : vector<4x326xf32> to vector<4x288xf32>
    %cst_68 = arith.constant dense<0.000000e+00> : vector<14x288xf32>
    %135 = tpu.matmul %15, %134, %cst_68 {dimension_numbers = #tpu.dot_dimension_numbers<[1], [0], [0], [1], [0, 0, 1, 1], [], []>} : vector<14x4xf32>, vector<4x288xf32>, vector<14x288xf32> -> vector<14x288xf32>
    %136 = arith.addf %133, %135 : vector<14x288xf32>
    %137 = vector.extract_strided_slice %111 {offsets = [0, 38], sizes = [4, 288], strides = [1, 1]} : vector<4x326xf32> to vector<4x288xf32>
    %cst_69 = arith.constant dense<0.000000e+00> : vector<14x288xf32>
    %138 = tpu.matmul %17, %137, %cst_69 {dimension_numbers = #tpu.dot_dimension_numbers<[1], [0], [0], [1], [0, 0, 1, 1], [], []>} : vector<14x4xf32>, vector<4x288xf32>, vector<14x288xf32> -> vector<14x288xf32>
    %139 = arith.addf %136, %138 : vector<14x288xf32>
    %c0_70 = arith.constant 0 : index
    %140 = arith.index_cast %c2_i32 : i32 to index
    %c0_71 = arith.constant 0 : index
    %c0_72 = arith.constant 0 : index
    %141 = vector.load %arg5[%c0_70, %140, %c0_71, %c0_72] : memref<1x8x14x288xf32, #tpu.memory_space<vmem>>, vector<1x1x14x288xf32>
    %142 = vector.shape_cast %141 : vector<1x1x14x288xf32> to vector<14x288xf32>
    %143 = vector.shape_cast %139 : vector<14x288xf32> to vector<1x1x14x288xf32>
    tpu.vector_store %arg5[%c0_70, %140, %c0_71, %c0_72], %143 {strides = array<i32>} : memref<1x8x14x288xf32, #tpu.memory_space<vmem>>, vector<1x1x14x288xf32>,
    %144 = vector.broadcast %18 : vector<1x288xf32> to vector<14x288xf32>
    %145 = arith.mulf %139, %144 : vector<14x288xf32>
    %cst_73 = arith.constant dense<0.000000e+00> : vector<14xf32>
    %146 = vector.multi_reduction <add>, %145, %cst_73 [1] : vector<14x288xf32> to vector<14xf32>
    %147 = vector.shape_cast %146 : vector<14xf32> to vector<14x1xf32>
    %148 = arith.addf %104, %147 : vector<14x1xf32>
    %149 = arith.mulf %145, %139 : vector<14x288xf32>
    %cst_74 = arith.constant dense<0.000000e+00> : vector<14xf32>
    %150 = vector.multi_reduction <add>, %149, %cst_74 [1] : vector<14x288xf32> to vector<14xf32>
    %151 = vector.shape_cast %150 : vector<14xf32> to vector<14x1xf32>
    %152 = arith.addf %108, %151 : vector<14x1xf32>
    %c3_i32 = arith.constant 3 : i32
    %c0_75 = arith.constant 0 : index
    %153 = arith.index_cast %c3_i32 : i32 to index
    %c0_76 = arith.constant 0 : index
    %c0_77 = arith.constant 0 : index
    %154 = vector.load %arg2[%c0_75, %153, %c0_76, %c0_77] : memref<1x8x4x326xf32, #tpu.memory_space<vmem>>, vector<1x1x4x326xf32>
    %155 = vector.shape_cast %154 : vector<1x1x4x326xf32> to vector<4x326xf32>
    %cst_78 = arith.constant 0.000000e+00 : f32
    %156 = vector.broadcast %cst_78 : f32 to vector<14x288xf32>
    %157 = vector.extract_strided_slice %155 {offsets = [0, 0], sizes = [4, 288], strides = [1, 1]} : vector<4x326xf32> to vector<4x288xf32>
    %cst_79 = arith.constant dense<0.000000e+00> : vector<14x288xf32>
    %158 = tpu.matmul %1, %157, %cst_79 {dimension_numbers = #tpu.dot_dimension_numbers<[1], [0], [0], [1], [0, 0, 1, 1], [], []>} : vector<14x4xf32>, vector<4x288xf32>, vector<14x288xf32> -> vector<14x288xf32>
    %159 = arith.addf %156, %158 : vector<14x288xf32>
    %160 = vector.extract_strided_slice %155 {offsets = [0, 1], sizes = [4, 288], strides = [1, 1]} : vector<4x326xf32> to vector<4x288xf32>
    %cst_80 = arith.constant dense<0.000000e+00> : vector<14x288xf32>
    %161 = tpu.matmul %3, %160, %cst_80 {dimension_numbers = #tpu.dot_dimension_numbers<[1], [0], [0], [1], [0, 0, 1, 1], [], []>} : vector<14x4xf32>, vector<4x288xf32>, vector<14x288xf32> -> vector<14x288xf32>
    %162 = arith.addf %159, %161 : vector<14x288xf32>
    %163 = vector.extract_strided_slice %155 {offsets = [0, 2], sizes = [4, 288], strides = [1, 1]} : vector<4x326xf32> to vector<4x288xf32>
    %cst_81 = arith.constant dense<0.000000e+00> : vector<14x288xf32>
    %164 = tpu.matmul %5, %163, %cst_81 {dimension_numbers = #tpu.dot_dimension_numbers<[1], [0], [0], [1], [0, 0, 1, 1], [], []>} : vector<14x4xf32>, vector<4x288xf32>, vector<14x288xf32> -> vector<14x288xf32>
    %165 = arith.addf %162, %164 : vector<14x288xf32>
    %166 = vector.extract_strided_slice %155 {offsets = [0, 18], sizes = [4, 288], strides = [1, 1]} : vector<4x326xf32> to vector<4x288xf32>
    %cst_82 = arith.constant dense<0.000000e+00> : vector<14x288xf32>
    %167 = tpu.matmul %7, %166, %cst_82 {dimension_numbers = #tpu.dot_dimension_numbers<[1], [0], [0], [1], [0, 0, 1, 1], [], []>} : vector<14x4xf32>, vector<4x288xf32>, vector<14x288xf32> -> vector<14x288xf32>
    %168 = arith.addf %165, %167 : vector<14x288xf32>
    %169 = vector.extract_strided_slice %155 {offsets = [0, 19], sizes = [4, 288], strides = [1, 1]} : vector<4x326xf32> to vector<4x288xf32>
    %cst_83 = arith.constant dense<0.000000e+00> : vector<14x288xf32>
    %170 = tpu.matmul %9, %169, %cst_83 {dimension_numbers = #tpu.dot_dimension_numbers<[1], [0], [0], [1], [0, 0, 1, 1], [], []>} : vector<14x4xf32>, vector<4x288xf32>, vector<14x288xf32> -> vector<14x288xf32>
    %171 = arith.addf %168, %170 : vector<14x288xf32>
    %172 = vector.extract_strided_slice %155 {offsets = [0, 20], sizes = [4, 288], strides = [1, 1]} : vector<4x326xf32> to vector<4x288xf32>
    %cst_84 = arith.constant dense<0.000000e+00> : vector<14x288xf32>
    %173 = tpu.matmul %11, %172, %cst_84 {dimension_numbers = #tpu.dot_dimension_numbers<[1], [0], [0], [1], [0, 0, 1, 1], [], []>} : vector<14x4xf32>, vector<4x288xf32>, vector<14x288xf32> -> vector<14x288xf32>
    %174 = arith.addf %171, %173 : vector<14x288xf32>
    %175 = vector.extract_strided_slice %155 {offsets = [0, 36], sizes = [4, 288], strides = [1, 1]} : vector<4x326xf32> to vector<4x288xf32>
    %cst_85 = arith.constant dense<0.000000e+00> : vector<14x288xf32>
    %176 = tpu.matmul %13, %175, %cst_85 {dimension_numbers = #tpu.dot_dimension_numbers<[1], [0], [0], [1], [0, 0, 1, 1], [], []>} : vector<14x4xf32>, vector<4x288xf32>, vector<14x288xf32> -> vector<14x288xf32>
    %177 = arith.addf %174, %176 : vector<14x288xf32>
    %178 = vector.extract_strided_slice %155 {offsets = [0, 37], sizes = [4, 288], strides = [1, 1]} : vector<4x326xf32> to vector<4x288xf32>
    %cst_86 = arith.constant dense<0.000000e+00> : vector<14x288xf32>
    %179 = tpu.matmul %15, %178, %cst_86 {dimension_numbers = #tpu.dot_dimension_numbers<[1], [0], [0], [1], [0, 0, 1, 1], [], []>} : vector<14x4xf32>, vector<4x288xf32>, vector<14x288xf32> -> vector<14x288xf32>
    %180 = arith.addf %177, %179 : vector<14x288xf32>
    %181 = vector.extract_strided_slice %155 {offsets = [0, 38], sizes = [4, 288], strides = [1, 1]} : vector<4x326xf32> to vector<4x288xf32>
    %cst_87 = arith.constant dense<0.000000e+00> : vector<14x288xf32>
    %182 = tpu.matmul %17, %181, %cst_87 {dimension_numbers = #tpu.dot_dimension_numbers<[1], [0], [0], [1], [0, 0, 1, 1], [], []>} : vector<14x4xf32>, vector<4x288xf32>, vector<14x288xf32> -> vector<14x288xf32>
    %183 = arith.addf %180, %182 : vector<14x288xf32>
    %c0_88 = arith.constant 0 : index
    %184 = arith.index_cast %c3_i32 : i32 to index
    %c0_89 = arith.constant 0 : index
    %c0_90 = arith.constant 0 : index
    %185 = vector.load %arg5[%c0_88, %184, %c0_89, %c0_90] : memref<1x8x14x288xf32, #tpu.memory_space<vmem>>, vector<1x1x14x288xf32>
    %186 = vector.shape_cast %185 : vector<1x1x14x288xf32> to vector<14x288xf32>
    %187 = vector.shape_cast %183 : vector<14x288xf32> to vector<1x1x14x288xf32>
    tpu.vector_store %arg5[%c0_88, %184, %c0_89, %c0_90], %187 {strides = array<i32>} : memref<1x8x14x288xf32, #tpu.memory_space<vmem>>, vector<1x1x14x288xf32>,
    %188 = vector.broadcast %18 : vector<1x288xf32> to vector<14x288xf32>
    %189 = arith.mulf %183, %188 : vector<14x288xf32>
    %cst_91 = arith.constant dense<0.000000e+00> : vector<14xf32>
    %190 = vector.multi_reduction <add>, %189, %cst_91 [1] : vector<14x288xf32> to vector<14xf32>
    %191 = vector.shape_cast %190 : vector<14xf32> to vector<14x1xf32>
    %192 = arith.addf %148, %191 : vector<14x1xf32>
    %193 = arith.mulf %189, %183 : vector<14x288xf32>
    %cst_92 = arith.constant dense<0.000000e+00> : vector<14xf32>
    %194 = vector.multi_reduction <add>, %193, %cst_92 [1] : vector<14x288xf32> to vector<14xf32>
    %195 = vector.shape_cast %194 : vector<14xf32> to vector<14x1xf32>
    %196 = arith.addf %152, %195 : vector<14x1xf32>
    %c4_i32 = arith.constant 4 : i32
    %c0_93 = arith.constant 0 : index
    %197 = arith.index_cast %c4_i32 : i32 to index
    %c0_94 = arith.constant 0 : index
    %c0_95 = arith.constant 0 : index
    %198 = vector.load %arg2[%c0_93, %197, %c0_94, %c0_95] : memref<1x8x4x326xf32, #tpu.memory_space<vmem>>, vector<1x1x4x326xf32>
    %199 = vector.shape_cast %198 : vector<1x1x4x326xf32> to vector<4x326xf32>
    %cst_96 = arith.constant 0.000000e+00 : f32
    %200 = vector.broadcast %cst_96 : f32 to vector<14x288xf32>
    %201 = vector.extract_strided_slice %199 {offsets = [0, 0], sizes = [4, 288], strides = [1, 1]} : vector<4x326xf32> to vector<4x288xf32>
    %cst_97 = arith.constant dense<0.000000e+00> : vector<14x288xf32>
    %202 = tpu.matmul %1, %201, %cst_97 {dimension_numbers = #tpu.dot_dimension_numbers<[1], [0], [0], [1], [0, 0, 1, 1], [], []>} : vector<14x4xf32>, vector<4x288xf32>, vector<14x288xf32> -> vector<14x288xf32>
    %203 = arith.addf %200, %202 : vector<14x288xf32>
    %204 = vector.extract_strided_slice %199 {offsets = [0, 1], sizes = [4, 288], strides = [1, 1]} : vector<4x326xf32> to vector<4x288xf32>
    %cst_98 = arith.constant dense<0.000000e+00> : vector<14x288xf32>
    %205 = tpu.matmul %3, %204, %cst_98 {dimension_numbers = #tpu.dot_dimension_numbers<[1], [0], [0], [1], [0, 0, 1, 1], [], []>} : vector<14x4xf32>, vector<4x288xf32>, vector<14x288xf32> -> vector<14x288xf32>
    %206 = arith.addf %203, %205 : vector<14x288xf32>
    %207 = vector.extract_strided_slice %199 {offsets = [0, 2], sizes = [4, 288], strides = [1, 1]} : vector<4x326xf32> to vector<4x288xf32>
    %cst_99 = arith.constant dense<0.000000e+00> : vector<14x288xf32>
    %208 = tpu.matmul %5, %207, %cst_99 {dimension_numbers = #tpu.dot_dimension_numbers<[1], [0], [0], [1], [0, 0, 1, 1], [], []>} : vector<14x4xf32>, vector<4x288xf32>, vector<14x288xf32> -> vector<14x288xf32>
    %209 = arith.addf %206, %208 : vector<14x288xf32>
    %210 = vector.extract_strided_slice %199 {offsets = [0, 18], sizes = [4, 288], strides = [1, 1]} : vector<4x326xf32> to vector<4x288xf32>
    %cst_100 = arith.constant dense<0.000000e+00> : vector<14x288xf32>
    %211 = tpu.matmul %7, %210, %cst_100 {dimension_numbers = #tpu.dot_dimension_numbers<[1], [0], [0], [1], [0, 0, 1, 1], [], []>} : vector<14x4xf32>, vector<4x288xf32>, vector<14x288xf32> -> vector<14x288xf32>
    %212 = arith.addf %209, %211 : vector<14x288xf32>
    %213 = vector.extract_strided_slice %199 {offsets = [0, 19], sizes = [4, 288], strides = [1, 1]} : vector<4x326xf32> to vector<4x288xf32>
    %cst_101 = arith.constant dense<0.000000e+00> : vector<14x288xf32>
    %214 = tpu.matmul %9, %213, %cst_101 {dimension_numbers = #tpu.dot_dimension_numbers<[1], [0], [0], [1], [0, 0, 1, 1], [], []>} : vector<14x4xf32>, vector<4x288xf32>, vector<14x288xf32> -> vector<14x288xf32>
    %215 = arith.addf %212, %214 : vector<14x288xf32>
    %216 = vector.extract_strided_slice %199 {offsets = [0, 20], sizes = [4, 288], strides = [1, 1]} : vector<4x326xf32> to vector<4x288xf32>
    %cst_102 = arith.constant dense<0.000000e+00> : vector<14x288xf32>
    %217 = tpu.matmul %11, %216, %cst_102 {dimension_numbers = #tpu.dot_dimension_numbers<[1], [0], [0], [1], [0, 0, 1, 1], [], []>} : vector<14x4xf32>, vector<4x288xf32>, vector<14x288xf32> -> vector<14x288xf32>
    %218 = arith.addf %215, %217 : vector<14x288xf32>
    %219 = vector.extract_strided_slice %199 {offsets = [0, 36], sizes = [4, 288], strides = [1, 1]} : vector<4x326xf32> to vector<4x288xf32>
    %cst_103 = arith.constant dense<0.000000e+00> : vector<14x288xf32>
    %220 = tpu.matmul %13, %219, %cst_103 {dimension_numbers = #tpu.dot_dimension_numbers<[1], [0], [0], [1], [0, 0, 1, 1], [], []>} : vector<14x4xf32>, vector<4x288xf32>, vector<14x288xf32> -> vector<14x288xf32>
    %221 = arith.addf %218, %220 : vector<14x288xf32>
    %222 = vector.extract_strided_slice %199 {offsets = [0, 37], sizes = [4, 288], strides = [1, 1]} : vector<4x326xf32> to vector<4x288xf32>
    %cst_104 = arith.constant dense<0.000000e+00> : vector<14x288xf32>
    %223 = tpu.matmul %15, %222, %cst_104 {dimension_numbers = #tpu.dot_dimension_numbers<[1], [0], [0], [1], [0, 0, 1, 1], [], []>} : vector<14x4xf32>, vector<4x288xf32>, vector<14x288xf32> -> vector<14x288xf32>
    %224 = arith.addf %221, %223 : vector<14x288xf32>
    %225 = vector.extract_strided_slice %199 {offsets = [0, 38], sizes = [4, 288], strides = [1, 1]} : vector<4x326xf32> to vector<4x288xf32>
    %cst_105 = arith.constant dense<0.000000e+00> : vector<14x288xf32>
    %226 = tpu.matmul %17, %225, %cst_105 {dimension_numbers = #tpu.dot_dimension_numbers<[1], [0], [0], [1], [0, 0, 1, 1], [], []>} : vector<14x4xf32>, vector<4x288xf32>, vector<14x288xf32> -> vector<14x288xf32>
    %227 = arith.addf %224, %226 : vector<14x288xf32>
    %c0_106 = arith.constant 0 : index
    %228 = arith.index_cast %c4_i32 : i32 to index
    %c0_107 = arith.constant 0 : index
    %c0_108 = arith.constant 0 : index
    %229 = vector.load %arg5[%c0_106, %228, %c0_107, %c0_108] : memref<1x8x14x288xf32, #tpu.memory_space<vmem>>, vector<1x1x14x288xf32>
    %230 = vector.shape_cast %229 : vector<1x1x14x288xf32> to vector<14x288xf32>
    %231 = vector.shape_cast %227 : vector<14x288xf32> to vector<1x1x14x288xf32>
    tpu.vector_store %arg5[%c0_106, %228, %c0_107, %c0_108], %231 {strides = array<i32>} : memref<1x8x14x288xf32, #tpu.memory_space<vmem>>, vector<1x1x14x288xf32>,
    %232 = vector.broadcast %18 : vector<1x288xf32> to vector<14x288xf32>
    %233 = arith.mulf %227, %232 : vector<14x288xf32>
    %cst_109 = arith.constant dense<0.000000e+00> : vector<14xf32>
    %234 = vector.multi_reduction <add>, %233, %cst_109 [1] : vector<14x288xf32> to vector<14xf32>
    %235 = vector.shape_cast %234 : vector<14xf32> to vector<14x1xf32>
    %236 = arith.addf %192, %235 : vector<14x1xf32>
    %237 = arith.mulf %233, %227 : vector<14x288xf32>
    %cst_110 = arith.constant dense<0.000000e+00> : vector<14xf32>
    %238 = vector.multi_reduction <add>, %237, %cst_110 [1] : vector<14x288xf32> to vector<14xf32>
    %239 = vector.shape_cast %238 : vector<14xf32> to vector<14x1xf32>
    %240 = arith.addf %196, %239 : vector<14x1xf32>
    %c5_i32 = arith.constant 5 : i32
    %c0_111 = arith.constant 0 : index
    %241 = arith.index_cast %c5_i32 : i32 to index
    %c0_112 = arith.constant 0 : index
    %c0_113 = arith.constant 0 : index
    %242 = vector.load %arg2[%c0_111, %241, %c0_112, %c0_113] : memref<1x8x4x326xf32, #tpu.memory_space<vmem>>, vector<1x1x4x326xf32>
    %243 = vector.shape_cast %242 : vector<1x1x4x326xf32> to vector<4x326xf32>
    %cst_114 = arith.constant 0.000000e+00 : f32
    %244 = vector.broadcast %cst_114 : f32 to vector<14x288xf32>
    %245 = vector.extract_strided_slice %243 {offsets = [0, 0], sizes = [4, 288], strides = [1, 1]} : vector<4x326xf32> to vector<4x288xf32>
    %cst_115 = arith.constant dense<0.000000e+00> : vector<14x288xf32>
    %246 = tpu.matmul %1, %245, %cst_115 {dimension_numbers = #tpu.dot_dimension_numbers<[1], [0], [0], [1], [0, 0, 1, 1], [], []>} : vector<14x4xf32>, vector<4x288xf32>, vector<14x288xf32> -> vector<14x288xf32>
    %247 = arith.addf %244, %246 : vector<14x288xf32>
    %248 = vector.extract_strided_slice %243 {offsets = [0, 1], sizes = [4, 288], strides = [1, 1]} : vector<4x326xf32> to vector<4x288xf32>
    %cst_116 = arith.constant dense<0.000000e+00> : vector<14x288xf32>
    %249 = tpu.matmul %3, %248, %cst_116 {dimension_numbers = #tpu.dot_dimension_numbers<[1], [0], [0], [1], [0, 0, 1, 1], [], []>} : vector<14x4xf32>, vector<4x288xf32>, vector<14x288xf32> -> vector<14x288xf32>
    %250 = arith.addf %247, %249 : vector<14x288xf32>
    %251 = vector.extract_strided_slice %243 {offsets = [0, 2], sizes = [4, 288], strides = [1, 1]} : vector<4x326xf32> to vector<4x288xf32>
    %cst_117 = arith.constant dense<0.000000e+00> : vector<14x288xf32>
    %252 = tpu.matmul %5, %251, %cst_117 {dimension_numbers = #tpu.dot_dimension_numbers<[1], [0], [0], [1], [0, 0, 1, 1], [], []>} : vector<14x4xf32>, vector<4x288xf32>, vector<14x288xf32> -> vector<14x288xf32>
    %253 = arith.addf %250, %252 : vector<14x288xf32>
    %254 = vector.extract_strided_slice %243 {offsets = [0, 18], sizes = [4, 288], strides = [1, 1]} : vector<4x326xf32> to vector<4x288xf32>
    %cst_118 = arith.constant dense<0.000000e+00> : vector<14x288xf32>
    %255 = tpu.matmul %7, %254, %cst_118 {dimension_numbers = #tpu.dot_dimension_numbers<[1], [0], [0], [1], [0, 0, 1, 1], [], []>} : vector<14x4xf32>, vector<4x288xf32>, vector<14x288xf32> -> vector<14x288xf32>
    %256 = arith.addf %253, %255 : vector<14x288xf32>
    %257 = vector.extract_strided_slice %243 {offsets = [0, 19], sizes = [4, 288], strides = [1, 1]} : vector<4x326xf32> to vector<4x288xf32>
    %cst_119 = arith.constant dense<0.000000e+00> : vector<14x288xf32>
    %258 = tpu.matmul %9, %257, %cst_119 {dimension_numbers = #tpu.dot_dimension_numbers<[1], [0], [0], [1], [0, 0, 1, 1], [], []>} : vector<14x4xf32>, vector<4x288xf32>, vector<14x288xf32> -> vector<14x288xf32>
    %259 = arith.addf %256, %258 : vector<14x288xf32>
    %260 = vector.extract_strided_slice %243 {offsets = [0, 20], sizes = [4, 288], strides = [1, 1]} : vector<4x326xf32> to vector<4x288xf32>
    %cst_120 = arith.constant dense<0.000000e+00> : vector<14x288xf32>
    %261 = tpu.matmul %11, %260, %cst_120 {dimension_numbers = #tpu.dot_dimension_numbers<[1], [0], [0], [1], [0, 0, 1, 1], [], []>} : vector<14x4xf32>, vector<4x288xf32>, vector<14x288xf32> -> vector<14x288xf32>
    %262 = arith.addf %259, %261 : vector<14x288xf32>
    %263 = vector.extract_strided_slice %243 {offsets = [0, 36], sizes = [4, 288], strides = [1, 1]} : vector<4x326xf32> to vector<4x288xf32>
    %cst_121 = arith.constant dense<0.000000e+00> : vector<14x288xf32>
    %264 = tpu.matmul %13, %263, %cst_121 {dimension_numbers = #tpu.dot_dimension_numbers<[1], [0], [0], [1], [0, 0, 1, 1], [], []>} : vector<14x4xf32>, vector<4x288xf32>, vector<14x288xf32> -> vector<14x288xf32>
    %265 = arith.addf %262, %264 : vector<14x288xf32>
    %266 = vector.extract_strided_slice %243 {offsets = [0, 37], sizes = [4, 288], strides = [1, 1]} : vector<4x326xf32> to vector<4x288xf32>
    %cst_122 = arith.constant dense<0.000000e+00> : vector<14x288xf32>
    %267 = tpu.matmul %15, %266, %cst_122 {dimension_numbers = #tpu.dot_dimension_numbers<[1], [0], [0], [1], [0, 0, 1, 1], [], []>} : vector<14x4xf32>, vector<4x288xf32>, vector<14x288xf32> -> vector<14x288xf32>
    %268 = arith.addf %265, %267 : vector<14x288xf32>
    %269 = vector.extract_strided_slice %243 {offsets = [0, 38], sizes = [4, 288], strides = [1, 1]} : vector<4x326xf32> to vector<4x288xf32>
    %cst_123 = arith.constant dense<0.000000e+00> : vector<14x288xf32>
    %270 = tpu.matmul %17, %269, %cst_123 {dimension_numbers = #tpu.dot_dimension_numbers<[1], [0], [0], [1], [0, 0, 1, 1], [], []>} : vector<14x4xf32>, vector<4x288xf32>, vector<14x288xf32> -> vector<14x288xf32>
    %271 = arith.addf %268, %270 : vector<14x288xf32>
    %c0_124 = arith.constant 0 : index
    %272 = arith.index_cast %c5_i32 : i32 to index
    %c0_125 = arith.constant 0 : index
    %c0_126 = arith.constant 0 : index
    %273 = vector.load %arg5[%c0_124, %272, %c0_125, %c0_126] : memref<1x8x14x288xf32, #tpu.memory_space<vmem>>, vector<1x1x14x288xf32>
    %274 = vector.shape_cast %273 : vector<1x1x14x288xf32> to vector<14x288xf32>
    %275 = vector.shape_cast %271 : vector<14x288xf32> to vector<1x1x14x288xf32>
    tpu.vector_store %arg5[%c0_124, %272, %c0_125, %c0_126], %275 {strides = array<i32>} : memref<1x8x14x288xf32, #tpu.memory_space<vmem>>, vector<1x1x14x288xf32>,
    %276 = vector.broadcast %18 : vector<1x288xf32> to vector<14x288xf32>
    %277 = arith.mulf %271, %276 : vector<14x288xf32>
    %cst_127 = arith.constant dense<0.000000e+00> : vector<14xf32>
    %278 = vector.multi_reduction <add>, %277, %cst_127 [1] : vector<14x288xf32> to vector<14xf32>
    %279 = vector.shape_cast %278 : vector<14xf32> to vector<14x1xf32>
    %280 = arith.addf %236, %279 : vector<14x1xf32>
    %281 = arith.mulf %277, %271 : vector<14x288xf32>
    %cst_128 = arith.constant dense<0.000000e+00> : vector<14xf32>
    %282 = vector.multi_reduction <add>, %281, %cst_128 [1] : vector<14x288xf32> to vector<14xf32>
    %283 = vector.shape_cast %282 : vector<14xf32> to vector<14x1xf32>
    %284 = arith.addf %240, %283 : vector<14x1xf32>
    %c6_i32 = arith.constant 6 : i32
    %c0_129 = arith.constant 0 : index
    %285 = arith.index_cast %c6_i32 : i32 to index
    %c0_130 = arith.constant 0 : index
    %c0_131 = arith.constant 0 : index
    %286 = vector.load %arg2[%c0_129, %285, %c0_130, %c0_131] : memref<1x8x4x326xf32, #tpu.memory_space<vmem>>, vector<1x1x4x326xf32>
    %287 = vector.shape_cast %286 : vector<1x1x4x326xf32> to vector<4x326xf32>
    %cst_132 = arith.constant 0.000000e+00 : f32
    %288 = vector.broadcast %cst_132 : f32 to vector<14x288xf32>
    %289 = vector.extract_strided_slice %287 {offsets = [0, 0], sizes = [4, 288], strides = [1, 1]} : vector<4x326xf32> to vector<4x288xf32>
    %cst_133 = arith.constant dense<0.000000e+00> : vector<14x288xf32>
    %290 = tpu.matmul %1, %289, %cst_133 {dimension_numbers = #tpu.dot_dimension_numbers<[1], [0], [0], [1], [0, 0, 1, 1], [], []>} : vector<14x4xf32>, vector<4x288xf32>, vector<14x288xf32> -> vector<14x288xf32>
    %291 = arith.addf %288, %290 : vector<14x288xf32>
    %292 = vector.extract_strided_slice %287 {offsets = [0, 1], sizes = [4, 288], strides = [1, 1]} : vector<4x326xf32> to vector<4x288xf32>
    %cst_134 = arith.constant dense<0.000000e+00> : vector<14x288xf32>
    %293 = tpu.matmul %3, %292, %cst_134 {dimension_numbers = #tpu.dot_dimension_numbers<[1], [0], [0], [1], [0, 0, 1, 1], [], []>} : vector<14x4xf32>, vector<4x288xf32>, vector<14x288xf32> -> vector<14x288xf32>
    %294 = arith.addf %291, %293 : vector<14x288xf32>
    %295 = vector.extract_strided_slice %287 {offsets = [0, 2], sizes = [4, 288], strides = [1, 1]} : vector<4x326xf32> to vector<4x288xf32>
    %cst_135 = arith.constant dense<0.000000e+00> : vector<14x288xf32>
    %296 = tpu.matmul %5, %295, %cst_135 {dimension_numbers = #tpu.dot_dimension_numbers<[1], [0], [0], [1], [0, 0, 1, 1], [], []>} : vector<14x4xf32>, vector<4x288xf32>, vector<14x288xf32> -> vector<14x288xf32>
    %297 = arith.addf %294, %296 : vector<14x288xf32>
    %298 = vector.extract_strided_slice %287 {offsets = [0, 18], sizes = [4, 288], strides = [1, 1]} : vector<4x326xf32> to vector<4x288xf32>
    %cst_136 = arith.constant dense<0.000000e+00> : vector<14x288xf32>
    %299 = tpu.matmul %7, %298, %cst_136 {dimension_numbers = #tpu.dot_dimension_numbers<[1], [0], [0], [1], [0, 0, 1, 1], [], []>} : vector<14x4xf32>, vector<4x288xf32>, vector<14x288xf32> -> vector<14x288xf32>
    %300 = arith.addf %297, %299 : vector<14x288xf32>
    %301 = vector.extract_strided_slice %287 {offsets = [0, 19], sizes = [4, 288], strides = [1, 1]} : vector<4x326xf32> to vector<4x288xf32>
    %cst_137 = arith.constant dense<0.000000e+00> : vector<14x288xf32>
    %302 = tpu.matmul %9, %301, %cst_137 {dimension_numbers = #tpu.dot_dimension_numbers<[1], [0], [0], [1], [0, 0, 1, 1], [], []>} : vector<14x4xf32>, vector<4x288xf32>, vector<14x288xf32> -> vector<14x288xf32>
    %303 = arith.addf %300, %302 : vector<14x288xf32>
    %304 = vector.extract_strided_slice %287 {offsets = [0, 20], sizes = [4, 288], strides = [1, 1]} : vector<4x326xf32> to vector<4x288xf32>
    %cst_138 = arith.constant dense<0.000000e+00> : vector<14x288xf32>
    %305 = tpu.matmul %11, %304, %cst_138 {dimension_numbers = #tpu.dot_dimension_numbers<[1], [0], [0], [1], [0, 0, 1, 1], [], []>} : vector<14x4xf32>, vector<4x288xf32>, vector<14x288xf32> -> vector<14x288xf32>
    %306 = arith.addf %303, %305 : vector<14x288xf32>
    %307 = vector.extract_strided_slice %287 {offsets = [0, 36], sizes = [4, 288], strides = [1, 1]} : vector<4x326xf32> to vector<4x288xf32>
    %cst_139 = arith.constant dense<0.000000e+00> : vector<14x288xf32>
    %308 = tpu.matmul %13, %307, %cst_139 {dimension_numbers = #tpu.dot_dimension_numbers<[1], [0], [0], [1], [0, 0, 1, 1], [], []>} : vector<14x4xf32>, vector<4x288xf32>, vector<14x288xf32> -> vector<14x288xf32>
    %309 = arith.addf %306, %308 : vector<14x288xf32>
    %310 = vector.extract_strided_slice %287 {offsets = [0, 37], sizes = [4, 288], strides = [1, 1]} : vector<4x326xf32> to vector<4x288xf32>
    %cst_140 = arith.constant dense<0.000000e+00> : vector<14x288xf32>
    %311 = tpu.matmul %15, %310, %cst_140 {dimension_numbers = #tpu.dot_dimension_numbers<[1], [0], [0], [1], [0, 0, 1, 1], [], []>} : vector<14x4xf32>, vector<4x288xf32>, vector<14x288xf32> -> vector<14x288xf32>
    %312 = arith.addf %309, %311 : vector<14x288xf32>
    %313 = vector.extract_strided_slice %287 {offsets = [0, 38], sizes = [4, 288], strides = [1, 1]} : vector<4x326xf32> to vector<4x288xf32>
    %cst_141 = arith.constant dense<0.000000e+00> : vector<14x288xf32>
    %314 = tpu.matmul %17, %313, %cst_141 {dimension_numbers = #tpu.dot_dimension_numbers<[1], [0], [0], [1], [0, 0, 1, 1], [], []>} : vector<14x4xf32>, vector<4x288xf32>, vector<14x288xf32> -> vector<14x288xf32>
    %315 = arith.addf %312, %314 : vector<14x288xf32>
    %c0_142 = arith.constant 0 : index
    %316 = arith.index_cast %c6_i32 : i32 to index
    %c0_143 = arith.constant 0 : index
    %c0_144 = arith.constant 0 : index
    %317 = vector.load %arg5[%c0_142, %316, %c0_143, %c0_144] : memref<1x8x14x288xf32, #tpu.memory_space<vmem>>, vector<1x1x14x288xf32>
    %318 = vector.shape_cast %317 : vector<1x1x14x288xf32> to vector<14x288xf32>
    %319 = vector.shape_cast %315 : vector<14x288xf32> to vector<1x1x14x288xf32>
    tpu.vector_store %arg5[%c0_142, %316, %c0_143, %c0_144], %319 {strides = array<i32>} : memref<1x8x14x288xf32, #tpu.memory_space<vmem>>, vector<1x1x14x288xf32>,
    %320 = vector.broadcast %18 : vector<1x288xf32> to vector<14x288xf32>
    %321 = arith.mulf %315, %320 : vector<14x288xf32>
    %cst_145 = arith.constant dense<0.000000e+00> : vector<14xf32>
    %322 = vector.multi_reduction <add>, %321, %cst_145 [1] : vector<14x288xf32> to vector<14xf32>
    %323 = vector.shape_cast %322 : vector<14xf32> to vector<14x1xf32>
    %324 = arith.addf %280, %323 : vector<14x1xf32>
    %325 = arith.mulf %321, %315 : vector<14x288xf32>
    %cst_146 = arith.constant dense<0.000000e+00> : vector<14xf32>
    %326 = vector.multi_reduction <add>, %325, %cst_146 [1] : vector<14x288xf32> to vector<14xf32>
    %327 = vector.shape_cast %326 : vector<14xf32> to vector<14x1xf32>
    %328 = arith.addf %284, %327 : vector<14x1xf32>
    %c7_i32 = arith.constant 7 : i32
    %c0_147 = arith.constant 0 : index
    %329 = arith.index_cast %c7_i32 : i32 to index
    %c0_148 = arith.constant 0 : index
    %c0_149 = arith.constant 0 : index
    %330 = vector.load %arg2[%c0_147, %329, %c0_148, %c0_149] : memref<1x8x4x326xf32, #tpu.memory_space<vmem>>, vector<1x1x4x326xf32>
    %331 = vector.shape_cast %330 : vector<1x1x4x326xf32> to vector<4x326xf32>
    %cst_150 = arith.constant 0.000000e+00 : f32
    %332 = vector.broadcast %cst_150 : f32 to vector<14x288xf32>
    %333 = vector.extract_strided_slice %331 {offsets = [0, 0], sizes = [4, 288], strides = [1, 1]} : vector<4x326xf32> to vector<4x288xf32>
    %cst_151 = arith.constant dense<0.000000e+00> : vector<14x288xf32>
    %334 = tpu.matmul %1, %333, %cst_151 {dimension_numbers = #tpu.dot_dimension_numbers<[1], [0], [0], [1], [0, 0, 1, 1], [], []>} : vector<14x4xf32>, vector<4x288xf32>, vector<14x288xf32> -> vector<14x288xf32>
    %335 = arith.addf %332, %334 : vector<14x288xf32>
    %336 = vector.extract_strided_slice %331 {offsets = [0, 1], sizes = [4, 288], strides = [1, 1]} : vector<4x326xf32> to vector<4x288xf32>
    %cst_152 = arith.constant dense<0.000000e+00> : vector<14x288xf32>
    %337 = tpu.matmul %3, %336, %cst_152 {dimension_numbers = #tpu.dot_dimension_numbers<[1], [0], [0], [1], [0, 0, 1, 1], [], []>} : vector<14x4xf32>, vector<4x288xf32>, vector<14x288xf32> -> vector<14x288xf32>
    %338 = arith.addf %335, %337 : vector<14x288xf32>
    %339 = vector.extract_strided_slice %331 {offsets = [0, 2], sizes = [4, 288], strides = [1, 1]} : vector<4x326xf32> to vector<4x288xf32>
    %cst_153 = arith.constant dense<0.000000e+00> : vector<14x288xf32>
    %340 = tpu.matmul %5, %339, %cst_153 {dimension_numbers = #tpu.dot_dimension_numbers<[1], [0], [0], [1], [0, 0, 1, 1], [], []>} : vector<14x4xf32>, vector<4x288xf32>, vector<14x288xf32> -> vector<14x288xf32>
    %341 = arith.addf %338, %340 : vector<14x288xf32>
    %342 = vector.extract_strided_slice %331 {offsets = [0, 18], sizes = [4, 288], strides = [1, 1]} : vector<4x326xf32> to vector<4x288xf32>
    %cst_154 = arith.constant dense<0.000000e+00> : vector<14x288xf32>
    %343 = tpu.matmul %7, %342, %cst_154 {dimension_numbers = #tpu.dot_dimension_numbers<[1], [0], [0], [1], [0, 0, 1, 1], [], []>} : vector<14x4xf32>, vector<4x288xf32>, vector<14x288xf32> -> vector<14x288xf32>
    %344 = arith.addf %341, %343 : vector<14x288xf32>
    %345 = vector.extract_strided_slice %331 {offsets = [0, 19], sizes = [4, 288], strides = [1, 1]} : vector<4x326xf32> to vector<4x288xf32>
    %cst_155 = arith.constant dense<0.000000e+00> : vector<14x288xf32>
    %346 = tpu.matmul %9, %345, %cst_155 {dimension_numbers = #tpu.dot_dimension_numbers<[1], [0], [0], [1], [0, 0, 1, 1], [], []>} : vector<14x4xf32>, vector<4x288xf32>, vector<14x288xf32> -> vector<14x288xf32>
    %347 = arith.addf %344, %346 : vector<14x288xf32>
    %348 = vector.extract_strided_slice %331 {offsets = [0, 20], sizes = [4, 288], strides = [1, 1]} : vector<4x326xf32> to vector<4x288xf32>
    %cst_156 = arith.constant dense<0.000000e+00> : vector<14x288xf32>
    %349 = tpu.matmul %11, %348, %cst_156 {dimension_numbers = #tpu.dot_dimension_numbers<[1], [0], [0], [1], [0, 0, 1, 1], [], []>} : vector<14x4xf32>, vector<4x288xf32>, vector<14x288xf32> -> vector<14x288xf32>
    %350 = arith.addf %347, %349 : vector<14x288xf32>
    %351 = vector.extract_strided_slice %331 {offsets = [0, 36], sizes = [4, 288], strides = [1, 1]} : vector<4x326xf32> to vector<4x288xf32>
    %cst_157 = arith.constant dense<0.000000e+00> : vector<14x288xf32>
    %352 = tpu.matmul %13, %351, %cst_157 {dimension_numbers = #tpu.dot_dimension_numbers<[1], [0], [0], [1], [0, 0, 1, 1], [], []>} : vector<14x4xf32>, vector<4x288xf32>, vector<14x288xf32> -> vector<14x288xf32>
    %353 = arith.addf %350, %352 : vector<14x288xf32>
    %354 = vector.extract_strided_slice %331 {offsets = [0, 37], sizes = [4, 288], strides = [1, 1]} : vector<4x326xf32> to vector<4x288xf32>
    %cst_158 = arith.constant dense<0.000000e+00> : vector<14x288xf32>
    %355 = tpu.matmul %15, %354, %cst_158 {dimension_numbers = #tpu.dot_dimension_numbers<[1], [0], [0], [1], [0, 0, 1, 1], [], []>} : vector<14x4xf32>, vector<4x288xf32>, vector<14x288xf32> -> vector<14x288xf32>
    %356 = arith.addf %353, %355 : vector<14x288xf32>
    %357 = vector.extract_strided_slice %331 {offsets = [0, 38], sizes = [4, 288], strides = [1, 1]} : vector<4x326xf32> to vector<4x288xf32>
    %cst_159 = arith.constant dense<0.000000e+00> : vector<14x288xf32>
    %358 = tpu.matmul %17, %357, %cst_159 {dimension_numbers = #tpu.dot_dimension_numbers<[1], [0], [0], [1], [0, 0, 1, 1], [], []>} : vector<14x4xf32>, vector<4x288xf32>, vector<14x288xf32> -> vector<14x288xf32>
    %359 = arith.addf %356, %358 : vector<14x288xf32>
    %c0_160 = arith.constant 0 : index
    %360 = arith.index_cast %c7_i32 : i32 to index
    %c0_161 = arith.constant 0 : index
    %c0_162 = arith.constant 0 : index
    %361 = vector.load %arg5[%c0_160, %360, %c0_161, %c0_162] : memref<1x8x14x288xf32, #tpu.memory_space<vmem>>, vector<1x1x14x288xf32>
    %362 = vector.shape_cast %361 : vector<1x1x14x288xf32> to vector<14x288xf32>
    %363 = vector.shape_cast %359 : vector<14x288xf32> to vector<1x1x14x288xf32>
    tpu.vector_store %arg5[%c0_160, %360, %c0_161, %c0_162], %363 {strides = array<i32>} : memref<1x8x14x288xf32, #tpu.memory_space<vmem>>, vector<1x1x14x288xf32>,
    %364 = vector.broadcast %18 : vector<1x288xf32> to vector<14x288xf32>
    %365 = arith.mulf %359, %364 : vector<14x288xf32>
    %cst_163 = arith.constant dense<0.000000e+00> : vector<14xf32>
    %366 = vector.multi_reduction <add>, %365, %cst_163 [1] : vector<14x288xf32> to vector<14xf32>
    %367 = vector.shape_cast %366 : vector<14xf32> to vector<14x1xf32>
    %368 = arith.addf %324, %367 : vector<14x1xf32>
    %369 = arith.mulf %365, %359 : vector<14x288xf32>
    %cst_164 = arith.constant dense<0.000000e+00> : vector<14xf32>
    %370 = vector.multi_reduction <add>, %369, %cst_164 [1] : vector<14x288xf32> to vector<14xf32>
    %371 = vector.shape_cast %370 : vector<14xf32> to vector<14x1xf32>
    %372 = arith.addf %328, %371 : vector<14x1xf32>
    %c8_i32 = arith.constant 8 : i32
    %c0_165 = arith.constant 0 : index
    %c0_166 = arith.constant 0 : index
    %c0_167 = arith.constant 0 : index
    %c0_168 = arith.constant 0 : index
    %373 = vector.load %arg6[%c0_165, %c0_166, %c0_167, %c0_168] : memref<1x1x14x1xf32, #tpu.memory_space<vmem>>, vector<1x1x14x1xf32>
    %374 = vector.shape_cast %373 : vector<1x1x14x1xf32> to vector<14x1xf32>
    %375 = vector.shape_cast %368 : vector<14x1xf32> to vector<1x1x14x1xf32>
    tpu.vector_store %arg6[%c0_165, %c0_166, %c0_167, %c0_168], %375 {strides = array<i32>} : memref<1x1x14x1xf32, #tpu.memory_space<vmem>>, vector<1x1x14x1xf32>,
    %c0_169 = arith.constant 0 : index
    %c0_170 = arith.constant 0 : index
    %c0_171 = arith.constant 0 : index
    %c0_172 = arith.constant 0 : index
    %376 = vector.load %arg7[%c0_169, %c0_170, %c0_171, %c0_172] : memref<1x1x14x1xf32, #tpu.memory_space<vmem>>, vector<1x1x14x1xf32>
    %377 = vector.shape_cast %376 : vector<1x1x14x1xf32> to vector<14x1xf32>
    %378 = vector.shape_cast %372 : vector<14x1xf32> to vector<1x1x14x1xf32>
    tpu.vector_store %arg7[%c0_169, %c0_170, %c0_171, %c0_172], %378 {strides = array<i32>} : memref<1x1x14x1xf32, #tpu.memory_space<vmem>>, vector<1x1x14x1xf32>,
    return
  }
  func.func @transform_0(%arg0: i32, %arg1: i32) -> (i32, i32, i32, i32) {
    %c0_i32 = arith.constant 0 : i32
    %c0_i32_0 = arith.constant 0 : i32
    %c0_i32_1 = arith.constant 0 : i32
    return %arg0, %arg1, %c0_i32, %c0_i32_0 : i32, i32, i32, i32
  }
  func.func @transform_1(%arg0: i32, %arg1: i32) -> (i32, i32, i32) {
    %c0_i32 = arith.constant 0 : i32
    %c0_i32_0 = arith.constant 0 : i32
    %c0_i32_1 = arith.constant 0 : i32
    %c0_i32_2 = arith.constant 0 : i32
    return %c0_i32, %c0_i32_0, %c0_i32_1 : i32, i32, i32
  }
  func.func @transform_2(%arg0: i32, %arg1: i32) -> (i32, i32) {
    %c0_i32 = arith.constant 0 : i32
    %c0_i32_0 = arith.constant 0 : i32
    %c0_i32_1 = arith.constant 0 : i32
    return %c0_i32, %c0_i32_0 : i32, i32
  }
  func.func @transform_3(%arg0: i32, %arg1: i32) -> (i32, i32, i32, i32) {
    %c0_i32 = arith.constant 0 : i32
    %c0_i32_0 = arith.constant 0 : i32
    %c0_i32_1 = arith.constant 0 : i32
    return %arg0, %arg1, %c0_i32, %c0_i32_0 : i32, i32, i32, i32
  }
  func.func @transform_4(%arg0: i32, %arg1: i32) -> (i32, i32, i32, i32) {
    %c0_i32 = arith.constant 0 : i32
    %c0_i32_0 = arith.constant 0 : i32
    %c0_i32_1 = arith.constant 0 : i32
    return %arg0, %arg1, %c0_i32, %c0_i32_0 : i32, i32, i32, i32
  }
  func.func @transform_5(%arg0: i32, %arg1: i32) -> (i32, i32, i32, i32) {
    %c0_i32 = arith.constant 0 : i32
    %c0_i32_0 = arith.constant 0 : i32
    %c0_i32_1 = arith.constant 0 : i32
    return %arg0, %arg1, %c0_i32, %c0_i32_0 : i32, i32, i32, i32
  }
}

module attributes {stable_mosaic.version = 11 : i64} {
  func.func @kernel(%arg0: i32, %arg1: memref<1x8x14x288xf32, #tpu.memory_space<vmem>>, %arg2: memref<14x1xf32, #tpu.memory_space<vmem>>, %arg3: memref<14x1xf32, #tpu.memory_space<vmem>>, %arg4: memref<3x8x14xf32, #tpu.memory_space<vmem>>, %arg5: memref<8x1xf32, #tpu.memory_space<vmem>>, %arg6: memref<1x8x8x288xf32, #tpu.memory_space<vmem>>) attributes {dimension_semantics = [#tpu.dimension_semantics<parallel>], iteration_bounds = array<i64: 2>, scalar_prefetch = 0 : i64, scratch_operands = 0 : i64, tpu.core_type = #tpu.core_type<tc>, window_params = [{transform_indices = @transform_0, window_bounds = array<i64: 1, 8, 14, 288>}, {pipeline_mode = #tpu.pipeline_mode<synchronous>, transform_indices = @transform_1, window_bounds = array<i64: 14, 1>}, {pipeline_mode = #tpu.pipeline_mode<synchronous>, transform_indices = @transform_2, window_bounds = array<i64: 14, 1>}, {pipeline_mode = #tpu.pipeline_mode<synchronous>, transform_indices = @transform_3, window_bounds = array<i64: 3, 8, 14>}, {pipeline_mode = #tpu.pipeline_mode<synchronous>, transform_indices = @transform_4, window_bounds = array<i64: 8, 1>}, {transform_indices = @transform_5, window_bounds = array<i64: 1, 8, 8, 288>}]} {
    %c0 = arith.constant 0 : index
    %c0_0 = arith.constant 0 : index
    %0 = vector.load %arg2[%c0, %c0_0] : memref<14x1xf32, #tpu.memory_space<vmem>>, vector<14x1xf32>
    %c0_1 = arith.constant 0 : index
    %c0_2 = arith.constant 0 : index
    %1 = vector.load %arg3[%c0_1, %c0_2] : memref<14x1xf32, #tpu.memory_space<vmem>>, vector<14x1xf32>
    %c0_3 = arith.constant 0 : index
    %c0_4 = arith.constant 0 : index
    %2 = vector.load %arg5[%c0_3, %c0_4] : memref<8x1xf32, #tpu.memory_space<vmem>>, vector<8x1xf32>
    %c0_5 = arith.constant 0 : index
    %c0_6 = arith.constant 0 : index
    %c0_7 = arith.constant 0 : index
    %3 = vector.load %arg4[%c0_5, %c0_6, %c0_7] : memref<3x8x14xf32, #tpu.memory_space<vmem>>, vector<1x8x14xf32>
    %4 = vector.shape_cast %3 : vector<1x8x14xf32> to vector<8x14xf32>
    %c1 = arith.constant 1 : index
    %c0_8 = arith.constant 0 : index
    %c0_9 = arith.constant 0 : index
    %5 = vector.load %arg4[%c1, %c0_8, %c0_9] : memref<3x8x14xf32, #tpu.memory_space<vmem>>, vector<1x8x14xf32>
    %6 = vector.shape_cast %5 : vector<1x8x14xf32> to vector<8x14xf32>
    %c2 = arith.constant 2 : index
    %c0_10 = arith.constant 0 : index
    %c0_11 = arith.constant 0 : index
    %7 = vector.load %arg4[%c2, %c0_10, %c0_11] : memref<3x8x14xf32, #tpu.memory_space<vmem>>, vector<1x8x14xf32>
    %8 = vector.shape_cast %7 : vector<1x8x14xf32> to vector<8x14xf32>
    %c0_i32 = arith.constant 0 : i32
    %cst = arith.constant 0.000000e+00 : f32
    %9 = vector.broadcast %cst : f32 to vector<8x288xf32>
    %c1_i32 = arith.constant 1 : i32
    %10 = arith.muli %c0_i32, %c1_i32 : i32
    %c1_i32_12 = arith.constant 1 : i32
    %11 = arith.subi %10, %c1_i32_12 : i32
    %c0_i32_13 = arith.constant 0 : i32
    %12 = arith.addi %11, %c0_i32_13 : i32
    %c0_i32_14 = arith.constant 0 : i32
    %c7_i32 = arith.constant 7 : i32
    %13 = arith.maxsi %c0_i32_14, %12 : i32
    %14 = arith.minsi %c7_i32, %13 : i32
    %c0_15 = arith.constant 0 : index
    %15 = arith.index_cast %14 : i32 to index
    %c0_16 = arith.constant 0 : index
    %c0_17 = arith.constant 0 : index
    %16 = vector.load %arg1[%c0_15, %15, %c0_16, %c0_17] : memref<1x8x14x288xf32, #tpu.memory_space<vmem>>, vector<1x1x14x288xf32>
    %17 = vector.shape_cast %16 : vector<1x1x14x288xf32> to vector<14x288xf32>
    %18 = vector.broadcast %0 : vector<14x1xf32> to vector<14x288xf32>
    %19 = arith.mulf %17, %18 : vector<14x288xf32>
    %20 = vector.broadcast %1 : vector<14x1xf32> to vector<14x288xf32>
    %21 = arith.addf %19, %20 : vector<14x288xf32>
    %cst_18 = arith.constant 0.000000e+00 : f32
    %22 = vector.broadcast %cst_18 : f32 to vector<14x288xf32>
    %23 = arith.maximumf %21, %22 : vector<14x288xf32>
    %cst_19 = arith.constant dense<0.000000e+00> : vector<8x288xf32>
    %24 = tpu.matmul %4, %23, %cst_19 {dimension_numbers = #tpu.dot_dimension_numbers<[1], [0], [0], [1], [0, 0, 1, 1], [], []>} : vector<8x14xf32>, vector<14x288xf32>, vector<8x288xf32> -> vector<8x288xf32>
    %c0_i32_20 = arith.constant 0 : i32
    %25 = arith.cmpi sge, %12, %c0_i32_20 : i32
    %c8_i32 = arith.constant 8 : i32
    %26 = arith.cmpi slt, %12, %c8_i32 : i32
    %27 = arith.andi %25, %26 : i1
    %cst_21 = arith.constant 0.000000e+00 : f32
    %28 = vector.broadcast %cst_21 : f32 to vector<8x288xf32>
    %29 = arith.select %27, %24, %28 : vector<8x288xf32>
    %30 = arith.addf %9, %29 : vector<8x288xf32>
    %c1_i32_22 = arith.constant 1 : i32
    %31 = arith.muli %c0_i32, %c1_i32_22 : i32
    %c1_i32_23 = arith.constant 1 : i32
    %32 = arith.subi %31, %c1_i32_23 : i32
    %c1_i32_24 = arith.constant 1 : i32
    %33 = arith.addi %32, %c1_i32_24 : i32
    %c0_i32_25 = arith.constant 0 : i32
    %c7_i32_26 = arith.constant 7 : i32
    %34 = arith.maxsi %c0_i32_25, %33 : i32
    %35 = arith.minsi %c7_i32_26, %34 : i32
    %c0_27 = arith.constant 0 : index
    %36 = arith.index_cast %35 : i32 to index
    %c0_28 = arith.constant 0 : index
    %c0_29 = arith.constant 0 : index
    %37 = vector.load %arg1[%c0_27, %36, %c0_28, %c0_29] : memref<1x8x14x288xf32, #tpu.memory_space<vmem>>, vector<1x1x14x288xf32>
    %38 = vector.shape_cast %37 : vector<1x1x14x288xf32> to vector<14x288xf32>
    %39 = vector.broadcast %0 : vector<14x1xf32> to vector<14x288xf32>
    %40 = arith.mulf %38, %39 : vector<14x288xf32>
    %41 = vector.broadcast %1 : vector<14x1xf32> to vector<14x288xf32>
    %42 = arith.addf %40, %41 : vector<14x288xf32>
    %cst_30 = arith.constant 0.000000e+00 : f32
    %43 = vector.broadcast %cst_30 : f32 to vector<14x288xf32>
    %44 = arith.maximumf %42, %43 : vector<14x288xf32>
    %cst_31 = arith.constant dense<0.000000e+00> : vector<8x288xf32>
    %45 = tpu.matmul %6, %44, %cst_31 {dimension_numbers = #tpu.dot_dimension_numbers<[1], [0], [0], [1], [0, 0, 1, 1], [], []>} : vector<8x14xf32>, vector<14x288xf32>, vector<8x288xf32> -> vector<8x288xf32>
    %c0_i32_32 = arith.constant 0 : i32
    %46 = arith.cmpi sge, %33, %c0_i32_32 : i32
    %c8_i32_33 = arith.constant 8 : i32
    %47 = arith.cmpi slt, %33, %c8_i32_33 : i32
    %48 = arith.andi %46, %47 : i1
    %cst_34 = arith.constant 0.000000e+00 : f32
    %49 = vector.broadcast %cst_34 : f32 to vector<8x288xf32>
    %50 = arith.select %48, %45, %49 : vector<8x288xf32>
    %51 = arith.addf %30, %50 : vector<8x288xf32>
    %c1_i32_35 = arith.constant 1 : i32
    %52 = arith.muli %c0_i32, %c1_i32_35 : i32
    %c1_i32_36 = arith.constant 1 : i32
    %53 = arith.subi %52, %c1_i32_36 : i32
    %c2_i32 = arith.constant 2 : i32
    %54 = arith.addi %53, %c2_i32 : i32
    %c0_i32_37 = arith.constant 0 : i32
    %c7_i32_38 = arith.constant 7 : i32
    %55 = arith.maxsi %c0_i32_37, %54 : i32
    %56 = arith.minsi %c7_i32_38, %55 : i32
    %c0_39 = arith.constant 0 : index
    %57 = arith.index_cast %56 : i32 to index
    %c0_40 = arith.constant 0 : index
    %c0_41 = arith.constant 0 : index
    %58 = vector.load %arg1[%c0_39, %57, %c0_40, %c0_41] : memref<1x8x14x288xf32, #tpu.memory_space<vmem>>, vector<1x1x14x288xf32>
    %59 = vector.shape_cast %58 : vector<1x1x14x288xf32> to vector<14x288xf32>
    %60 = vector.broadcast %0 : vector<14x1xf32> to vector<14x288xf32>
    %61 = arith.mulf %59, %60 : vector<14x288xf32>
    %62 = vector.broadcast %1 : vector<14x1xf32> to vector<14x288xf32>
    %63 = arith.addf %61, %62 : vector<14x288xf32>
    %cst_42 = arith.constant 0.000000e+00 : f32
    %64 = vector.broadcast %cst_42 : f32 to vector<14x288xf32>
    %65 = arith.maximumf %63, %64 : vector<14x288xf32>
    %cst_43 = arith.constant dense<0.000000e+00> : vector<8x288xf32>
    %66 = tpu.matmul %8, %65, %cst_43 {dimension_numbers = #tpu.dot_dimension_numbers<[1], [0], [0], [1], [0, 0, 1, 1], [], []>} : vector<8x14xf32>, vector<14x288xf32>, vector<8x288xf32> -> vector<8x288xf32>
    %c0_i32_44 = arith.constant 0 : i32
    %67 = arith.cmpi sge, %54, %c0_i32_44 : i32
    %c8_i32_45 = arith.constant 8 : i32
    %68 = arith.cmpi slt, %54, %c8_i32_45 : i32
    %69 = arith.andi %67, %68 : i1
    %cst_46 = arith.constant 0.000000e+00 : f32
    %70 = vector.broadcast %cst_46 : f32 to vector<8x288xf32>
    %71 = arith.select %69, %66, %70 : vector<8x288xf32>
    %72 = arith.addf %51, %71 : vector<8x288xf32>
    %73 = vector.broadcast %2 : vector<8x1xf32> to vector<8x288xf32>
    %74 = arith.addf %72, %73 : vector<8x288xf32>
    %c0_47 = arith.constant 0 : index
    %75 = arith.index_cast %c0_i32 : i32 to index
    %c0_48 = arith.constant 0 : index
    %c0_49 = arith.constant 0 : index
    %76 = vector.load %arg6[%c0_47, %75, %c0_48, %c0_49] : memref<1x8x8x288xf32, #tpu.memory_space<vmem>>, vector<1x1x8x288xf32>
    %77 = vector.shape_cast %76 : vector<1x1x8x288xf32> to vector<8x288xf32>
    %78 = vector.shape_cast %74 : vector<8x288xf32> to vector<1x1x8x288xf32>
    tpu.vector_store %arg6[%c0_47, %75, %c0_48, %c0_49], %78 {strides = array<i32>} : memref<1x8x8x288xf32, #tpu.memory_space<vmem>>, vector<1x1x8x288xf32>,
    %c1_i32_50 = arith.constant 1 : i32
    %cst_51 = arith.constant 0.000000e+00 : f32
    %79 = vector.broadcast %cst_51 : f32 to vector<8x288xf32>
    %c1_i32_52 = arith.constant 1 : i32
    %80 = arith.muli %c1_i32_50, %c1_i32_52 : i32
    %c1_i32_53 = arith.constant 1 : i32
    %81 = arith.subi %80, %c1_i32_53 : i32
    %c0_i32_54 = arith.constant 0 : i32
    %82 = arith.addi %81, %c0_i32_54 : i32
    %c0_i32_55 = arith.constant 0 : i32
    %c7_i32_56 = arith.constant 7 : i32
    %83 = arith.maxsi %c0_i32_55, %82 : i32
    %84 = arith.minsi %c7_i32_56, %83 : i32
    %c0_57 = arith.constant 0 : index
    %85 = arith.index_cast %84 : i32 to index
    %c0_58 = arith.constant 0 : index
    %c0_59 = arith.constant 0 : index
    %86 = vector.load %arg1[%c0_57, %85, %c0_58, %c0_59] : memref<1x8x14x288xf32, #tpu.memory_space<vmem>>, vector<1x1x14x288xf32>
    %87 = vector.shape_cast %86 : vector<1x1x14x288xf32> to vector<14x288xf32>
    %88 = vector.broadcast %0 : vector<14x1xf32> to vector<14x288xf32>
    %89 = arith.mulf %87, %88 : vector<14x288xf32>
    %90 = vector.broadcast %1 : vector<14x1xf32> to vector<14x288xf32>
    %91 = arith.addf %89, %90 : vector<14x288xf32>
    %cst_60 = arith.constant 0.000000e+00 : f32
    %92 = vector.broadcast %cst_60 : f32 to vector<14x288xf32>
    %93 = arith.maximumf %91, %92 : vector<14x288xf32>
    %cst_61 = arith.constant dense<0.000000e+00> : vector<8x288xf32>
    %94 = tpu.matmul %4, %93, %cst_61 {dimension_numbers = #tpu.dot_dimension_numbers<[1], [0], [0], [1], [0, 0, 1, 1], [], []>} : vector<8x14xf32>, vector<14x288xf32>, vector<8x288xf32> -> vector<8x288xf32>
    %c0_i32_62 = arith.constant 0 : i32
    %95 = arith.cmpi sge, %82, %c0_i32_62 : i32
    %c8_i32_63 = arith.constant 8 : i32
    %96 = arith.cmpi slt, %82, %c8_i32_63 : i32
    %97 = arith.andi %95, %96 : i1
    %cst_64 = arith.constant 0.000000e+00 : f32
    %98 = vector.broadcast %cst_64 : f32 to vector<8x288xf32>
    %99 = arith.select %97, %94, %98 : vector<8x288xf32>
    %100 = arith.addf %79, %99 : vector<8x288xf32>
    %c1_i32_65 = arith.constant 1 : i32
    %101 = arith.muli %c1_i32_50, %c1_i32_65 : i32
    %c1_i32_66 = arith.constant 1 : i32
    %102 = arith.subi %101, %c1_i32_66 : i32
    %c1_i32_67 = arith.constant 1 : i32
    %103 = arith.addi %102, %c1_i32_67 : i32
    %c0_i32_68 = arith.constant 0 : i32
    %c7_i32_69 = arith.constant 7 : i32
    %104 = arith.maxsi %c0_i32_68, %103 : i32
    %105 = arith.minsi %c7_i32_69, %104 : i32
    %c0_70 = arith.constant 0 : index
    %106 = arith.index_cast %105 : i32 to index
    %c0_71 = arith.constant 0 : index
    %c0_72 = arith.constant 0 : index
    %107 = vector.load %arg1[%c0_70, %106, %c0_71, %c0_72] : memref<1x8x14x288xf32, #tpu.memory_space<vmem>>, vector<1x1x14x288xf32>
    %108 = vector.shape_cast %107 : vector<1x1x14x288xf32> to vector<14x288xf32>
    %109 = vector.broadcast %0 : vector<14x1xf32> to vector<14x288xf32>
    %110 = arith.mulf %108, %109 : vector<14x288xf32>
    %111 = vector.broadcast %1 : vector<14x1xf32> to vector<14x288xf32>
    %112 = arith.addf %110, %111 : vector<14x288xf32>
    %cst_73 = arith.constant 0.000000e+00 : f32
    %113 = vector.broadcast %cst_73 : f32 to vector<14x288xf32>
    %114 = arith.maximumf %112, %113 : vector<14x288xf32>
    %cst_74 = arith.constant dense<0.000000e+00> : vector<8x288xf32>
    %115 = tpu.matmul %6, %114, %cst_74 {dimension_numbers = #tpu.dot_dimension_numbers<[1], [0], [0], [1], [0, 0, 1, 1], [], []>} : vector<8x14xf32>, vector<14x288xf32>, vector<8x288xf32> -> vector<8x288xf32>
    %c0_i32_75 = arith.constant 0 : i32
    %116 = arith.cmpi sge, %103, %c0_i32_75 : i32
    %c8_i32_76 = arith.constant 8 : i32
    %117 = arith.cmpi slt, %103, %c8_i32_76 : i32
    %118 = arith.andi %116, %117 : i1
    %cst_77 = arith.constant 0.000000e+00 : f32
    %119 = vector.broadcast %cst_77 : f32 to vector<8x288xf32>
    %120 = arith.select %118, %115, %119 : vector<8x288xf32>
    %121 = arith.addf %100, %120 : vector<8x288xf32>
    %c1_i32_78 = arith.constant 1 : i32
    %122 = arith.muli %c1_i32_50, %c1_i32_78 : i32
    %c1_i32_79 = arith.constant 1 : i32
    %123 = arith.subi %122, %c1_i32_79 : i32
    %c2_i32_80 = arith.constant 2 : i32
    %124 = arith.addi %123, %c2_i32_80 : i32
    %c0_i32_81 = arith.constant 0 : i32
    %c7_i32_82 = arith.constant 7 : i32
    %125 = arith.maxsi %c0_i32_81, %124 : i32
    %126 = arith.minsi %c7_i32_82, %125 : i32
    %c0_83 = arith.constant 0 : index
    %127 = arith.index_cast %126 : i32 to index
    %c0_84 = arith.constant 0 : index
    %c0_85 = arith.constant 0 : index
    %128 = vector.load %arg1[%c0_83, %127, %c0_84, %c0_85] : memref<1x8x14x288xf32, #tpu.memory_space<vmem>>, vector<1x1x14x288xf32>
    %129 = vector.shape_cast %128 : vector<1x1x14x288xf32> to vector<14x288xf32>
    %130 = vector.broadcast %0 : vector<14x1xf32> to vector<14x288xf32>
    %131 = arith.mulf %129, %130 : vector<14x288xf32>
    %132 = vector.broadcast %1 : vector<14x1xf32> to vector<14x288xf32>
    %133 = arith.addf %131, %132 : vector<14x288xf32>
    %cst_86 = arith.constant 0.000000e+00 : f32
    %134 = vector.broadcast %cst_86 : f32 to vector<14x288xf32>
    %135 = arith.maximumf %133, %134 : vector<14x288xf32>
    %cst_87 = arith.constant dense<0.000000e+00> : vector<8x288xf32>
    %136 = tpu.matmul %8, %135, %cst_87 {dimension_numbers = #tpu.dot_dimension_numbers<[1], [0], [0], [1], [0, 0, 1, 1], [], []>} : vector<8x14xf32>, vector<14x288xf32>, vector<8x288xf32> -> vector<8x288xf32>
    %c0_i32_88 = arith.constant 0 : i32
    %137 = arith.cmpi sge, %124, %c0_i32_88 : i32
    %c8_i32_89 = arith.constant 8 : i32
    %138 = arith.cmpi slt, %124, %c8_i32_89 : i32
    %139 = arith.andi %137, %138 : i1
    %cst_90 = arith.constant 0.000000e+00 : f32
    %140 = vector.broadcast %cst_90 : f32 to vector<8x288xf32>
    %141 = arith.select %139, %136, %140 : vector<8x288xf32>
    %142 = arith.addf %121, %141 : vector<8x288xf32>
    %143 = vector.broadcast %2 : vector<8x1xf32> to vector<8x288xf32>
    %144 = arith.addf %142, %143 : vector<8x288xf32>
    %c0_91 = arith.constant 0 : index
    %145 = arith.index_cast %c1_i32_50 : i32 to index
    %c0_92 = arith.constant 0 : index
    %c0_93 = arith.constant 0 : index
    %146 = vector.load %arg6[%c0_91, %145, %c0_92, %c0_93] : memref<1x8x8x288xf32, #tpu.memory_space<vmem>>, vector<1x1x8x288xf32>
    %147 = vector.shape_cast %146 : vector<1x1x8x288xf32> to vector<8x288xf32>
    %148 = vector.shape_cast %144 : vector<8x288xf32> to vector<1x1x8x288xf32>
    tpu.vector_store %arg6[%c0_91, %145, %c0_92, %c0_93], %148 {strides = array<i32>} : memref<1x8x8x288xf32, #tpu.memory_space<vmem>>, vector<1x1x8x288xf32>,
    %c2_i32_94 = arith.constant 2 : i32
    %cst_95 = arith.constant 0.000000e+00 : f32
    %149 = vector.broadcast %cst_95 : f32 to vector<8x288xf32>
    %c1_i32_96 = arith.constant 1 : i32
    %150 = arith.muli %c2_i32_94, %c1_i32_96 : i32
    %c1_i32_97 = arith.constant 1 : i32
    %151 = arith.subi %150, %c1_i32_97 : i32
    %c0_i32_98 = arith.constant 0 : i32
    %152 = arith.addi %151, %c0_i32_98 : i32
    %c0_i32_99 = arith.constant 0 : i32
    %c7_i32_100 = arith.constant 7 : i32
    %153 = arith.maxsi %c0_i32_99, %152 : i32
    %154 = arith.minsi %c7_i32_100, %153 : i32
    %c0_101 = arith.constant 0 : index
    %155 = arith.index_cast %154 : i32 to index
    %c0_102 = arith.constant 0 : index
    %c0_103 = arith.constant 0 : index
    %156 = vector.load %arg1[%c0_101, %155, %c0_102, %c0_103] : memref<1x8x14x288xf32, #tpu.memory_space<vmem>>, vector<1x1x14x288xf32>
    %157 = vector.shape_cast %156 : vector<1x1x14x288xf32> to vector<14x288xf32>
    %158 = vector.broadcast %0 : vector<14x1xf32> to vector<14x288xf32>
    %159 = arith.mulf %157, %158 : vector<14x288xf32>
    %160 = vector.broadcast %1 : vector<14x1xf32> to vector<14x288xf32>
    %161 = arith.addf %159, %160 : vector<14x288xf32>
    %cst_104 = arith.constant 0.000000e+00 : f32
    %162 = vector.broadcast %cst_104 : f32 to vector<14x288xf32>
    %163 = arith.maximumf %161, %162 : vector<14x288xf32>
    %cst_105 = arith.constant dense<0.000000e+00> : vector<8x288xf32>
    %164 = tpu.matmul %4, %163, %cst_105 {dimension_numbers = #tpu.dot_dimension_numbers<[1], [0], [0], [1], [0, 0, 1, 1], [], []>} : vector<8x14xf32>, vector<14x288xf32>, vector<8x288xf32> -> vector<8x288xf32>
    %c0_i32_106 = arith.constant 0 : i32
    %165 = arith.cmpi sge, %152, %c0_i32_106 : i32
    %c8_i32_107 = arith.constant 8 : i32
    %166 = arith.cmpi slt, %152, %c8_i32_107 : i32
    %167 = arith.andi %165, %166 : i1
    %cst_108 = arith.constant 0.000000e+00 : f32
    %168 = vector.broadcast %cst_108 : f32 to vector<8x288xf32>
    %169 = arith.select %167, %164, %168 : vector<8x288xf32>
    %170 = arith.addf %149, %169 : vector<8x288xf32>
    %c1_i32_109 = arith.constant 1 : i32
    %171 = arith.muli %c2_i32_94, %c1_i32_109 : i32
    %c1_i32_110 = arith.constant 1 : i32
    %172 = arith.subi %171, %c1_i32_110 : i32
    %c1_i32_111 = arith.constant 1 : i32
    %173 = arith.addi %172, %c1_i32_111 : i32
    %c0_i32_112 = arith.constant 0 : i32
    %c7_i32_113 = arith.constant 7 : i32
    %174 = arith.maxsi %c0_i32_112, %173 : i32
    %175 = arith.minsi %c7_i32_113, %174 : i32
    %c0_114 = arith.constant 0 : index
    %176 = arith.index_cast %175 : i32 to index
    %c0_115 = arith.constant 0 : index
    %c0_116 = arith.constant 0 : index
    %177 = vector.load %arg1[%c0_114, %176, %c0_115, %c0_116] : memref<1x8x14x288xf32, #tpu.memory_space<vmem>>, vector<1x1x14x288xf32>
    %178 = vector.shape_cast %177 : vector<1x1x14x288xf32> to vector<14x288xf32>
    %179 = vector.broadcast %0 : vector<14x1xf32> to vector<14x288xf32>
    %180 = arith.mulf %178, %179 : vector<14x288xf32>
    %181 = vector.broadcast %1 : vector<14x1xf32> to vector<14x288xf32>
    %182 = arith.addf %180, %181 : vector<14x288xf32>
    %cst_117 = arith.constant 0.000000e+00 : f32
    %183 = vector.broadcast %cst_117 : f32 to vector<14x288xf32>
    %184 = arith.maximumf %182, %183 : vector<14x288xf32>
    %cst_118 = arith.constant dense<0.000000e+00> : vector<8x288xf32>
    %185 = tpu.matmul %6, %184, %cst_118 {dimension_numbers = #tpu.dot_dimension_numbers<[1], [0], [0], [1], [0, 0, 1, 1], [], []>} : vector<8x14xf32>, vector<14x288xf32>, vector<8x288xf32> -> vector<8x288xf32>
    %c0_i32_119 = arith.constant 0 : i32
    %186 = arith.cmpi sge, %173, %c0_i32_119 : i32
    %c8_i32_120 = arith.constant 8 : i32
    %187 = arith.cmpi slt, %173, %c8_i32_120 : i32
    %188 = arith.andi %186, %187 : i1
    %cst_121 = arith.constant 0.000000e+00 : f32
    %189 = vector.broadcast %cst_121 : f32 to vector<8x288xf32>
    %190 = arith.select %188, %185, %189 : vector<8x288xf32>
    %191 = arith.addf %170, %190 : vector<8x288xf32>
    %c1_i32_122 = arith.constant 1 : i32
    %192 = arith.muli %c2_i32_94, %c1_i32_122 : i32
    %c1_i32_123 = arith.constant 1 : i32
    %193 = arith.subi %192, %c1_i32_123 : i32
    %c2_i32_124 = arith.constant 2 : i32
    %194 = arith.addi %193, %c2_i32_124 : i32
    %c0_i32_125 = arith.constant 0 : i32
    %c7_i32_126 = arith.constant 7 : i32
    %195 = arith.maxsi %c0_i32_125, %194 : i32
    %196 = arith.minsi %c7_i32_126, %195 : i32
    %c0_127 = arith.constant 0 : index
    %197 = arith.index_cast %196 : i32 to index
    %c0_128 = arith.constant 0 : index
    %c0_129 = arith.constant 0 : index
    %198 = vector.load %arg1[%c0_127, %197, %c0_128, %c0_129] : memref<1x8x14x288xf32, #tpu.memory_space<vmem>>, vector<1x1x14x288xf32>
    %199 = vector.shape_cast %198 : vector<1x1x14x288xf32> to vector<14x288xf32>
    %200 = vector.broadcast %0 : vector<14x1xf32> to vector<14x288xf32>
    %201 = arith.mulf %199, %200 : vector<14x288xf32>
    %202 = vector.broadcast %1 : vector<14x1xf32> to vector<14x288xf32>
    %203 = arith.addf %201, %202 : vector<14x288xf32>
    %cst_130 = arith.constant 0.000000e+00 : f32
    %204 = vector.broadcast %cst_130 : f32 to vector<14x288xf32>
    %205 = arith.maximumf %203, %204 : vector<14x288xf32>
    %cst_131 = arith.constant dense<0.000000e+00> : vector<8x288xf32>
    %206 = tpu.matmul %8, %205, %cst_131 {dimension_numbers = #tpu.dot_dimension_numbers<[1], [0], [0], [1], [0, 0, 1, 1], [], []>} : vector<8x14xf32>, vector<14x288xf32>, vector<8x288xf32> -> vector<8x288xf32>
    %c0_i32_132 = arith.constant 0 : i32
    %207 = arith.cmpi sge, %194, %c0_i32_132 : i32
    %c8_i32_133 = arith.constant 8 : i32
    %208 = arith.cmpi slt, %194, %c8_i32_133 : i32
    %209 = arith.andi %207, %208 : i1
    %cst_134 = arith.constant 0.000000e+00 : f32
    %210 = vector.broadcast %cst_134 : f32 to vector<8x288xf32>
    %211 = arith.select %209, %206, %210 : vector<8x288xf32>
    %212 = arith.addf %191, %211 : vector<8x288xf32>
    %213 = vector.broadcast %2 : vector<8x1xf32> to vector<8x288xf32>
    %214 = arith.addf %212, %213 : vector<8x288xf32>
    %c0_135 = arith.constant 0 : index
    %215 = arith.index_cast %c2_i32_94 : i32 to index
    %c0_136 = arith.constant 0 : index
    %c0_137 = arith.constant 0 : index
    %216 = vector.load %arg6[%c0_135, %215, %c0_136, %c0_137] : memref<1x8x8x288xf32, #tpu.memory_space<vmem>>, vector<1x1x8x288xf32>
    %217 = vector.shape_cast %216 : vector<1x1x8x288xf32> to vector<8x288xf32>
    %218 = vector.shape_cast %214 : vector<8x288xf32> to vector<1x1x8x288xf32>
    tpu.vector_store %arg6[%c0_135, %215, %c0_136, %c0_137], %218 {strides = array<i32>} : memref<1x8x8x288xf32, #tpu.memory_space<vmem>>, vector<1x1x8x288xf32>,
    %c3_i32 = arith.constant 3 : i32
    %cst_138 = arith.constant 0.000000e+00 : f32
    %219 = vector.broadcast %cst_138 : f32 to vector<8x288xf32>
    %c1_i32_139 = arith.constant 1 : i32
    %220 = arith.muli %c3_i32, %c1_i32_139 : i32
    %c1_i32_140 = arith.constant 1 : i32
    %221 = arith.subi %220, %c1_i32_140 : i32
    %c0_i32_141 = arith.constant 0 : i32
    %222 = arith.addi %221, %c0_i32_141 : i32
    %c0_i32_142 = arith.constant 0 : i32
    %c7_i32_143 = arith.constant 7 : i32
    %223 = arith.maxsi %c0_i32_142, %222 : i32
    %224 = arith.minsi %c7_i32_143, %223 : i32
    %c0_144 = arith.constant 0 : index
    %225 = arith.index_cast %224 : i32 to index
    %c0_145 = arith.constant 0 : index
    %c0_146 = arith.constant 0 : index
    %226 = vector.load %arg1[%c0_144, %225, %c0_145, %c0_146] : memref<1x8x14x288xf32, #tpu.memory_space<vmem>>, vector<1x1x14x288xf32>
    %227 = vector.shape_cast %226 : vector<1x1x14x288xf32> to vector<14x288xf32>
    %228 = vector.broadcast %0 : vector<14x1xf32> to vector<14x288xf32>
    %229 = arith.mulf %227, %228 : vector<14x288xf32>
    %230 = vector.broadcast %1 : vector<14x1xf32> to vector<14x288xf32>
    %231 = arith.addf %229, %230 : vector<14x288xf32>
    %cst_147 = arith.constant 0.000000e+00 : f32
    %232 = vector.broadcast %cst_147 : f32 to vector<14x288xf32>
    %233 = arith.maximumf %231, %232 : vector<14x288xf32>
    %cst_148 = arith.constant dense<0.000000e+00> : vector<8x288xf32>
    %234 = tpu.matmul %4, %233, %cst_148 {dimension_numbers = #tpu.dot_dimension_numbers<[1], [0], [0], [1], [0, 0, 1, 1], [], []>} : vector<8x14xf32>, vector<14x288xf32>, vector<8x288xf32> -> vector<8x288xf32>
    %c0_i32_149 = arith.constant 0 : i32
    %235 = arith.cmpi sge, %222, %c0_i32_149 : i32
    %c8_i32_150 = arith.constant 8 : i32
    %236 = arith.cmpi slt, %222, %c8_i32_150 : i32
    %237 = arith.andi %235, %236 : i1
    %cst_151 = arith.constant 0.000000e+00 : f32
    %238 = vector.broadcast %cst_151 : f32 to vector<8x288xf32>
    %239 = arith.select %237, %234, %238 : vector<8x288xf32>
    %240 = arith.addf %219, %239 : vector<8x288xf32>
    %c1_i32_152 = arith.constant 1 : i32
    %241 = arith.muli %c3_i32, %c1_i32_152 : i32
    %c1_i32_153 = arith.constant 1 : i32
    %242 = arith.subi %241, %c1_i32_153 : i32
    %c1_i32_154 = arith.constant 1 : i32
    %243 = arith.addi %242, %c1_i32_154 : i32
    %c0_i32_155 = arith.constant 0 : i32
    %c7_i32_156 = arith.constant 7 : i32
    %244 = arith.maxsi %c0_i32_155, %243 : i32
    %245 = arith.minsi %c7_i32_156, %244 : i32
    %c0_157 = arith.constant 0 : index
    %246 = arith.index_cast %245 : i32 to index
    %c0_158 = arith.constant 0 : index
    %c0_159 = arith.constant 0 : index
    %247 = vector.load %arg1[%c0_157, %246, %c0_158, %c0_159] : memref<1x8x14x288xf32, #tpu.memory_space<vmem>>, vector<1x1x14x288xf32>
    %248 = vector.shape_cast %247 : vector<1x1x14x288xf32> to vector<14x288xf32>
    %249 = vector.broadcast %0 : vector<14x1xf32> to vector<14x288xf32>
    %250 = arith.mulf %248, %249 : vector<14x288xf32>
    %251 = vector.broadcast %1 : vector<14x1xf32> to vector<14x288xf32>
    %252 = arith.addf %250, %251 : vector<14x288xf32>
    %cst_160 = arith.constant 0.000000e+00 : f32
    %253 = vector.broadcast %cst_160 : f32 to vector<14x288xf32>
    %254 = arith.maximumf %252, %253 : vector<14x288xf32>
    %cst_161 = arith.constant dense<0.000000e+00> : vector<8x288xf32>
    %255 = tpu.matmul %6, %254, %cst_161 {dimension_numbers = #tpu.dot_dimension_numbers<[1], [0], [0], [1], [0, 0, 1, 1], [], []>} : vector<8x14xf32>, vector<14x288xf32>, vector<8x288xf32> -> vector<8x288xf32>
    %c0_i32_162 = arith.constant 0 : i32
    %256 = arith.cmpi sge, %243, %c0_i32_162 : i32
    %c8_i32_163 = arith.constant 8 : i32
    %257 = arith.cmpi slt, %243, %c8_i32_163 : i32
    %258 = arith.andi %256, %257 : i1
    %cst_164 = arith.constant 0.000000e+00 : f32
    %259 = vector.broadcast %cst_164 : f32 to vector<8x288xf32>
    %260 = arith.select %258, %255, %259 : vector<8x288xf32>
    %261 = arith.addf %240, %260 : vector<8x288xf32>
    %c1_i32_165 = arith.constant 1 : i32
    %262 = arith.muli %c3_i32, %c1_i32_165 : i32
    %c1_i32_166 = arith.constant 1 : i32
    %263 = arith.subi %262, %c1_i32_166 : i32
    %c2_i32_167 = arith.constant 2 : i32
    %264 = arith.addi %263, %c2_i32_167 : i32
    %c0_i32_168 = arith.constant 0 : i32
    %c7_i32_169 = arith.constant 7 : i32
    %265 = arith.maxsi %c0_i32_168, %264 : i32
    %266 = arith.minsi %c7_i32_169, %265 : i32
    %c0_170 = arith.constant 0 : index
    %267 = arith.index_cast %266 : i32 to index
    %c0_171 = arith.constant 0 : index
    %c0_172 = arith.constant 0 : index
    %268 = vector.load %arg1[%c0_170, %267, %c0_171, %c0_172] : memref<1x8x14x288xf32, #tpu.memory_space<vmem>>, vector<1x1x14x288xf32>
    %269 = vector.shape_cast %268 : vector<1x1x14x288xf32> to vector<14x288xf32>
    %270 = vector.broadcast %0 : vector<14x1xf32> to vector<14x288xf32>
    %271 = arith.mulf %269, %270 : vector<14x288xf32>
    %272 = vector.broadcast %1 : vector<14x1xf32> to vector<14x288xf32>
    %273 = arith.addf %271, %272 : vector<14x288xf32>
    %cst_173 = arith.constant 0.000000e+00 : f32
    %274 = vector.broadcast %cst_173 : f32 to vector<14x288xf32>
    %275 = arith.maximumf %273, %274 : vector<14x288xf32>
    %cst_174 = arith.constant dense<0.000000e+00> : vector<8x288xf32>
    %276 = tpu.matmul %8, %275, %cst_174 {dimension_numbers = #tpu.dot_dimension_numbers<[1], [0], [0], [1], [0, 0, 1, 1], [], []>} : vector<8x14xf32>, vector<14x288xf32>, vector<8x288xf32> -> vector<8x288xf32>
    %c0_i32_175 = arith.constant 0 : i32
    %277 = arith.cmpi sge, %264, %c0_i32_175 : i32
    %c8_i32_176 = arith.constant 8 : i32
    %278 = arith.cmpi slt, %264, %c8_i32_176 : i32
    %279 = arith.andi %277, %278 : i1
    %cst_177 = arith.constant 0.000000e+00 : f32
    %280 = vector.broadcast %cst_177 : f32 to vector<8x288xf32>
    %281 = arith.select %279, %276, %280 : vector<8x288xf32>
    %282 = arith.addf %261, %281 : vector<8x288xf32>
    %283 = vector.broadcast %2 : vector<8x1xf32> to vector<8x288xf32>
    %284 = arith.addf %282, %283 : vector<8x288xf32>
    %c0_178 = arith.constant 0 : index
    %285 = arith.index_cast %c3_i32 : i32 to index
    %c0_179 = arith.constant 0 : index
    %c0_180 = arith.constant 0 : index
    %286 = vector.load %arg6[%c0_178, %285, %c0_179, %c0_180] : memref<1x8x8x288xf32, #tpu.memory_space<vmem>>, vector<1x1x8x288xf32>
    %287 = vector.shape_cast %286 : vector<1x1x8x288xf32> to vector<8x288xf32>
    %288 = vector.shape_cast %284 : vector<8x288xf32> to vector<1x1x8x288xf32>
    tpu.vector_store %arg6[%c0_178, %285, %c0_179, %c0_180], %288 {strides = array<i32>} : memref<1x8x8x288xf32, #tpu.memory_space<vmem>>, vector<1x1x8x288xf32>,
    %c4_i32 = arith.constant 4 : i32
    %cst_181 = arith.constant 0.000000e+00 : f32
    %289 = vector.broadcast %cst_181 : f32 to vector<8x288xf32>
    %c1_i32_182 = arith.constant 1 : i32
    %290 = arith.muli %c4_i32, %c1_i32_182 : i32
    %c1_i32_183 = arith.constant 1 : i32
    %291 = arith.subi %290, %c1_i32_183 : i32
    %c0_i32_184 = arith.constant 0 : i32
    %292 = arith.addi %291, %c0_i32_184 : i32
    %c0_i32_185 = arith.constant 0 : i32
    %c7_i32_186 = arith.constant 7 : i32
    %293 = arith.maxsi %c0_i32_185, %292 : i32
    %294 = arith.minsi %c7_i32_186, %293 : i32
    %c0_187 = arith.constant 0 : index
    %295 = arith.index_cast %294 : i32 to index
    %c0_188 = arith.constant 0 : index
    %c0_189 = arith.constant 0 : index
    %296 = vector.load %arg1[%c0_187, %295, %c0_188, %c0_189] : memref<1x8x14x288xf32, #tpu.memory_space<vmem>>, vector<1x1x14x288xf32>
    %297 = vector.shape_cast %296 : vector<1x1x14x288xf32> to vector<14x288xf32>
    %298 = vector.broadcast %0 : vector<14x1xf32> to vector<14x288xf32>
    %299 = arith.mulf %297, %298 : vector<14x288xf32>
    %300 = vector.broadcast %1 : vector<14x1xf32> to vector<14x288xf32>
    %301 = arith.addf %299, %300 : vector<14x288xf32>
    %cst_190 = arith.constant 0.000000e+00 : f32
    %302 = vector.broadcast %cst_190 : f32 to vector<14x288xf32>
    %303 = arith.maximumf %301, %302 : vector<14x288xf32>
    %cst_191 = arith.constant dense<0.000000e+00> : vector<8x288xf32>
    %304 = tpu.matmul %4, %303, %cst_191 {dimension_numbers = #tpu.dot_dimension_numbers<[1], [0], [0], [1], [0, 0, 1, 1], [], []>} : vector<8x14xf32>, vector<14x288xf32>, vector<8x288xf32> -> vector<8x288xf32>
    %c0_i32_192 = arith.constant 0 : i32
    %305 = arith.cmpi sge, %292, %c0_i32_192 : i32
    %c8_i32_193 = arith.constant 8 : i32
    %306 = arith.cmpi slt, %292, %c8_i32_193 : i32
    %307 = arith.andi %305, %306 : i1
    %cst_194 = arith.constant 0.000000e+00 : f32
    %308 = vector.broadcast %cst_194 : f32 to vector<8x288xf32>
    %309 = arith.select %307, %304, %308 : vector<8x288xf32>
    %310 = arith.addf %289, %309 : vector<8x288xf32>
    %c1_i32_195 = arith.constant 1 : i32
    %311 = arith.muli %c4_i32, %c1_i32_195 : i32
    %c1_i32_196 = arith.constant 1 : i32
    %312 = arith.subi %311, %c1_i32_196 : i32
    %c1_i32_197 = arith.constant 1 : i32
    %313 = arith.addi %312, %c1_i32_197 : i32
    %c0_i32_198 = arith.constant 0 : i32
    %c7_i32_199 = arith.constant 7 : i32
    %314 = arith.maxsi %c0_i32_198, %313 : i32
    %315 = arith.minsi %c7_i32_199, %314 : i32
    %c0_200 = arith.constant 0 : index
    %316 = arith.index_cast %315 : i32 to index
    %c0_201 = arith.constant 0 : index
    %c0_202 = arith.constant 0 : index
    %317 = vector.load %arg1[%c0_200, %316, %c0_201, %c0_202] : memref<1x8x14x288xf32, #tpu.memory_space<vmem>>, vector<1x1x14x288xf32>
    %318 = vector.shape_cast %317 : vector<1x1x14x288xf32> to vector<14x288xf32>
    %319 = vector.broadcast %0 : vector<14x1xf32> to vector<14x288xf32>
    %320 = arith.mulf %318, %319 : vector<14x288xf32>
    %321 = vector.broadcast %1 : vector<14x1xf32> to vector<14x288xf32>
    %322 = arith.addf %320, %321 : vector<14x288xf32>
    %cst_203 = arith.constant 0.000000e+00 : f32
    %323 = vector.broadcast %cst_203 : f32 to vector<14x288xf32>
    %324 = arith.maximumf %322, %323 : vector<14x288xf32>
    %cst_204 = arith.constant dense<0.000000e+00> : vector<8x288xf32>
    %325 = tpu.matmul %6, %324, %cst_204 {dimension_numbers = #tpu.dot_dimension_numbers<[1], [0], [0], [1], [0, 0, 1, 1], [], []>} : vector<8x14xf32>, vector<14x288xf32>, vector<8x288xf32> -> vector<8x288xf32>
    %c0_i32_205 = arith.constant 0 : i32
    %326 = arith.cmpi sge, %313, %c0_i32_205 : i32
    %c8_i32_206 = arith.constant 8 : i32
    %327 = arith.cmpi slt, %313, %c8_i32_206 : i32
    %328 = arith.andi %326, %327 : i1
    %cst_207 = arith.constant 0.000000e+00 : f32
    %329 = vector.broadcast %cst_207 : f32 to vector<8x288xf32>
    %330 = arith.select %328, %325, %329 : vector<8x288xf32>
    %331 = arith.addf %310, %330 : vector<8x288xf32>
    %c1_i32_208 = arith.constant 1 : i32
    %332 = arith.muli %c4_i32, %c1_i32_208 : i32
    %c1_i32_209 = arith.constant 1 : i32
    %333 = arith.subi %332, %c1_i32_209 : i32
    %c2_i32_210 = arith.constant 2 : i32
    %334 = arith.addi %333, %c2_i32_210 : i32
    %c0_i32_211 = arith.constant 0 : i32
    %c7_i32_212 = arith.constant 7 : i32
    %335 = arith.maxsi %c0_i32_211, %334 : i32
    %336 = arith.minsi %c7_i32_212, %335 : i32
    %c0_213 = arith.constant 0 : index
    %337 = arith.index_cast %336 : i32 to index
    %c0_214 = arith.constant 0 : index
    %c0_215 = arith.constant 0 : index
    %338 = vector.load %arg1[%c0_213, %337, %c0_214, %c0_215] : memref<1x8x14x288xf32, #tpu.memory_space<vmem>>, vector<1x1x14x288xf32>
    %339 = vector.shape_cast %338 : vector<1x1x14x288xf32> to vector<14x288xf32>
    %340 = vector.broadcast %0 : vector<14x1xf32> to vector<14x288xf32>
    %341 = arith.mulf %339, %340 : vector<14x288xf32>
    %342 = vector.broadcast %1 : vector<14x1xf32> to vector<14x288xf32>
    %343 = arith.addf %341, %342 : vector<14x288xf32>
    %cst_216 = arith.constant 0.000000e+00 : f32
    %344 = vector.broadcast %cst_216 : f32 to vector<14x288xf32>
    %345 = arith.maximumf %343, %344 : vector<14x288xf32>
    %cst_217 = arith.constant dense<0.000000e+00> : vector<8x288xf32>
    %346 = tpu.matmul %8, %345, %cst_217 {dimension_numbers = #tpu.dot_dimension_numbers<[1], [0], [0], [1], [0, 0, 1, 1], [], []>} : vector<8x14xf32>, vector<14x288xf32>, vector<8x288xf32> -> vector<8x288xf32>
    %c0_i32_218 = arith.constant 0 : i32
    %347 = arith.cmpi sge, %334, %c0_i32_218 : i32
    %c8_i32_219 = arith.constant 8 : i32
    %348 = arith.cmpi slt, %334, %c8_i32_219 : i32
    %349 = arith.andi %347, %348 : i1
    %cst_220 = arith.constant 0.000000e+00 : f32
    %350 = vector.broadcast %cst_220 : f32 to vector<8x288xf32>
    %351 = arith.select %349, %346, %350 : vector<8x288xf32>
    %352 = arith.addf %331, %351 : vector<8x288xf32>
    %353 = vector.broadcast %2 : vector<8x1xf32> to vector<8x288xf32>
    %354 = arith.addf %352, %353 : vector<8x288xf32>
    %c0_221 = arith.constant 0 : index
    %355 = arith.index_cast %c4_i32 : i32 to index
    %c0_222 = arith.constant 0 : index
    %c0_223 = arith.constant 0 : index
    %356 = vector.load %arg6[%c0_221, %355, %c0_222, %c0_223] : memref<1x8x8x288xf32, #tpu.memory_space<vmem>>, vector<1x1x8x288xf32>
    %357 = vector.shape_cast %356 : vector<1x1x8x288xf32> to vector<8x288xf32>
    %358 = vector.shape_cast %354 : vector<8x288xf32> to vector<1x1x8x288xf32>
    tpu.vector_store %arg6[%c0_221, %355, %c0_222, %c0_223], %358 {strides = array<i32>} : memref<1x8x8x288xf32, #tpu.memory_space<vmem>>, vector<1x1x8x288xf32>,
    %c5_i32 = arith.constant 5 : i32
    %cst_224 = arith.constant 0.000000e+00 : f32
    %359 = vector.broadcast %cst_224 : f32 to vector<8x288xf32>
    %c1_i32_225 = arith.constant 1 : i32
    %360 = arith.muli %c5_i32, %c1_i32_225 : i32
    %c1_i32_226 = arith.constant 1 : i32
    %361 = arith.subi %360, %c1_i32_226 : i32
    %c0_i32_227 = arith.constant 0 : i32
    %362 = arith.addi %361, %c0_i32_227 : i32
    %c0_i32_228 = arith.constant 0 : i32
    %c7_i32_229 = arith.constant 7 : i32
    %363 = arith.maxsi %c0_i32_228, %362 : i32
    %364 = arith.minsi %c7_i32_229, %363 : i32
    %c0_230 = arith.constant 0 : index
    %365 = arith.index_cast %364 : i32 to index
    %c0_231 = arith.constant 0 : index
    %c0_232 = arith.constant 0 : index
    %366 = vector.load %arg1[%c0_230, %365, %c0_231, %c0_232] : memref<1x8x14x288xf32, #tpu.memory_space<vmem>>, vector<1x1x14x288xf32>
    %367 = vector.shape_cast %366 : vector<1x1x14x288xf32> to vector<14x288xf32>
    %368 = vector.broadcast %0 : vector<14x1xf32> to vector<14x288xf32>
    %369 = arith.mulf %367, %368 : vector<14x288xf32>
    %370 = vector.broadcast %1 : vector<14x1xf32> to vector<14x288xf32>
    %371 = arith.addf %369, %370 : vector<14x288xf32>
    %cst_233 = arith.constant 0.000000e+00 : f32
    %372 = vector.broadcast %cst_233 : f32 to vector<14x288xf32>
    %373 = arith.maximumf %371, %372 : vector<14x288xf32>
    %cst_234 = arith.constant dense<0.000000e+00> : vector<8x288xf32>
    %374 = tpu.matmul %4, %373, %cst_234 {dimension_numbers = #tpu.dot_dimension_numbers<[1], [0], [0], [1], [0, 0, 1, 1], [], []>} : vector<8x14xf32>, vector<14x288xf32>, vector<8x288xf32> -> vector<8x288xf32>
    %c0_i32_235 = arith.constant 0 : i32
    %375 = arith.cmpi sge, %362, %c0_i32_235 : i32
    %c8_i32_236 = arith.constant 8 : i32
    %376 = arith.cmpi slt, %362, %c8_i32_236 : i32
    %377 = arith.andi %375, %376 : i1
    %cst_237 = arith.constant 0.000000e+00 : f32
    %378 = vector.broadcast %cst_237 : f32 to vector<8x288xf32>
    %379 = arith.select %377, %374, %378 : vector<8x288xf32>
    %380 = arith.addf %359, %379 : vector<8x288xf32>
    %c1_i32_238 = arith.constant 1 : i32
    %381 = arith.muli %c5_i32, %c1_i32_238 : i32
    %c1_i32_239 = arith.constant 1 : i32
    %382 = arith.subi %381, %c1_i32_239 : i32
    %c1_i32_240 = arith.constant 1 : i32
    %383 = arith.addi %382, %c1_i32_240 : i32
    %c0_i32_241 = arith.constant 0 : i32
    %c7_i32_242 = arith.constant 7 : i32
    %384 = arith.maxsi %c0_i32_241, %383 : i32
    %385 = arith.minsi %c7_i32_242, %384 : i32
    %c0_243 = arith.constant 0 : index
    %386 = arith.index_cast %385 : i32 to index
    %c0_244 = arith.constant 0 : index
    %c0_245 = arith.constant 0 : index
    %387 = vector.load %arg1[%c0_243, %386, %c0_244, %c0_245] : memref<1x8x14x288xf32, #tpu.memory_space<vmem>>, vector<1x1x14x288xf32>
    %388 = vector.shape_cast %387 : vector<1x1x14x288xf32> to vector<14x288xf32>
    %389 = vector.broadcast %0 : vector<14x1xf32> to vector<14x288xf32>
    %390 = arith.mulf %388, %389 : vector<14x288xf32>
    %391 = vector.broadcast %1 : vector<14x1xf32> to vector<14x288xf32>
    %392 = arith.addf %390, %391 : vector<14x288xf32>
    %cst_246 = arith.constant 0.000000e+00 : f32
    %393 = vector.broadcast %cst_246 : f32 to vector<14x288xf32>
    %394 = arith.maximumf %392, %393 : vector<14x288xf32>
    %cst_247 = arith.constant dense<0.000000e+00> : vector<8x288xf32>
    %395 = tpu.matmul %6, %394, %cst_247 {dimension_numbers = #tpu.dot_dimension_numbers<[1], [0], [0], [1], [0, 0, 1, 1], [], []>} : vector<8x14xf32>, vector<14x288xf32>, vector<8x288xf32> -> vector<8x288xf32>
    %c0_i32_248 = arith.constant 0 : i32
    %396 = arith.cmpi sge, %383, %c0_i32_248 : i32
    %c8_i32_249 = arith.constant 8 : i32
    %397 = arith.cmpi slt, %383, %c8_i32_249 : i32
    %398 = arith.andi %396, %397 : i1
    %cst_250 = arith.constant 0.000000e+00 : f32
    %399 = vector.broadcast %cst_250 : f32 to vector<8x288xf32>
    %400 = arith.select %398, %395, %399 : vector<8x288xf32>
    %401 = arith.addf %380, %400 : vector<8x288xf32>
    %c1_i32_251 = arith.constant 1 : i32
    %402 = arith.muli %c5_i32, %c1_i32_251 : i32
    %c1_i32_252 = arith.constant 1 : i32
    %403 = arith.subi %402, %c1_i32_252 : i32
    %c2_i32_253 = arith.constant 2 : i32
    %404 = arith.addi %403, %c2_i32_253 : i32
    %c0_i32_254 = arith.constant 0 : i32
    %c7_i32_255 = arith.constant 7 : i32
    %405 = arith.maxsi %c0_i32_254, %404 : i32
    %406 = arith.minsi %c7_i32_255, %405 : i32
    %c0_256 = arith.constant 0 : index
    %407 = arith.index_cast %406 : i32 to index
    %c0_257 = arith.constant 0 : index
    %c0_258 = arith.constant 0 : index
    %408 = vector.load %arg1[%c0_256, %407, %c0_257, %c0_258] : memref<1x8x14x288xf32, #tpu.memory_space<vmem>>, vector<1x1x14x288xf32>
    %409 = vector.shape_cast %408 : vector<1x1x14x288xf32> to vector<14x288xf32>
    %410 = vector.broadcast %0 : vector<14x1xf32> to vector<14x288xf32>
    %411 = arith.mulf %409, %410 : vector<14x288xf32>
    %412 = vector.broadcast %1 : vector<14x1xf32> to vector<14x288xf32>
    %413 = arith.addf %411, %412 : vector<14x288xf32>
    %cst_259 = arith.constant 0.000000e+00 : f32
    %414 = vector.broadcast %cst_259 : f32 to vector<14x288xf32>
    %415 = arith.maximumf %413, %414 : vector<14x288xf32>
    %cst_260 = arith.constant dense<0.000000e+00> : vector<8x288xf32>
    %416 = tpu.matmul %8, %415, %cst_260 {dimension_numbers = #tpu.dot_dimension_numbers<[1], [0], [0], [1], [0, 0, 1, 1], [], []>} : vector<8x14xf32>, vector<14x288xf32>, vector<8x288xf32> -> vector<8x288xf32>
    %c0_i32_261 = arith.constant 0 : i32
    %417 = arith.cmpi sge, %404, %c0_i32_261 : i32
    %c8_i32_262 = arith.constant 8 : i32
    %418 = arith.cmpi slt, %404, %c8_i32_262 : i32
    %419 = arith.andi %417, %418 : i1
    %cst_263 = arith.constant 0.000000e+00 : f32
    %420 = vector.broadcast %cst_263 : f32 to vector<8x288xf32>
    %421 = arith.select %419, %416, %420 : vector<8x288xf32>
    %422 = arith.addf %401, %421 : vector<8x288xf32>
    %423 = vector.broadcast %2 : vector<8x1xf32> to vector<8x288xf32>
    %424 = arith.addf %422, %423 : vector<8x288xf32>
    %c0_264 = arith.constant 0 : index
    %425 = arith.index_cast %c5_i32 : i32 to index
    %c0_265 = arith.constant 0 : index
    %c0_266 = arith.constant 0 : index
    %426 = vector.load %arg6[%c0_264, %425, %c0_265, %c0_266] : memref<1x8x8x288xf32, #tpu.memory_space<vmem>>, vector<1x1x8x288xf32>
    %427 = vector.shape_cast %426 : vector<1x1x8x288xf32> to vector<8x288xf32>
    %428 = vector.shape_cast %424 : vector<8x288xf32> to vector<1x1x8x288xf32>
    tpu.vector_store %arg6[%c0_264, %425, %c0_265, %c0_266], %428 {strides = array<i32>} : memref<1x8x8x288xf32, #tpu.memory_space<vmem>>, vector<1x1x8x288xf32>,
    %c6_i32 = arith.constant 6 : i32
    %cst_267 = arith.constant 0.000000e+00 : f32
    %429 = vector.broadcast %cst_267 : f32 to vector<8x288xf32>
    %c1_i32_268 = arith.constant 1 : i32
    %430 = arith.muli %c6_i32, %c1_i32_268 : i32
    %c1_i32_269 = arith.constant 1 : i32
    %431 = arith.subi %430, %c1_i32_269 : i32
    %c0_i32_270 = arith.constant 0 : i32
    %432 = arith.addi %431, %c0_i32_270 : i32
    %c0_i32_271 = arith.constant 0 : i32
    %c7_i32_272 = arith.constant 7 : i32
    %433 = arith.maxsi %c0_i32_271, %432 : i32
    %434 = arith.minsi %c7_i32_272, %433 : i32
    %c0_273 = arith.constant 0 : index
    %435 = arith.index_cast %434 : i32 to index
    %c0_274 = arith.constant 0 : index
    %c0_275 = arith.constant 0 : index
    %436 = vector.load %arg1[%c0_273, %435, %c0_274, %c0_275] : memref<1x8x14x288xf32, #tpu.memory_space<vmem>>, vector<1x1x14x288xf32>
    %437 = vector.shape_cast %436 : vector<1x1x14x288xf32> to vector<14x288xf32>
    %438 = vector.broadcast %0 : vector<14x1xf32> to vector<14x288xf32>
    %439 = arith.mulf %437, %438 : vector<14x288xf32>
    %440 = vector.broadcast %1 : vector<14x1xf32> to vector<14x288xf32>
    %441 = arith.addf %439, %440 : vector<14x288xf32>
    %cst_276 = arith.constant 0.000000e+00 : f32
    %442 = vector.broadcast %cst_276 : f32 to vector<14x288xf32>
    %443 = arith.maximumf %441, %442 : vector<14x288xf32>
    %cst_277 = arith.constant dense<0.000000e+00> : vector<8x288xf32>
    %444 = tpu.matmul %4, %443, %cst_277 {dimension_numbers = #tpu.dot_dimension_numbers<[1], [0], [0], [1], [0, 0, 1, 1], [], []>} : vector<8x14xf32>, vector<14x288xf32>, vector<8x288xf32> -> vector<8x288xf32>
    %c0_i32_278 = arith.constant 0 : i32
    %445 = arith.cmpi sge, %432, %c0_i32_278 : i32
    %c8_i32_279 = arith.constant 8 : i32
    %446 = arith.cmpi slt, %432, %c8_i32_279 : i32
    %447 = arith.andi %445, %446 : i1
    %cst_280 = arith.constant 0.000000e+00 : f32
    %448 = vector.broadcast %cst_280 : f32 to vector<8x288xf32>
    %449 = arith.select %447, %444, %448 : vector<8x288xf32>
    %450 = arith.addf %429, %449 : vector<8x288xf32>
    %c1_i32_281 = arith.constant 1 : i32
    %451 = arith.muli %c6_i32, %c1_i32_281 : i32
    %c1_i32_282 = arith.constant 1 : i32
    %452 = arith.subi %451, %c1_i32_282 : i32
    %c1_i32_283 = arith.constant 1 : i32
    %453 = arith.addi %452, %c1_i32_283 : i32
    %c0_i32_284 = arith.constant 0 : i32
    %c7_i32_285 = arith.constant 7 : i32
    %454 = arith.maxsi %c0_i32_284, %453 : i32
    %455 = arith.minsi %c7_i32_285, %454 : i32
    %c0_286 = arith.constant 0 : index
    %456 = arith.index_cast %455 : i32 to index
    %c0_287 = arith.constant 0 : index
    %c0_288 = arith.constant 0 : index
    %457 = vector.load %arg1[%c0_286, %456, %c0_287, %c0_288] : memref<1x8x14x288xf32, #tpu.memory_space<vmem>>, vector<1x1x14x288xf32>
    %458 = vector.shape_cast %457 : vector<1x1x14x288xf32> to vector<14x288xf32>
    %459 = vector.broadcast %0 : vector<14x1xf32> to vector<14x288xf32>
    %460 = arith.mulf %458, %459 : vector<14x288xf32>
    %461 = vector.broadcast %1 : vector<14x1xf32> to vector<14x288xf32>
    %462 = arith.addf %460, %461 : vector<14x288xf32>
    %cst_289 = arith.constant 0.000000e+00 : f32
    %463 = vector.broadcast %cst_289 : f32 to vector<14x288xf32>
    %464 = arith.maximumf %462, %463 : vector<14x288xf32>
    %cst_290 = arith.constant dense<0.000000e+00> : vector<8x288xf32>
    %465 = tpu.matmul %6, %464, %cst_290 {dimension_numbers = #tpu.dot_dimension_numbers<[1], [0], [0], [1], [0, 0, 1, 1], [], []>} : vector<8x14xf32>, vector<14x288xf32>, vector<8x288xf32> -> vector<8x288xf32>
    %c0_i32_291 = arith.constant 0 : i32
    %466 = arith.cmpi sge, %453, %c0_i32_291 : i32
    %c8_i32_292 = arith.constant 8 : i32
    %467 = arith.cmpi slt, %453, %c8_i32_292 : i32
    %468 = arith.andi %466, %467 : i1
    %cst_293 = arith.constant 0.000000e+00 : f32
    %469 = vector.broadcast %cst_293 : f32 to vector<8x288xf32>
    %470 = arith.select %468, %465, %469 : vector<8x288xf32>
    %471 = arith.addf %450, %470 : vector<8x288xf32>
    %c1_i32_294 = arith.constant 1 : i32
    %472 = arith.muli %c6_i32, %c1_i32_294 : i32
    %c1_i32_295 = arith.constant 1 : i32
    %473 = arith.subi %472, %c1_i32_295 : i32
    %c2_i32_296 = arith.constant 2 : i32
    %474 = arith.addi %473, %c2_i32_296 : i32
    %c0_i32_297 = arith.constant 0 : i32
    %c7_i32_298 = arith.constant 7 : i32
    %475 = arith.maxsi %c0_i32_297, %474 : i32
    %476 = arith.minsi %c7_i32_298, %475 : i32
    %c0_299 = arith.constant 0 : index
    %477 = arith.index_cast %476 : i32 to index
    %c0_300 = arith.constant 0 : index
    %c0_301 = arith.constant 0 : index
    %478 = vector.load %arg1[%c0_299, %477, %c0_300, %c0_301] : memref<1x8x14x288xf32, #tpu.memory_space<vmem>>, vector<1x1x14x288xf32>
    %479 = vector.shape_cast %478 : vector<1x1x14x288xf32> to vector<14x288xf32>
    %480 = vector.broadcast %0 : vector<14x1xf32> to vector<14x288xf32>
    %481 = arith.mulf %479, %480 : vector<14x288xf32>
    %482 = vector.broadcast %1 : vector<14x1xf32> to vector<14x288xf32>
    %483 = arith.addf %481, %482 : vector<14x288xf32>
    %cst_302 = arith.constant 0.000000e+00 : f32
    %484 = vector.broadcast %cst_302 : f32 to vector<14x288xf32>
    %485 = arith.maximumf %483, %484 : vector<14x288xf32>
    %cst_303 = arith.constant dense<0.000000e+00> : vector<8x288xf32>
    %486 = tpu.matmul %8, %485, %cst_303 {dimension_numbers = #tpu.dot_dimension_numbers<[1], [0], [0], [1], [0, 0, 1, 1], [], []>} : vector<8x14xf32>, vector<14x288xf32>, vector<8x288xf32> -> vector<8x288xf32>
    %c0_i32_304 = arith.constant 0 : i32
    %487 = arith.cmpi sge, %474, %c0_i32_304 : i32
    %c8_i32_305 = arith.constant 8 : i32
    %488 = arith.cmpi slt, %474, %c8_i32_305 : i32
    %489 = arith.andi %487, %488 : i1
    %cst_306 = arith.constant 0.000000e+00 : f32
    %490 = vector.broadcast %cst_306 : f32 to vector<8x288xf32>
    %491 = arith.select %489, %486, %490 : vector<8x288xf32>
    %492 = arith.addf %471, %491 : vector<8x288xf32>
    %493 = vector.broadcast %2 : vector<8x1xf32> to vector<8x288xf32>
    %494 = arith.addf %492, %493 : vector<8x288xf32>
    %c0_307 = arith.constant 0 : index
    %495 = arith.index_cast %c6_i32 : i32 to index
    %c0_308 = arith.constant 0 : index
    %c0_309 = arith.constant 0 : index
    %496 = vector.load %arg6[%c0_307, %495, %c0_308, %c0_309] : memref<1x8x8x288xf32, #tpu.memory_space<vmem>>, vector<1x1x8x288xf32>
    %497 = vector.shape_cast %496 : vector<1x1x8x288xf32> to vector<8x288xf32>
    %498 = vector.shape_cast %494 : vector<8x288xf32> to vector<1x1x8x288xf32>
    tpu.vector_store %arg6[%c0_307, %495, %c0_308, %c0_309], %498 {strides = array<i32>} : memref<1x8x8x288xf32, #tpu.memory_space<vmem>>, vector<1x1x8x288xf32>,
    %c7_i32_310 = arith.constant 7 : i32
    %cst_311 = arith.constant 0.000000e+00 : f32
    %499 = vector.broadcast %cst_311 : f32 to vector<8x288xf32>
    %c1_i32_312 = arith.constant 1 : i32
    %500 = arith.muli %c7_i32_310, %c1_i32_312 : i32
    %c1_i32_313 = arith.constant 1 : i32
    %501 = arith.subi %500, %c1_i32_313 : i32
    %c0_i32_314 = arith.constant 0 : i32
    %502 = arith.addi %501, %c0_i32_314 : i32
    %c0_i32_315 = arith.constant 0 : i32
    %c7_i32_316 = arith.constant 7 : i32
    %503 = arith.maxsi %c0_i32_315, %502 : i32
    %504 = arith.minsi %c7_i32_316, %503 : i32
    %c0_317 = arith.constant 0 : index
    %505 = arith.index_cast %504 : i32 to index
    %c0_318 = arith.constant 0 : index
    %c0_319 = arith.constant 0 : index
    %506 = vector.load %arg1[%c0_317, %505, %c0_318, %c0_319] : memref<1x8x14x288xf32, #tpu.memory_space<vmem>>, vector<1x1x14x288xf32>
    %507 = vector.shape_cast %506 : vector<1x1x14x288xf32> to vector<14x288xf32>
    %508 = vector.broadcast %0 : vector<14x1xf32> to vector<14x288xf32>
    %509 = arith.mulf %507, %508 : vector<14x288xf32>
    %510 = vector.broadcast %1 : vector<14x1xf32> to vector<14x288xf32>
    %511 = arith.addf %509, %510 : vector<14x288xf32>
    %cst_320 = arith.constant 0.000000e+00 : f32
    %512 = vector.broadcast %cst_320 : f32 to vector<14x288xf32>
    %513 = arith.maximumf %511, %512 : vector<14x288xf32>
    %cst_321 = arith.constant dense<0.000000e+00> : vector<8x288xf32>
    %514 = tpu.matmul %4, %513, %cst_321 {dimension_numbers = #tpu.dot_dimension_numbers<[1], [0], [0], [1], [0, 0, 1, 1], [], []>} : vector<8x14xf32>, vector<14x288xf32>, vector<8x288xf32> -> vector<8x288xf32>
    %c0_i32_322 = arith.constant 0 : i32
    %515 = arith.cmpi sge, %502, %c0_i32_322 : i32
    %c8_i32_323 = arith.constant 8 : i32
    %516 = arith.cmpi slt, %502, %c8_i32_323 : i32
    %517 = arith.andi %515, %516 : i1
    %cst_324 = arith.constant 0.000000e+00 : f32
    %518 = vector.broadcast %cst_324 : f32 to vector<8x288xf32>
    %519 = arith.select %517, %514, %518 : vector<8x288xf32>
    %520 = arith.addf %499, %519 : vector<8x288xf32>
    %c1_i32_325 = arith.constant 1 : i32
    %521 = arith.muli %c7_i32_310, %c1_i32_325 : i32
    %c1_i32_326 = arith.constant 1 : i32
    %522 = arith.subi %521, %c1_i32_326 : i32
    %c1_i32_327 = arith.constant 1 : i32
    %523 = arith.addi %522, %c1_i32_327 : i32
    %c0_i32_328 = arith.constant 0 : i32
    %c7_i32_329 = arith.constant 7 : i32
    %524 = arith.maxsi %c0_i32_328, %523 : i32
    %525 = arith.minsi %c7_i32_329, %524 : i32
    %c0_330 = arith.constant 0 : index
    %526 = arith.index_cast %525 : i32 to index
    %c0_331 = arith.constant 0 : index
    %c0_332 = arith.constant 0 : index
    %527 = vector.load %arg1[%c0_330, %526, %c0_331, %c0_332] : memref<1x8x14x288xf32, #tpu.memory_space<vmem>>, vector<1x1x14x288xf32>
    %528 = vector.shape_cast %527 : vector<1x1x14x288xf32> to vector<14x288xf32>
    %529 = vector.broadcast %0 : vector<14x1xf32> to vector<14x288xf32>
    %530 = arith.mulf %528, %529 : vector<14x288xf32>
    %531 = vector.broadcast %1 : vector<14x1xf32> to vector<14x288xf32>
    %532 = arith.addf %530, %531 : vector<14x288xf32>
    %cst_333 = arith.constant 0.000000e+00 : f32
    %533 = vector.broadcast %cst_333 : f32 to vector<14x288xf32>
    %534 = arith.maximumf %532, %533 : vector<14x288xf32>
    %cst_334 = arith.constant dense<0.000000e+00> : vector<8x288xf32>
    %535 = tpu.matmul %6, %534, %cst_334 {dimension_numbers = #tpu.dot_dimension_numbers<[1], [0], [0], [1], [0, 0, 1, 1], [], []>} : vector<8x14xf32>, vector<14x288xf32>, vector<8x288xf32> -> vector<8x288xf32>
    %c0_i32_335 = arith.constant 0 : i32
    %536 = arith.cmpi sge, %523, %c0_i32_335 : i32
    %c8_i32_336 = arith.constant 8 : i32
    %537 = arith.cmpi slt, %523, %c8_i32_336 : i32
    %538 = arith.andi %536, %537 : i1
    %cst_337 = arith.constant 0.000000e+00 : f32
    %539 = vector.broadcast %cst_337 : f32 to vector<8x288xf32>
    %540 = arith.select %538, %535, %539 : vector<8x288xf32>
    %541 = arith.addf %520, %540 : vector<8x288xf32>
    %c1_i32_338 = arith.constant 1 : i32
    %542 = arith.muli %c7_i32_310, %c1_i32_338 : i32
    %c1_i32_339 = arith.constant 1 : i32
    %543 = arith.subi %542, %c1_i32_339 : i32
    %c2_i32_340 = arith.constant 2 : i32
    %544 = arith.addi %543, %c2_i32_340 : i32
    %c0_i32_341 = arith.constant 0 : i32
    %c7_i32_342 = arith.constant 7 : i32
    %545 = arith.maxsi %c0_i32_341, %544 : i32
    %546 = arith.minsi %c7_i32_342, %545 : i32
    %c0_343 = arith.constant 0 : index
    %547 = arith.index_cast %546 : i32 to index
    %c0_344 = arith.constant 0 : index
    %c0_345 = arith.constant 0 : index
    %548 = vector.load %arg1[%c0_343, %547, %c0_344, %c0_345] : memref<1x8x14x288xf32, #tpu.memory_space<vmem>>, vector<1x1x14x288xf32>
    %549 = vector.shape_cast %548 : vector<1x1x14x288xf32> to vector<14x288xf32>
    %550 = vector.broadcast %0 : vector<14x1xf32> to vector<14x288xf32>
    %551 = arith.mulf %549, %550 : vector<14x288xf32>
    %552 = vector.broadcast %1 : vector<14x1xf32> to vector<14x288xf32>
    %553 = arith.addf %551, %552 : vector<14x288xf32>
    %cst_346 = arith.constant 0.000000e+00 : f32
    %554 = vector.broadcast %cst_346 : f32 to vector<14x288xf32>
    %555 = arith.maximumf %553, %554 : vector<14x288xf32>
    %cst_347 = arith.constant dense<0.000000e+00> : vector<8x288xf32>
    %556 = tpu.matmul %8, %555, %cst_347 {dimension_numbers = #tpu.dot_dimension_numbers<[1], [0], [0], [1], [0, 0, 1, 1], [], []>} : vector<8x14xf32>, vector<14x288xf32>, vector<8x288xf32> -> vector<8x288xf32>
    %c0_i32_348 = arith.constant 0 : i32
    %557 = arith.cmpi sge, %544, %c0_i32_348 : i32
    %c8_i32_349 = arith.constant 8 : i32
    %558 = arith.cmpi slt, %544, %c8_i32_349 : i32
    %559 = arith.andi %557, %558 : i1
    %cst_350 = arith.constant 0.000000e+00 : f32
    %560 = vector.broadcast %cst_350 : f32 to vector<8x288xf32>
    %561 = arith.select %559, %556, %560 : vector<8x288xf32>
    %562 = arith.addf %541, %561 : vector<8x288xf32>
    %563 = vector.broadcast %2 : vector<8x1xf32> to vector<8x288xf32>
    %564 = arith.addf %562, %563 : vector<8x288xf32>
    %c0_351 = arith.constant 0 : index
    %565 = arith.index_cast %c7_i32_310 : i32 to index
    %c0_352 = arith.constant 0 : index
    %c0_353 = arith.constant 0 : index
    %566 = vector.load %arg6[%c0_351, %565, %c0_352, %c0_353] : memref<1x8x8x288xf32, #tpu.memory_space<vmem>>, vector<1x1x8x288xf32>
    %567 = vector.shape_cast %566 : vector<1x1x8x288xf32> to vector<8x288xf32>
    %568 = vector.shape_cast %564 : vector<8x288xf32> to vector<1x1x8x288xf32>
    tpu.vector_store %arg6[%c0_351, %565, %c0_352, %c0_353], %568 {strides = array<i32>} : memref<1x8x8x288xf32, #tpu.memory_space<vmem>>, vector<1x1x8x288xf32>,
    %c8_i32_354 = arith.constant 8 : i32
    return
  }
  func.func @transform_0(%arg0: i32) -> (i32, i32, i32, i32) {
    %c0_i32 = arith.constant 0 : i32
    %c0_i32_0 = arith.constant 0 : i32
    %c0_i32_1 = arith.constant 0 : i32
    %c0_i32_2 = arith.constant 0 : i32
    return %arg0, %c0_i32, %c0_i32_0, %c0_i32_1 : i32, i32, i32, i32
  }
  func.func @transform_1(%arg0: i32) -> (i32, i32) {
    %c0_i32 = arith.constant 0 : i32
    %c0_i32_0 = arith.constant 0 : i32
    %c0_i32_1 = arith.constant 0 : i32
    return %c0_i32, %c0_i32_0 : i32, i32
  }
  func.func @transform_2(%arg0: i32) -> (i32, i32) {
    %c0_i32 = arith.constant 0 : i32
    %c0_i32_0 = arith.constant 0 : i32
    %c0_i32_1 = arith.constant 0 : i32
    return %c0_i32, %c0_i32_0 : i32, i32
  }
  func.func @transform_3(%arg0: i32) -> (i32, i32, i32) {
    %c0_i32 = arith.constant 0 : i32
    %c0_i32_0 = arith.constant 0 : i32
    %c0_i32_1 = arith.constant 0 : i32
    %c0_i32_2 = arith.constant 0 : i32
    return %c0_i32, %c0_i32_0, %c0_i32_1 : i32, i32, i32
  }
  func.func @transform_4(%arg0: i32) -> (i32, i32) {
    %c0_i32 = arith.constant 0 : i32
    %c0_i32_0 = arith.constant 0 : i32
    %c0_i32_1 = arith.constant 0 : i32
    return %c0_i32, %c0_i32_0 : i32, i32
  }
  func.func @transform_5(%arg0: i32) -> (i32, i32, i32, i32) {
    %c0_i32 = arith.constant 0 : i32
    %c0_i32_0 = arith.constant 0 : i32
    %c0_i32_1 = arith.constant 0 : i32
    %c0_i32_2 = arith.constant 0 : i32
    return %arg0, %c0_i32, %c0_i32_0, %c0_i32_1 : i32, i32, i32, i32
  }
}

</mosaic_0001>

<bundles_post_ra>
// kernel: tile.9
= control target key start
LH: loop header
LB: loop body
LE: loop exit
PB: predicated region body
PF: predicated region fallthrough
CT: control target
= control target key end

     0   :  { %vm9_vm0 = vcmask 15360   ;;  %vm22_vm1 = vcmask 31744   ;;  %s169_s14 = smov 126   ;;  %s170_s15 = smov 108   ;;  %vm3_vm2 = vcmask 146432   ;;  %vm13_vm3 = vcmask 130048   ;;  %s257_s0 = inlined_call_operand.vmem [shape: f32[16,18], index: 0, kind: input, shape index: {}]   ;;  %s258_s1 = inlined_call_operand.vmem [shape: f32[1,288], index: 1, kind: output, shape index: {}]  }
   0x1   :  { %v135_v0 = vld [vmem:[%s257_s0 + $0x7] sm:$0x1]   ;;  %v139_v3 = vld [vmem:[%s257_s0 + $0x6] sm:$0x1]   ;;  %v137_v4 = vld [vmem:[%s257_s0 + $0xe] sm:$0x1]  }
   0x2   :  { %v136_v1 = vld [vmem:[%s257_s0 + $0x7] sm:$0x1]   ;;  %34 = vrot.lane.b32.xlu1 %v139_v3, %s170_s15  ;;  %v138_v5 = vld [vmem:[%s257_s0 + $0xe] sm:$0x1]   ;;  %v140_v7 = vld [vmem:[%s257_s0 + $0xd] sm:$0x1]  }
   0x3   :  { %v10_v2 = vsel %vm9_vm0, %v136_v1, %v135_v0  ;;  %v23_v6 = vsel %vm22_vm1, %v138_v5, %v137_v4  ;;  %s171_s20 = smov 124   ;;  %s172_s21 = smov 106   ;;  %v141_v8 = vld [vmem:[%s257_s0 + $0x5] sm:$0x1]   ;;  %v142_v9 = vld [vmem:[%s257_s0 + $0xc] sm:$0x1]  }
   0x4   :  { %11 = vrot.lane.b32.xlu0 %v10_v2, %s169_s14  ;;  %v2_v10 = vld [vmem:[%s257_s0] sm:$0x1]   ;;  %s173_s28 = smov 90   ;;  %s174_s29 = smov 88   ;;  %v143_v11 = vld [vmem:[%s257_s0 + $0x4] sm:$0x1]  }
   0x5   :  { %4 = vst.msk [vmem:[#allocation0] sm:$0x1] %vm3_vm2, %v2_v10   ;;  %v144_v12 = vld [vmem:[%s257_s0 + $0xb] sm:$0x1]   ;;  %s175_s5 = smov 72   ;;  %s176_s6 = smov 70  }
   0x6   :  { %40 = vrot.lane.b32.xlu1 %v140_v7, %s172_s21  ;;  %v145_v13 = vld [vmem:[%s257_s0 + $0x3] sm:$0x1]   ;;  %v146_v14 = vld [vmem:[%s257_s0 + $0xa] sm:$0x1]   ;;  %s177_s11 = smov 54   ;;  %s178_s12 = smov 52  }
   0x7   :  { %v147_v15 = vld [vmem:[%s257_s0 + $0x2] sm:$0x1]   ;;  %v148_v16 = vld [vmem:[%s257_s0 + $0x9] sm:$0x1]   ;;  %s179_s17 = smov 36   ;;  %s180_s18 = smov 34  }
   0x8   :  { %24 = vrot.lane.b32.xlu0 %v23_v6, %s171_s20  ;;  %v149_v17 = vld [vmem:[%s257_s0 + $0x1] sm:$0x1]   ;;  %v150_v18 = vld [vmem:[%s257_s0 + $0x8] sm:$0x1]   ;;  %s181_s23 = smov 18   ;;  %s182_s24 = smov 16  }
   0x9   :  { %v151_v19 = vld [vmem:[%s257_s0 + $0xf] sm:$0x1]   ;;  %s183_s0 = smov 14   ;;  %vm16_vm4 = vcmask 1048560   ;;  %vm36_vm5 = vcmask 1032032   ;;  %vm26_vm6 = vcmask 113664  }
   0xa   :  { %53 = vrot.lane.b32.xlu1 %v142_v9, %s174_s29  ;;  %vm29_vm7 = vcmask 1048544   ;;  %vm42_vm8 = vcmask 1015632   ;;  %vm49_vm9 = vcmask 884432   ;;  %vm55_vm10 = vcmask 868032  }
   0xb   :  { %vm62_vm11 = vcmask 736832   ;;  %vm68_vm12 = vcmask 720432   ;;  %vm75_vm13 = vcmask 589232   ;;  %vm81_vm14 = vcmask 572832  }
   0xc   :  { %47 = vrot.lane.b32.xlu0 %v141_v8, %s173_s28  ;;  %vm88_vm15 = vcmask 441632   ;;  %vm94_vm0 = vcmask 425232   ;;  %vm101_vm1 = vcmask 294032   ;;  %vm107_vm2 = vcmask 277632  }
   0xe   :  { %66 = vrot.lane.b32.xlu1 %v144_v12, %s176_s6 }
  0x10   :  { %60 = vrot.lane.b32.xlu0 %v143_v11, %s175_s5 }
  0x12   :  { %79 = vrot.lane.b32.xlu1 %v146_v14, %s178_s12 }
  0x14   :  { %73 = vrot.lane.b32.xlu0 %v145_v13, %s177_s11 }
  0x16   :  { %92 = vrot.lane.b32.xlu1 %v148_v16, %s180_s18 }
  0x18   :  { %86 = vrot.lane.b32.xlu0 %v147_v15, %s179_s17 }
  0x1a   :  { %105 = vrot.lane.b32.xlu1 %v150_v18, %s182_s24 }
  0x1c   :  { %99 = vrot.lane.b32.xlu0 %v149_v17, %s181_s23 }
  0x20   :  { %112 = vrot.lane.b32.xlu0 %v151_v19, %s183_s0 }
  0x74   :  { %v35_v21 = vpop.permute.xlu1 %34  }
  0x76   :  { %v12_v20 = vpop.permute.xlu0 %11  }
  0x77   :  { %15 = vst.msk [vmem:[#allocation0 + $0x8] sm:$0x1] %vm13_vm3, %v12_v20   ;;  %vm114_vm3 = vcmask 261232  }
  0x78   :  { %17 = vst.msk [vmem:[#allocation0] sm:$0x1] %vm16_vm4, %v12_v20   ;;  %v41_v23 = vpop.permute.xlu1 %40  }
  0x79   :  { %37 = vst.msk [vmem:[#allocation0] sm:$0x1] %vm36_vm5, %v35_v21  }
  0x7a   :  { %v25_v22 = vpop.permute.xlu0 %24  }
  0x7b   :  { %28 = vst.msk [vmem:[#allocation0 + $0x10] sm:$0x1] %vm26_vm6, %v25_v22  }
  0x7c   :  { %31 = vst.msk [vmem:[#allocation0 + $0x8] sm:$0x1] %vm29_vm7, %v25_v22   ;;  %v54_v25 = vpop.permute.xlu1 %53  }
  0x7d   :  { %44 = vst.msk [vmem:[#allocation0 + $0x8] sm:$0x1] %vm42_vm8, %v41_v23  }
  0x7e   :  { %v48_v24 = vpop.permute.xlu0 %47   ;;  %57 = vst.msk [vmem:[#allocation0 + $0x8] sm:$0x1] %vm55_vm10, %v54_v25  }
  0x7f   :  { %50 = vst.msk [vmem:[#allocation0] sm:$0x1] %vm49_vm9, %v48_v24  }
  0x80   :  { %v67_v27 = vpop.permute.xlu1 %66  }
  0x81   :  { %70 = vst.msk [vmem:[#allocation0 + $0x8] sm:$0x1] %vm68_vm12, %v67_v27  }
  0x82   :  { %v61_v26 = vpop.permute.xlu0 %60  }
  0x83   :  { %63 = vst.msk [vmem:[#allocation0] sm:$0x1] %vm62_vm11, %v61_v26  }
  0x84   :  { %v80_v29 = vpop.permute.xlu1 %79  }
  0x85   :  { %83 = vst.msk [vmem:[#allocation0 + $0x8] sm:$0x1] %vm81_vm14, %v80_v29  }
  0x86   :  { %v74_v28 = vpop.permute.xlu0 %73  }
  0x87   :  { %76 = vst.msk [vmem:[#allocation0] sm:$0x1] %vm75_vm13, %v74_v28  }
  0x88   :  { %v93_v31 = vpop.permute.xlu1 %92  }
  0x89   :  { %96 = vst.msk [vmem:[#allocation0 + $0x8] sm:$0x1] %vm94_vm0, %v93_v31  }
  0x8a   :  { %v87_v30 = vpop.permute.xlu0 %86  }
  0x8b   :  { %89 = vst.msk [vmem:[#allocation0] sm:$0x1] %vm88_vm15, %v87_v30  }
  0x8c   :  { %v106_v33 = vpop.permute.xlu1 %105  }
  0x8d   :  { %109 = vst.msk [vmem:[#allocation0 + $0x8] sm:$0x1] %vm107_vm2, %v106_v33  }
  0x8e   :  { %v100_v32 = vpop.permute.xlu0 %99  }
  0x8f   :  { %102 = vst.msk [vmem:[#allocation0] sm:$0x1] %vm101_vm1, %v100_v32  }
  0x92   :  { %v113_v34 = vpop.permute.xlu0 %112  }
  0x93   :  { %116 = vst.msk [vmem:[#allocation0 + $0x10] sm:$0x1] %vm114_vm3, %v113_v34  }
  0x94   :  { %v124_v36 = vld [vmem:[#allocation0 + $0x8] sm:$0x1] }
  0x95   :  { %152 = vst [vmem:[%s258_s1 + $0x1] sm:$0x1] %v124_v36 }
  0x96   :  { %v120_v35 = vld [vmem:[#allocation0] sm:$0x1] }
  0x97   :  { %122 = vst [vmem:[%s258_s1] sm:$0x1] %v120_v35 }
  0x9a   :  { %v129_v37 = vld [vmem:[#allocation0 + $0x10] sm:$0x1] }
  0x9b   :  { %153 = vst [vmem:[%s258_s1 + $0x2] sm:$0x1] %v129_v37 }

// kernel: tile.8
= control target key start
LH: loop header
LB: loop body
LE: loop exit
PB: predicated region body
PF: predicated region fallthrough
CT: control target
= control target key end

     0   :  { %s28_s0 = inlined_call_operand.vmem [shape: f32[18], index: 0, kind: input, shape index: {}]   ;;  %s29_s1 = inlined_call_operand.vmem [shape: f32[16,18], index: 1, kind: output, shape index: {}]  }
   0x1   :  { %v4_v0 = vld [vmem:[%s28_s0] ss:$0 sm:$0xff] }
   0x2   :  { %5 = vst [vmem:[%s29_s1] sm:$0xff] %v4_v0  ;;  %8 = vst [vmem:[%s29_s1 + $0x8] sm:$0xff] %v4_v0 }

// kernel: _lambda_.3
= control target key start
LH: loop header
LB: loop body
LE: loop exit
PB: predicated region body
PF: predicated region fallthrough
CT: control target
= control target key end

     0   :  { %s5030_s18 = smov 0   ;;  %s5845_s0 = inlined_call_operand.vmem [shape: f32[2,8,14,288], index: 0, kind: input, shape index: {}]   ;;  %s5846_s1 = inlined_call_operand.vmem [shape: f32[14,1], index: 1, kind: input, shape index: {}]   ;;  %s5847_s2 = inlined_call_operand.vmem [shape: f32[14,1], index: 2, kind: input, shape index: {}]   ;;  %s5848_s3 = inlined_call_operand.vmem [shape: f32[3,8,14], index: 3, kind: input, shape index: {}]   ;;  %s5849_s4 = inlined_call_operand.vmem [shape: f32[8,1], index: 4, kind: input, shape index: {}]   ;;  %s5850_s5 = inlined_call_operand.vmem [shape: f32[2,8,8,288], index: 5, kind: output, shape index: {}]  }
   0x1 LB: > { %s4238_s19 = sadd.s32 4294967295, %s4993_s18   ;;  %p4242_p0 = scmp.ge.s32.totalorder %s4993_s18, 1  ;;  %s4993_s18 = sphi %s5030_s18, %s15_s18  }
   0x2   : > { %p187_p1 = scmp.lt.s32.totalorder %s4993_s18, 3 }
   0x4   : > { %p188_p2 = pnand %p4242_p0, %p187_p1 }
   0x5   : > { %v227_v0 = vld [vmem:[%s5847_s2] sm:$0xff] (!%p188_p2)  ;;  %v4995_v2 = vmov (!%p188_p2), 0   ;;  %v228_v3 = vld [vmem:[%s5847_s2 + $0x8] sm:$0x3f] (!%p188_p2)  ;;  %v4996_v6 = vmov (!%p188_p2), 0.0|0.0   ;;  %vm4997_vm0 = vmmov (!%p188_p2), 0  }
   0x6   : > { %191 = sbr.rel (%p188_p2) target bundleno = 507 (0x1fb), region = 40  ;;  %v225_v1 = vld [vmem:[%s5846_s1] sm:$0xff] (!%p188_p2)  ;;  %4984 = vset.pattern.permute.xlu1 (!%p188_p2), %v4995_v2  ;;  %4983 = vset.pattern.permute.xlu0 (!%p188_p2), %v4995_v2  ;;  %v226_v4 = vld [vmem:[%s5846_s1 + $0x8] sm:$0x3f] (!%p188_p2)  ;;  %v4998_v7 = vmov (!%p188_p2), 0.0   ;;  %p215_p3 = scmp.lt.s32.totalorder (!%p188_p2), %s4238_s19, 1 }
   0x7   : > { %259 = vperm.xlu1 (!%p188_p2), %4984, %v227_v0   ;;  %243 = vperm.xlu0 (!%p188_p2), %4983, %v225_v1   ;;  %v229_v5 = vld [vmem:[%s5849_s4] sm:$0xff] (!%p188_p2)  ;;  %vm308_vm1 = vcmask (!%p188_p2), 1045504   ;;  %vm304_vm2 = vcmask (!%p188_p2), 113664   ;;  %vm4999_vm3 = vmmov (!%p188_p2), 1   ;;  %vm622_vm5 = vcmask (!%p188_p2), 261120  }
   0x8   : > { %4726 = vmatprep.subr.bf16.mxu1 (!%p188_p2), %v4996_v6  ;;  %4570 = vmatprep.mubr.msk.f32.mxu1 (!%p188_p2), %vm4997_vm0, %v4998_v7  ;;  %vm5125_vm4 = vmpackc.low (!%p188_p2), %vm308_vm1, %vm4999_vm3 }
   0x9   : > { %382 = vmatprep.mubr.f32.mxu0 (!%p188_p2), %v4998_v7 }
   0xb   : > { %264 = vperm.xlu1 (!%p188_p2), %4984, %v228_v3   ;;  %248 = vperm.xlu0 (!%p188_p2), %4983, %v226_v4  }
   0xd   : > { %s5854_s19 = smov (!%p215_p3, %s4238_s19), 1 }
   0xe   : > { %s4968_s30 = smul.u32 384, %s5854_s19 }
   0xf   : > { %614 = vperm.xlu0 %4983, %v229_v5   ;;  %s4969_s21 = smul.u32 192, %s5854_s19 }
  0x10   : > { %s5063_s8 = scalar_lea.vmem %s5845_s0, %s4968_s30 }
  0x11   : > { %v4248_v8 = vld [vmem:[%s5063_s8 + $0x38] sm:$0xff]  ;;  %v4249_v9 = vld [vmem:[%s5063_s8 + $0x40] sm:$0xff]  ;;  %v4247_v10 = vld [vmem:[%s5063_s8 + $0x30] sm:$0xff]  ;;  %s5784_s24 = scalar_lea.vmem %s5850_s5, %s4969_s21 }
  0x12   : > { %v236_v11 = vld [vmem:[%s5063_s8 + $0x8] sm:$0xff]  ;;  %v237_v12 = vld [vmem:[%s5063_s8 + $0x10] sm:$0xff]  ;;  %v235_v13 = vld [vmem:[%s5063_s8] sm:$0xff] }
  0x13   : > { %v4251_v20 = vld [vmem:[%s5063_s8 + $0x50] sm:$0x3f]  ;;  %v4252_v21 = vld [vmem:[%s5063_s8 + $0x58] sm:$0x3f]  ;;  %v4250_v26 = vld [vmem:[%s5063_s8 + $0x48] sm:$0x3f] }
  0x14   : > { %v239_v28 = vld [vmem:[%s5063_s8 + $0x20] sm:$0x3f]  ;;  %v240_v31 = vld [vmem:[%s5063_s8 + $0x28] sm:$0x3f]  ;;  %v238_v35 = vld [vmem:[%s5063_s8 + $0x18] sm:$0x3f] }
  0x15   : > { %v4267_v42 = vld [vmem:[%s5063_s8 + $0x50] sm:$0x3f]  ;;  %v4268_v47 = vld [vmem:[%s5063_s8 + $0x58] sm:$0x3f]  ;;  %v4266_v61 = vld [vmem:[%s5063_s8 + $0x48] sm:$0x3f] }
  0x16   : > { %v629_v62 = vld [vmem:[%s5063_s8 + $0x28] sm:$0x3f]  ;;  %v628_v3 = vld [vmem:[%s5063_s8 + $0x20] sm:$0x3f] }
  0x86   : > { %v5071_v14 = vpop.permute.xlu1 %259  ;;  %v5073_v15 = vpop.permute.xlu0 %243 }
  0x87   : > { %v287_v16 = vmul.f32 %v4248_v8, %v5073_v15  ;;  %v288_v17 = vmul.f32 %v4249_v9, %v5073_v15  ;;  %v286_v18 = vmul.f32 %v4247_v10, %v5073_v15  ;;  %v252_v19 = vmul.f32 %v5073_v15, %v236_v11  ;;  %v5149_v11 = vld [vmem:[%s5848_s3 + $0x10] sm:$0xff] }
  0x88   : > { %v253_v22 = vmul.f32 %v5073_v15, %v237_v12  ;;  %v251_v23 = vmul.f32 %v5073_v15, %v235_v13 }
  0x89   : > { %v293_v24 = vadd.f32 %v287_v16, %v5071_v14  ;;  %v294_v25 = vadd.f32 %v288_v17, %v5071_v14  ;;  %v292_v27 = vadd.f32 %v286_v18, %v5071_v14  ;;  %v5091_v30 = vadd.f32 %v5071_v14, %v252_v19  ;;  %v627_v17 = vld [vmem:[%s5063_s8 + $0x18] sm:$0x3f] }
  0x8a   : > { %v5088_v29 = vpop.permute.xlu0 %248  ;;  %v5097_v34 = vadd.f32 %v5071_v14, %v253_v22  ;;  %v5101_v36 = vadd.f32 %v5071_v14, %v251_v23  ;;  %v5103_v37 = vpop.permute.xlu1 %264 }
  0x8b   : > { %v290_v32 = vmul.f32 %v4251_v20, %v5088_v29  ;;  %v291_v33 = vmul.f32 %v4252_v21, %v5088_v29  ;;  %v5105_v38 = vmax.f32 %v293_v24, 0.0  ;;  %v5107_v39 = vmax.f32 %v294_v25, 0.0  ;;  %v4281_v20 = vld [vmem:[%s5063_s8 + $0x70] sm:$0xff]  ;;  %v4284_v21 = vld [vmem:[%s5063_s8 + $0x88] sm:$0x3f] }
  0x8c   : > { %v289_v40 = vmul.f32 %v4250_v26, %v5088_v29  ;;  %v255_v41 = vmul.f32 %v5088_v29, %v239_v28  ;;  %v5114_v45 = vmax.f32 %v292_v27, 0.0  ;;  %v256_v46 = vmul.f32 %v5088_v29, %v240_v31  ;;  %v4280_v25 = vld [vmem:[%s5063_s8 + $0x68] sm:$0xff] }
  0x8d   : > { %v296_v43 = vadd.f32 %v290_v32, %v5103_v37  ;;  %v297_v44 = vadd.f32 %v291_v33, %v5103_v37  ;;  %v274_v50 = vmax.f32 %v5091_v30, 0.0  ;;  %v254_v51 = vmul.f32 %v5088_v29, %v238_v35  ;;  %v5179_v32 = vld [vmem:[%s5848_s3 + $0x8] sm:$0xff] }
  0x8e   : > { %v295_v48 = vadd.f32 %v289_v40, %v5103_v37  ;;  %v271_v49 = vadd.f32 %v5103_v37, %v255_v41  ;;  %v272_v54 = vadd.f32 %v5103_v37, %v256_v46  ;;  %v658_v55 = vmul.f32 %v4267_v42, %v5088_v29  ;;  %v4283_v41 = vld [vmem:[%s5063_s8 + $0x80] sm:$0x3f] }
  0x8f   : > { %v302_v52 = vmax.f32 %v296_v43, 0.0  ;;  %v303_v53 = vmax.f32 %v297_v44, 0.0  ;;  %v270_v59 = vadd.f32 %v5103_v37, %v254_v51  ;;  %v659_v60 = vmul.f32 %v4268_v47, %v5088_v29  ;;  %v4304_v43 = vld [vmem:[%s5063_s8 + $0x88] sm:$0x3f] }
  0x90   : > { %v301_v57 = vmax.f32 %v295_v48, 0.0  ;;  %v277_v58 = vmax.f32 %v271_v49, 0.0  ;;  %v278_v1 = vmax.f32 %v272_v54, 0.0  ;;  %v664_v2 = vadd.f32 %v658_v55, %v5103_v37  ;;  %v4298_v49 = vld [vmem:[%s5063_s8 + $0x58] sm:$0x3f] }
  0x91   : > { %v4720_v63 = vpack.c.bf16 %v302_v52, %v5105_v38  ;;  %v4727_v0 = vpack.c.bf16 %v303_v53, %v5107_v39  ;;  %v275_v5 = vmax.f32 %v5097_v34, 0.0  ;;  %v276_v8 = vmax.f32 %v270_v59, 0.0  ;;  %v4282_v55 = vld [vmem:[%s5063_s8 + $0x78] sm:$0x3f]  ;;  %v4303_v59 = vld [vmem:[%s5063_s8 + $0x80] sm:$0x3f] }
  0x92   : > { %v4723_v4 = vpack.c.bf16 %v301_v57, %v5114_v45  ;;  %v665_v9 = vadd.f32 %v659_v60, %v5103_v37  ;;  %v4730_v10 = vpack.c.bf16 %v277_v58, %v274_v50  ;;  %v670_v12 = vmax.f32 %v664_v2, 0.0 }
  0x93   : > { %4722 = vmatprep.subr.msk.bf16.mxu0 %vm5125_vm4, %v4720_v63  ;;  %4729 = vmatpush3.bf16.msk.msra.mxu1 %vm5125_vm4, %v4727_v0  ;;  %v657_v13 = vmul.f32 %v4266_v61, %v5088_v29  ;;  %v635_v16 = vmul.f32 %v629_v62, %v5088_v29  ;;  %v273_v18 = vmax.f32 %v5101_v36, 0.0  ;;  %v634_v19 = vmul.f32 %v628_v3, %v5088_v29  ;;  %v4279_v63 = vld [vmem:[%s5063_s8 + $0x60] sm:$0xff] }
  0x94   : > { %4725 = vmatpush1.bf16.msk.msra.mxu0 %vm5125_vm4, %v4723_v4  ;;  %4736 = vmatprep.subr.bf16.mxu1 %v4996_v6  ;;  %v4737_v22 = vpack.c.bf16 %v278_v1, %v275_v5  ;;  %v671_v23 = vmax.f32 %v665_v9, 0.0  ;;  %v4740_v27 = vpack.c.bf16 %v670_v12, %v5105_v38  ;;  %v633_v31 = vmul.f32 %v627_v17, %v5088_v29  ;;  %v4320_v4 = vld [vmem:[%s5063_s8 + $0xb8] sm:$0x3f] }
  0x95   : > { %4732 = vmatprep.subr.msk.bf16.mxu0 %vm5125_vm4, %v4730_v10  ;;  %v641_v24 = vadd.f32 %v635_v16, %v5103_v37  ;;  %v4733_v26 = vpack.c.bf16 %v276_v8, %v273_v18  ;;  %v663_v28 = vadd.f32 %v657_v13, %v5103_v37  ;;  %v640_v33 = vadd.f32 %v634_v19, %v5103_v37  ;;  %v5230_v8 = vld [vmem:[%s5848_s3] sm:$0xff] }
  0x96   : > { %4571 = vmatmul.mubr.msk.f32.vlgmr.msra.gmra.mrb[0].mxu1 %vm304_vm2, %v5149_v11  ;;  %v984_v34 = vmul.f32 %v4281_v20, %v5073_v15  ;;  %v987_v35 = vmul.f32 %v4284_v21, %v5088_v29  ;;  %v983_v42 = vmul.f32 %v4280_v25, %v5073_v15  ;;  %v4747_v44 = vpack.c.bf16 %v671_v23, %v5107_v39  ;;  %v4340_v23 = vld [vmem:[%s5063_s8 + $0xb8] sm:$0x3f] }
  0x97   : > { %4255 = vmatmul.mubr.msk.f32.vlgmr.msra.gmra.mrb[0].mxu0 %vm304_vm2, %v5149_v11  ;;  %4739 = vmatpush3.bf16.msk.msra.mxu1 %vm5125_vm4, %v4737_v22  ;;  %v647_v40 = vmax.f32 %v641_v24, 0.0  ;;  %v669_v46 = vmax.f32 %v663_v28, 0.0  ;;  %v639_v47 = vadd.f32 %v633_v31, %v5103_v37  ;;  %v646_v51 = vmax.f32 %v640_v33, 0.0 }
  0x98   : > { %4735 = vmatpush1.bf16.msk.msra.mxu0 %vm5125_vm4, %v4733_v26  ;;  %4577 = vmatprep.mubr.msk.f32.mxu1 %vm4997_vm0, %v4998_v7  ;;  %v993_v48 = vadd.f32 %v987_v35, %v5103_v37  ;;  %v990_v52 = vadd.f32 %v984_v34, %v5071_v14  ;;  %v986_v53 = vmul.f32 %v4283_v41, %v5088_v29  ;;  %v4334_v41 = vld [vmem:[%s5063_s8 + $0x88] sm:$0x3f] }
  0x99   : > { %4742 = vmatprep.subr.msk.bf16.mxu0 %vm5125_vm4, %v4740_v27  ;;  %4746 = vmatprep.subr.bf16.mxu1 %v4996_v6  ;;  %v1195_v54 = vmul.f32 %v4304_v43, %v5088_v29  ;;  %v4757_v57 = vpack.c.bf16 %v647_v40, %v275_v5  ;;  %v989_v58 = vadd.f32 %v983_v42, %v5071_v14  ;;  %v645_v2 = vmax.f32 %v639_v47, 0.0  ;;  %v4302_v27 = vld [vmem:[%s5063_s8 + $0x78] sm:$0x3f] }
  0x9a   : > { %4578 = vmatmul.mubr.msk.f32.vlgmr.msra.gmra.mrb[2].mxu1 %vm304_vm2, %v5179_v32  ;;  %535 = vmatprep.mubr.f32.mxu0 %v4998_v7  ;;  %v999_v60 = vmax.f32 %v993_v48, 0.0  ;;  %v992_v61 = vadd.f32 %v986_v53, %v5103_v37  ;;  %v1171_v0 = vmul.f32 %v4298_v49, %v5088_v29  ;;  %v4743_v1 = vpack.c.bf16 %v669_v46, %v5114_v45  ;;  %v4296_v46 = vld [vmem:[%s5063_s8 + $0x48] sm:$0x3f]  ;;  %v4319_v48 = vld [vmem:[%s5063_s8 + $0xb0] sm:$0x3f] }
  0x9b   : > { %4749 = vmatpush3.bf16.msk.msra.mxu1 %vm5125_vm4, %v4747_v44  ;;  %4584 = vmatprep.mubr.msk.f32.mxu1 %vm4997_vm0, %v4998_v7  ;;  %v1201_v62 = vadd.f32 %v1195_v54, %v5103_v37  ;;  %v985_v3 = vmul.f32 %v4282_v55, %v5088_v29  ;;  %v4750_v5 = vpack.c.bf16 %v646_v51, %v274_v50  ;;  %v5232_v9 = vmax.f32 %v990_v52, 0.0  ;;  %v4317_v50 = vld [vmem:[%s5063_s8 + $0xa0] sm:$0xff]  ;;  %v4316_v54 = vld [vmem:[%s5063_s8 + $0x98] sm:$0xff] }
  0x9c   : > { %4756 = vmatprep.subr.bf16.mxu1 %v4996_v6  ;;  %v998_v10 = vmax.f32 %v992_v61, 0.0  ;;  %v1194_v12 = vmul.f32 %v4303_v59, %v5088_v29  ;;  %v5239_v13 = vmax.f32 %v989_v58, 0.0  ;;  %v982_v30 = vmul.f32 %v4279_v63, %v5073_v15  ;;  %v4356_v59 = vld [vmem:[%s5063_s8 + $0xe8] sm:$0x3f] }
  0x9d   : > { %v4767_v16 = vpack.c.bf16 %v999_v60, %v5232_v9  ;;  %v1207_v17 = vmax.f32 %v1201_v62, 0.0  ;;  %v1177_v19 = vadd.f32 %v1171_v0, %v5103_v37  ;;  %v1520_v20 = vmul.f32 %v4320_v4, %v5088_v29  ;;  %v4353_v0 = vld [vmem:[%s5063_s8 + $0xd0] sm:$0xff] }
  0x9e   : > { %4585 = vmatmul.mubr.msk.f32.vlgmr.msra.gmra.mrb[4].mxu1 %vm304_vm2, %v5179_v32  ;;  %v4753_v21 = vpack.c.bf16 %v645_v2, %v273_v18  ;;  %v991_v22 = vadd.f32 %v985_v3, %v5103_v37  ;;  %v4760_v24 = vpack.c.bf16 %v998_v10, %v5239_v13  ;;  %v1200_v25 = vadd.f32 %v1194_v12, %v5103_v37  ;;  %v4297_v18 = vld [vmem:[%s5063_s8 + $0x50] sm:$0x3f]  ;;  %v4376_v12 = vld [vmem:[%s5063_s8 + $0xe8] sm:$0x3f] }
  0x9f   : > { %4260 = vmatmul.mubr.msk.f32.vlgmr.msra.gmra.mrb[0].mxu0 %vm304_vm2, %v5179_v32  ;;  %4759 = vmatpush3.bf16.msk.msra.mxu1 %vm5125_vm4, %v4757_v57  ;;  %v1517_v26 = vmul.f32 %v4317_v50, %v5073_v15  ;;  %v988_v36 = vadd.f32 %v982_v30, %v5071_v14  ;;  %v4777_v28 = vpack.c.bf16 %v1207_v17, %v5232_v9  ;;  %v1183_v31 = vmax.f32 %v1177_v19, 0.0  ;;  %v4318_v17 = vld [vmem:[%s5063_s8 + $0xa8] sm:$0x3f] }
  0xa0   : > { %4745 = vmatpush1.bf16.msk.msra.mxu0 %vm5125_vm4, %v4743_v1  ;;  %4591 = vmatprep.mubr.msk.f32.mxu1 %vm4997_vm0, %v4998_v7  ;;  %v1526_v33 = vadd.f32 %v1520_v20, %v5103_v37  ;;  %v1728_v34 = vmul.f32 %v4340_v23, %v5088_v29  ;;  %v997_v35 = vmax.f32 %v991_v22, 0.0  ;;  %v1193_v40 = vmul.f32 %v4302_v27, %v5088_v29  ;;  %v4339_v20 = vld [vmem:[%s5063_s8 + $0xb0] sm:$0x3f] }
  0xa1   : > { %4752 = vmatprep.subr.msk.bf16.mxu0 %vm5125_vm4, %v4750_v5  ;;  %745 = vmatprep.mubr.f32.mxu0 %v4998_v7  ;;  %v1206_v42 = vmax.f32 %v1200_v25, 0.0  ;;  %v1523_v43 = vadd.f32 %v1517_v26, %v5071_v14  ;;  %v1170_v44 = vmul.f32 %v4297_v18, %v5088_v29  ;;  %v5289_v47 = vmax.f32 %v988_v36, 0.0  ;;  %v4370_v26 = vld [vmem:[%s5063_s8 + $0xb8] sm:$0x3f] }
  0xa2   : > { %4592 = vmatmul.mubr.msk.f32.vlgmr.msra.gmra.mrb[6].mxu1 %vm304_vm2, %v5230_v8  ;;  %4766 = vmatprep.subr.bf16.mxu1 %v4996_v6  ;;  %v4787_v49 = vpack.c.bf16 %v1183_v31, %v5107_v39  ;;  %v1532_v51 = vmax.f32 %v1526_v33, 0.0  ;;  %v1734_v52 = vadd.f32 %v1728_v34, %v5103_v37  ;;  %v1704_v53 = vmul.f32 %v4334_v41, %v5088_v29 }
  0xa3   : > { %4271 = vmatmul.mubr.msk.f32.vlgmr.msra.gmra.mrb[2].mxu0 %vm304_vm2, %v5179_v32  ;;  %4769 = vmatpush3.bf16.msk.msra.mxu1 %vm5125_vm4, %v4767_v16  ;;  %v4763_v55 = vpack.c.bf16 %v997_v35, %v5289_v47  ;;  %v1199_v57 = vadd.f32 %v1193_v40, %v5103_v37  ;;  %v1169_v58 = vmul.f32 %v4296_v46, %v5088_v29  ;;  %v5307_v60 = vmax.f32 %v1523_v43, 0.0 }
  0xa4   : > { %4755 = vmatpush1.bf16.msk.msra.mxu0 %vm5125_vm4, %v4753_v21  ;;  %4598 = vmatprep.mubr.msk.f32.mxu1 %vm4997_vm0, %v4998_v7  ;;  %v4770_v39 = vpack.c.bf16 %v1206_v42, %v5239_v13  ;;  %v1176_v61 = vadd.f32 %v1170_v44, %v5103_v37  ;;  %v1519_v62 = vmul.f32 %v4319_v48, %v5088_v29  ;;  %v1740_v2 = vmax.f32 %v1734_v52, 0.0  ;;  %v4392_v44 = vld [vmem:[%s5063_s8 + $0x118] sm:$0x3f]  ;;  %v4338_v52 = vld [vmem:[%s5063_s8 + $0xa8] sm:$0x3f] }
  0xa5   : > { %4762 = vmatprep.subr.msk.bf16.mxu0 %vm5125_vm4, %v4760_v24  ;;  %4776 = vmatprep.subr.bf16.mxu1 %v4996_v6  ;;  %v1516_v63 = vmul.f32 %v4316_v54, %v5073_v15  ;;  %v4797_v1 = vpack.c.bf16 %v1532_v51, %v5307_v60  ;;  %v1710_v3 = vadd.f32 %v1704_v53, %v5103_v37  ;;  %v1205_v5 = vmax.f32 %v1199_v57, 0.0  ;;  %v4315_v24 = vld [vmem:[%s5063_s8 + $0x90] sm:$0xff]  ;;  %v4389_v53 = vld [vmem:[%s5063_s8 + $0x100] sm:$0xff] }
  0xa6   : > { %4599 = vmatmul.mubr.msk.f32.vlgmr.msra.gmra.mrb[8].mxu1 %vm304_vm2, %v5149_v11  ;;  %898 = vmatprep.mubr.f32.mxu0 %v4998_v7  ;;  %v2053_v4 = vmul.f32 %v4356_v59, %v5088_v29  ;;  %v1175_v10 = vadd.f32 %v1169_v58, %v5103_v37  ;;  %v1182_v30 = vmax.f32 %v1176_v61, 0.0  ;;  %v1525_v50 = vadd.f32 %v1519_v62, %v5103_v37  ;;  %v4333_v57 = vld [vmem:[%s5063_s8 + $0x80] sm:$0x3f] }
  0xa7   : > { %4779 = vmatpush3.bf16.msk.msra.mxu1 %vm5125_vm4, %v4777_v28  ;;  %4605 = vmatprep.mubr.msk.f32.mxu1 %vm4997_vm0, %v4998_v7  ;;  %v2050_v16 = vmul.f32 %v4353_v0, %v5073_v15  ;;  %v1522_v19 = vadd.f32 %v1516_v63, %v5071_v14  ;;  %v4807_v21 = vpack.c.bf16 %v1740_v2, %v5307_v60  ;;  %v1716_v22 = vmax.f32 %v1710_v3, 0.0  ;;  %v4412_v63 = vld [vmem:[%s5063_s8 + $0x118] sm:$0x3f] }
  0xa8   : > { %4786 = vmatprep.subr.bf16.mxu1 %v4996_v6  ;;  %v2059_v23 = vadd.f32 %v2053_v4, %v5103_v37  ;;  %v2261_v25 = vmul.f32 %v4376_v12, %v5088_v29  ;;  %v4773_v27 = vpack.c.bf16 %v1205_v5, %v5289_v47  ;;  %v1181_v36 = vmax.f32 %v1175_v10, 0.0  ;;  %v4332_v2 = vld [vmem:[%s5063_s8 + $0x78] sm:$0x3f]  ;;  %v4355_v10 = vld [vmem:[%s5063_s8 + $0xe0] sm:$0x3f] }
  0xa9   : > { %v1518_v18 = vmul.f32 %v4318_v17, %v5088_v29  ;;  %v4780_v28 = vpack.c.bf16 %v1182_v30, %v5105_v38  ;;  %v1531_v31 = vmax.f32 %v1525_v50, 0.0  ;;  %v2056_v33 = vadd.f32 %v2050_v16, %v5071_v14 }
  0xaa   : > { %4606 = vmatmul.mubr.msk.f32.vlgmr.msra.gmra.mrb[10].mxu1 %vm304_vm2, %v5179_v32  ;;  %v1727_v34 = vmul.f32 %v4339_v20, %v5088_v29  ;;  %v1515_v35 = vmul.f32 %v4315_v24, %v5073_v15  ;;  %v2237_v40 = vmul.f32 %v4370_v26, %v5088_v29  ;;  %v4817_v38 = vpack.c.bf16 %v1716_v22, %v5232_v9  ;;  %v4352_v20 = vld [vmem:[%s5063_s8 + $0xc8] sm:$0xff] }
  0xab   : > { %4276 = vmatmul.mubr.msk.f32.vlgmr.msra.gmra.mrb[2].mxu0 %vm304_vm2, %v5230_v8  ;;  %4789 = vmatpush3.bf16.msk.msra.mxu1 %vm5125_vm4, %v4787_v49  ;;  %v5364_v41 = vmax.f32 %v1522_v19, 0.0  ;;  %v2065_v42 = vmax.f32 %v2059_v23, 0.0  ;;  %v2267_v43 = vadd.f32 %v2261_v25, %v5103_v37  ;;  %v4783_v46 = vpack.c.bf16 %v1181_v36, %v5114_v45 }
  0xac   : > { %4765 = vmatpush1.bf16.msk.msra.mxu0 %vm5125_vm4, %v4763_v55  ;;  %4612 = vmatprep.mubr.msk.f32.mxu1 %vm4997_vm0, %v4998_v7  ;;  %v1524_v48 = vadd.f32 %v1518_v18, %v5103_v37  ;;  %v5378_v49 = vmax.f32 %v2056_v33, 0.0  ;;  %v1733_v51 = vadd.f32 %v1727_v34, %v5103_v37  ;;  %v1521_v45 = vadd.f32 %v1515_v35, %v5071_v14  ;;  %v4428_v33 = vld [vmem:[%s5063_s8 + $0x148] sm:$0x3f] }
  0xad   : > { %4772 = vmatprep.subr.msk.bf16.mxu0 %vm5125_vm4, %v4770_v39  ;;  %4796 = vmatprep.subr.bf16.mxu1 %v4996_v6  ;;  %v4790_v9 = vpack.c.bf16 %v1531_v31, %v5364_v41  ;;  %v2243_v54 = vadd.f32 %v2237_v40, %v5103_v37  ;;  %v2586_v55 = vmul.f32 %v4392_v44, %v5088_v29  ;;  %v2273_v59 = vmax.f32 %v2267_v43, 0.0  ;;  %v4354_v40 = vld [vmem:[%s5063_s8 + $0xd8] sm:$0x3f]  ;;  %v4375_v43 = vld [vmem:[%s5063_s8 + $0xe0] sm:$0x3f] }
  0xae   : > { %4613 = vmatmul.mubr.msk.f32.vlgmr.msra.gmra.mrb[12].mxu1 %vm304_vm2, %v5230_v8  ;;  %1073 = vmatprep.mubr.f32.mxu0 %v4998_v7  ;;  %v4827_v58 = vpack.c.bf16 %v2065_v42, %v5378_v49  ;;  %v1530_v39 = vmax.f32 %v1524_v48, 0.0  ;;  %v1726_v61 = vmul.f32 %v4338_v52, %v5088_v29  ;;  %v2583_v62 = vmul.f32 %v4389_v53, %v5073_v15  ;;  %v4425_v42 = vld [vmem:[%s5063_s8 + $0x130] sm:$0xff]  ;;  %v4448_v52 = vld [vmem:[%s5063_s8 + $0x148] sm:$0x3f] }
  0xaf   : > { %4799 = vmatpush3.bf16.msk.msra.mxu1 %vm5125_vm4, %v4797_v1  ;;  %4619 = vmatprep.mubr.msk.f32.mxu1 %vm4997_vm0, %v4998_v7  ;;  %v1739_v0 = vmax.f32 %v1733_v51, 0.0  ;;  %v1703_v1 = vmul.f32 %v4333_v57, %v5088_v29  ;;  %v5408_v3 = vmax.f32 %v1521_v45, 0.0  ;;  %v2249_v4 = vmax.f32 %v2243_v54, 0.0 }
  0xb0   : > { %4806 = vmatprep.subr.bf16.mxu1 %v4996_v6  ;;  %v2592_v5 = vadd.f32 %v2586_v55, %v5103_v37  ;;  %v4837_v12 = vpack.c.bf16 %v2273_v59, %v5378_v49  ;;  %v2794_v30 = vmul.f32 %v4412_v63, %v5088_v29  ;;  %v1732_v16 = vadd.f32 %v1726_v61, %v5103_v37 }
  0xb1   : > { %v4793_v50 = vpack.c.bf16 %v1530_v39, %v5408_v3  ;;  %v2589_v17 = vadd.f32 %v2583_v62, %v5071_v14  ;;  %v1702_v19 = vmul.f32 %v4332_v2, %v5088_v29  ;;  %v4800_v22 = vpack.c.bf16 %v1739_v0, %v5364_v41 }
  0xb2   : > { %4620 = vmatmul.mubr.msk.f32.vlgmr.msra.gmra.mrb[14].mxu1 %vm304_vm2, %v5149_v11  ;;  %v1709_v23 = vadd.f32 %v1703_v1, %v5103_v37  ;;  %v2052_v24 = vmul.f32 %v4355_v10, %v5088_v29  ;;  %v4847_v25 = vpack.c.bf16 %v2249_v4, %v5307_v60  ;;  %v2598_v26 = vmax.f32 %v2592_v5, 0.0  ;;  %v4442_v1 = vld [vmem:[%s5063_s8 + $0x118] sm:$0x3f] }
  0xb3   : > { %4287 = vmatmul.mubr.msk.f32.vlgmr.msra.gmra.mrb[2].mxu0 %vm304_vm2, %v5149_v11  ;;  %4809 = vmatpush3.bf16.msk.msra.mxu1 %vm5125_vm4, %v4807_v21  ;;  %v4406_v21 = vld [vmem:[%s5063_s8 + $0xe8] sm:$0x3f]  ;;  %v2049_v36 = vmul.f32 %v4352_v20, %v5073_v15  ;;  %v1738_v60 = vmax.f32 %v1732_v16, 0.0  ;;  %v1708_v31 = vadd.f32 %v1702_v19, %v5103_v37  ;;  %v3119_v51 = vmul.f32 %v4428_v33, %v5088_v29 }
  0xb4   : > { %4775 = vmatpush1.bf16.msk.msra.mxu0 %vm5125_vm4, %v4773_v27  ;;  %4626 = vmatprep.mubr.msk.f32.mxu1 %vm4997_vm0, %v4998_v7  ;;  %v2800_v27 = vadd.f32 %v2794_v30, %v5103_v37  ;;  %v2770_v18 = vmul.f32 %v4406_v21, %v5088_v29  ;;  %v1715_v34 = vmax.f32 %v1709_v23, 0.0  ;;  %v2058_v35 = vadd.f32 %v2052_v24, %v5103_v37  ;;  %v4374_v30 = vld [vmem:[%s5063_s8 + $0xd8] sm:$0x3f] }
  0xb5   : > { %4782 = vmatprep.subr.msk.bf16.mxu0 %vm5125_vm4, %v4780_v28  ;;  %1281 = vmatprep.mubr.f32.mxu0 %v4998_v7  ;;  %v5443_v28 = vmax.f32 %v2589_v17, 0.0  ;;  %v4803_v53 = vpack.c.bf16 %v1738_v60, %v5408_v3  ;;  %v1714_v45 = vmax.f32 %v1708_v31, 0.0  ;;  %v2051_v54 = vmul.f32 %v4354_v40, %v5088_v29  ;;  %v4464_v24 = vld [vmem:[%s5063_s8 + $0x178] sm:$0x3f]  ;;  %v4461_v60 = vld [vmem:[%s5063_s8 + $0x160] sm:$0xff] }
  0xb6   : > { %4627 = vmatmul.mubr.msk.f32.vlgmr.msra.gmra.mrb[16].mxu1 %vm304_vm2, %v5179_v32  ;;  %4816 = vmatprep.subr.bf16.mxu1 %v4996_v6  ;;  %v2806_v44 = vmax.f32 %v2800_v27, 0.0  ;;  %v2776_v48 = vadd.f32 %v2770_v18, %v5103_v37  ;;  %v4810_v55 = vpack.c.bf16 %v1715_v34, %v5239_v13  ;;  %v2064_v57 = vmax.f32 %v2058_v35, 0.0  ;;  %v4391_v31 = vld [vmem:[%s5063_s8 + $0x110] sm:$0x3f] }
  0xb7   : > { %4307 = vmatmul.mubr.msk.f32.vlgmr.msra.gmra.mrb[4].mxu0 %vm304_vm2, %v5179_v32  ;;  %4819 = vmatpush3.bf16.msk.msra.mxu1 %vm5125_vm4, %v4817_v38  ;;  %v4857_v38 = vpack.c.bf16 %v2598_v26, %v5443_v28  ;;  %v2260_v59 = vmul.f32 %v4375_v43, %v5088_v29  ;;  %v3327_v61 = vmul.f32 %v4448_v52, %v5088_v29  ;;  %v4368_v26 = vld [vmem:[%s5063_s8 + $0xa8] sm:$0x3f]  ;;  %v4388_v43 = vld [vmem:[%s5063_s8 + $0xf8] sm:$0xff] }
  0xb8   : > { %4785 = vmatpush1.bf16.msk.msra.mxu0 %vm5125_vm4, %v4783_v46  ;;  %4633 = vmatprep.mubr.msk.f32.mxu1 %vm4997_vm0, %v4998_v7  ;;  %v2055_v46 = vadd.f32 %v2049_v36, %v5071_v14  ;;  %v4867_v13 = vpack.c.bf16 %v2806_v44, %v5443_v28  ;;  %v2782_v63 = vmax.f32 %v2776_v48, 0.0  ;;  %v3125_v0 = vadd.f32 %v3119_v51, %v5103_v37  ;;  %v4484_v44 = vld [vmem:[%s5063_s8 + $0x178] sm:$0x3f] }
  0xb9   : > { %4792 = vmatprep.subr.msk.bf16.mxu0 %vm5125_vm4, %v4790_v9  ;;  %4826 = vmatprep.subr.bf16.mxu1 %v4996_v6  ;;  %v4351_v9 = vld [vmem:[%s5063_s8 + $0xc0] sm:$0xff]  ;;  %v4813_v2 = vpack.c.bf16 %v1714_v45, %v5289_v47  ;;  %v2057_v4 = vadd.f32 %v2051_v54, %v5103_v37  ;;  %v3333_v16 = vadd.f32 %v3327_v61, %v5103_v37 }
  0xba   : > { %4634 = vmatmul.mubr.msk.f32.vlgmr.msra.gmra.mrb[18].mxu1 %vm304_vm2, %v5230_v8  ;;  %1431 = vmatprep.mubr.f32.mxu0 %v4998_v7  ;;  %v2048_v39 = vmul.f32 %v4351_v9, %v5073_v15  ;;  %v5483_v62 = vmax.f32 %v2055_v46, 0.0  ;;  %v3303_v17 = vmul.f32 %v4442_v1, %v5088_v29  ;;  %v4877_v19 = vpack.c.bf16 %v2782_v63, %v5378_v49 }
  0xbb   : > { %4829 = vmatpush3.bf16.msk.msra.mxu1 %vm5125_vm4, %v4827_v58  ;;  %4640 = vmatprep.mubr.msk.f32.mxu1 %vm4997_vm0, %v4998_v7  ;;  %v3116_v58 = vmul.f32 %v4425_v42, %v5073_v15  ;;  %v3131_v20 = vmax.f32 %v3125_v0, 0.0  ;;  %v2063_v21 = vmax.f32 %v2057_v4, 0.0  ;;  %v3339_v36 = vmax.f32 %v3333_v16, 0.0  ;;  %v4411_v0 = vld [vmem:[%s5063_s8 + $0x110] sm:$0x3f] }
  0xbc   : > { %4836 = vmatprep.subr.bf16.mxu1 %v4996_v6  ;;  %v4820_v5 = vpack.c.bf16 %v2064_v57, %v5483_v62  ;;  %v2054_v47 = vadd.f32 %v2048_v39, %v5071_v14  ;;  %v3309_v18 = vadd.f32 %v3303_v17, %v5103_v37  ;;  %v3652_v34 = vmul.f32 %v4464_v24, %v5088_v29 }
  0xbd   : > { %v3122_v10 = vadd.f32 %v3116_v58, %v5071_v14  ;;  %v2235_v42 = vmul.f32 %v4368_v26, %v5088_v29  ;;  %v3649_v48 = vmul.f32 %v4461_v60, %v5073_v15  ;;  %v2585_v9 = vmul.f32 %v4391_v31, %v5088_v29  ;;  %v4478_v58 = vld [vmem:[%s5063_s8 + $0x148] sm:$0x3f] }
  0xbe   : > { %4641 = vmatmul.mubr.msk.f32.vlgmr.msra.gmra.mrb[20].mxu1 %vm304_vm2, %v5149_v11  ;;  %v5526_v27 = vmax.f32 %v2054_v47, 0.0  ;;  %v3315_v52 = vmax.f32 %v3309_v18, 0.0  ;;  %v2582_v45 = vmul.f32 %v4388_v43, %v5073_v15  ;;  %v3860_v54 = vmul.f32 %v4484_v44, %v5088_v29  ;;  %v4405_v18 = vld [vmem:[%s5063_s8 + $0xe0] sm:$0x3f] }
  0xbf   : > { %4312 = vmatmul.mubr.msk.f32.vlgmr.msra.gmra.mrb[4].mxu0 %vm304_vm2, %v5230_v8  ;;  %4839 = vmatpush3.bf16.msk.msra.mxu1 %vm5125_vm4, %v4837_v12  ;;  %v2266_v12 = vadd.f32 %v2260_v59, %v5103_v37  ;;  %v5522_v49 = vmax.f32 %v3122_v10, 0.0  ;;  %v2241_v57 = vadd.f32 %v2235_v42, %v5103_v37  ;;  %v3655_v39 = vadd.f32 %v3649_v48, %v5071_v14  ;;  %v4427_v43 = vld [vmem:[%s5063_s8 + $0x140] sm:$0x3f] }
  0xc0   : > { %4795 = vmatpush1.bf16.msk.msra.mxu0 %vm5125_vm4, %v4793_v50  ;;  %4647 = vmatprep.mubr.msk.f32.mxu1 %vm4997_vm0, %v4998_v7  ;;  %v4369_v50 = vld [vmem:[%s5063_s8 + $0xb0] sm:$0x3f]  ;;  %v4823_v35 = vpack.c.bf16 %v2063_v21, %v5526_v27  ;;  %v2591_v61 = vadd.f32 %v2585_v9, %v5103_v37  ;;  %v4907_v63 = vpack.c.bf16 %v3315_v52, %v5443_v28 }
  0xc1   : > { %4802 = vmatprep.subr.msk.bf16.mxu0 %vm5125_vm4, %v4800_v22  ;;  %4846 = vmatprep.subr.bf16.mxu1 %v4996_v6  ;;  %v2259_v22 = vmul.f32 %v4374_v30, %v5088_v29  ;;  %v2236_v23 = vmul.f32 %v4369_v50, %v5088_v29  ;;  %v4887_v33 = vpack.c.bf16 %v3131_v20, %v5522_v49  ;;  %v2247_v30 = vmax.f32 %v2241_v57, 0.0 }
  0xc2   : > { %4648 = vmatmul.mubr.msk.f32.vlgmr.msra.gmra.mrb[22].mxu1 %vm304_vm2, %v5179_v32  ;;  %1606 = vmatprep.mubr.f32.mxu0 %v4998_v7  ;;  %v4897_v51 = vpack.c.bf16 %v3339_v36, %v5522_v49  ;;  %v3866_v4 = vadd.f32 %v3860_v54, %v5103_v37  ;;  %v3836_v10 = vmul.f32 %v4478_v58, %v5088_v29  ;;  %v3661_v47 = vmax.f32 %v3655_v39, 0.0  ;;  %v4410_v36 = vld [vmem:[%s5063_s8 + $0x108] sm:$0x3f]  ;;  %v4426_v58 = vld [vmem:[%s5063_s8 + $0x138] sm:$0x3f] }
  0xc3   : > { %4849 = vmatpush3.bf16.msk.msra.mxu1 %vm5125_vm4, %v4847_v25  ;;  %4654 = vmatprep.mubr.msk.f32.mxu1 %vm4997_vm0, %v4998_v7  ;;  %v2272_v25 = vmax.f32 %v2266_v12, 0.0  ;;  %v2265_v40 = vadd.f32 %v2259_v22, %v5103_v37  ;;  %v2597_v16 = vmax.f32 %v2591_v61, 0.0  ;;  %v2793_v17 = vmul.f32 %v4411_v0, %v5088_v29  ;;  %v4423_v61 = vld [vmem:[%s5063_s8 + $0x120] sm:$0xff] }
  0xc4   : > { %4856 = vmatprep.subr.bf16.mxu1 %v4996_v6  ;;  %v3872_v21 = vmax.f32 %v3866_v4, 0.0  ;;  %v3842_v22 = vadd.f32 %v3836_v10, %v5103_v37  ;;  %v3118_v52 = vmul.f32 %v4427_v43, %v5088_v29  ;;  %v3117_v0 = vmul.f32 %v4426_v58, %v5088_v29  ;;  %v4483_v43 = vld [vmem:[%s5063_s8 + $0x170] sm:$0x3f]  ;;  %v4477_v58 = vld [vmem:[%s5063_s8 + $0x140] sm:$0x3f] }
  0xc5   : > { %v4830_v46 = vpack.c.bf16 %v2272_v25, %v5483_v62  ;;  %v2799_v26 = vadd.f32 %v2793_v17, %v5103_v37 }
  0xc6   : > { %4655 = vmatmul.mubr.msk.f32.vlgmr.msra.gmra.mrb[24].mxu1 %vm304_vm2, %v5230_v8  ;;  %v4927_v60 = vpack.c.bf16 %v3872_v21, %v3661_v47  ;;  %v3848_v31 = vmax.f32 %v3842_v22, 0.0  ;;  %v3124_v57 = vadd.f32 %v3118_v52, %v5103_v37  ;;  %v4440_v21 = vld [vmem:[%s5063_s8 + $0x108] sm:$0x3f]  ;;  %v3859_v52 = vmul.f32 %v4483_v43, %v5088_v29 }
  0xc7   : > { %4323 = vmatmul.mubr.msk.f32.vlgmr.msra.gmra.mrb[4].mxu0 %vm304_vm2, %v5149_v11  ;;  %4859 = vmatpush3.bf16.msk.msra.mxu1 %vm5125_vm4, %v4857_v38  ;;  %v2242_v38 = vadd.f32 %v2236_v23, %v5103_v37  ;;  %v4843_v23 = vpack.c.bf16 %v2247_v30, %v5408_v3 }
  0xc8   : > { %4805 = vmatpush1.bf16.msk.msra.mxu0 %vm5125_vm4, %v4803_v53  ;;  %4661 = vmatprep.mubr.msk.f32.mxu1 %vm4997_vm0, %v4998_v7  ;;  %v3658_v53 = vadd.f32 %v3652_v34, %v5103_v37  ;;  %v2792_v34 = vmul.f32 %v4410_v36, %v5088_v29  ;;  %v4937_v44 = vpack.c.bf16 %v3848_v31, %v5522_v49  ;;  %v4460_v36 = vld [vmem:[%s5063_s8 + $0x158] sm:$0xff] }
  0xc9   : > { %4812 = vmatprep.subr.msk.bf16.mxu0 %vm5125_vm4, %v4810_v55  ;;  %1814 = vmatprep.mubr.f32.mxu0 %v4998_v7  ;;  %v2271_v55 = vmax.f32 %v2265_v40, 0.0  ;;  %v2248_v59 = vmax.f32 %v2242_v38, 0.0  ;;  %v2769_v40 = vmul.f32 %v4405_v18, %v5088_v29  ;;  %v4404_v38 = vld [vmem:[%s5063_s8 + $0xd8] sm:$0x3f]  ;;  %v3648_v31 = vmul.f32 %v4460_v36, %v5073_v15 }
  0xca   : > { %4662 = vmatmul.mubr.msk.f32.vlgmr.msra.gmra.mrb[26].mxu1 %vm304_vm2, %v5149_v11  ;;  %4866 = vmatprep.subr.bf16.mxu1 %v4996_v6  ;;  %v3664_v1 = vmax.f32 %v3658_v53, 0.0  ;;  %v2798_v48 = vadd.f32 %v2792_v34, %v5103_v37  ;;  %v2768_v9 = vmul.f32 %v4404_v38, %v5088_v29  ;;  %v4462_v38 = vld [vmem:[%s5063_s8 + $0x168] sm:$0x3f] }
  0xcb   : > { %4343 = vmatmul.mubr.msk.f32.vlgmr.msra.gmra.mrb[6].mxu0 %vm304_vm2, %v5179_v32  ;;  %4869 = vmatpush3.bf16.msk.msra.mxu1 %vm5125_vm4, %v4867_v13  ;;  %v4390_v13 = vld [vmem:[%s5063_s8 + $0x108] sm:$0x3f]  ;;  %v4833_v12 = vpack.c.bf16 %v2271_v55, %v5526_v27  ;;  %v4840_v28 = vpack.c.bf16 %v2248_v59, %v5364_v41  ;;  %v2775_v49 = vadd.f32 %v2769_v40, %v5103_v37  ;;  %v4447_v59 = vld [vmem:[%s5063_s8 + $0x140] sm:$0x3f] }
  0xcc   : > { %4815 = vmatpush1.bf16.msk.msra.mxu0 %vm5125_vm4, %v4813_v2  ;;  %4668 = vmatprep.mubr.msk.f32.mxu1 %vm4997_vm0, %v4998_v7  ;;  %v2588_v2 = vadd.f32 %v2582_v45, %v5071_v14  ;;  %v2584_v50 = vmul.f32 %v4390_v13, %v5088_v29  ;;  %v4917_v20 = vpack.c.bf16 %v3664_v1, %v3661_v47  ;;  %v2804_v45 = vmax.f32 %v2798_v48, 0.0 }
  0xcd   : > { %4822 = vmatprep.subr.msk.bf16.mxu0 %vm5125_vm4, %v4820_v5  ;;  %4876 = vmatprep.subr.bf16.mxu1 %v4996_v6  ;;  %v4387_v5 = vld [vmem:[%s5063_s8 + $0xf0] sm:$0xff]  ;;  %v2774_v54 = vadd.f32 %v2768_v9, %v5103_v37  ;;  %v2781_v55 = vmax.f32 %v2775_v49, 0.0  ;;  %v3326_v4 = vmul.f32 %v4447_v59, %v5088_v29 }
  0xce   : > { %4669 = vmatmul.mubr.msk.f32.vlgmr.msra.gmra.mrb[28].mxu1 %vm304_vm2, %v5179_v32  ;;  %1964 = vmatprep.mubr.f32.mxu0 %v4998_v7  ;;  %v5596_v41 = vmax.f32 %v2588_v2, 0.0  ;;  %v2590_v24 = vadd.f32 %v2584_v50, %v5103_v37  ;;  %v3130_v2 = vmax.f32 %v3124_v57, 0.0  ;;  %v4482_v57 = vld [vmem:[%s5063_s8 + $0x168] sm:$0x3f] }
  0xcf   : > { %4879 = vmatpush3.bf16.msk.msra.mxu1 %vm5125_vm4, %v4877_v19  ;;  %4675 = vmatprep.mubr.msk.f32.mxu1 %vm4997_vm0, %v4998_v7  ;;  %v2581_v19 = vmul.f32 %v4387_v5, %v5073_v15  ;;  %v4870_v1 = vpack.c.bf16 %v2781_v55, %v5483_v62  ;;  %v3114_v5 = vmul.f32 %v4423_v61, %v5073_v15  ;;  %v4476_v61 = vld [vmem:[%s5063_s8 + $0x138] sm:$0x3f] }
  0xd0   : > { %4886 = vmatprep.subr.bf16.mxu1 %v4996_v6  ;;  %v4850_v25 = vpack.c.bf16 %v2597_v16, %v5596_v41  ;;  %v3123_v62 = vadd.f32 %v3117_v0, %v5103_v37  ;;  %v3332_v50 = vadd.f32 %v3326_v4, %v5103_v37  ;;  %v3865_v55 = vadd.f32 %v3859_v52, %v5103_v37 }
  0xd1   : > { %v2587_v3 = vadd.f32 %v2581_v19, %v5071_v14  ;;  %v3120_v47 = vadd.f32 %v3114_v5, %v5071_v14  ;;  %v3858_v59 = vmul.f32 %v4482_v57, %v5088_v29 }
  0xd2   : > { %4676 = vmatmul.mubr.msk.f32.vlgmr.msra.gmra.mrb[30].mxu1 %vm304_vm2, %v5230_v8  ;;  %v3129_v16 = vmax.f32 %v3123_v62, 0.0  ;;  %v3338_v19 = vmax.f32 %v3332_v50, 0.0 }
  0xd3   : > { %4348 = vmatmul.mubr.msk.f32.vlgmr.msra.gmra.mrb[6].mxu0 %vm304_vm2, %v5230_v8  ;;  %4889 = vmatpush3.bf16.msk.msra.mxu1 %vm5125_vm4, %v4887_v33  ;;  %v2596_v33 = vmax.f32 %v2590_v24, 0.0  ;;  %v5631_v42 = vmax.f32 %v2587_v3, 0.0  ;;  %v5695_v22 = vmax.f32 %v3120_v47, 0.0  ;;  %v3864_v0 = vadd.f32 %v3858_v59, %v5103_v37 }
  0xd4   : > { %4825 = vmatpush1.bf16.msk.msra.mxu0 %vm5125_vm4, %v4823_v35  ;;  %4682 = vmatprep.mubr.msk.f32.mxu1 %vm4997_vm0, %v4998_v7  ;;  %v2805_v35 = vmax.f32 %v2799_v26, 0.0  ;;  %v3301_v26 = vmul.f32 %v4440_v21, %v5088_v29 }
  0xd5   : > { %4832 = vmatprep.subr.msk.bf16.mxu0 %vm5125_vm4, %v4830_v46  ;;  %4896 = vmatprep.subr.bf16.mxu1 %v4996_v6  ;;  %v4853_v46 = vpack.c.bf16 %v2596_v33, %v5631_v42  ;;  %v4863_v13 = vpack.c.bf16 %v2804_v45, %v5631_v42  ;;  %v4883_v24 = vpack.c.bf16 %v3129_v16, %v5695_v22  ;;  %v3870_v4 = vmax.f32 %v3864_v0, 0.0 }
  0xd6   : > { %4683 = vmatmul.mubr.msk.f32.vlgmr.msra.gmra.mrb[32].mxu1 %vm304_vm2, %v5149_v11  ;;  %2139 = vmatprep.mubr.f32.mxu0 %v4998_v7  ;;  %v3307_v34 = vadd.f32 %v3301_v26, %v5103_v37 }
  0xd7   : > { %4899 = vmatpush3.bf16.msk.msra.mxu1 %vm5125_vm4, %v4897_v51  ;;  %4689 = vmatprep.mubr.msk.f32.mxu1 %vm4997_vm0, %v4998_v7  ;;  %v4424_v51 = vld [vmem:[%s5063_s8 + $0x128] sm:$0xff] }
  0xd8   : > { %4906 = vmatprep.subr.bf16.mxu1 %v4996_v6  ;;  %v3115_v53 = vmul.f32 %v4424_v51, %v5073_v15  ;;  %v3313_v9 = vmax.f32 %v3307_v34, 0.0  ;;  %v3650_v51 = vmul.f32 %v4462_v38, %v5088_v29 }
  0xda   : > { %4690 = vmatmul.mubr.msk.f32.vlgmr.msra.gmra.mrb[34].mxu1 %vm304_vm2, %v5179_v32  ;;  %v3121_v39 = vadd.f32 %v3115_v53, %v5071_v14 }
  0xdb   : > { %4359 = vmatmul.mubr.msk.f32.vlgmr.msra.gmra.mrb[6].mxu0 %vm304_vm2, %v5149_v11  ;;  %4909 = vmatpush3.bf16.msk.msra.mxu1 %vm5125_vm4, %v4907_v63  ;;  %v2780_v63 = vmax.f32 %v2774_v54, 0.0 }
  0xdc   : > { %4835 = vmatpush1.bf16.msk.msra.mxu0 %vm5125_vm4, %v4833_v12  ;;  %4696 = vmatprep.mubr.msk.f32.mxu1 %vm4997_vm0, %v4998_v7  ;;  %v5676_v10 = vmax.f32 %v3121_v39, 0.0  ;;  %v3871_v39 = vmax.f32 %v3865_v55, 0.0 }
  0xdd   : > { %4842 = vmatprep.subr.msk.bf16.mxu0 %vm5125_vm4, %v4840_v28  ;;  %2347 = vmatprep.mubr.f32.mxu0 %v4998_v7  ;;  %v4873_v12 = vpack.c.bf16 %v2780_v63, %v5526_v27  ;;  %v4446_v28 = vld [vmem:[%s5063_s8 + $0x138] sm:$0x3f]  ;;  %v4441_v27 = vld [vmem:[%s5063_s8 + $0x110] sm:$0x3f] }
  0xde   : > { %4697 = vmatmul.mubr.msk.f32.vlgmr.msra.gmra.mrb[36].mxu1 %vm304_vm2, %v5230_v8  ;;  %4916 = vmatprep.subr.bf16.mxu1 %v4996_v6  ;;  %v4880_v30 = vpack.c.bf16 %v3130_v2, %v5676_v10  ;;  %v3325_v17 = vmul.f32 %v4446_v28, %v5088_v29  ;;  %v4890_v3 = vpack.c.bf16 %v3338_v19, %v5676_v10  ;;  %v4986_v28 = vld [vmem:[%s5848_s3 + $0x8] sm:$0xff]  ;;  %v5779_v19 = vpop.permute.xlu0 %614 }
  0xdf   : > { %4379 = vmatmul.mubr.msk.f32.vlgmr.msra.gmra.mrb[8].mxu0 %vm304_vm2, %v5179_v32  ;;  %4919 = vmatpush3.bf16.msk.msra.mxu1 %vm5125_vm4, %v4917_v20  ;;  %v3302_v20 = vmul.f32 %v4441_v27, %v5088_v29 }
  0xe0   : > { %4845 = vmatpush1.bf16.msk.msra.mxu0 %vm5125_vm4, %v4843_v23  ;;  %4703 = vmatprep.mubr.msk.f32.mxu1 %vm4997_vm0, %v4998_v7  ;;  %v4463_v23 = vld [vmem:[%s5063_s8 + $0x170] sm:$0x3f] }
  0xe1   : > { %4852 = vmatprep.subr.msk.bf16.mxu0 %vm5125_vm4, %v4850_v25  ;;  %4926 = vmatprep.subr.bf16.mxu1 %v4996_v6  ;;  %v3331_v25 = vadd.f32 %v3325_v17, %v5103_v37  ;;  %v3308_v18 = vadd.f32 %v3302_v20, %v5103_v37 }
  0xe2   : > { %4704 = vmatmul.mubr.msk.f32.vlgmr.msra.gmra.mrb[38].mxu1 %vm304_vm2, %v5149_v11  ;;  %2497 = vmatprep.mubr.f32.mxu0 %v4998_v7 }
  0xe3   : > { %4929 = vmatpush3.bf16.msk.msra.mxu1 %vm5125_vm4, %v4927_v60  ;;  %4710 = vmatprep.mubr.msk.f32.mxu1 %vm4997_vm0, %v4998_v7  ;;  %v3651_v60 = vmul.f32 %v4463_v23, %v5088_v29  ;;  %v3337_v33 = vmax.f32 %v3331_v25, 0.0 }
  0xe4   : > { %4936 = vmatprep.subr.bf16.mxu1 %v4996_v6  ;;  %v4860_v6 = vpack.c.bf16 %v2805_v35, %v5596_v41  ;;  %v3314_v35 = vmax.f32 %v3308_v18, 0.0 }
  0xe5   : > { %v3657_v40 = vadd.f32 %v3651_v60, %v5103_v37  ;;  %v4893_v48 = vpack.c.bf16 %v3337_v33, %v5695_v22 }
  0xe6   : > { %4711 = vmatmul.mubr.msk.f32.vlgmr.msra.gmra.mrb[40].mxu1 %vm304_vm2, %v5179_v32 }
  0xe7   : > { %4384 = vmatmul.mubr.msk.f32.vlgmr.msra.gmra.mrb[8].mxu0 %vm304_vm2, %v5230_v8  ;;  %4939 = vmatpush3.bf16.msk.msra.mxu1 %vm5125_vm4, %v4937_v44  ;;  %v3654_v44 = vadd.f32 %v3648_v31, %v5071_v14  ;;  %v3663_v49 = vmax.f32 %v3657_v40, 0.0 }
  0xe8   : > { %4855 = vmatpush1.bf16.msk.msra.mxu0 %vm5125_vm4, %v4853_v46  ;;  %4717 = vmatprep.mubr.msk.f32.mxu1 %vm4997_vm0, %v4998_v7  ;;  %v4459_v46 = vld [vmem:[%s5063_s8 + $0x150] sm:$0xff] }
  0xe9   : > { %4862 = vmatprep.subr.msk.bf16.mxu0 %vm5125_vm4, %v4860_v6  ;;  %2672 = vmatprep.mubr.f32.mxu0 %v4998_v7  ;;  %v4900_v6 = vpack.c.bf16 %v3314_v35, %v5596_v41  ;;  %v3647_v53 = vmul.f32 %v4459_v46, %v5073_v15  ;;  %v3660_v45 = vmax.f32 %v3654_v44, 0.0  ;;  %v3656_v41 = vadd.f32 %v3650_v51, %v5103_v37 }
  0xea   : > { %4718 = vmatmul.mubr.msk.f32.vlgmr.msra.gmra.mrb[42].mxu1 %vm304_vm2, %v5230_v8 }
  0xeb   : > { %v4910_v54 = vpack.c.bf16 %v3663_v49, %v3660_v45  ;;  %v3653_v15 = vadd.f32 %v3647_v53, %v5071_v14  ;;  %v4920_v14 = vpack.c.bf16 %v3871_v39, %v3660_v45 }
  0xef   : > { %4395 = vmatmul.mubr.msk.f32.vlgmr.msra.gmra.mrb[8].mxu0 %vm304_vm2, %v5149_v11 }
  0xf0   : > { %4865 = vmatpush1.bf16.msk.msra.mxu0 %vm5125_vm4, %v4863_v13  ;;  %2880 = vmatprep.mubr.f32.mxu0 %v4998_v7  ;;  %v3659_v13 = vmax.f32 %v3653_v15, 0.0 }
  0xf1   : > { %4872 = vmatprep.subr.msk.bf16.mxu0 %vm5125_vm4, %v4870_v1  ;;  %v3834_v1 = vmul.f32 %v4476_v61, %v5088_v29 }
  0xf2   : > { %v4923_v62 = vpack.c.bf16 %v3870_v4, %v3659_v13 }
  0xf3   : > { %4415 = vmatmul.mubr.msk.f32.vlgmr.msra.gmra.mrb[10].mxu0 %vm304_vm2, %v5179_v32  ;;  %v3840_v5 = vadd.f32 %v3834_v1, %v5103_v37 }
  0xf4   : > { %4875 = vmatpush1.bf16.msk.msra.mxu0 %vm5125_vm4, %v4873_v12  ;;  %3030 = vmatprep.mubr.f32.mxu0 %v4998_v7 }
  0xf5   : > { %4882 = vmatprep.subr.msk.bf16.mxu0 %vm5125_vm4, %v4880_v30  ;;  %v4985_v30 = vld [vmem:[%s5848_s3 + $0x10] sm:$0xff] }
  0xfb   : > { %4420 = vmatmul.mubr.msk.f32.vlgmr.msra.gmra.mrb[10].mxu0 %vm304_vm2, %v5230_v8 }
  0xfc   : > { %4885 = vmatpush1.bf16.msk.msra.mxu0 %vm5125_vm4, %v4883_v24  ;;  %3205 = vmatprep.mubr.f32.mxu0 %v4998_v7 }
  0xfd   : > { %4892 = vmatprep.subr.msk.bf16.mxu0 %vm5125_vm4, %v4890_v3 }
 0x103   : > { %4431 = vmatmul.mubr.msk.f32.vlgmr.msra.gmra.mrb[10].mxu0 %vm304_vm2, %v5149_v11  ;;  %v4903_v11 = vpack.c.bf16 %v3313_v9, %v5631_v42  ;;  %v3662_v42 = vmax.f32 %v3656_v41, 0.0 }
 0x104   : > { %4895 = vmatpush1.bf16.msk.msra.mxu0 %vm5125_vm4, %v4893_v48  ;;  %3413 = vmatprep.mubr.f32.mxu0 %v4998_v7 }
 0x105   : > { %4902 = vmatprep.subr.msk.bf16.mxu0 %vm5125_vm4, %v4900_v6  ;;  %v4913_v63 = vpack.c.bf16 %v3662_v42, %v3659_v13 }
 0x107   : > { %4451 = vmatmul.mubr.msk.f32.vlgmr.msra.gmra.mrb[12].mxu0 %vm304_vm2, %v5179_v32  ;;  %v3835_v32 = vmul.f32 %v4477_v58, %v5088_v29  ;;  %v3846_v29 = vmax.f32 %v3840_v5, 0.0 }
 0x108   : > { %4905 = vmatpush1.bf16.msk.msra.mxu0 %vm5125_vm4, %v4903_v11  ;;  %3563 = vmatprep.mubr.f32.mxu0 %v4998_v7 }
 0x109   : > { %4912 = vmatprep.subr.msk.bf16.mxu0 %vm5125_vm4, %v4910_v54  ;;  %v3841_v2 = vadd.f32 %v3835_v32, %v5103_v37  ;;  %v4933_v37 = vpack.c.bf16 %v3846_v29, %v5695_v22 }
 0x10b   : > { %v3847_v12 = vmax.f32 %v3841_v2, 0.0 }
 0x10d   : > { %v4930_v50 = vpack.c.bf16 %v3847_v12, %v5676_v10 }
 0x10f   : > { %4456 = vmatmul.mubr.msk.f32.vlgmr.msra.gmra.mrb[12].mxu0 %vm304_vm2, %v5230_v8 }
 0x110   : > { %4915 = vmatpush1.bf16.msk.msra.mxu0 %vm5125_vm4, %v4913_v63  ;;  %3738 = vmatprep.mubr.f32.mxu0 %v4998_v7 }
 0x111   : > { %4922 = vmatprep.subr.msk.bf16.mxu0 %vm5125_vm4, %v4920_v14 }
 0x117   : > { %4467 = vmatmul.mubr.msk.f32.vlgmr.msra.gmra.mrb[12].mxu0 %vm304_vm2, %v4985_v30 }
 0x118   : > { %4925 = vmatpush1.bf16.msk.msra.mxu0 %vm5125_vm4, %v4923_v62  ;;  %3946 = vmatprep.mubr.f32.mxu0 %v4998_v7 }
 0x119   : > { %4932 = vmatprep.subr.msk.bf16.mxu0 %vm5125_vm4, %v4930_v50 }
 0x11b   : > { %4487 = vmatmul.mubr.msk.f32.vlgmr.msra.gmra.mrb[14].mxu0 %vm304_vm2, %v4986_v28 }
 0x11c   : > { %4935 = vmatpush1.bf16.msk.msra.mxu0 %vm5125_vm4, %v4933_v37  ;;  %4096 = vmatprep.mubr.f32.mxu0 %v4998_v7 }
 0x123   : > { %4492 = vmatmul.mubr.msk.f32.vlgmr.msra.gmra.mrb[14].mxu0 %vm304_vm2, %v5230_v8 }
 0x169   : > { %v455_v10 = vpop.f32.mrb[0].mxu1 }
 0x16a   : > { %v4572_v47 = vpop.f32.mrb[1].mxu1 }
 0x16d   : > { %v608_v27 = vpop.f32.mrb[2].mxu1 }
 0x16e   : > { %v609_v16 = vadd.f32 %v608_v27, %v455_v10  ;;  %v4579_v17 = vpop.f32.mrb[3].mxu1 }
 0x170   : > { %v619_v7 = vadd.f32 %v5779_v19, %v609_v16 }
 0x171   : > { %v818_v56 = vpop.f32.mrb[4].mxu1 }
 0x172   : > { %623 = vst.msk [vmem:[%s5784_s24 + $0x10] sm:$0xff] %vm622_vm5, %v619_v7  ;;  %v537_v8 = vpop.f32.mrb[0].mxu0  ;;  %v4586_v20 = vpop.f32.mrb[5].mxu1 }
 0x173   : > { %v617_v21 = vadd.f32 %v5779_v19, %v537_v8  ;;  %v539_v22 = vpop.f32.mrb[1].mxu0 }
 0x174   : > { %v618_v23 = vadd.f32 %v5779_v19, %v539_v22 }
 0x175   : > { %620 = vst [vmem:[%s5784_s24] sm:$0xff] %v617_v21  ;;  %v971_v24 = vpop.f32.mrb[6].mxu1 }
 0x176   : > { %621 = vst [vmem:[%s5784_s24 + $0x8] sm:$0xff] %v618_v23  ;;  %v972_v25 = vadd.f32 %v971_v24, %v818_v56  ;;  %v4593_v26 = vpop.f32.mrb[7].mxu1 }
 0x179   : > { %v1146_v36 = vpop.f32.mrb[8].mxu1 }
 0x17a   : > { %v1152_v3 = vadd.f32 %v1146_v36, %v972_v25  ;;  %v4600_v18 = vpop.f32.mrb[9].mxu1 }
 0x17c   : > { %v1155_v60 = vadd.f32 %v1152_v3, %v5779_v19 }
 0x17d   : > { %v1354_v31 = vpop.f32.mrb[10].mxu1 }
 0x17e   : > { %4292 = vst.msk [vmem:[%s5784_s24 + $0x28] sm:$0xff] %vm622_vm5, %v1155_v60  ;;  %v4607_v33 = vpop.f32.mrb[11].mxu1 }
 0x181   : > { %v1504_v34 = vpop.f32.mrb[12].mxu1 }
 0x182   : > { %v1505_v35 = vadd.f32 %v1504_v34, %v1354_v31  ;;  %v4614_v40 = vpop.f32.mrb[13].mxu1 }
 0x185   : > { %v1679_v38 = vpop.f32.mrb[14].mxu1 }
 0x186   : > { %v1685_v43 = vadd.f32 %v1679_v38, %v1505_v35  ;;  %v1075_v44 = vpop.f32.mrb[2].mxu0  ;;  %v4621_v46 = vpop.f32.mrb[15].mxu1 }
 0x187   : > { %v1153_v48 = vadd.f32 %v1075_v44, %v5779_v19  ;;  %v1077_v9 = vpop.f32.mrb[3].mxu0 }
 0x188   : > { %v1688_v51 = vadd.f32 %v1685_v43, %v5779_v19  ;;  %v1154_v6 = vadd.f32 %v1077_v9, %v5779_v19 }
 0x189   : > { %4290 = vst [vmem:[%s5784_s24 + $0x18] sm:$0xff] %v1153_v48  ;;  %v1887_v49 = vpop.f32.mrb[16].mxu1 }
 0x18a   : > { %4328 = vst.msk [vmem:[%s5784_s24 + $0x40] sm:$0xff] %vm622_vm5, %v1688_v51  ;;  %4291 = vst [vmem:[%s5784_s24 + $0x20] sm:$0xff] %v1154_v6  ;;  %v4628_v52 = vpop.f32.mrb[17].mxu1 }
 0x18d   : > { %v2037_v53 = vpop.f32.mrb[18].mxu1 }
 0x18e   : > { %v2038_v45 = vadd.f32 %v2037_v53, %v1887_v49  ;;  %v4635_v11 = vpop.f32.mrb[19].mxu1 }
 0x191   : > { %v2212_v41 = vpop.f32.mrb[20].mxu1 }
 0x192   : > { %v2218_v54 = vadd.f32 %v2212_v41, %v2038_v45  ;;  %v4642_v55 = vpop.f32.mrb[21].mxu1 }
 0x194   : > { %v2221_v57 = vadd.f32 %v2218_v54, %v5779_v19 }
 0x195   : > { %v2420_v15 = vpop.f32.mrb[22].mxu1 }
 0x196   : > { %4364 = vst.msk [vmem:[%s5784_s24 + $0x58] sm:$0xff] %vm622_vm5, %v2221_v57  ;;  %v4649_v58 = vpop.f32.mrb[23].mxu1 }
 0x199   : > { %v2570_v42 = vpop.f32.mrb[24].mxu1 }
 0x19a   : > { %v1608_v59 = vpop.f32.mrb[4].mxu0  ;;  %v2571_v39 = vadd.f32 %v2570_v42, %v2420_v15  ;;  %v4656_v32 = vpop.f32.mrb[25].mxu1 }
 0x19b   : > { %v1686_v61 = vadd.f32 %v1608_v59, %v5779_v19  ;;  %v1610_v13 = vpop.f32.mrb[5].mxu0 }
 0x19c   : > { %v1687_v63 = vadd.f32 %v1610_v13, %v5779_v19 }
 0x19d   : > { %4326 = vst [vmem:[%s5784_s24 + $0x30] sm:$0xff] %v1686_v61  ;;  %v2745_v0 = vpop.f32.mrb[26].mxu1 }
 0x19e   : > { %4327 = vst [vmem:[%s5784_s24 + $0x38] sm:$0xff] %v1687_v63  ;;  %v2751_v1 = vadd.f32 %v2745_v0, %v2571_v39  ;;  %v4663_v14 = vpop.f32.mrb[27].mxu1 }
 0x1a0   : > { %v2754_v2 = vadd.f32 %v2751_v1, %v5779_v19 }
 0x1a1   : > { %v2953_v4 = vpop.f32.mrb[28].mxu1 }
 0x1a2   : > { %4400 = vst.msk [vmem:[%s5784_s24 + $0x70] sm:$0xff] %vm622_vm5, %v2754_v2  ;;  %v4670_v5 = vpop.f32.mrb[29].mxu1 }
 0x1a5   : > { %v3103_v12 = vpop.f32.mrb[30].mxu1 }
 0x1a6   : > { %v3104_v62 = vadd.f32 %v3103_v12, %v2953_v4  ;;  %v4677_v29 = vpop.f32.mrb[31].mxu1 }
 0x1a9   : > { %v3278_v30 = vpop.f32.mrb[32].mxu1 }
 0x1aa   : > { %v3284_v50 = vadd.f32 %v3278_v30, %v3104_v62  ;;  %v4684_v37 = vpop.f32.mrb[33].mxu1 }
 0x1ac   : > { %v3287_v28 = vadd.f32 %v3284_v50, %v5779_v19 }
 0x1ad   : > { %v3486_v10 = vpop.f32.mrb[34].mxu1 }
 0x1ae   : > { %4436 = vst.msk [vmem:[%s5784_s24 + $0x88] sm:$0xff] %vm622_vm5, %v3287_v28  ;;  %v2141_v47 = vpop.f32.mrb[6].mxu0  ;;  %v4691_v27 = vpop.f32.mrb[35].mxu1 }
 0x1af   : > { %v2219_v16 = vadd.f32 %v2141_v47, %v5779_v19  ;;  %v2143_v17 = vpop.f32.mrb[7].mxu0 }
 0x1b0   : > { %v2220_v7 = vadd.f32 %v2143_v17, %v5779_v19 }
 0x1b1   : > { %4362 = vst [vmem:[%s5784_s24 + $0x48] sm:$0xff] %v2219_v16  ;;  %v3636_v56 = vpop.f32.mrb[36].mxu1 }
 0x1b2   : > { %4363 = vst [vmem:[%s5784_s24 + $0x50] sm:$0xff] %v2220_v7  ;;  %v3637_v8 = vadd.f32 %v3636_v56, %v3486_v10  ;;  %v4698_v20 = vpop.f32.mrb[37].mxu1 }
 0x1b5   : > { %v3811_v21 = vpop.f32.mrb[38].mxu1 }
 0x1b6   : > { %v3817_v22 = vadd.f32 %v3811_v21, %v3637_v8  ;;  %v4705_v23 = vpop.f32.mrb[39].mxu1 }
 0x1b8   : > { %v3820_v24 = vadd.f32 %v3817_v22, %v5779_v19 }
 0x1b9   : > { %v4019_v25 = vpop.f32.mrb[40].mxu1 }
 0x1ba   : > { %4472 = vst.msk [vmem:[%s5784_s24 + $0xa0] sm:$0xff] %vm622_vm5, %v3820_v24  ;;  %v4712_v26 = vpop.f32.mrb[41].mxu1 }
 0x1bd   : > { %v4169_v36 = vpop.f32.mrb[42].mxu1 }
 0x1be   : > { %v4170_v3 = vadd.f32 %v4169_v36, %v4019_v25  ;;  %v4719_v18 = vpop.f32.mrb[43].mxu1 }
 0x1c0   : > { %v4178_v60 = vadd.f32 %v4170_v3, %v5779_v19 }
 0x1c2   : > { %4497 = vst.msk [vmem:[%s5784_s24 + $0xb8] sm:$0xff] %vm622_vm5, %v4178_v60  ;;  %v2674_v31 = vpop.f32.mrb[8].mxu0 }
 0x1c3   : > { %v2752_v33 = vadd.f32 %v2674_v31, %v5779_v19  ;;  %v2676_v34 = vpop.f32.mrb[9].mxu0 }
 0x1c4   : > { %v2753_v35 = vadd.f32 %v2676_v34, %v5779_v19 }
 0x1c5   : > { %4398 = vst [vmem:[%s5784_s24 + $0x60] sm:$0xff] %v2752_v33 }
 0x1c6   : > { %4399 = vst [vmem:[%s5784_s24 + $0x68] sm:$0xff] %v2753_v35 }
 0x1d6   : > { %v3207_v40 = vpop.f32.mrb[10].mxu0 }
 0x1d7   : > { %v3285_v38 = vadd.f32 %v3207_v40, %v5779_v19  ;;  %v3209_v43 = vpop.f32.mrb[11].mxu0 }
 0x1d8   : > { %v3286_v44 = vadd.f32 %v3209_v43, %v5779_v19 }
 0x1d9   : > { %4434 = vst [vmem:[%s5784_s24 + $0x78] sm:$0xff] %v3285_v38 }
 0x1da   : > { %4435 = vst [vmem:[%s5784_s24 + $0x80] sm:$0xff] %v3286_v44 }
 0x1ea   : > { %v3740_v46 = vpop.f32.mrb[12].mxu0 }
 0x1eb   : > { %v3818_v48 = vadd.f32 %v3740_v46, %v5779_v19  ;;  %v3742_v9 = vpop.f32.mrb[13].mxu0 }
 0x1ec   : > { %v3819_v51 = vadd.f32 %v3742_v9, %v5779_v19 }
 0x1ed   : > { %4470 = vst [vmem:[%s5784_s24 + $0x90] sm:$0xff] %v3818_v48 }
 0x1ee   : > { %4471 = vst [vmem:[%s5784_s24 + $0x98] sm:$0xff] %v3819_v51 }
 0x1f6   : > { %v4098_v6 = vpop.f32.mrb[14].mxu0 }
 0x1f7   : > { %v4176_v49 = vadd.f32 %v4098_v6, %v5779_v19  ;;  %v4100_v52 = vpop.f32.mrb[15].mxu0 }
 0x1f8   : > { %v4177_v53 = vadd.f32 %v4100_v52, %v5779_v19 }
 0x1f9   : > { %4495 = vst [vmem:[%s5784_s24 + $0xa8] sm:$0xff] %v4176_v49 }
 0x1fa   : > { %4496 = vst [vmem:[%s5784_s24 + $0xb0] sm:$0xff] %v4177_v53 }
 0x1fb PF: > { %s15_s18 = sadd.s32 1, %s4993_s18  }
 0x1fc   : > { %p12_p4 = scmp.ge.s32.totalorder %s15_s18, 4  }
 0x1fe   :  { %14 = sbr.rel (!%p12_p4) target bundleno = 1 (0x1), region = 86 }

// kernel: _lambda_.2
= control target key start
LH: loop header
LB: loop body
LE: loop exit
PB: predicated region body
PF: predicated region fallthrough
CT: control target
= control target key end

     0   :  { %s14974_s18 = smov 0   ;;  %s14976_s19 = smov 0   ;;  %s17734_s0 = inlined_call_operand.vmem [shape: f32[2,8,4,326], index: 0, kind: input, shape index: {}]   ;;  %s17735_s1 = inlined_call_operand.vmem [shape: f32[9,14,4], index: 1, kind: input, shape index: {}]   ;;  %s17736_s2 = inlined_call_operand.vmem [shape: f32[1,288], index: 2, kind: input, shape index: {}]   ;;  %s17737_s3 = inlined_call_operand.vmem [shape: f32[2,8,14,288], index: 3, kind: output, shape index: {0}]   ;;  %s17738_s4 = inlined_call_operand.vmem [shape: f32[2,1,14,1], index: 4, kind: output, shape index: {1}]   ;;  %s17739_s5 = inlined_call_operand.vmem [shape: f32[2,1,14,1], index: 5, kind: output, shape index: {2}]  }
   0x1   :  { %s14978_s20 = smov 0  }
   0x2 LB: > { %s28_s21 = sadd.s32 1, %s14929_s19  ;;  %p13282_p0 = scmp.ge.s32.totalorder %s14933_s20, 1  ;;  %s14933_s20 = sphi %s14978_s20, %s16_s20   ;;  %s14929_s19 = sphi %s14976_s19, %s17741_s19   ;;  %s14925_s18 = sphi %s14974_s18, %s17740_s18  }
   0x3   : > { %p30_p1 = scmp.ge.s32.totalorder %s28_s21, 2  ;;  %p218_p2 = scmp.lt.s32.totalorder %s14933_s20, 3 }
   0x5   : > { %s17743_s21 = smov (%p30_p1, %s28_s21), 0  ;;  %p219_p3 = pnand %p13282_p0, %p218_p2 }
   0x6   : > { %p275_p4 = scmp.lt.s32.totalorder (!%p219_p3), %s14925_s18, 1  ;;  %v14995_v0 = vld [vmem:[%s17735_s1] sm:$0xff] (!%p219_p3)  ;;  %vm355_vm0 = vcmask (!%p219_p3), 31744   ;;  %vm362_vm1 = vcmask (!%p219_p3), 1043456   ;;  %s14935_s28 = smov (!%p219_p3), 109   ;;  %v14937_v4 = vmov (!%p219_p3), 0.0  }
   0x7   : > { %222 = sbr.rel (%p219_p3) target bundleno = 977 (0x3d1), region = 32  ;;  %14092 = vmatprep.mubr.msk.f32.mxu1 (!%p219_p3), %vm355_vm0, %v14995_v0  ;;  %s14936_s29 = smov (!%p219_p3), 126   ;;  %v15013_v2 = vld [vmem:[%s17735_s1 + $0x8] sm:$0x3f] (!%p219_p3)  ;;  %433 = vmatprep.mubr.f32.mxu0 (!%p219_p3), %v14937_v4  ;;  %v15024_v5 = vld [vmem:[%s17735_s1 + $0x20] sm:$0xff] (!%p219_p3)  ;;  %v15181_v19 = vld [vmem:[%s17735_s1 + $0x30] sm:$0xff] (!%p219_p3) }
   0x8   : > { %s14938_s9 = smov (!%p219_p3), 108   ;;  %s14939_s10 = smov (!%p219_p3), 110   ;;  %v15175_v18 = vld [vmem:[%s17735_s1 + $0x28] sm:$0x3f] (!%p219_p3)  ;;  %vm352_vm2 = vcmask (!%p219_p3), 1039360   ;;  %v15215_v26 = vld [vmem:[%s17735_s1 + $0x40] sm:$0xff] (!%p219_p3) }
   0x9   : > { %s14940_s11 = smov (!%p219_p3), 127   ;;  %s14941_s12 = smov (!%p219_p3), 92   ;;  %v15209_v24 = vld [vmem:[%s17735_s1 + $0x38] sm:$0x3f] (!%p219_p3)  ;;  %v15229_v29 = vld [vmem:[%s17735_s1 + $0x10] sm:$0xff] (!%p219_p3)  ;;  %vm691_vm3 = vcmask (!%p219_p3), 1031168  }
   0xa   : > { %s14942_s13 = smov (!%p219_p3), 90   ;;  %s14943_s14 = smov (!%p219_p3), 91   ;;  %v15253_v33 = vld [vmem:[%s17735_s1 + $0x48] sm:$0x3f] (!%p219_p3)  ;;  %v15258_v34 = vld [vmem:[%s17735_s1 + $0x18] sm:$0x3f] (!%p219_p3) }
   0xb   : > { %v15269_v35 = vld [vmem:[%s17735_s1 + $0x50] sm:$0xff] (!%p219_p3)  ;;  %v15298_v41 = vld [vmem:[%s17735_s1 + $0x58] sm:$0x3f] (!%p219_p3)  ;;  %vm870_vm4 = vcmask (!%p219_p3), 900096   ;;  %v15313_v43 = vld [vmem:[%s17735_s1 + $0x60] sm:$0xff] (!%p219_p3)  ;;  %vm1049_vm5 = vcmask (!%p219_p3), 891904  }
   0xc   : > { %v15336_v49 = vld [vmem:[%s17735_s1 + $0x68] sm:$0x3f] (!%p219_p3)  ;;  %v15357_v54 = vld [vmem:[%s17735_s1 + $0x70] sm:$0xff] (!%p219_p3)  ;;  %v15377_v57 = vld [vmem:[%s17735_s1 + $0x78] sm:$0x3f] (!%p219_p3)  ;;  %vm1228_vm6 = vcmask (!%p219_p3), 883712  }
   0xd   : > { %v15402_v62 = vld [vmem:[%s17735_s1 + $0x80] sm:$0xff] (!%p219_p3)  ;;  %vm1407_vm7 = vcmask (!%p219_p3), 752640   ;;  %vm1586_vm8 = vcmask (!%p219_p3), 744448   ;;  %vm1765_vm9 = vcmask (!%p219_p3), 736256   ;;  %vm1944_vm10 = vcmask (!%p219_p3), 259072  }
   0xe   : > { %s17745_s18 = smov (!%p275_p4, %s14925_s18), 1  ;;  %vm1940_vm11 = vcmask 261120   ;;  %vm1973_vm12 = vcmask 1045504   ;;  %vm13072_vm13 = vcmask 5120   ;;  %vm13070_vm14 = vcmask 7168  }
   0xf   : > { %s14829_s24 = smul.u32 96, %s17745_s18 }
  0x11   : > { %s15005_s27 = scalar_lea.vmem %s17734_s0, %s14829_s24 }
  0x12   : > { %v342_v1 = vld [vmem:[%s15005_s27 + $0x8] sm:$0xf]  ;;  %v15016_v3 = vld [vmem:[%s15005_s27] sm:$0xff]  ;;  %v15049_v7 = vld [vmem:[%s15005_s27 + $0x14] sm:$0xf] }
  0x13   : > { %1047 = vrot.lane.b32.xlu1 %v342_v1, %s14935_s28  ;;  %689 = vrot.lane.b32.xlu0 %v342_v1, %s14936_s29  ;;  %v15032_v6 = vcombine.high %v15016_v3, %v15016_v3  ;;  %v15064_v8 = vld [vmem:[%s15005_s27 + $0xc] sm:$0xff]  ;;  %v15127_v10 = vld [vmem:[%s15005_s27 + $0x18] sm:$0xff] }
  0x14   : > { %14090 = vmatprep.subr.msk.mxu1 %vm362_vm1, %v342_v1  ;;  %v15072_v9 = vcombine.high %v15064_v8, %v15064_v8  ;;  %v15135_v11 = vcombine.high %v15127_v10, %v15127_v10  ;;  %v15138_v12 = vld [vmem:[%s15005_s27 + $0x20] sm:$0xf]  ;;  %v15141_v13 = vld [vmem:[%s15005_s27 + $0x24] sm:$0xff]  ;;  %v15156_v15 = vld [vmem:[%s15005_s27 + $0x2c] sm:$0xf] }
  0x15   : > { %14091 = vmatpush3.msk.msra.mxu1 %vm362_vm1, %v342_v1  ;;  %v15149_v14 = vcombine.high %v15141_v13, %v15141_v13 }
  0x16   : > { %14093 = vmatmul.mubr.msk.f32.vlgmr.msra.gmra.mrb[0].mxu1 %vm355_vm0, %v15013_v2 }
  0x17   : > { %1226 = vrot.lane.b32.xlu1 %v342_v1, %s14938_s9  ;;  %868 = vrot.lane.b32.xlu0 %v342_v1, %s14939_s10 }
  0x18   : > { %14097 = vmatprep.mubr.msk.f32.mxu1 %vm355_vm0, %v15024_v5 }
  0x1b   : > { %350 = vrot.lane.b32.xlu1 %v342_v1, %s14940_s11  ;;  %348 = vrot.lane.b32.xlu0 %v15032_v6, %s14940_s11 }
  0x1f   : > { %1405 = vrot.lane.b32.xlu1 %v342_v1, %s14941_s12  ;;  %346 = vrot.lane.b32.xlu0 %v15016_v3, %s14940_s11 }
  0x23   : > { %1763 = vrot.lane.b32.xlu1 %v342_v1, %s14942_s13  ;;  %1584 = vrot.lane.b32.xlu0 %v342_v1, %s14943_s14 }
  0x27   : > { %685 = vrot.lane.b32.xlu1 %v15016_v3, %s14936_s29  ;;  %687 = vrot.lane.b32.xlu0 %v15032_v6, %s14936_s29 }
  0x2b   : > { %866 = vrot.lane.b32.xlu1 %v15032_v6, %s14939_s10  ;;  %2013 = vrot.lane.b32.xlu0 %v15049_v7, %s14940_s11 }
  0x2f   : > { %1045 = vrot.lane.b32.xlu1 %v15032_v6, %s14935_s28  ;;  %864 = vrot.lane.b32.xlu0 %v15016_v3, %s14939_s10 }
  0x33   : > { %2337 = vrot.lane.b32.xlu1 %v15049_v7, %s14936_s29  ;;  %1043 = vrot.lane.b32.xlu0 %v15016_v3, %s14935_s28 }
  0x37   : > { %1222 = vrot.lane.b32.xlu1 %v15016_v3, %s14938_s9  ;;  %1224 = vrot.lane.b32.xlu0 %v15032_v6, %s14938_s9 }
  0x3b   : > { %2679 = vrot.lane.b32.xlu1 %v15072_v9, %s14935_s28  ;;  %2509 = vrot.lane.b32.xlu0 %v15049_v7, %s14939_s10 }
  0x3f   : > { %2677 = vrot.lane.b32.xlu1 %v15064_v8, %s14935_s28  ;;  %2681 = vrot.lane.b32.xlu0 %v15049_v7, %s14935_s28 }
  0x43   : > { %1401 = vrot.lane.b32.xlu1 %v15016_v3, %s14941_s12  ;;  %1403 = vrot.lane.b32.xlu0 %v15032_v6, %s14941_s12 }
  0x47   : > { %1580 = vrot.lane.b32.xlu1 %v15016_v3, %s14943_s14  ;;  %1582 = vrot.lane.b32.xlu0 %v15032_v6, %s14943_s14 }
  0x4b   : > { %2853 = vrot.lane.b32.xlu1 %v15049_v7, %s14938_s9  ;;  %2851 = vrot.lane.b32.xlu0 %v15072_v9, %s14938_s9 }
  0x4f   : > { %1761 = vrot.lane.b32.xlu1 %v15032_v6, %s14942_s13  ;;  %2849 = vrot.lane.b32.xlu0 %v15064_v8, %s14938_s9 }
  0x53   : > { %3023 = vrot.lane.b32.xlu1 %v15072_v9, %s14941_s12  ;;  %1759 = vrot.lane.b32.xlu0 %v15016_v3, %s14942_s13 }
  0x57   : > { %3021 = vrot.lane.b32.xlu1 %v15064_v8, %s14941_s12  ;;  %3025 = vrot.lane.b32.xlu0 %v15049_v7, %s14941_s12 }
  0x5b   : > { %2009 = vrot.lane.b32.xlu1 %v15064_v8, %s14940_s11  ;;  %2011 = vrot.lane.b32.xlu0 %v15072_v9, %s14940_s11 }
  0x5f   : > { %3197 = vrot.lane.b32.xlu1 %v15049_v7, %s14943_s14  ;;  %3195 = vrot.lane.b32.xlu0 %v15072_v9, %s14943_s14 }
  0x63   : > { %2335 = vrot.lane.b32.xlu1 %v15072_v9, %s14936_s29  ;;  %3193 = vrot.lane.b32.xlu0 %v15064_v8, %s14943_s14 }
  0x67   : > { %2333 = vrot.lane.b32.xlu0 %v15064_v8, %s14936_s29  ;;  %3367 = vrot.lane.b32.xlu1 %v15072_v9, %s14942_s13 }
  0x6b   : > { %3369 = vrot.lane.b32.xlu0 %v15049_v7, %s14942_s13  ;;  %3365 = vrot.lane.b32.xlu1 %v15064_v8, %s14942_s13 }
  0x6f   : > { %2507 = vrot.lane.b32.xlu0 %v15072_v9, %s14939_s10  ;;  %2505 = vrot.lane.b32.xlu1 %v15064_v8, %s14939_s10 }
  0x73   : > { %3594 = vrot.lane.b32.xlu1 %v15138_v12, %s14940_s11  ;;  %3592 = vrot.lane.b32.xlu0 %v15135_v11, %s14940_s11 }
  0x77   : > { %5173 = vrot.lane.b32.xlu1 %v15149_v14, %s14940_s11  ;;  %3590 = vrot.lane.b32.xlu0 %v15127_v10, %s14940_s11 }
  0x7b   : > { %5171 = vrot.lane.b32.xlu1 %v15141_v13, %s14940_s11  ;;  %5175 = vrot.lane.b32.xlu0 %v15156_v15, %s14940_s11 }
  0x7f   : > { %3918 = vrot.lane.b32.xlu1 %v15138_v12, %s14936_s29  ;;  %3916 = vrot.lane.b32.xlu0 %v15135_v11, %s14936_s29 }
  0x83   : > { %5497 = vrot.lane.b32.xlu1 %v15149_v14, %s14936_s29  ;;  %3914 = vrot.lane.b32.xlu0 %v15127_v10, %s14936_s29 }
  0x85   : > { %v15170_v16 = vpop.permute.xlu1 %1047  ;;  %v690_v17 = vpop.permute.xlu0 %689 }
  0x86   : > { %14095 = vmatprep.subr.msk.mxu1 %vm362_vm1, %v690_v17 }
  0x87   : > { %14096 = vmatpush3.msk.msra.mxu1 %vm362_vm1, %v690_v17  ;;  %5495 = vrot.lane.b32.xlu1 %v15141_v13, %s14936_s29 }
  0x88   : > { %14098 = vmatmul.mubr.msk.f32.vlgmr.msra.gmra.mrb[0].mxu1 %vm355_vm0, %v15175_v18  ;;  %5499 = vrot.lane.b32.xlu0 %v15156_v15, %s14936_s29 }
  0x89   : > { %v15190_v20 = vpop.permute.xlu1 %1226  ;;  %v15192_v21 = vpop.permute.xlu0 %868  ;;  %14102 = vmatprep.mubr.msk.f32.mxu1 %vm355_vm0, %v15181_v19 }
  0x8a   : > { %14100 = vmatprep.subr.msk.mxu1 %vm362_vm1, %v15192_v21 }
  0x8b   : > { %14101 = vmatpush3.msk.msra.mxu1 %vm362_vm1, %v15192_v21  ;;  %4090 = vrot.lane.b32.xlu1 %v15138_v12, %s14939_s10 }
  0x8c   : > { %4088 = vrot.lane.b32.xlu0 %v15135_v11, %s14939_s10  ;;  %14105 = vmatprep.subr.msk.mxu1 %vm362_vm1, %v15170_v16 }
  0x8d   : > { %v351_v22 = vpop.permute.xlu1 %350  ;;  %v349_v23 = vpop.permute.xlu0 %348 }
  0x8e   : > { %v354_v25 = vsel %vm352_vm2, %v349_v23, %v351_v22 }
  0x8f   : > { %13305 = vmatprep.subr.msk.mxu0 %vm362_vm1, %v354_v25  ;;  %5669 = vrot.lane.b32.xlu1 %v15149_v14, %s14939_s10 }
  0x90   : > { %14103 = vmatmul.mubr.msk.f32.vlgmr.msra.gmra.mrb[0].mxu1 %vm355_vm0, %v15209_v24  ;;  %4086 = vrot.lane.b32.xlu0 %v15127_v10, %s14939_s10 }
  0x91   : > { %v15224_v27 = vpop.permute.xlu1 %1405  ;;  %v347_v28 = vpop.permute.xlu0 %346  ;;  %14106 = vmatpush3.msk.msra.mxu1 %vm362_vm1, %v15170_v16  ;;  %14107 = vmatprep.mubr.msk.f32.mxu1 %vm355_vm0, %v15215_v26 }
  0x92   : > { %v353_v30 = vsel %vm352_vm2, %v347_v28, %v349_v23  ;;  %14110 = vmatprep.subr.msk.mxu1 %vm362_vm1, %v15190_v20 }
  0x93   : > { %13306 = vmatpush1.msk.msra.mxu0 %vm362_vm1, %v353_v30  ;;  %5667 = vrot.lane.b32.xlu1 %v15141_v13, %s14939_s10 }
  0x94   : > { %13307 = vmatmul.mubr.msk.f32.vlgmr.msra.gmra.mrb[0].mxu0 %vm355_vm0, %v15229_v29  ;;  %5671 = vrot.lane.b32.xlu0 %v15156_v15, %s14939_s10 }
  0x95   : > { %v15245_v31 = vpop.permute.xlu1 %1763  ;;  %v15247_v32 = vpop.permute.xlu0 %1584  ;;  %439 = vmatprep.mubr.f32.mxu0 %v14937_v4  ;;  %14085 = vmatprep.subr.msk.mxu0 %vm362_vm1, %v351_v22 }
  0x96   : > { %14086 = vmatpush3.msk.msra.mxu0 %vm362_vm1, %v351_v22 }
  0x97   : > { %13312 = vmatprep.subr.msk.mxu0 %vm362_vm1, %v15032_v6  ;;  %4262 = vrot.lane.b32.xlu1 %v15138_v12, %s14935_s28 }
  0x98   : > { %14108 = vmatmul.mubr.msk.f32.vlgmr.msra.gmra.mrb[0].mxu1 %vm355_vm0, %v15253_v33  ;;  %13308 = vmatmul.mubr.msk.f32.gmra.mrb[2].mxu0 %vm355_vm0, %v15258_v34 }
  0x99   : > { %v686_v36 = vpop.permute.xlu1 %685  ;;  %v688_v37 = vpop.permute.xlu0 %687  ;;  %14087 = vmatprep.mubr.msk.f32.mxu0 %vm355_vm0, %v15229_v29  ;;  %4260 = vrot.lane.b32.xlu0 %v15135_v11, %s14935_s28 }
  0x9a   : > { %14111 = vmatpush3.msk.msra.mxu1 %vm362_vm1, %v15190_v20  ;;  %14112 = vmatprep.mubr.msk.f32.mxu1 %vm355_vm0, %v15269_v35  ;;  %v693_v39 = vsel %vm691_vm3, %v688_v37, %v690_v17  ;;  %v692_v42 = vsel %vm691_vm3, %v686_v36, %v688_v37 }
  0x9b   : > { %5841 = vrot.lane.b32.xlu1 %v15149_v14, %s14935_s28  ;;  %14115 = vmatprep.subr.msk.mxu1 %vm362_vm1, %v15224_v27 }
  0x9c   : > { %14088 = vmatmul.mubr.msk.f32.vlgmr.msra.gmra.mrb[4].mxu0 %vm355_vm0, %v15258_v34 }
  0x9d   : > { %13313 = vmatpush1.msk.msra.mxu0 %vm362_vm1, %v15016_v3  ;;  %v867_v38 = vpop.permute.xlu1 %866  ;;  %v15292_v40 = vpop.permute.xlu0 %2013  ;;  %597 = vmatprep.mubr.f32.mxu0 %v14937_v4  ;;  %v15418_v3 = vld [vmem:[%s17735_s1 + $0x88] sm:$0x3f] }
  0x9e   : > { %13319 = vmatprep.subr.msk.mxu0 %vm362_vm1, %v693_v39  ;;  %4258 = vrot.lane.b32.xlu0 %v15127_v10, %s14935_s28  ;;  %v872_v45 = vsel %vm870_vm4, %v867_v38, %v15192_v21 }
  0x9f   : > { %5839 = vrot.lane.b32.xlu1 %v15141_v13, %s14935_s28 }
  0xa0   : > { %14113 = vmatmul.mubr.msk.f32.vlgmr.msra.gmra.mrb[0].mxu1 %vm355_vm0, %v15298_v41  ;;  %13314 = vmatmul.mubr.msk.f32.vlgmr.msra.gmra.mrb[0].mxu0 %vm355_vm0, %v14995_v0 }
  0xa1   : > { %13320 = vmatpush1.msk.msra.mxu0 %vm362_vm1, %v692_v42  ;;  %v1046_v44 = vpop.permute.xlu1 %1045  ;;  %v865_v46 = vpop.permute.xlu0 %864  ;;  %603 = vmatprep.mubr.f32.mxu0 %v14937_v4 }
  0xa2   : > { %13326 = vmatprep.subr.msk.mxu0 %vm362_vm1, %v872_v45  ;;  %5843 = vrot.lane.b32.xlu0 %v15156_v15, %s14935_s28  ;;  %v871_v50 = vsel %vm870_vm4, %v865_v46, %v867_v38  ;;  %v1051_v52 = vsel %vm1049_vm5, %v1046_v44, %v15170_v16 }
  0xa3   : > { %14116 = vmatpush3.msk.msra.mxu1 %vm362_vm1, %v15224_v27  ;;  %14117 = vmatprep.mubr.msk.f32.mxu1 %vm355_vm0, %v15313_v43 }
  0xa4   : > { %13315 = vmatmul.mubr.msk.f32.gmra.mrb[2].mxu0 %vm355_vm0, %v15013_v2  ;;  %4434 = vrot.lane.b32.xlu1 %v15138_v12, %s14938_s9 }
  0xa5   : > { %v15330_v47 = vpop.permute.xlu1 %2337  ;;  %v1044_v48 = vpop.permute.xlu0 %1043  ;;  %770 = vmatprep.mubr.f32.mxu0 %v14937_v4  ;;  %14120 = vmatprep.subr.msk.mxu1 %vm362_vm1, %v15247_v32 }
  0xa6   : > { %4432 = vrot.lane.b32.xlu0 %v15135_v11, %s14938_s9  ;;  %v1050_v58 = vsel %vm1049_vm5, %v1044_v48, %v1046_v44 }
  0xa8   : > { %14118 = vmatmul.mubr.msk.f32.vlgmr.msra.gmra.mrb[0].mxu1 %vm355_vm0, %v15336_v49  ;;  %13321 = vmatmul.mubr.msk.f32.vlgmr.msra.gmra.mrb[0].mxu0 %vm355_vm0, %v15024_v5 }
  0xa9   : > { %13327 = vmatpush1.msk.msra.mxu0 %vm362_vm1, %v871_v50  ;;  %v1223_v51 = vpop.permute.xlu1 %1222  ;;  %v1225_v53 = vpop.permute.xlu0 %1224  ;;  %776 = vmatprep.mubr.f32.mxu0 %v14937_v4  ;;  %v15539_v50 = vld [vmem:[%s15005_s27 + $0x30] sm:$0xff] }
  0xaa   : > { %13333 = vmatprep.subr.msk.mxu0 %vm362_vm1, %v1051_v52  ;;  %6013 = vrot.lane.b32.xlu1 %v15149_v14, %s14938_s9  ;;  %v1230_v60 = vsel %vm1228_vm6, %v1225_v53, %v15190_v20  ;;  %v1229_v6 = vsel %vm1228_vm6, %v1223_v51, %v1225_v53  ;;  %v15549_v51 = vld [vmem:[%s15005_s27 + $0x38] sm:$0xf]  ;;  %v15556_v52 = vld [vmem:[%s15005_s27 + $0x3c] sm:$0xff] }
  0xab   : > { %4430 = vrot.lane.b32.xlu0 %v15127_v10, %s14938_s9  ;;  %14121 = vmatpush3.msk.msra.mxu1 %vm362_vm1, %v15247_v32 }
  0xac   : > { %13322 = vmatmul.mubr.msk.f32.gmra.mrb[2].mxu0 %vm355_vm0, %v15175_v18  ;;  %14125 = vmatprep.subr.msk.mxu1 %vm362_vm1, %v15245_v31 }
  0xad   : > { %v15367_v55 = vpop.permute.xlu1 %2679  ;;  %v15369_v56 = vpop.permute.xlu0 %2509  ;;  %949 = vmatprep.mubr.f32.mxu0 %v14937_v4  ;;  %14122 = vmatprep.mubr.msk.f32.mxu1 %vm355_vm0, %v15357_v54 }
  0xae   : > { %6011 = vrot.lane.b32.xlu1 %v15141_v13, %s14938_s9 }
  0xaf   : > { %6015 = vrot.lane.b32.xlu0 %v15156_v15, %s14938_s9 }
  0xb0   : > { %13328 = vmatmul.mubr.msk.f32.vlgmr.msra.gmra.mrb[0].mxu0 %vm355_vm0, %v15181_v19  ;;  %14123 = vmatmul.mubr.msk.f32.vlgmr.msra.gmra.mrb[0].mxu1 %vm355_vm0, %v15377_v57 }
  0xb1   : > { %13334 = vmatpush1.msk.msra.mxu0 %vm362_vm1, %v1050_v58  ;;  %14126 = vmatpush3.msk.msra.mxu1 %vm362_vm1, %v15245_v31  ;;  %v15391_v59 = vpop.permute.xlu1 %2677  ;;  %v15395_v61 = vpop.permute.xlu0 %2681 }
  0xb2   : > { %13340 = vmatprep.subr.msk.mxu0 %vm362_vm1, %v1230_v60  ;;  %955 = vmatprep.mubr.f32.mxu0 %v14937_v4  ;;  %v2684_v44 = vsel %vm1049_vm5, %v15367_v55, %v15395_v61  ;;  %v2683_v53 = vsel %vm1049_vm5, %v15391_v59, %v15367_v55  ;;  %v15574_v55 = vcombine.high %v15556_v52, %v15556_v52 }
  0xb3   : > { %4606 = vrot.lane.b32.xlu1 %v15138_v12, %s14941_s12  ;;  %4604 = vrot.lane.b32.xlu0 %v15135_v11, %s14941_s12 }
  0xb4   : > { %13329 = vmatmul.mubr.msk.f32.gmra.mrb[2].mxu0 %vm355_vm0, %v15209_v24  ;;  %14130 = vmatprep.subr.msk.mxu1 %vm362_vm1, %v15292_v40 }
  0xb5   : > { %v1402_v63 = vpop.permute.xlu1 %1401  ;;  %v1404_v1 = vpop.permute.xlu0 %1403  ;;  %1128 = vmatprep.mubr.f32.mxu0 %v14937_v4  ;;  %14127 = vmatprep.mubr.msk.f32.mxu1 %vm355_vm0, %v15402_v62 }
  0xb6   : > { %v1409_v17 = vsel %vm1407_vm7, %v1404_v1, %v15224_v27  ;;  %v1408_v23 = vsel %vm1407_vm7, %v1402_v63, %v1404_v1 }
  0xb7   : > { %6185 = vrot.lane.b32.xlu1 %v15149_v14, %s14941_s12  ;;  %4602 = vrot.lane.b32.xlu0 %v15127_v10, %s14941_s12 }
  0xb8   : > { %13335 = vmatmul.mubr.msk.f32.vlgmr.msra.gmra.mrb[0].mxu0 %vm355_vm0, %v15215_v26  ;;  %14128 = vmatmul.mubr.msk.f32.vlgmr.msra.gmra.mrb[0].mxu1 %vm355_vm0, %v15418_v3 }
  0xb9   : > { %13341 = vmatpush1.msk.msra.mxu0 %vm362_vm1, %v1229_v6  ;;  %14131 = vmatpush3.msk.msra.mxu1 %vm362_vm1, %v15292_v40  ;;  %v1581_v16 = vpop.permute.xlu1 %1580  ;;  %v1583_v20 = vpop.permute.xlu0 %1582 }
  0xba   : > { %13347 = vmatprep.subr.msk.mxu0 %vm362_vm1, %v1409_v17  ;;  %1134 = vmatprep.mubr.f32.mxu0 %v14937_v4  ;;  %v1588_v27 = vsel %vm1586_vm8, %v1583_v20, %v15247_v32  ;;  %v1587_v32 = vsel %vm1586_vm8, %v1581_v16, %v1583_v20 }
  0xbb   : > { %14132 = vmatprep.mubr.msk.f32.mxu1 %vm355_vm0, %v15229_v29  ;;  %6183 = vrot.lane.b32.xlu1 %v15141_v13, %s14941_s12 }
  0xbc   : > { %6187 = vrot.lane.b32.xlu0 %v15156_v15, %s14941_s12  ;;  %13336 = vmatmul.mubr.msk.f32.gmra.mrb[2].mxu0 %vm355_vm0, %v15253_v33 }
  0xbd   : > { %14133 = vmatmul.mubr.msk.f32.vlgmr.msra.gmra.mrb[2].mxu1 %vm355_vm0, %v15258_v34  ;;  %v15446_v21 = vpop.permute.xlu1 %2853  ;;  %v15448_v22 = vpop.permute.xlu0 %2851  ;;  %1307 = vmatprep.mubr.f32.mxu0 %v14937_v4 }
  0xbe   : > { %14135 = vmatprep.subr.msk.mxu1 %vm362_vm1, %v15049_v7  ;;  %14137 = vmatprep.mubr.msk.f32.mxu1 %vm355_vm0, %v14995_v0  ;;  %v2856_v59 = vsel %vm1228_vm6, %v15448_v22, %v15446_v21 }
  0xbf   : > { %4778 = vrot.lane.b32.xlu1 %v15138_v12, %s14943_s14  ;;  %14136 = vmatpush3.msk.msra.mxu1 %vm362_vm1, %v15049_v7 }
  0xc0   : > { %4776 = vrot.lane.b32.xlu0 %v15135_v11, %s14943_s14  ;;  %13342 = vmatmul.mubr.msk.f32.vlgmr.msra.gmra.mrb[0].mxu0 %vm355_vm0, %v15269_v35 }
  0xc1   : > { %13348 = vmatpush1.msk.msra.mxu0 %vm362_vm1, %v1408_v23  ;;  %v1762_v25 = vpop.permute.xlu1 %1761  ;;  %v15467_v28 = vpop.permute.xlu0 %2849  ;;  %14140 = vmatprep.subr.msk.mxu1 %vm362_vm1, %v15330_v47 }
  0xc2   : > { %13354 = vmatprep.subr.msk.mxu0 %vm362_vm1, %v1588_v27  ;;  %1313 = vmatprep.mubr.f32.mxu0 %v14937_v4  ;;  %v1767_v37 = vsel %vm1765_vm9, %v1762_v25, %v15245_v31  ;;  %v2855_v20 = vsel %vm1228_vm6, %v15467_v28, %v15448_v22 }
  0xc3   : > { %6357 = vrot.lane.b32.xlu1 %v15149_v14, %s14943_s14 }
  0xc4   : > { %4774 = vrot.lane.b32.xlu0 %v15127_v10, %s14943_s14  ;;  %13343 = vmatmul.mubr.msk.f32.gmra.mrb[2].mxu0 %vm355_vm0, %v15298_v41 }
  0xc5   : > { %14138 = vmatmul.mubr.msk.f32.vlgmr.msra.gmra.mrb[2].mxu1 %vm355_vm0, %v15013_v2  ;;  %v15481_v7 = vpop.permute.xlu1 %3023  ;;  %v1760_v30 = vpop.permute.xlu0 %1759  ;;  %1486 = vmatprep.mubr.f32.mxu0 %v14937_v4 }
  0xc6   : > { %14141 = vmatpush3.msk.msra.mxu1 %vm362_vm1, %v15330_v47  ;;  %14142 = vmatprep.mubr.msk.f32.mxu1 %vm355_vm0, %v15024_v5  ;;  %v1766_v42 = vsel %vm1765_vm9, %v1760_v30, %v1762_v25 }
  0xc7   : > { %6355 = vrot.lane.b32.xlu1 %v15141_v13, %s14943_s14  ;;  %14145 = vmatprep.subr.msk.mxu1 %vm362_vm1, %v15369_v56 }
  0xc8   : > { %6359 = vrot.lane.b32.xlu0 %v15156_v15, %s14943_s14  ;;  %13349 = vmatmul.mubr.msk.f32.vlgmr.msra.gmra.mrb[0].mxu0 %vm355_vm0, %v15313_v43 }
  0xc9   : > { %13355 = vmatpush1.msk.msra.mxu0 %vm362_vm1, %v1587_v32  ;;  %v15498_v36 = vpop.permute.xlu1 %3021  ;;  %v15502_v38 = vpop.permute.xlu0 %3025  ;;  %1492 = vmatprep.mubr.f32.mxu0 %v14937_v4 }
  0xca   : > { %13361 = vmatprep.subr.msk.mxu0 %vm362_vm1, %v1767_v37  ;;  %v3028_v27 = vsel %vm1407_vm7, %v15481_v7, %v15502_v38 }
  0xcb   : > { %4950 = vrot.lane.b32.xlu1 %v15138_v12, %s14942_s13 }
  0xcc   : > { %4948 = vrot.lane.b32.xlu0 %v15135_v11, %s14942_s13  ;;  %13350 = vmatmul.mubr.msk.f32.gmra.mrb[2].mxu0 %vm355_vm0, %v15336_v49 }
  0xcd   : > { %14143 = vmatmul.mubr.msk.f32.vlgmr.msra.gmra.mrb[2].mxu1 %vm355_vm0, %v15175_v18  ;;  %v2010_v39 = vpop.permute.xlu1 %2009  ;;  %v2012_v31 = vpop.permute.xlu0 %2011  ;;  %1665 = vmatprep.mubr.f32.mxu0 %v14937_v4 }
  0xce   : > { %14146 = vmatpush3.msk.msra.mxu1 %vm362_vm1, %v15369_v56  ;;  %14147 = vmatprep.mubr.msk.f32.mxu1 %vm355_vm0, %v15181_v19  ;;  %v2016_v46 = vsel %vm352_vm2, %v2012_v31, %v15292_v40  ;;  %v15553_v40 = vcombine.high %v15539_v50, %v15539_v50  ;;  %v2015_v6 = vsel %vm352_vm2, %v2010_v39, %v2012_v31 }
  0xcf   : > { %13398 = vmatprep.subr.msk.mxu1 %vm362_vm1, %v2684_v44  ;;  %6529 = vrot.lane.b32.xlu1 %v15149_v14, %s14942_s13 }
  0xd0   : > { %4946 = vrot.lane.b32.xlu0 %v15127_v10, %s14942_s13  ;;  %13356 = vmatmul.mubr.msk.f32.vlgmr.msra.gmra.mrb[0].mxu0 %vm355_vm0, %v15357_v54 }
  0xd1   : > { %13362 = vmatpush1.msk.msra.mxu0 %vm362_vm1, %v1766_v42  ;;  %v15531_v45 = vpop.permute.xlu1 %3197  ;;  %v15535_v48 = vpop.permute.xlu0 %3195  ;;  %1671 = vmatprep.mubr.f32.mxu0 %v14937_v4 }
  0xd2   : > { %13370 = vmatprep.subr.msk.mxu0 %vm362_vm1, %v2016_v46 }
  0xd3   : > { %6527 = vrot.lane.b32.xlu1 %v15141_v13, %s14942_s13 }
  0xd4   : > { %6531 = vrot.lane.b32.xlu0 %v15156_v15, %s14942_s13  ;;  %13357 = vmatmul.mubr.msk.f32.gmra.mrb[2].mxu0 %vm355_vm0, %v15377_v57 }
  0xd5   : > { %14148 = vmatmul.mubr.msk.f32.vlgmr.msra.gmra.mrb[2].mxu1 %vm355_vm0, %v15209_v24  ;;  %v2336_v58 = vpop.permute.xlu1 %2335  ;;  %v15563_v60 = vpop.permute.xlu0 %3193  ;;  %1844 = vmatprep.mubr.f32.mxu0 %v14937_v4 }
  0xd6   : > { %13399 = vmatpush1.msk.msra.mxu1 %vm362_vm1, %v2683_v53  ;;  %2755 = vmatprep.mubr.f32.mxu1 %v14937_v4  ;;  %v3199_v53 = vsel %vm1586_vm8, %v15563_v60, %v15535_v48 }
  0xd7   : > { %14150 = vmatprep.subr.msk.mxu1 %vm362_vm1, %v15395_v61  ;;  %6756 = vrot.lane.b32.xlu1 %v15549_v51, %s14940_s11 }
  0xd8   : > { %6754 = vrot.lane.b32.xlu0 %v15553_v40, %s14940_s11  ;;  %13363 = vmatmul.mubr.msk.f32.vlgmr.msra.gmra.mrb[0].mxu0 %vm355_vm0, %v15402_v62 }
  0xd9   : > { %13400 = vmatmul.mubr.msk.f32.vlgmr.msra.gmra.mrb[4].mxu1 %vm355_vm0, %v15215_v26  ;;  %v2334_v63 = vpop.permute.xlu0 %2333  ;;  %1850 = vmatprep.mubr.f32.mxu0 %v14937_v4  ;;  %v15586_v1 = vpop.permute.xlu1 %3367 }
  0xda   : > { %14151 = vmatpush3.msk.msra.mxu1 %vm362_vm1, %v15395_v61  ;;  %2761 = vmatprep.mubr.f32.mxu1 %v14937_v4  ;;  %v15605_v61 = vld [vmem:[%s15005_s27 + $0x44] sm:$0xf]  ;;  %v2339_v22 = vsel %vm691_vm3, %v2334_v63, %v2336_v58 }
  0xdb   : > { %13405 = vmatprep.subr.msk.mxu1 %vm362_vm1, %v2856_v59  ;;  %8335 = vrot.lane.b32.xlu1 %v15574_v55, %s14940_s11 }
  0xdc   : > { %6752 = vrot.lane.b32.xlu0 %v15539_v50, %s14940_s11  ;;  %13364 = vmatmul.mubr.msk.f32.gmra.mrb[2].mxu0 %vm355_vm0, %v15418_v3 }
  0xdd   : > { %13401 = vmatmul.mubr.msk.f32.gmra.mrb[6].mxu1 %vm355_vm0, %v15253_v33  ;;  %v15601_v16 = vpop.permute.xlu0 %3369  ;;  %13371 = vmatpush1.msk.msra.mxu0 %vm362_vm1, %v2015_v6  ;;  %v15607_v17 = vpop.permute.xlu1 %3365 }
  0xde   : > { %2087 = vmatprep.mubr.f32.mxu0 %v14937_v4  ;;  %13377 = vmatprep.subr.msk.mxu0 %vm362_vm1, %v15072_v9  ;;  %v2340_v9 = vsel %vm691_vm3, %v2336_v58, %v15330_v47  ;;  %v3372_v63 = vsel %vm1765_vm9, %v15586_v1, %v15601_v16 }
  0xdf   : > { %14152 = vmatprep.mubr.msk.f32.mxu1 %vm355_vm0, %v15215_v26  ;;  %8333 = vrot.lane.b32.xlu1 %v15556_v52, %s14940_s11 }
  0xe0   : > { %8337 = vrot.lane.b32.xlu0 %v15605_v61, %s14940_s11  ;;  %13372 = vmatmul.mubr.msk.f32.vlgmr.msra.gmra.mrb[6].mxu0 %vm355_vm0, %v15229_v29 }
  0xe1   : > { %13378 = vmatpush1.msk.msra.mxu0 %vm362_vm1, %v15064_v8  ;;  %14153 = vmatmul.mubr.msk.f32.vlgmr.msra.gmra.mrb[2].mxu1 %vm355_vm0, %v15253_v33  ;;  %v2508_v23 = vpop.permute.xlu0 %2507  ;;  %v2506_v25 = vpop.permute.xlu1 %2505 }
  0xe2   : > { %13406 = vmatpush1.msk.msra.mxu1 %vm362_vm1, %v2855_v20  ;;  %13384 = vmatprep.subr.msk.mxu0 %vm362_vm1, %v2340_v9  ;;  %v2511_v31 = vsel %vm870_vm4, %v2506_v25, %v2508_v23  ;;  %v3371_v9 = vsel %vm1765_vm9, %v15607_v17, %v15586_v1 }
  0xe3   : > { %14155 = vmatprep.subr.msk.mxu1 %vm362_vm1, %v15446_v21  ;;  %2093 = vmatprep.mubr.f32.mxu0 %v14937_v4 }
  0xe4   : > { %2927 = vmatprep.mubr.f32.mxu1 %v14937_v4  ;;  %7080 = vrot.lane.b32.xlu1 %v15549_v51, %s14936_s29 }
  0xe5   : > { %7078 = vrot.lane.b32.xlu0 %v15553_v40, %s14936_s29  ;;  %13373 = vmatmul.mubr.msk.f32.gmra.mrb[8].mxu0 %vm355_vm0, %v15258_v34  ;;  %v15641_v8 = vpop.permute.xlu0 %3592  ;;  %v15643_v47 = vpop.permute.xlu1 %3594 }
  0xe6   : > { %13407 = vmatmul.mubr.msk.f32.vlgmr.msra.gmra.mrb[4].mxu1 %vm355_vm0, %v15269_v35  ;;  %2245 = vmatprep.mubr.f32.mxu0 %v14937_v4  ;;  %v3597_v42 = vsel %vm352_vm2, %v15641_v8, %v15643_v47 }
  0xe7   : > { %14156 = vmatpush3.msk.msra.mxu1 %vm362_vm1, %v15446_v21  ;;  %2933 = vmatprep.mubr.f32.mxu1 %v14937_v4  ;;  %v2512_v21 = vsel %vm870_vm4, %v2508_v23, %v15369_v56  ;;  %v3027_v56 = vsel %vm1407_vm7, %v15498_v36, %v15481_v7  ;;  %v3200_v7 = vsel %vm1586_vm8, %v15535_v48, %v15531_v45 }
  0xe8   : > { %13412 = vmatprep.subr.msk.mxu1 %vm362_vm1, %v3028_v27  ;;  %8659 = vrot.lane.b32.xlu1 %v15574_v55, %s14936_s29 }
  0xe9   : > { %7076 = vrot.lane.b32.xlu0 %v15539_v50, %s14936_s29  ;;  %13379 = vmatmul.mubr.msk.f32.vlgmr.msra.gmra.mrb[6].mxu0 %vm355_vm0, %v14995_v0  ;;  %v3591_v28 = vpop.permute.xlu0 %3590  ;;  %v15662_v30 = vpop.permute.xlu1 %5173 }
  0xea   : > { %13385 = vmatpush1.msk.msra.mxu0 %vm362_vm1, %v2339_v22  ;;  %13408 = vmatmul.mubr.msk.f32.gmra.mrb[6].mxu1 %vm355_vm0, %v15298_v41  ;;  %v3596_v59 = vsel %vm352_vm2, %v3591_v28, %v15641_v8 }
  0xeb   : > { %13391 = vmatprep.subr.msk.mxu0 %vm362_vm1, %v2512_v21  ;;  %2251 = vmatprep.mubr.f32.mxu0 %v14937_v4 }
  0xec   : > { %14157 = vmatprep.mubr.msk.f32.mxu1 %vm355_vm0, %v15269_v35  ;;  %8657 = vrot.lane.b32.xlu1 %v15556_v52, %s14936_s29 }
  0xed   : > { %8661 = vrot.lane.b32.xlu0 %v15605_v61, %s14936_s29  ;;  %13380 = vmatmul.mubr.msk.f32.gmra.mrb[8].mxu0 %vm355_vm0, %v15013_v2  ;;  %v15679_v32 = vpop.permute.xlu0 %5175  ;;  %v15681_v37 = vpop.permute.xlu1 %5171 }
  0xee   : > { %14158 = vmatmul.mubr.msk.f32.vlgmr.msra.gmra.mrb[2].mxu1 %vm355_vm0, %v15298_v41  ;;  %2411 = vmatprep.mubr.f32.mxu0 %v14937_v4  ;;  %v5177_v8 = vsel %vm352_vm2, %v15681_v37, %v15662_v30 }
  0xef   : > { %13413 = vmatpush1.msk.msra.mxu1 %vm362_vm1, %v3027_v56  ;;  %3099 = vmatprep.mubr.f32.mxu1 %v14937_v4 }
  0xf0   : > { %14160 = vmatprep.subr.msk.mxu1 %vm362_vm1, %v15502_v38  ;;  %7252 = vrot.lane.b32.xlu1 %v15549_v51, %s14939_s10 }
  0xf1   : > { %7250 = vrot.lane.b32.xlu0 %v15553_v40, %s14939_s10  ;;  %13386 = vmatmul.mubr.msk.f32.vlgmr.msra.gmra.mrb[6].mxu0 %vm355_vm0, %v15024_v5  ;;  %v15702_v36 = vpop.permute.xlu0 %3916  ;;  %v15704_v39 = vpop.permute.xlu1 %3918 }
  0xf2   : > { %13414 = vmatmul.mubr.msk.f32.vlgmr.msra.gmra.mrb[4].mxu1 %vm355_vm0, %v15313_v43  ;;  %2417 = vmatprep.mubr.f32.mxu0 %v14937_v4 }
  0xf3   : > { %14161 = vmatpush3.msk.msra.mxu1 %vm362_vm1, %v15502_v38  ;;  %3105 = vmatprep.mubr.f32.mxu1 %v14937_v4 }
  0xf4   : > { %13419 = vmatprep.subr.msk.mxu1 %vm362_vm1, %v3200_v7  ;;  %8831 = vrot.lane.b32.xlu1 %v15574_v55, %s14939_s10 }
  0xf5   : > { %7248 = vrot.lane.b32.xlu0 %v15539_v50, %s14939_s10  ;;  %13387 = vmatmul.mubr.msk.f32.gmra.mrb[8].mxu0 %vm355_vm0, %v15175_v18  ;;  %v15723_v38 = vpop.permute.xlu0 %3914  ;;  %v15725_v44 = vpop.permute.xlu1 %5497 }
  0xf6   : > { %13415 = vmatmul.mubr.msk.f32.gmra.mrb[6].mxu1 %vm355_vm0, %v15336_v49  ;;  %13392 = vmatpush1.msk.msra.mxu0 %vm362_vm1, %v2511_v31  ;;  %v16040_v31 = vld [vmem:[%s17735_s1 + $0x20] sm:$0xff] }
  0xf7   : > { %2583 = vmatprep.mubr.f32.mxu0 %v14937_v4  ;;  %14162 = vmatprep.mubr.msk.f32.mxu1 %vm355_vm0, %v15313_v43 }
  0xf8   : > { %8829 = vrot.lane.b32.xlu1 %v15556_v52, %s14939_s10  ;;  %13441 = vmatprep.subr.msk.mxu0 %vm362_vm1, %v3597_v42 }
  0xf9   : > { %8833 = vrot.lane.b32.xlu0 %v15605_v61, %s14939_s10  ;;  %13393 = vmatmul.mubr.msk.f32.vlgmr.msra.gmra.mrb[6].mxu0 %vm355_vm0, %v15181_v19  ;;  %v15740_v46 = vpop.permute.xlu1 %5495 }
  0xfa   : > { %14163 = vmatmul.mubr.msk.f32.vlgmr.msra.gmra.mrb[2].mxu1 %vm355_vm0, %v15336_v49  ;;  %2589 = vmatprep.mubr.f32.mxu0 %v14937_v4  ;;  %v15748_v58 = vpop.permute.xlu0 %5499 }
  0xfb   : > { %13420 = vmatpush1.msk.msra.mxu1 %vm362_vm1, %v3199_v53  ;;  %3271 = vmatprep.mubr.f32.mxu1 %v14937_v4  ;;  %v5502_v37 = vsel %vm691_vm3, %v15725_v44, %v15748_v58 }
  0xfc   : > { %14165 = vmatprep.subr.msk.mxu1 %vm362_vm1, %v15531_v45  ;;  %7424 = vrot.lane.b32.xlu1 %v15549_v51, %s14935_s28 }
  0xfd   : > { %7422 = vrot.lane.b32.xlu0 %v15553_v40, %s14935_s28  ;;  %13394 = vmatmul.mubr.msk.f32.gmra.mrb[8].mxu0 %vm355_vm0, %v15209_v24  ;;  %v15762_v48 = vpop.permute.xlu1 %4090 }
  0xfe   : > { %13421 = vmatmul.mubr.msk.f32.vlgmr.msra.gmra.mrb[4].mxu1 %vm355_vm0, %v15357_v54  ;;  %13442 = vmatpush1.msk.msra.mxu0 %vm362_vm1, %v3596_v59  ;;  %v15767_v60 = vpop.permute.xlu0 %4088  ;;  %v16090_v59 = vld [vmem:[%s15005_s27 + $0x50] sm:$0xf] }
  0xff   : > { %14166 = vmatpush3.msk.msra.mxu1 %vm362_vm1, %v15531_v45  ;;  %3277 = vmatprep.mubr.f32.mxu1 %v14937_v4  ;;  %v4093_v27 = vsel %vm870_vm4, %v15767_v60, %v15762_v48 }
 0x100   : > { %13426 = vmatprep.subr.msk.mxu1 %vm362_vm1, %v3372_v63  ;;  %3668 = vmatprep.mubr.f32.mxu0 %v14937_v4 }
 0x101   : > { %9003 = vrot.lane.b32.xlu1 %v15574_v55, %s14935_s28  ;;  %7420 = vrot.lane.b32.xlu0 %v15539_v50, %s14935_s28  ;;  %v15781_v6 = vpop.permute.xlu1 %5669 }
 0x102   : > { %13422 = vmatmul.mubr.msk.f32.gmra.mrb[6].mxu1 %vm355_vm0, %v15377_v57  ;;  %13443 = vmatmul.mubr.msk.f32.vlgmr.msra.gmra.mrb[10].mxu0 %vm355_vm0, %v15229_v29  ;;  %v15787_v45 = vpop.permute.xlu0 %4086 }
 0x103   : > { %14167 = vmatprep.mubr.msk.f32.mxu1 %vm355_vm0, %v15357_v54  ;;  %3674 = vmatprep.mubr.f32.mxu0 %v14937_v4 }
 0x104   : > { %14175 = vmatprep.subr.msk.mxu0 %vm362_vm1, %v15643_v47 }
 0x105   : > { %9001 = vrot.lane.b32.xlu1 %v15556_v52, %s14935_s28  ;;  %9005 = vrot.lane.b32.xlu0 %v15605_v61, %s14935_s28  ;;  %v15798_v20 = vpop.permute.xlu1 %5667 }
 0x106   : > { %14168 = vmatmul.mubr.msk.f32.vlgmr.msra.gmra.mrb[2].mxu1 %vm355_vm0, %v15377_v57  ;;  %13444 = vmatmul.mubr.msk.f32.gmra.mrb[12].mxu0 %vm355_vm0, %v15258_v34  ;;  %v15807_v23 = vpop.permute.xlu0 %5671 }
 0x107   : > { %13427 = vmatpush1.msk.msra.mxu1 %vm362_vm1, %v3371_v9  ;;  %3443 = vmatprep.mubr.f32.mxu1 %v14937_v4 }
 0x108   : > { %14170 = vmatprep.subr.msk.mxu1 %vm362_vm1, %v15601_v16  ;;  %14176 = vmatpush3.msk.msra.mxu0 %vm362_vm1, %v15643_v47  ;;  %v3921_v47 = vsel %vm691_vm3, %v15702_v36, %v15704_v39 }
 0x109   : > { %14177 = vmatprep.mubr.msk.f32.mxu0 %vm355_vm0, %v15229_v29  ;;  %7596 = vrot.lane.b32.xlu1 %v15549_v51, %s14938_s9  ;;  %v15819_v1 = vpop.permute.xlu1 %4262 }
 0x10a   : > { %7594 = vrot.lane.b32.xlu0 %v15553_v40, %s14938_s9  ;;  %13428 = vmatmul.mubr.msk.f32.vlgmr.msra.gmra.mrb[4].mxu1 %vm355_vm0, %v15402_v62 }
 0x10b   : > { %14171 = vmatpush3.msk.msra.mxu1 %vm362_vm1, %v15601_v16  ;;  %14178 = vmatmul.mubr.msk.f32.vlgmr.msra.gmra.mrb[14].mxu0 %vm355_vm0, %v15258_v34  ;;  %v15829_v17 = vpop.permute.xlu0 %4260  ;;  %v5178_v16 = vsel %vm352_vm2, %v15662_v30, %v15679_v32  ;;  %v15979_v30 = vld [vmem:[%s17735_s1 + $0x8] sm:$0x3f] }
 0x10c   : > { %13448 = vmatprep.subr.msk.mxu0 %vm362_vm1, %v15135_v11  ;;  %3449 = vmatprep.mubr.f32.mxu1 %v14937_v4 }
 0x10d   : > { %13449 = vmatpush1.msk.msra.mxu0 %vm362_vm1, %v15127_v10  ;;  %3826 = vmatprep.mubr.f32.mxu0 %v14937_v4  ;;  %v15837_v25 = vpop.permute.xlu1 %5841 }
 0x10e   : > { %9175 = vrot.lane.b32.xlu1 %v15574_v55, %s14938_s9  ;;  %7592 = vrot.lane.b32.xlu0 %v15539_v50, %s14938_s9 }
 0x10f   : > { %13429 = vmatmul.mubr.msk.f32.gmra.mrb[6].mxu1 %vm355_vm0, %v15418_v3  ;;  %13450 = vmatmul.mubr.msk.f32.vlgmr.msra.gmra.mrb[10].mxu0 %vm355_vm0, %v14995_v0 }
 0x110   : > { %14172 = vmatprep.mubr.msk.f32.mxu1 %vm355_vm0, %v15402_v62  ;;  %3832 = vmatprep.mubr.f32.mxu0 %v14937_v4  ;;  %v15853_v10 = vpop.permute.xlu0 %4258 }
 0x111   : > { %14180 = vmatprep.subr.msk.mxu0 %vm362_vm1, %v15138_v12  ;;  %13512 = vmatprep.subr.msk.mxu1 %vm362_vm1, %v5178_v16  ;;  %v15858_v11 = vpop.permute.xlu1 %5839 }
 0x112   : > { %9173 = vrot.lane.b32.xlu1 %v15556_v52, %s14938_s9  ;;  %9177 = vrot.lane.b32.xlu0 %v15605_v61, %s14938_s9 }
 0x113   : > { %14173 = vmatmul.mubr.msk.f32.vlgmr.msra.gmra.mrb[2].mxu1 %vm355_vm0, %v15418_v3  ;;  %13451 = vmatmul.mubr.msk.f32.gmra.mrb[12].mxu0 %vm355_vm0, %v15013_v2 }
 0x114   : > { %14181 = vmatpush3.msk.msra.mxu0 %vm362_vm1, %v15138_v12  ;;  %14182 = vmatprep.mubr.msk.f32.mxu0 %vm355_vm0, %v14995_v0  ;;  %v15875_v62 = vpop.permute.xlu0 %5843  ;;  %v3920_v0 = vsel %vm691_vm3, %v15723_v38, %v15702_v36  ;;  %v4265_v36 = vsel %vm1049_vm5, %v15829_v17, %v15819_v1 }
 0x115   : > { %13513 = vmatpush1.msk.msra.mxu1 %vm362_vm1, %v5177_v8  ;;  %5249 = vmatprep.mubr.f32.mxu1 %v14937_v4 }
 0x116   : > { %7768 = vrot.lane.b32.xlu1 %v15549_v51, %s14941_s12  ;;  %7766 = vrot.lane.b32.xlu0 %v15553_v40, %s14941_s12  ;;  %v15889_v12 = vpop.permute.xlu1 %4434 }
 0x117   : > { %14183 = vmatmul.mubr.msk.f32.vlgmr.msra.gmra.mrb[14].mxu0 %vm355_vm0, %v15013_v2  ;;  %13514 = vmatmul.mubr.msk.f32.vlgmr.msra.gmra.mrb[8].mxu1 %vm355_vm0, %v15229_v29 }
 0x118   : > { %14220 = vmatprep.subr.msk.mxu1 %vm362_vm1, %v15679_v32  ;;  %13455 = vmatprep.subr.msk.mxu0 %vm362_vm1, %v3921_v47  ;;  %v15898_v3 = vpop.permute.xlu0 %4432 }
 0x119   : > { %14221 = vmatpush3.msk.msra.mxu1 %vm362_vm1, %v15679_v32  ;;  %13456 = vmatpush1.msk.msra.mxu0 %vm362_vm1, %v3920_v0 }
 0x11a   : > { %3992 = vmatprep.mubr.f32.mxu0 %v14937_v4  ;;  %5255 = vmatprep.mubr.f32.mxu1 %v14937_v4 }
 0x11b   : > { %9347 = vrot.lane.b32.xlu1 %v15574_v55, %s14941_s12  ;;  %7764 = vrot.lane.b32.xlu0 %v15539_v50, %s14941_s12 }
 0x11c   : > { %13457 = vmatmul.mubr.msk.f32.vlgmr.msra.gmra.mrb[10].mxu0 %vm355_vm0, %v15024_v5  ;;  %13515 = vmatmul.mubr.msk.f32.gmra.mrb[10].mxu1 %vm355_vm0, %v15258_v34  ;;  %v15913_v2 = vpop.permute.xlu1 %6013 }
 0x11d   : > { %3998 = vmatprep.mubr.f32.mxu0 %v14937_v4  ;;  %14222 = vmatprep.mubr.msk.f32.mxu1 %vm355_vm0, %v15229_v29  ;;  %v15918_v22 = vpop.permute.xlu0 %4430 }
 0x11e   : > { %14185 = vmatprep.subr.msk.mxu0 %vm362_vm1, %v15704_v39  ;;  %13519 = vmatprep.subr.msk.mxu1 %vm362_vm1, %v15149_v14 }
 0x11f   : > { %9345 = vrot.lane.b32.xlu1 %v15556_v52, %s14941_s12  ;;  %9349 = vrot.lane.b32.xlu0 %v15605_v61, %s14941_s12 }
 0x120   : > { %13458 = vmatmul.mubr.msk.f32.gmra.mrb[12].mxu0 %vm355_vm0, %v15175_v18  ;;  %14223 = vmatmul.mubr.msk.f32.vlgmr.msra.gmra.mrb[12].mxu1 %vm355_vm0, %v15258_v34  ;;  %v15932_v29 = vpop.permute.xlu1 %6011 }
 0x121   : > { %14186 = vmatpush3.msk.msra.mxu0 %vm362_vm1, %v15704_v39  ;;  %14187 = vmatprep.mubr.msk.f32.mxu0 %vm355_vm0, %v15024_v5  ;;  %v15938_v14 = vpop.permute.xlu0 %6015  ;;  %v4092_v5 = vsel %vm870_vm4, %v15787_v45, %v15767_v60  ;;  %v4264_v39 = vsel %vm1049_vm5, %v15853_v10, %v15829_v17  ;;  %v4436_v60 = vsel %vm1228_vm6, %v15918_v22, %v15898_v3  ;;  %v16132_v45 = vld [vmem:[%s17735_s1 + $0x30] sm:$0xff] }
 0x122   : > { %13520 = vmatpush1.msk.msra.mxu1 %vm362_vm1, %v15141_v13  ;;  %5407 = vmatprep.mubr.f32.mxu1 %v14937_v4  ;;  %v15958_v13 = vld [vmem:[%s17735_s1] sm:$0xff]  ;;  %v5845_v10 = vsel %vm1049_vm5, %v15858_v11, %v15837_v25 }
 0x123   : > { %7940 = vrot.lane.b32.xlu1 %v15549_v51, %s14943_s14  ;;  %7938 = vrot.lane.b32.xlu0 %v15553_v40, %s14943_s14 }
 0x124   : > { %14188 = vmatmul.mubr.msk.f32.vlgmr.msra.gmra.mrb[14].mxu0 %vm355_vm0, %v15175_v18  ;;  %13521 = vmatmul.mubr.msk.f32.vlgmr.msra.gmra.mrb[8].mxu1 %vm355_vm0, %v15958_v13 }
 0x125   : > { %13462 = vmatprep.subr.msk.mxu0 %vm362_vm1, %v4093_v27  ;;  %4164 = vmatprep.mubr.f32.mxu0 %v14937_v4  ;;  %v15964_v34 = vpop.permute.xlu0 %4604  ;;  %v15966_v28 = vpop.permute.xlu1 %4606  ;;  %v6017_v27 = vsel %vm1228_vm6, %v15932_v29, %v15913_v2 }
 0x126   : > { %13463 = vmatpush1.msk.msra.mxu0 %vm362_vm1, %v4092_v5  ;;  %5413 = vmatprep.mubr.f32.mxu1 %v14937_v4 }
 0x127   : > { %9519 = vrot.lane.b32.xlu1 %v15574_v55, %s14943_s14  ;;  %7936 = vrot.lane.b32.xlu0 %v15539_v50, %s14943_s14 }
 0x128   : > { %13464 = vmatmul.mubr.msk.f32.vlgmr.msra.gmra.mrb[10].mxu0 %vm355_vm0, %v15181_v19  ;;  %13522 = vmatmul.mubr.msk.f32.gmra.mrb[10].mxu1 %vm355_vm0, %v15979_v30 }
 0x129   : > { %14225 = vmatprep.subr.msk.mxu1 %vm362_vm1, %v15156_v15  ;;  %4170 = vmatprep.mubr.f32.mxu0 %v14937_v4  ;;  %v15986_v21 = vpop.permute.xlu0 %4602  ;;  %v15988_v32 = vpop.permute.xlu1 %6185 }
 0x12a   : > { %14226 = vmatpush3.msk.msra.mxu1 %vm362_vm1, %v15156_v15  ;;  %14227 = vmatprep.mubr.msk.f32.mxu1 %vm355_vm0, %v15958_v13  ;;  %v5501_v15 = vsel %vm691_vm3, %v15740_v46, %v15725_v44  ;;  %v16071_v46 = vld [vmem:[%s15005_s27 + $0x48] sm:$0xff]  ;;  %v4608_v8 = vsel %vm1407_vm7, %v15986_v21, %v15964_v34  ;;  %v16317_v21 = vld [vmem:[%s17735_s1 + $0x58] sm:$0x3f] }
 0x12b   : > { %9517 = vrot.lane.b32.xlu1 %v15556_v52, %s14943_s14  ;;  %9521 = vrot.lane.b32.xlu0 %v15605_v61, %s14943_s14 }
 0x12c   : > { %13465 = vmatmul.mubr.msk.f32.gmra.mrb[12].mxu0 %vm355_vm0, %v15209_v24  ;;  %14228 = vmatmul.mubr.msk.f32.vlgmr.msra.gmra.mrb[12].mxu1 %vm355_vm0, %v15979_v30 }
 0x12d   : > { %13526 = vmatprep.subr.msk.mxu1 %vm362_vm1, %v5502_v37  ;;  %14190 = vmatprep.subr.msk.mxu0 %vm362_vm1, %v15762_v48  ;;  %v16011_v56 = vpop.permute.xlu1 %6183 }
 0x12e   : > { %13527 = vmatpush1.msk.msra.mxu1 %vm362_vm1, %v5501_v15  ;;  %14191 = vmatpush3.msk.msra.mxu0 %vm362_vm1, %v15762_v48  ;;  %v16016_v7 = vpop.permute.xlu0 %6187  ;;  %v6189_v15 = vsel %vm1407_vm7, %v16011_v56, %v15988_v32 }
 0x12f   : > { %14230 = vmatprep.subr.msk.mxu1 %vm362_vm1, %v15748_v58  ;;  %14192 = vmatprep.mubr.msk.f32.mxu0 %vm355_vm0, %v15181_v19 }
 0x130   : > { %5573 = vmatprep.mubr.f32.mxu1 %v14937_v4  ;;  %8112 = vrot.lane.b32.xlu1 %v15549_v51, %s14942_s13 }
 0x131   : > { %8110 = vrot.lane.b32.xlu0 %v15553_v40, %s14942_s13  ;;  %14193 = vmatmul.mubr.msk.f32.vlgmr.msra.gmra.mrb[14].mxu0 %vm355_vm0, %v15209_v24  ;;  %v16035_v19 = vpop.permute.xlu1 %4778  ;;  %v5674_v24 = vsel %vm870_vm4, %v15781_v6, %v15807_v23 }
 0x132   : > { %13528 = vmatmul.mubr.msk.f32.vlgmr.msra.gmra.mrb[8].mxu1 %vm355_vm0, %v16040_v31  ;;  %13469 = vmatprep.subr.msk.mxu0 %vm362_vm1, %v4265_v36  ;;  %v16045_v42 = vpop.permute.xlu0 %4776 }
 0x133   : > { %14231 = vmatpush3.msk.msra.mxu1 %vm362_vm1, %v15748_v58  ;;  %13470 = vmatpush1.msk.msra.mxu0 %vm362_vm1, %v4264_v39  ;;  %v5673_v58 = vsel %vm870_vm4, %v15798_v20, %v15781_v6  ;;  %v5846_v20 = vsel %vm1049_vm5, %v15837_v25, %v15875_v62  ;;  %v4609_v25 = vsel %vm1407_vm7, %v15964_v34, %v15966_v28 }
 0x134   : > { %4336 = vmatprep.mubr.f32.mxu0 %v14937_v4  ;;  %5579 = vmatprep.mubr.f32.mxu1 %v14937_v4 }
 0x135   : > { %9691 = vrot.lane.b32.xlu1 %v15574_v55, %s14942_s13  ;;  %8108 = vrot.lane.b32.xlu0 %v15539_v50, %s14942_s13  ;;  %v16059_v38 = vpop.permute.xlu1 %6357 }
 0x136   : > { %13471 = vmatmul.mubr.msk.f32.vlgmr.msra.gmra.mrb[10].mxu0 %vm355_vm0, %v15215_v26  ;;  %13529 = vmatmul.mubr.msk.f32.gmra.mrb[10].mxu1 %vm355_vm0, %v15175_v18  ;;  %v16065_v44 = vpop.permute.xlu0 %4774 }
 0x137   : > { %4342 = vmatprep.mubr.f32.mxu0 %v14937_v4  ;;  %14232 = vmatprep.mubr.msk.f32.mxu1 %vm355_vm0, %v16040_v31  ;;  %v4780_v5 = vsel %vm1586_vm8, %v16065_v44, %v16045_v42 }
 0x138   : > { %13533 = vmatprep.subr.msk.mxu1 %vm362_vm1, %v5674_v24  ;;  %14195 = vmatprep.subr.msk.mxu0 %vm362_vm1, %v15819_v1 }
 0x139   : > { %9689 = vrot.lane.b32.xlu1 %v15556_v52, %s14942_s13  ;;  %9693 = vrot.lane.b32.xlu0 %v15605_v61, %s14942_s13  ;;  %v16080_v53 = vpop.permute.xlu1 %6355  ;;  %v16094_v52 = vcombine.high %v16071_v46, %v16071_v46  ;;  %v16102_v61 = vld [vmem:[%s15005_s27 + $0x54] sm:$0xff] }
 0x13a   : > { %13472 = vmatmul.mubr.msk.f32.gmra.mrb[12].mxu0 %vm355_vm0, %v15253_v33  ;;  %14233 = vmatmul.mubr.msk.f32.vlgmr.msra.gmra.mrb[12].mxu1 %vm355_vm0, %v15175_v18  ;;  %v16096_v48 = vpop.permute.xlu0 %6359  ;;  %v4437_v18 = vsel %vm1228_vm6, %v15898_v3, %v15889_v12 }
 0x13b   : > { %13534 = vmatpush1.msk.msra.mxu1 %vm362_vm1, %v5673_v58  ;;  %14196 = vmatpush3.msk.msra.mxu0 %vm362_vm1, %v15819_v1  ;;  %v16163_v1 = vld [vmem:[%s15005_s27 + $0x5c] sm:$0xf]  ;;  %v6362_v58 = vsel %vm1586_vm8, %v16059_v38, %v16096_v48 }
 0x13c   : > { %14235 = vmatprep.subr.msk.mxu1 %vm362_vm1, %v15807_v23  ;;  %14197 = vmatprep.mubr.msk.f32.mxu0 %vm355_vm0, %v15215_v26  ;;  %v16125_v26 = vcombine.high %v16102_v61, %v16102_v61 }
 0x13d   : > { %5745 = vmatprep.mubr.f32.mxu1 %v14937_v4  ;;  %9918 = vrot.lane.b32.xlu1 %v16090_v59, %s14940_s11  ;;  %v16117_v63 = vpop.permute.xlu1 %4950 }
 0x13e   : > { %9916 = vrot.lane.b32.xlu0 %v16094_v52, %s14940_s11  ;;  %14198 = vmatmul.mubr.msk.f32.vlgmr.msra.gmra.mrb[14].mxu0 %vm355_vm0, %v15253_v33  ;;  %v16127_v6 = vpop.permute.xlu0 %4948 }
 0x13f   : > { %13535 = vmatmul.mubr.msk.f32.vlgmr.msra.gmra.mrb[8].mxu1 %vm355_vm0, %v16132_v45  ;;  %13476 = vmatprep.subr.msk.mxu0 %vm362_vm1, %v4437_v18  ;;  %v16410_v18 = vld [vmem:[%s17735_s1 + $0x68] sm:$0x3f] }
 0x140   : > { %14236 = vmatpush3.msk.msra.mxu1 %vm362_vm1, %v15807_v23  ;;  %13477 = vmatpush1.msk.msra.mxu0 %vm362_vm1, %v4436_v60  ;;  %v16158_v23 = vld [vmem:[%s17735_s1 + $0x38] sm:$0x3f] }
 0x141   : > { %4508 = vmatprep.mubr.f32.mxu0 %v14937_v4  ;;  %5751 = vmatprep.mubr.f32.mxu1 %v14937_v4  ;;  %v16142_v33 = vpop.permute.xlu1 %6529 }
 0x142   : > { %11497 = vrot.lane.b32.xlu1 %v16125_v26, %s14940_s11  ;;  %9914 = vrot.lane.b32.xlu0 %v16071_v46, %s14940_s11  ;;  %v16151_v9 = vpop.permute.xlu0 %4946 }
 0x143   : > { %13478 = vmatmul.mubr.msk.f32.vlgmr.msra.gmra.mrb[10].mxu0 %vm355_vm0, %v15269_v35  ;;  %13536 = vmatmul.mubr.msk.f32.gmra.mrb[10].mxu1 %vm355_vm0, %v16158_v23  ;;  %v4952_v39 = vsel %vm1765_vm9, %v16151_v9, %v16127_v6  ;;  %v16434_v9 = vld [vmem:[%s17735_s1 + $0x88] sm:$0x3f] }
 0x144   : > { %4514 = vmatprep.mubr.f32.mxu0 %v14937_v4  ;;  %14237 = vmatprep.mubr.msk.f32.mxu1 %vm355_vm0, %v16132_v45 }
 0x145   : > { %13540 = vmatprep.subr.msk.mxu1 %vm362_vm1, %v5846_v20  ;;  %14200 = vmatprep.subr.msk.mxu0 %vm362_vm1, %v15889_v12  ;;  %v16171_v17 = vpop.permute.xlu1 %6527  ;;  %v6361_v20 = vsel %vm1586_vm8, %v16080_v53, %v16059_v38 }
 0x146   : > { %11495 = vrot.lane.b32.xlu1 %v16102_v61, %s14940_s11  ;;  %11499 = vrot.lane.b32.xlu0 %v16163_v1, %s14940_s11  ;;  %v16177_v16 = vpop.permute.xlu0 %6531 }
 0x147   : > { %13479 = vmatmul.mubr.msk.f32.gmra.mrb[12].mxu0 %vm355_vm0, %v15298_v41  ;;  %14238 = vmatmul.mubr.msk.f32.vlgmr.msra.gmra.mrb[12].mxu1 %vm355_vm0, %v16158_v23 }
 0x148   : > { %13541 = vmatpush1.msk.msra.mxu1 %vm362_vm1, %v5845_v10  ;;  %14201 = vmatpush3.msk.msra.mxu0 %vm362_vm1, %v15889_v12  ;;  %v16239_v12 = vld [vmem:[%s17735_s1 + $0x48] sm:$0x3f] }
 0x149   : > { %14240 = vmatprep.subr.msk.mxu1 %vm362_vm1, %v15875_v62  ;;  %14202 = vmatprep.mubr.msk.f32.mxu0 %vm355_vm0, %v15269_v35  ;;  %v16196_v11 = vpop.permute.xlu1 %6756  ;;  %v16213_v35 = vld [vmem:[%s17735_s1 + $0x40] sm:$0xff] }
 0x14a   : > { %5917 = vmatprep.mubr.f32.mxu1 %v14937_v4  ;;  %10242 = vrot.lane.b32.xlu1 %v16090_v59, %s14936_s29  ;;  %v16204_v47 = vpop.permute.xlu0 %6754 }
 0x14b   : > { %10240 = vrot.lane.b32.xlu0 %v16094_v52, %s14936_s29  ;;  %14203 = vmatmul.mubr.msk.f32.vlgmr.msra.gmra.mrb[14].mxu0 %vm355_vm0, %v15298_v41  ;;  %v6759_v53 = vsel %vm352_vm2, %v16204_v47, %v16196_v11 }
 0x14c   : > { %13542 = vmatmul.mubr.msk.f32.vlgmr.msra.gmra.mrb[8].mxu1 %vm355_vm0, %v16213_v35  ;;  %13483 = vmatprep.subr.msk.mxu0 %vm362_vm1, %v4609_v25 }
 0x14d   : > { %14241 = vmatpush3.msk.msra.mxu1 %vm362_vm1, %v15875_v62  ;;  %13484 = vmatpush1.msk.msra.mxu0 %vm362_vm1, %v4608_v8  ;;  %v16221_v0 = vpop.permute.xlu1 %8335  ;;  %v6018_v62 = vsel %vm1228_vm6, %v15913_v2, %v15938_v14  ;;  %v4781_v2 = vsel %vm1586_vm8, %v16045_v42, %v16035_v19  ;;  %v16379_v42 = vld [vmem:[%s17735_s1 + $0x60] sm:$0xff] }
 0x14e   : > { %4680 = vmatprep.mubr.f32.mxu0 %v14937_v4  ;;  %5923 = vmatprep.mubr.f32.mxu1 %v14937_v4  ;;  %v16225_v41 = vpop.permute.xlu0 %6752 }
 0x14f   : > { %11821 = vrot.lane.b32.xlu1 %v16125_v26, %s14936_s29  ;;  %10238 = vrot.lane.b32.xlu0 %v16071_v46, %s14936_s29 }
 0x150   : > { %13485 = vmatmul.mubr.msk.f32.vlgmr.msra.gmra.mrb[10].mxu0 %vm355_vm0, %v15313_v43  ;;  %13543 = vmatmul.mubr.msk.f32.gmra.mrb[10].mxu1 %vm355_vm0, %v16239_v12 }
 0x151   : > { %4686 = vmatprep.mubr.f32.mxu0 %v14937_v4  ;;  %14242 = vmatprep.mubr.msk.f32.mxu1 %vm355_vm0, %v16213_v35  ;;  %v16251_v22 = vpop.permute.xlu1 %8333 }
 0x152   : > { %13547 = vmatprep.subr.msk.mxu1 %vm362_vm1, %v6018_v62  ;;  %14205 = vmatprep.subr.msk.mxu0 %vm362_vm1, %v15966_v28  ;;  %v16249_v3 = vpop.permute.xlu0 %8337 }
 0x153   : > { %11819 = vrot.lane.b32.xlu1 %v16102_v61, %s14936_s29  ;;  %11823 = vrot.lane.b32.xlu0 %v16163_v1, %s14936_s29 }
 0x154   : > { %13486 = vmatmul.mubr.msk.f32.gmra.mrb[12].mxu0 %vm355_vm0, %v15336_v49  ;;  %14243 = vmatmul.mubr.msk.f32.vlgmr.msra.gmra.mrb[12].mxu1 %vm355_vm0, %v16239_v12 }
 0x155   : > { %13548 = vmatpush1.msk.msra.mxu1 %vm362_vm1, %v6017_v27  ;;  %14206 = vmatpush3.msk.msra.mxu0 %vm362_vm1, %v15966_v28 }
 0x156   : > { %14245 = vmatprep.subr.msk.mxu1 %vm362_vm1, %v15938_v14  ;;  %14207 = vmatprep.mubr.msk.f32.mxu0 %vm355_vm0, %v15313_v43  ;;  %v16274_v29 = vpop.permute.xlu1 %7080  ;;  %v16291_v43 = vld [vmem:[%s17735_s1 + $0x50] sm:$0xff] }
 0x157   : > { %6089 = vmatprep.mubr.f32.mxu1 %v14937_v4  ;;  %10414 = vrot.lane.b32.xlu1 %v16090_v59, %s14939_s10  ;;  %v16282_v34 = vpop.permute.xlu0 %7078 }
 0x158   : > { %10412 = vrot.lane.b32.xlu0 %v16094_v52, %s14939_s10  ;;  %14208 = vmatmul.mubr.msk.f32.vlgmr.msra.gmra.mrb[14].mxu0 %vm355_vm0, %v15336_v49 }
 0x159   : > { %13549 = vmatmul.mubr.msk.f32.vlgmr.msra.gmra.mrb[8].mxu1 %vm355_vm0, %v16291_v43  ;;  %13490 = vmatprep.subr.msk.mxu0 %vm362_vm1, %v4781_v2 }
 0x15a   : > { %14246 = vmatpush3.msk.msra.mxu1 %vm362_vm1, %v15938_v14  ;;  %13491 = vmatpush1.msk.msra.mxu0 %vm362_vm1, %v4780_v5  ;;  %v16299_v28 = vpop.permute.xlu1 %8659  ;;  %v6190_v14 = vsel %vm1407_vm7, %v15988_v32, %v16016_v7  ;;  %v16352_v32 = vld [vmem:[%s17735_s1 + $0x70] sm:$0xff]  ;;  %v6533_v5 = vsel %vm1765_vm9, %v16171_v17, %v16142_v33 }
 0x15b   : > { %4852 = vmatprep.mubr.f32.mxu0 %v14937_v4  ;;  %6095 = vmatprep.mubr.f32.mxu1 %v14937_v4  ;;  %v16303_v49 = vpop.permute.xlu0 %7076 }
 0x15c   : > { %11993 = vrot.lane.b32.xlu1 %v16125_v26, %s14939_s10  ;;  %10410 = vrot.lane.b32.xlu0 %v16071_v46, %s14939_s10 }
 0x15d   : > { %13492 = vmatmul.mubr.msk.f32.vlgmr.msra.gmra.mrb[10].mxu0 %vm355_vm0, %v15357_v54  ;;  %13550 = vmatmul.mubr.msk.f32.gmra.mrb[10].mxu1 %vm355_vm0, %v16317_v21 }
 0x15e   : > { %4858 = vmatprep.mubr.f32.mxu0 %v14937_v4  ;;  %14247 = vmatprep.mubr.msk.f32.mxu1 %vm355_vm0, %v16291_v43  ;;  %v16324_v37 = vpop.permute.xlu1 %8657 }
 0x15f   : > { %13554 = vmatprep.subr.msk.mxu1 %vm362_vm1, %v6190_v14  ;;  %14210 = vmatprep.subr.msk.mxu0 %vm362_vm1, %v16035_v19  ;;  %v16329_v54 = vpop.permute.xlu0 %8661  ;;  %v16518_v14 = vld [vmem:[%s17735_s1 + $0x18] sm:$0x3f] }
 0x160   : > { %11991 = vrot.lane.b32.xlu1 %v16102_v61, %s14939_s10  ;;  %11995 = vrot.lane.b32.xlu0 %v16163_v1, %s14939_s10 }
 0x161   : > { %13493 = vmatmul.mubr.msk.f32.gmra.mrb[12].mxu0 %vm355_vm0, %v15377_v57  ;;  %14248 = vmatmul.mubr.msk.f32.vlgmr.msra.gmra.mrb[12].mxu1 %vm355_vm0, %v16317_v21  ;;  %v4953_v57 = vsel %vm1765_vm9, %v16127_v6, %v16117_v63 }
 0x162   : > { %13555 = vmatpush1.msk.msra.mxu1 %vm362_vm1, %v6189_v15  ;;  %14211 = vmatpush3.msk.msra.mxu0 %vm362_vm1, %v16035_v19  ;;  %v16345_v36 = vpop.permute.xlu1 %7252  ;;  %v16372_v19 = vld [vmem:[%s17735_s1 + $0x78] sm:$0x3f] }
 0x163   : > { %14250 = vmatprep.subr.msk.mxu1 %vm362_vm1, %v16016_v7  ;;  %14212 = vmatprep.mubr.msk.f32.mxu0 %vm355_vm0, %v16352_v32  ;;  %v16359_v56 = vpop.permute.xlu0 %7250 }
 0x164   : > { %6261 = vmatprep.mubr.f32.mxu1 %v14937_v4  ;;  %10586 = vrot.lane.b32.xlu1 %v16090_v59, %s14935_s28 }
 0x165   : > { %10584 = vrot.lane.b32.xlu0 %v16094_v52, %s14935_s28  ;;  %14213 = vmatmul.mubr.msk.f32.vlgmr.msra.gmra.mrb[14].mxu0 %vm355_vm0, %v16372_v19 }
 0x166   : > { %13556 = vmatmul.mubr.msk.f32.vlgmr.msra.gmra.mrb[8].mxu1 %vm355_vm0, %v16379_v42  ;;  %13497 = vmatprep.subr.msk.mxu0 %vm362_vm1, %v4953_v57  ;;  %v16384_v24 = vpop.permute.xlu1 %8831 }
 0x167   : > { %14251 = vmatpush3.msk.msra.mxu1 %vm362_vm1, %v16016_v7  ;;  %13498 = vmatpush1.msk.msra.mxu0 %vm362_vm1, %v4952_v39  ;;  %v16389_v44 = vpop.permute.xlu0 %7248  ;;  %v16403_v7 = vld [vmem:[%s17735_s1 + $0x80] sm:$0xff] }
 0x168   : > { %5024 = vmatprep.mubr.f32.mxu0 %v14937_v4  ;;  %6267 = vmatprep.mubr.f32.mxu1 %v14937_v4 }
 0x169   : > { %12165 = vrot.lane.b32.xlu1 %v16125_v26, %s14935_s28  ;;  %10582 = vrot.lane.b32.xlu0 %v16071_v46, %s14935_s28 }
 0x16a   : > { %13499 = vmatmul.mubr.msk.f32.vlgmr.msra.gmra.mrb[10].mxu0 %vm355_vm0, %v16403_v7  ;;  %13557 = vmatmul.mubr.msk.f32.gmra.mrb[10].mxu1 %vm355_vm0, %v16410_v18  ;;  %v16414_v60 = vpop.permute.xlu1 %8829 }
 0x16b   : > { %5030 = vmatprep.mubr.f32.mxu0 %v14937_v4  ;;  %14252 = vmatprep.mubr.msk.f32.mxu1 %vm355_vm0, %v16379_v42  ;;  %v16419_v6 = vpop.permute.xlu0 %8833 }
 0x16c   : > { %13561 = vmatprep.subr.msk.mxu1 %vm362_vm1, %v6362_v58  ;;  %14215 = vmatprep.subr.msk.mxu0 %vm362_vm1, %v16117_v63 }
 0x16d   : > { %12163 = vrot.lane.b32.xlu1 %v16102_v61, %s14935_s28  ;;  %12167 = vrot.lane.b32.xlu0 %v16163_v1, %s14935_s28 }
 0x16e   : > { %13500 = vmatmul.mubr.msk.f32.gmra.mrb[12].mxu0 %vm355_vm0, %v16434_v9  ;;  %14253 = vmatmul.mubr.msk.f32.vlgmr.msra.gmra.mrb[12].mxu1 %vm355_vm0, %v16410_v18  ;;  %v16440_v10 = vpop.permute.xlu1 %7424 }
 0x16f   : > { %13562 = vmatpush1.msk.msra.mxu1 %vm362_vm1, %v6361_v20  ;;  %14216 = vmatpush3.msk.msra.mxu0 %vm362_vm1, %v16117_v63  ;;  %v16445_v25 = vpop.f32.mrb[4].mxu0  ;;  %v16447_v38 = vpop.permute.xlu0 %7422  ;;  %v6758_v63 = vsel %vm352_vm2, %v16225_v41, %v16204_v47  ;;  %v6534_v47 = vsel %vm1765_vm9, %v16142_v33, %v16177_v16 }
 0x170   : > { %14255 = vmatprep.subr.msk.mxu1 %vm362_vm1, %v16096_v48  ;;  %14217 = vmatprep.mubr.msk.f32.mxu0 %vm355_vm0, %v16403_v7  ;;  %v16456_v8 = vpop.f32.mrb[5].mxu0 }
 0x171   : > { %6433 = vmatprep.mubr.f32.mxu1 %v14937_v4  ;;  %10758 = vrot.lane.b32.xlu1 %v16090_v59, %s14938_s9 }
 0x172   : > { %10756 = vrot.lane.b32.xlu0 %v16094_v52, %s14938_s9  ;;  %14218 = vmatmul.mubr.msk.f32.vlgmr.msra.gmra.mrb[14].mxu0 %vm355_vm0, %v16434_v9 }
 0x173   : > { %13563 = vmatmul.mubr.msk.f32.vlgmr.msra.gmra.mrb[8].mxu1 %vm355_vm0, %v16352_v32  ;;  %13583 = vmatprep.subr.msk.mxu0 %vm362_vm1, %v6759_v53  ;;  %v16471_v62 = vpop.permute.xlu0 %7420  ;;  %v16473_v27 = vpop.permute.xlu1 %9003 }
 0x174   : > { %14256 = vmatpush3.msk.msra.mxu1 %vm362_vm1, %v16096_v48  ;;  %6439 = vmatprep.mubr.f32.mxu1 %v14937_v4  ;;  %v16492_v48 = vld [vmem:[%s17735_s1 + $0x10] sm:$0xff] }
 0x175   : > { %13584 = vmatpush1.msk.msra.mxu0 %vm362_vm1, %v6758_v63  ;;  %6830 = vmatprep.mubr.f32.mxu0 %v14937_v4 }
 0x176   : > { %12337 = vrot.lane.b32.xlu1 %v16125_v26, %s14938_s9  ;;  %10754 = vrot.lane.b32.xlu0 %v16071_v46, %s14938_s9 }
 0x177   : > { %13564 = vmatmul.mubr.msk.f32.gmra.mrb[10].mxu1 %vm355_vm0, %v16372_v19  ;;  %13585 = vmatmul.mubr.msk.f32.vlgmr.msra.gmra.mrb[16].mxu0 %vm355_vm0, %v16492_v48  ;;  %v16496_v41 = vpop.permute.xlu0 %9005  ;;  %v16498_v2 = vpop.permute.xlu1 %9001 }
 0x178   : > { %14257 = vmatprep.mubr.msk.f32.mxu1 %vm355_vm0, %v16352_v32  ;;  %6836 = vmatprep.mubr.f32.mxu0 %v14937_v4 }
 0x179   : > { %13568 = vmatprep.subr.msk.mxu1 %vm362_vm1, %v6534_v47  ;;  %14265 = vmatprep.subr.msk.mxu0 %vm362_vm1, %v16196_v11 }
 0x17a   : > { %12335 = vrot.lane.b32.xlu1 %v16102_v61, %s14938_s9  ;;  %12339 = vrot.lane.b32.xlu0 %v16163_v1, %s14938_s9  ;;  %s14830_s9 = smul.u32 384, %s17745_s18 }
 0x17b   : > { %14258 = vmatmul.mubr.msk.f32.vlgmr.msra.gmra.mrb[12].mxu1 %vm355_vm0, %v16372_v19  ;;  %13586 = vmatmul.mubr.msk.f32.gmra.mrb[18].mxu0 %vm355_vm0, %v16518_v14  ;;  %v16522_v15 = vpop.permute.xlu1 %7596 }
 0x17c   : > { %13569 = vmatpush1.msk.msra.mxu1 %vm362_vm1, %v6533_v5  ;;  %6605 = vmatprep.mubr.f32.mxu1 %v14937_v4  ;;  %v16526_v57 = vpop.permute.xlu0 %7594  ;;  %s16603_s7 = scalar_lea.vmem %s17737_s3, %s14830_s9  ;;  %v7255_v5 = vsel %vm870_vm4, %v16359_v56, %v16345_v36 }
 0x17d   : > { %14260 = vmatprep.subr.msk.mxu1 %vm362_vm1, %v16177_v16  ;;  %14266 = vmatpush3.msk.msra.mxu0 %vm362_vm1, %v16196_v11  ;;  %v8339_v11 = vsel %vm352_vm2, %v16251_v22, %v16221_v0 }
 0x17e   : > { %14267 = vmatprep.mubr.msk.f32.mxu0 %vm355_vm0, %v16492_v48  ;;  %10930 = vrot.lane.b32.xlu1 %v16090_v59, %s14941_s12 }
 0x17f   : > { %10928 = vrot.lane.b32.xlu0 %v16094_v52, %s14941_s12  ;;  %13570 = vmatmul.mubr.msk.f32.vlgmr.msra.gmra.mrb[8].mxu1 %vm355_vm0, %v16403_v7 }
 0x180   : > { %14261 = vmatpush3.msk.msra.mxu1 %vm362_vm1, %v16177_v16  ;;  %14268 = vmatmul.mubr.msk.f32.vlgmr.msra.gmra.mrb[20].mxu0 %vm355_vm0, %v16518_v14  ;;  %v16544_v33 = vpop.permute.xlu0 %7592  ;;  %v16546_v17 = vpop.permute.xlu1 %9175  ;;  %v8340_v16 = vsel %vm352_vm2, %v16221_v0, %v16249_v3  ;;  %v7083_v0 = vsel %vm691_vm3, %v16282_v34, %v16274_v29 }
 0x181   : > { %13590 = vmatprep.subr.msk.mxu0 %vm362_vm1, %v15553_v40  ;;  %6611 = vmatprep.mubr.f32.mxu1 %v14937_v4 }
 0x182   : > { %13591 = vmatpush1.msk.msra.mxu0 %vm362_vm1, %v15539_v50  ;;  %6988 = vmatprep.mubr.f32.mxu0 %v14937_v4 }
 0x183   : > { %12509 = vrot.lane.b32.xlu1 %v16125_v26, %s14941_s12  ;;  %10926 = vrot.lane.b32.xlu0 %v16071_v46, %s14941_s12 }
 0x184   : > { %13571 = vmatmul.mubr.msk.f32.gmra.mrb[10].mxu1 %vm355_vm0, %v16434_v9  ;;  %13592 = vmatmul.mubr.msk.f32.vlgmr.msra.gmra.mrb[16].mxu0 %vm355_vm0, %v15958_v13  ;;  %v16565_v40 = vpop.permute.xlu0 %9177  ;;  %v16567_v50 = vpop.permute.xlu1 %9173 }
 0x185   : > { %14262 = vmatprep.mubr.msk.f32.mxu1 %vm355_vm0, %v16403_v7  ;;  %6994 = vmatprep.mubr.f32.mxu0 %v14937_v4 }
 0x186   : > { %14270 = vmatprep.subr.msk.mxu0 %vm362_vm1, %v15549_v51  ;;  %13654 = vmatprep.subr.msk.mxu1 %vm362_vm1, %v8340_v16 }
 0x187   : > { %12507 = vrot.lane.b32.xlu1 %v16102_v61, %s14941_s12  ;;  %12511 = vrot.lane.b32.xlu0 %v16163_v1, %s14941_s12 }
 0x188   : > { %14263 = vmatmul.mubr.msk.f32.vlgmr.msra.gmra.mrb[12].mxu1 %vm355_vm0, %v16434_v9  ;;  %13593 = vmatmul.mubr.msk.f32.gmra.mrb[18].mxu0 %vm355_vm0, %v15979_v30  ;;  %v16587_v39 = vpop.permute.xlu0 %7766  ;;  %v16589_v58 = vpop.permute.xlu1 %7768 }
 0x189   : > { %14271 = vmatpush3.msk.msra.mxu0 %vm362_vm1, %v15549_v51  ;;  %14272 = vmatprep.mubr.msk.f32.mxu0 %vm355_vm0, %v15958_v13  ;;  %v7082_v51 = vsel %vm691_vm3, %v16303_v49, %v16282_v34 }
 0x18a   : > { %13655 = vmatpush1.msk.msra.mxu1 %vm362_vm1, %v8339_v11  ;;  %8411 = vmatprep.mubr.f32.mxu1 %v14937_v4  ;;  %v1947_v11 = vlaneseq }
 0x18b   : > { %11102 = vrot.lane.b32.xlu1 %v16090_v59, %s14943_s14  ;;  %11100 = vrot.lane.b32.xlu0 %v16094_v52, %s14943_s14  ;;  %v14129_v22 = vpop.f32.mrb[0].mxu1 }
 0x18c   : > { %14273 = vmatmul.mubr.msk.f32.vlgmr.msra.gmra.mrb[20].mxu0 %vm355_vm0, %v15979_v30  ;;  %13656 = vmatmul.mubr.msk.f32.vlgmr.msra.gmra.mrb[14].mxu1 %vm355_vm0, %v16492_v48  ;;  %v16617_v20 = vadd.f32 %v14129_v22, %v16445_v25  ;;  %v1923_v53 = vpop.f32.mrb[1].mxu1 }
 0x18d   : > { %14310 = vmatprep.subr.msk.mxu1 %vm362_vm1, %v16249_v3  ;;  %13597 = vmatprep.subr.msk.mxu0 %vm362_vm1, %v7083_v0  ;;  %v16623_v34 = vadd.f32 %v1923_v53, %v16456_v8  ;;  %v16625_v49 = vpop.permute.xlu0 %7764  ;;  %v16627_v63 = vpop.permute.xlu1 %9347  ;;  %v16666_v8 = vld [vmem:[%s17735_s1 + $0x28] sm:$0x3f] }
 0x18e   : > { %14311 = vmatpush3.msk.msra.mxu1 %vm362_vm1, %v16249_v3  ;;  %13598 = vmatpush1.msk.msra.mxu0 %vm362_vm1, %v7082_v51  ;;  %1945 = vst.msk [vmem:[%s16603_s7 + $0x28] sm:$0x3f] %vm1944_vm10, %v16617_v20 }
 0x18f   : > { %7154 = vmatprep.mubr.f32.mxu0 %v14937_v4  ;;  %8417 = vmatprep.mubr.f32.mxu1 %v14937_v4  ;;  %1941 = vst.msk [vmem:[%s16603_s7 + $0x10] sm:$0xff] %vm1940_vm11, %v16623_v34 }
 0x190   : > { %12681 = vrot.lane.b32.xlu1 %v16125_v26, %s14943_s14  ;;  %11098 = vrot.lane.b32.xlu0 %v16071_v46, %s14943_s14 }
 0x191   : > { %13599 = vmatmul.mubr.msk.f32.vlgmr.msra.gmra.mrb[16].mxu0 %vm355_vm0, %v16040_v31  ;;  %13657 = vmatmul.mubr.msk.f32.gmra.mrb[16].mxu1 %vm355_vm0, %v16518_v14  ;;  %v16648_v3 = vpop.permute.xlu0 %9349  ;;  %v16653_v25 = vpop.permute.xlu1 %9345 }
 0x192   : > { %7160 = vmatprep.mubr.f32.mxu0 %v14937_v4  ;;  %14312 = vmatprep.mubr.msk.f32.mxu1 %vm355_vm0, %v16492_v48 }
 0x193   : > { %14275 = vmatprep.subr.msk.mxu0 %vm362_vm1, %v16274_v29  ;;  %13661 = vmatprep.subr.msk.mxu1 %vm362_vm1, %v15574_v55  ;;  %v14890_v55 = vld [vmem:[%s15005_s27 + $0x3c] sm:$0xff] }
 0x194   : > { %12679 = vrot.lane.b32.xlu1 %v16102_v61, %s14943_s14  ;;  %12683 = vrot.lane.b32.xlu0 %v16163_v1, %s14943_s14 }
 0x195   : > { %13600 = vmatmul.mubr.msk.f32.gmra.mrb[18].mxu0 %vm355_vm0, %v16666_v8  ;;  %14313 = vmatmul.mubr.msk.f32.vlgmr.msra.gmra.mrb[18].mxu1 %vm355_vm0, %v16518_v14  ;;  %v16672_v47 = vpop.permute.xlu0 %7938  ;;  %v16691_v16 = vpop.permute.xlu1 %7940 }
 0x196   : > { %14276 = vmatpush3.msk.msra.mxu0 %vm362_vm1, %v16274_v29  ;;  %14277 = vmatprep.mubr.msk.f32.mxu0 %vm355_vm0, %v16040_v31  ;;  %v7254_v29 = vsel %vm870_vm4, %v16389_v44, %v16359_v56  ;;  %v1948_v56 = vshrl.u32 %v1947_v11, 7  ;;  %v14891_v44 = vld [vmem:[%s15005_s27 + $0x44] sm:$0xf] }
 0x197   : > { %13662 = vmatpush1.msk.msra.mxu1 %vm362_vm1, %v14890_v55  ;;  %8569 = vmatprep.mubr.f32.mxu1 %v14937_v4 }
 0x198   : > { %11274 = vrot.lane.b32.xlu1 %v16090_v59, %s14942_s13  ;;  %11272 = vrot.lane.b32.xlu0 %v16094_v52, %s14942_s13  ;;  %v1957_v22 = vsub.s32 2, %v1948_v56 }
 0x199   : > { %14278 = vmatmul.mubr.msk.f32.vlgmr.msra.gmra.mrb[20].mxu0 %vm355_vm0, %v16666_v8  ;;  %13663 = vmatmul.mubr.msk.f32.vlgmr.msra.gmra.mrb[14].mxu1 %vm355_vm0, %v15958_v13  ;;  %v16701_v59 = vpop.permute.xlu0 %7936  ;;  %v16714_v0 = vpop.permute.xlu1 %9519 }
 0x19a   : > { %13604 = vmatprep.subr.msk.mxu0 %vm362_vm1, %v7255_v5  ;;  %7326 = vmatprep.mubr.f32.mxu0 %v14937_v4 }
 0x19b   : > { %13605 = vmatpush1.msk.msra.mxu0 %vm362_vm1, %v7254_v29  ;;  %8575 = vmatprep.mubr.f32.mxu1 %v14937_v4  ;;  %v7599_v29 = vsel %vm1228_vm6, %v16526_v57, %v16522_v15 }
 0x19c   : > { %12853 = vrot.lane.b32.xlu1 %v16125_v26, %s14942_s13  ;;  %11270 = vrot.lane.b32.xlu0 %v16071_v46, %s14942_s13  ;;  %v8664_v46 = vsel %vm691_vm3, %v16299_v28, %v16329_v54 }
 0x19d   : > { %13606 = vmatmul.mubr.msk.f32.vlgmr.msra.gmra.mrb[16].mxu0 %vm355_vm0, %v16132_v45  ;;  %13664 = vmatmul.mubr.msk.f32.gmra.mrb[16].mxu1 %vm355_vm0, %v15979_v30  ;;  %v16730_v51 = vpop.permute.xlu0 %9521 }
 0x19e   : > { %14315 = vmatprep.subr.msk.mxu1 %vm362_vm1, %v14891_v44  ;;  %7332 = vmatprep.mubr.f32.mxu0 %v14937_v4 }
 0x19f   : > { %14316 = vmatpush3.msk.msra.mxu1 %vm362_vm1, %v14891_v44  ;;  %14317 = vmatprep.mubr.msk.f32.mxu1 %vm355_vm0, %v15958_v13  ;;  %v8663_v13 = vsel %vm691_vm3, %v16324_v37, %v16299_v28  ;;  %v1949_v28 = vsub.s32 0, %v1948_v56  ;;  %v16754_v37 = vpop.permute.xlu1 %9517 }
 0x1a0   : > { %12851 = vrot.lane.b32.xlu1 %v16102_v61, %s14942_s13  ;;  %12855 = vrot.lane.b32.xlu0 %v16163_v1, %s14942_s13  ;;  %v340_v61 = vld [vmem:[%s17736_s2] sm:$0x7]  ;;  %v7426_v1 = vsel %vm1049_vm5, %v16471_v62, %v16447_v38 }
 0x1a1   : > { %13607 = vmatmul.mubr.msk.f32.gmra.mrb[18].mxu0 %vm355_vm0, %v16158_v23  ;;  %14318 = vmatmul.mubr.msk.f32.vlgmr.msra.gmra.mrb[18].mxu1 %vm355_vm0, %v15979_v30  ;;  %v7427_v30 = vsel %vm1049_vm5, %v16447_v38, %v16440_v10  ;;  %v16759_v53 = vrot.slane %v340_v61, %v1957_v22  ;;  %v8836_v38 = vsel %vm870_vm4, %v16384_v24, %v16419_v6 }
 0x1a2   : > { %13668 = vmatprep.subr.msk.mxu1 %vm362_vm1, %v8664_v46  ;;  %14280 = vmatprep.subr.msk.mxu0 %vm362_vm1, %v16345_v36  ;;  %v16774_v55 = vrot.slane %v340_v61, %v1949_v28 }
 0x1a3   : > { %13669 = vmatpush1.msk.msra.mxu1 %vm362_vm1, %v8663_v13  ;;  %14281 = vmatpush3.msk.msra.mxu0 %vm362_vm1, %v16345_v36  ;;  %v1953_v36 = vsub.s32 1, %v1948_v56  ;;  %v16770_v62 = vpop.permute.xlu0 %8110  ;;  %v16789_v11 = vpop.permute.xlu1 %8112  ;;  %v8835_v13 = vsel %vm870_vm4, %v16414_v60, %v16384_v24  ;;  %v7598_v24 = vsel %vm1228_vm6, %v16544_v33, %v16526_v57 }
 0x1a4   : > { %14320 = vmatprep.subr.msk.mxu1 %vm362_vm1, %v16329_v54  ;;  %14282 = vmatprep.mubr.msk.f32.mxu0 %vm355_vm0, %v16132_v45 }
 0x1a5   : > { %8735 = vmatprep.mubr.f32.mxu1 %v14937_v4  ;;  %14283 = vmatmul.mubr.msk.f32.vlgmr.msra.gmra.mrb[20].mxu0 %vm355_vm0, %v16158_v23  ;;  %v16779_v5 = vrot.slane %v340_v61, %v1953_v36  ;;  %v1967_v61 = vmul.f32 %v16617_v20, %v16759_v53 }
 0x1a6   : > { %13670 = vmatmul.mubr.msk.f32.vlgmr.msra.gmra.mrb[14].mxu1 %vm355_vm0, %v16040_v31  ;;  %13611 = vmatprep.subr.msk.mxu0 %vm362_vm1, %v7427_v30 }
 0x1a7   : > { %14321 = vmatpush3.msk.msra.mxu1 %vm362_vm1, %v16329_v54  ;;  %13612 = vmatpush1.msk.msra.mxu0 %vm362_vm1, %v7426_v1  ;;  %v1964_v54 = vmul.f32 %v16623_v34, %v16759_v53  ;;  %v16807_v22 = vpop.permute.xlu0 %8108  ;;  %v16826_v36 = vpop.permute.xlu1 %9691 }
 0x1a8   : > { %7498 = vmatprep.mubr.f32.mxu0 %v14937_v4  ;;  %8741 = vmatprep.mubr.f32.mxu1 %v14937_v4 }
 0x1a9   : > { %13613 = vmatmul.mubr.msk.f32.vlgmr.msra.gmra.mrb[16].mxu0 %vm355_vm0, %v16213_v35  ;;  %13675 = vmatprep.subr.msk.mxu1 %vm362_vm1, %v8836_v38  ;;  %v1969_v33 = vsel %vm1940_vm11, %v1964_v54, 0.0 }
 0x1aa   : > { %13671 = vmatmul.mubr.msk.f32.gmra.mrb[16].mxu1 %vm355_vm0, %v16666_v8  ;;  %7504 = vmatprep.mubr.f32.mxu0 %v14937_v4 }
 0x1ab   : > { %14322 = vmatprep.mubr.msk.f32.mxu1 %vm355_vm0, %v16040_v31  ;;  %14285 = vmatprep.subr.msk.mxu0 %vm362_vm1, %v16440_v10  ;;  %v1846_v56 = vpop.f32.mrb[0].mxu0 }
 0x1ac   : > { %14286 = vmatpush3.msk.msra.mxu0 %vm362_vm1, %v16440_v10  ;;  %1938 = vst [vmem:[%s16603_s7] sm:$0xff] %v1846_v56  ;;  %v1962_v44 = vmul.f32 %v16774_v55, %v1846_v56  ;;  %v1848_v46 = vpop.f32.mrb[1].mxu0  ;;  %v1985_v10 = vmul.f32 %v16623_v34, %v1964_v54 }
 0x1ad   : > { %13614 = vmatmul.mubr.msk.f32.gmra.mrb[18].mxu0 %vm355_vm0, %v16239_v12  ;;  %13618 = vmatprep.subr.msk.mxu0 %vm362_vm1, %v7599_v29  ;;  %1939 = vst [vmem:[%s16603_s7 + $0x8] sm:$0xff] %v1848_v46  ;;  %v1963_v31 = vmul.f32 %v16779_v5, %v1848_v46  ;;  %v9008_v29 = vsel %vm1049_vm5, %v16473_v27, %v16496_v41 }
 0x1ae   : > { %14323 = vmatmul.mubr.msk.f32.vlgmr.msra.gmra.mrb[18].mxu1 %vm355_vm0, %v16666_v8  ;;  %14287 = vmatprep.mubr.msk.f32.mxu0 %vm355_vm0, %v16213_v35  ;;  %v1983_v60 = vmul.f32 %v1962_v44, %v1846_v56 }
 0x1af   : > { %13676 = vmatpush1.msk.msra.mxu1 %vm362_vm1, %v8835_v13  ;;  %8907 = vmatprep.mubr.f32.mxu1 %v14937_v4  ;;  %v1968_v34 = vadd.f32 %v1963_v31, %v1962_v44  ;;  %v1984_v30 = vmul.f32 %v1963_v31, %v1848_v46  ;;  %v1852_v1 = vpop.f32.mrb[2].mxu0  ;;  %v1990_v13 = vsel %vm1940_vm11, %v1985_v10, 0.0  ;;  %v1988_v31 = vmul.f32 %v16617_v20, %v1967_v61 }
 0x1b0   : > { %14325 = vmatprep.subr.msk.mxu1 %vm362_vm1, %v16419_v6  ;;  %1942 = vst [vmem:[%s16603_s7 + $0x18] sm:$0x3f] %v1852_v1  ;;  %v1965_v28 = vmul.f32 %v16774_v55, %v1852_v1  ;;  %v1854_v57 = vpop.f32.mrb[3].mxu0  ;;  %v7771_v20 = vsel %vm1407_vm7, %v16587_v39, %v16589_v58 }
 0x1b1   : > { %14288 = vmatmul.mubr.msk.f32.vlgmr.msra.gmra.mrb[20].mxu0 %vm355_vm0, %v16239_v12  ;;  %v1989_v38 = vadd.f32 %v1984_v30, %v1983_v60  ;;  %1943 = vst [vmem:[%s16603_s7 + $0x20] sm:$0x3f] %v1854_v57  ;;  %v1966_v56 = vmul.f32 %v16779_v5, %v1854_v57  ;;  %v1970_v44 = vadd.f32 %v1969_v33, %v1968_v34  ;;  %v16845_v33 = vpop.permute.xlu0 %9693 }
 0x1b2   : > { %13677 = vmatmul.mubr.msk.f32.vlgmr.msra.gmra.mrb[14].mxu1 %vm355_vm0, %v16132_v45  ;;  %13619 = vmatpush1.msk.msra.mxu0 %vm362_vm1, %v7598_v24  ;;  %v1974_v54 = vsel %vm1973_vm12, %v1965_v28, 0.0  ;;  %v1986_v46 = vmul.f32 %v1965_v28, %v1852_v1  ;;  %v1977_v1 = vsel %vm1944_vm10, %v1967_v61, 0.0 }
 0x1b3   : > { %14326 = vmatpush3.msk.msra.mxu1 %vm362_vm1, %v16419_v6  ;;  %7670 = vmatprep.mubr.f32.mxu0 %v14937_v4  ;;  %v1975_v60 = vsel %vm1973_vm12, %v1966_v56, 0.0  ;;  %v1987_v34 = vmul.f32 %v1966_v56, %v1854_v57  ;;  %v1991_v30 = vadd.f32 %v1990_v13, %v1989_v38  ;;  %v16862_v38 = vpop.permute.xlu1 %9689 }
 0x1b4   : > { %8913 = vmatprep.mubr.f32.mxu1 %v14937_v4  ;;  %13682 = vmatprep.subr.msk.mxu1 %vm362_vm1, %v9008_v29  ;;  %v1994_v24 = vsel %vm1973_vm12, %v1986_v46, 0.0  ;;  %v1976_v10 = vadd.f32 %v1975_v60, %v1974_v54  ;;  %v1997_v29 = vsel %vm1944_vm10, %v1988_v31, 0.0  ;;  %v9007_v54 = vsel %vm1049_vm5, %v16498_v2, %v16473_v27 }
 0x1b5   : > { %13620 = vmatmul.mubr.msk.f32.vlgmr.msra.gmra.mrb[16].mxu0 %vm355_vm0, %v16291_v43  ;;  %14290 = vmatprep.subr.msk.mxu0 %vm362_vm1, %v16522_v15  ;;  %v1995_v6 = vsel %vm1973_vm12, %v1987_v34, 0.0  ;;  %v16872_v56 = vpop.permute.xlu0 %9916  ;;  %v9523_v34 = vsel %vm1586_vm8, %v16754_v37, %v16714_v0  ;;  %v9696_v37 = vsel %vm1765_vm9, %v16826_v36, %v16845_v33 }
 0x1b6   : > { %13678 = vmatmul.mubr.msk.f32.gmra.mrb[16].mxu1 %vm355_vm0, %v16158_v23  ;;  %7676 = vmatprep.mubr.f32.mxu0 %v14937_v4  ;;  %v1978_v28 = vadd.f32 %v1977_v1, %v1976_v10  ;;  %v1996_v57 = vadd.f32 %v1995_v6, %v1994_v24 }
 0x1b7   : > { %14327 = vmatprep.mubr.msk.f32.mxu1 %vm355_vm0, %v16132_v45  ;;  %14291 = vmatpush3.msk.msra.mxu0 %vm362_vm1, %v16522_v15  ;;  %v7770_v45 = vsel %vm1407_vm7, %v16625_v49, %v16587_v39  ;;  %v16888_v15 = vpop.permute.xlu1 %9918  ;;  %v9179_v39 = vsel %vm1228_vm6, %v16567_v50, %v16546_v17  ;;  %v7943_v49 = vsel %vm1586_vm8, %v16672_v47, %v16691_v16 }
 0x1b8   : > { %13625 = vmatprep.subr.msk.mxu0 %vm362_vm1, %v7771_v20  ;;  %v1998_v61 = vadd.f32 %v1997_v29, %v1996_v57  ;;  %v9352_v50 = vsel %vm1407_vm7, %v16627_v63, %v16648_v3 }
 0x1b9   : > { %13621 = vmatmul.mubr.msk.f32.gmra.mrb[18].mxu0 %vm355_vm0, %v16317_v21  ;;  %v16900_v27 = vpop.permute.xlu0 %9914 }
 0x1ba   : > { %14328 = vmatmul.mubr.msk.f32.vlgmr.msra.gmra.mrb[18].mxu1 %vm355_vm0, %v16158_v23  ;;  %14292 = vmatprep.mubr.msk.f32.mxu0 %vm355_vm0, %v16291_v43  ;;  %v9180_v23 = vsel %vm1228_vm6, %v16546_v17, %v16565_v40 }
 0x1bb   : > { %13683 = vmatpush1.msk.msra.mxu1 %vm362_vm1, %v9007_v54  ;;  %9079 = vmatprep.mubr.f32.mxu1 %v14937_v4  ;;  %v16904_v2 = vpop.permute.xlu1 %11497 }
 0x1bc   : > { %14330 = vmatprep.subr.msk.mxu1 %vm362_vm1, %v16496_v41 }
 0x1bd   : > { %14293 = vmatmul.mubr.msk.f32.vlgmr.msra.gmra.mrb[20].mxu0 %vm355_vm0, %v16317_v21 }
 0x1be   : > { %13684 = vmatmul.mubr.msk.f32.vlgmr.msra.gmra.mrb[14].mxu1 %vm355_vm0, %v16213_v35  ;;  %13626 = vmatpush1.msk.msra.mxu0 %vm362_vm1, %v7770_v45 }
 0x1bf   : > { %14331 = vmatpush3.msk.msra.mxu1 %vm362_vm1, %v16496_v41  ;;  %1971 = vadd.xlane.f32.xlu0 %v1970_v44  ;;  %v16914_v41 = vpop.permute.xlu0 %11499 }
 0x1c0   : > { %7842 = vmatprep.mubr.f32.mxu0 %v14937_v4  ;;  %9085 = vmatprep.mubr.f32.mxu1 %v14937_v4 }
 0x1c1   : > { %13627 = vmatmul.mubr.msk.f32.vlgmr.msra.gmra.mrb[16].mxu0 %vm355_vm0, %v16379_v42  ;;  %13689 = vmatprep.subr.msk.mxu1 %vm362_vm1, %v9180_v23 }
 0x1c2   : > { %13685 = vmatmul.mubr.msk.f32.gmra.mrb[16].mxu1 %vm355_vm0, %v16239_v12  ;;  %7848 = vmatprep.mubr.f32.mxu0 %v14937_v4 }
 0x1c3   : > { %1992 = vadd.xlane.f32.xlu0 %v1991_v30  ;;  %14332 = vmatprep.mubr.msk.f32.mxu1 %vm355_vm0, %v16213_v35  ;;  %v16927_v35 = vpop.permute.xlu1 %11495  ;;  %v16943_v17 = vpop.permute.xlu0 %10240  ;;  %v9920_v30 = vsel %vm352_vm2, %v16900_v27, %v16872_v56 }
 0x1c4   : > { %1979 = vadd.xlane.f32.xlu1 %v1978_v28  ;;  %14295 = vmatprep.subr.msk.mxu0 %vm362_vm1, %v16589_v58 }
 0x1c5   : > { %13628 = vmatmul.mubr.msk.f32.gmra.mrb[18].mxu0 %vm355_vm0, %v16410_v18 }
 0x1c6   : > { %14333 = vmatmul.mubr.msk.f32.vlgmr.msra.gmra.mrb[18].mxu1 %vm355_vm0, %v16239_v12  ;;  %14296 = vmatpush3.msk.msra.mxu0 %vm362_vm1, %v16589_v58  ;;  %v7942_v12 = vsel %vm1586_vm8, %v16701_v59, %v16672_v47 }
 0x1c7   : > { %13690 = vmatpush1.msk.msra.mxu1 %vm362_vm1, %v9179_v39  ;;  %1999 = vadd.xlane.f32.xlu0 %v1998_v61  ;;  %v16951_v58 = vpop.permute.xlu1 %10242  ;;  %v16971_v44 = vpop.permute.xlu0 %10238 }
 0x1c8   : > { %14335 = vmatprep.subr.msk.mxu1 %vm362_vm1, %v16565_v40  ;;  %14297 = vmatprep.mubr.msk.f32.mxu0 %vm355_vm0, %v16379_v42 }
 0x1c9   : > { %9251 = vmatprep.mubr.f32.mxu1 %v14937_v4  ;;  %14298 = vmatmul.mubr.msk.f32.vlgmr.msra.gmra.mrb[20].mxu0 %vm355_vm0, %v16410_v18 }
 0x1ca   : > { %13691 = vmatmul.mubr.msk.f32.vlgmr.msra.gmra.mrb[14].mxu1 %vm355_vm0, %v16291_v43  ;;  %13632 = vmatprep.subr.msk.mxu0 %vm362_vm1, %v7943_v49 }
 0x1cb   : > { %14336 = vmatpush3.msk.msra.mxu1 %vm362_vm1, %v16565_v40  ;;  %13633 = vmatpush1.msk.msra.mxu0 %vm362_vm1, %v7942_v12  ;;  %v8115_v40 = vsel %vm1765_vm9, %v16770_v62, %v16789_v11  ;;  %v16975_v13 = vpop.permute.xlu1 %11821 }
 0x1cc   : > { %8014 = vmatprep.mubr.f32.mxu0 %v14937_v4  ;;  %9257 = vmatprep.mubr.f32.mxu1 %v14937_v4  ;;  %v2585_v47 = vpop.f32.mrb[6].mxu0 }
 0x1cd   : > { %13634 = vmatmul.mubr.msk.f32.vlgmr.msra.gmra.mrb[16].mxu0 %vm355_vm0, %v16352_v32  ;;  %13696 = vmatprep.subr.msk.mxu1 %vm362_vm1, %v9352_v50  ;;  %v2587_v59 = vpop.f32.mrb[7].mxu0 }
 0x1ce   : > { %13692 = vmatmul.mubr.msk.f32.gmra.mrb[16].mxu1 %vm355_vm0, %v16317_v21  ;;  %8020 = vmatprep.mubr.f32.mxu0 %v14937_v4 }
 0x1cf   : > { %14337 = vmatprep.mubr.msk.f32.mxu1 %vm355_vm0, %v16291_v43  ;;  %14300 = vmatprep.subr.msk.mxu0 %vm362_vm1, %v16691_v16  ;;  %v9351_v43 = vsel %vm1407_vm7, %v16653_v25, %v16627_v63  ;;  %v16999_v63 = vpop.permute.xlu0 %11823  ;;  %v17004_v25 = vpop.permute.xlu1 %11819 }
 0x1d0   : > { %14301 = vmatpush3.msk.msra.mxu0 %vm362_vm1, %v16691_v16  ;;  %v2591_v46 = vpop.f32.mrb[8].mxu0  ;;  %v8114_v16 = vsel %vm1765_vm9, %v16807_v22, %v16770_v62  ;;  %v9921_v62 = vsel %vm352_vm2, %v16872_v56, %v16888_v15 }
 0x1d1   : > { %13635 = vmatmul.mubr.msk.f32.gmra.mrb[18].mxu0 %vm355_vm0, %v16372_v19  ;;  %13639 = vmatprep.subr.msk.mxu0 %vm362_vm1, %v8115_v40  ;;  %v2593_v31 = vpop.f32.mrb[9].mxu0 }
 0x1d2   : > { %14338 = vmatmul.mubr.msk.f32.vlgmr.msra.gmra.mrb[18].mxu1 %vm355_vm0, %v16317_v21  ;;  %14302 = vmatprep.mubr.msk.f32.mxu0 %vm355_vm0, %v16352_v32  ;;  %v9524_v21 = vsel %vm1586_vm8, %v16714_v0, %v16730_v51 }
 0x1d3   : > { %13697 = vmatpush1.msk.msra.mxu1 %vm362_vm1, %v9351_v43  ;;  %9423 = vmatprep.mubr.f32.mxu1 %v14937_v4  ;;  %v17028_v22 = vpop.permute.xlu1 %10414 }
 0x1d4   : > { %14340 = vmatprep.subr.msk.mxu1 %vm362_vm1, %v16648_v3 }
 0x1d5   : > { %14303 = vmatmul.mubr.msk.f32.vlgmr.msra.gmra.mrb[20].mxu0 %vm355_vm0, %v16372_v19 }
 0x1d6   : > { %13698 = vmatmul.mubr.msk.f32.vlgmr.msra.gmra.mrb[14].mxu1 %vm355_vm0, %v16379_v42  ;;  %13640 = vmatpush1.msk.msra.mxu0 %vm362_vm1, %v8114_v16 }
 0x1d7   : > { %14341 = vmatpush3.msk.msra.mxu1 %vm362_vm1, %v16648_v3  ;;  %8186 = vmatprep.mubr.f32.mxu0 %v14937_v4  ;;  %v17025_v3 = vpop.permute.xlu0 %10412  ;;  %v17060_v1 = vpop.permute.xlu1 %11993 }
 0x1d8   : > { %9429 = vmatprep.mubr.f32.mxu1 %v14937_v4  ;;  %13703 = vmatprep.subr.msk.mxu1 %vm362_vm1, %v9524_v21 }
 0x1d9   : > { %13641 = vmatmul.mubr.msk.f32.vlgmr.msra.gmra.mrb[16].mxu0 %vm355_vm0, %v16403_v7  ;;  %14305 = vmatprep.subr.msk.mxu0 %vm362_vm1, %v16789_v11 }
 0x1da   : > { %13699 = vmatmul.mubr.msk.f32.gmra.mrb[16].mxu1 %vm355_vm0, %v16410_v18  ;;  %8192 = vmatprep.mubr.f32.mxu0 %v14937_v4 }
 0x1db   : > { %14342 = vmatprep.mubr.msk.f32.mxu1 %vm355_vm0, %v16379_v42  ;;  %14306 = vmatpush3.msk.msra.mxu0 %vm362_vm1, %v16789_v11  ;;  %v17055_v10 = vpop.permute.xlu0 %10410 }
 0x1dc   : > { %13725 = vmatprep.subr.msk.mxu0 %vm362_vm1, %v9921_v62 }
 0x1dd   : > { %13642 = vmatmul.mubr.msk.f32.gmra.mrb[18].mxu0 %vm355_vm0, %v16434_v9  ;;  %v3445_v60 = vpop.f32.mrb[4].mxu1 }
 0x1de   : > { %14343 = vmatmul.mubr.msk.f32.vlgmr.msra.gmra.mrb[18].mxu1 %vm355_vm0, %v16410_v18  ;;  %14307 = vmatprep.mubr.msk.f32.mxu0 %vm355_vm0, %v16403_v7  ;;  %v14447_v42 = vadd.f32 %v3445_v60, %v2585_v47  ;;  %v3447_v11 = vpop.f32.mrb[5].mxu1 }
 0x1df   : > { %13704 = vmatpush1.msk.msra.mxu1 %vm362_vm1, %v9523_v34  ;;  %9595 = vmatprep.mubr.f32.mxu1 %v14937_v4  ;;  %v14448_v24 = vadd.f32 %v3447_v11, %v2587_v59  ;;  %v17092_v59 = vpop.permute.xlu0 %11995 }
 0x1e0   : > { %14345 = vmatprep.subr.msk.mxu1 %vm362_vm1, %v16730_v51  ;;  %13433 = vst [vmem:[%s16603_s7 + $0x30] sm:$0xff] %v14447_v42  ;;  %v3544_v18 = vmul.f32 %v14447_v42, %v16774_v55 }
 0x1e1   : > { %14308 = vmatmul.mubr.msk.f32.vlgmr.msra.gmra.mrb[20].mxu0 %vm355_vm0, %v16434_v9  ;;  %13434 = vst [vmem:[%s16603_s7 + $0x38] sm:$0xff] %v14448_v24  ;;  %v3545_v0 = vmul.f32 %v14448_v24, %v16779_v5 }
 0x1e2   : > { %13705 = vmatmul.mubr.msk.f32.vlgmr.msra.gmra.mrb[14].mxu1 %vm355_vm0, %v16352_v32  ;;  %13726 = vmatpush1.msk.msra.mxu0 %vm362_vm1, %v9920_v30  ;;  %v3564_v6 = vmul.f32 %v14447_v42, %v3544_v18  ;;  %v3451_v20 = vpop.f32.mrb[6].mxu1  ;;  %v14892_v30 = vld [vmem:[%s15005_s27 + $0x48] sm:$0xff] }
 0x1e3   : > { %14346 = vmatpush3.msk.msra.mxu1 %vm362_vm1, %v16730_v51  ;;  %9601 = vmatprep.mubr.f32.mxu1 %v14937_v4  ;;  %v3565_v28 = vmul.f32 %v14448_v24, %v3545_v0  ;;  %v14449_v57 = vadd.f32 %v3451_v20, %v2591_v46  ;;  %v3453_v29 = vpop.f32.mrb[7].mxu1  ;;  %v3550_v61 = vadd.f32 %v3545_v0, %v3544_v18  ;;  %v17121_v24 = vpop.permute.xlu0 %10584 }
 0x1e4   : > { %9992 = vmatprep.mubr.f32.mxu0 %v14937_v4  ;;  %13710 = vmatprep.subr.msk.mxu1 %vm362_vm1, %v9696_v37  ;;  %v14450_v56 = vadd.f32 %v3453_v29, %v2593_v31  ;;  %v11502_v0 = vsel %vm352_vm2, %v16904_v2, %v16914_v41  ;;  %v17135_v37 = vld [vmem:[%s17735_s1] sm:$0xff]  ;;  %v14897_v29 = vld [vmem:[%s15005_s27 + $0x54] sm:$0xff] }
 0x1e5   : > { %13727 = vmatmul.mubr.msk.f32.vlgmr.msra.gmra.mrb[22].mxu0 %vm355_vm0, %v16492_v48  ;;  %14355 = vmatprep.subr.msk.mxu0 %vm362_vm1, %v16888_v15  ;;  %13436 = vst [vmem:[%s16603_s7 + $0x48] sm:$0x3f] %v14449_v57  ;;  %v3547_v51 = vmul.f32 %v14449_v57, %v16774_v55  ;;  %v3570_v54 = vadd.f32 %v3565_v28, %v3564_v6  ;;  %v14894_v6 = vld [vmem:[%s15005_s27 + $0x50] sm:$0xf] }
 0x1e6   : > { %13706 = vmatmul.mubr.msk.f32.gmra.mrb[16].mxu1 %vm355_vm0, %v16372_v19  ;;  %9998 = vmatprep.mubr.f32.mxu0 %v14937_v4  ;;  %13437 = vst [vmem:[%s16603_s7 + $0x50] sm:$0x3f] %v14450_v56  ;;  %v3548_v45 = vmul.f32 %v14450_v56, %v16779_v5  ;;  %v14174_v23 = vpop.f32.mrb[2].mxu1 }
 0x1e7   : > { %14347 = vmatprep.mubr.msk.f32.mxu1 %vm355_vm0, %v16352_v32  ;;  %v3567_v27 = vmul.f32 %v14449_v57, %v3547_v51  ;;  %14356 = vmatpush3.msk.msra.mxu0 %vm362_vm1, %v16888_v15  ;;  %13438 = vst.msk [vmem:[%s16603_s7 + $0x58] sm:$0x3f] %vm1944_vm10, %v14174_v23  ;;  %v3549_v39 = vmul.f32 %v14174_v23, %v16759_v53  ;;  %v3522_v49 = vpop.f32.mrb[3].mxu1  ;;  %v3555_v12 = vsel %vm1973_vm12, %v3547_v51, 0.0  ;;  %v17094_v15 = vpop.permute.xlu1 %11991  ;;  %v17158_v57 = vld [vmem:[%s17735_s1 + $0x8] sm:$0x3f] }
 0x1e8   : > { %v3568_v50 = vmul.f32 %v14450_v56, %v3548_v45  ;;  %13732 = vmatprep.subr.msk.mxu0 %vm362_vm1, %v16094_v52  ;;  %13435 = vst.msk [vmem:[%s16603_s7 + $0x40] sm:$0xff] %vm1940_vm11, %v3522_v49  ;;  %v3546_v47 = vmul.f32 %v3522_v49, %v16759_v53  ;;  %v3556_v32 = vsel %vm1973_vm12, %v3548_v45, 0.0  ;;  %v9695_v52 = vsel %vm1765_vm9, %v16862_v38, %v16826_v36  ;;  %v17151_v20 = vpop.permute.xlu0 %10582  ;;  %v17271_v45 = vld [vmem:[%s17735_s1 + $0x38] sm:$0x3f] }
 0x1e9   : > { %13728 = vmatmul.mubr.msk.f32.gmra.mrb[24].mxu0 %vm355_vm0, %v16518_v14  ;;  %v3569_v40 = vmul.f32 %v14174_v23, %v3549_v39  ;;  %v3557_v46 = vadd.f32 %v3556_v32, %v3555_v12  ;;  %v3558_v31 = vsel %vm1944_vm10, %v3549_v39, 0.0  ;;  %v3575_v43 = vsel %vm1973_vm12, %v3567_v27, 0.0  ;;  %v17307_v39 = vld [vmem:[%s17735_s1 + $0x40] sm:$0xff] }
 0x1ea   : > { %14348 = vmatmul.mubr.msk.f32.vlgmr.msra.gmra.mrb[18].mxu1 %vm355_vm0, %v16372_v19  ;;  %14357 = vmatprep.mubr.msk.f32.mxu0 %vm355_vm0, %v16492_v48  ;;  %v3566_v16 = vmul.f32 %v3546_v47, %v3522_v49  ;;  %v3551_v21 = vsel %vm1940_vm11, %v3546_v47, 0.0  ;;  %v3576_v62 = vsel %vm1973_vm12, %v3568_v50, 0.0  ;;  %v11825_v23 = vsel %vm691_vm3, %v17004_v25, %v16975_v13  ;;  %v17329_v50 = vld [vmem:[%s17735_s1 + $0x48] sm:$0x3f] }
 0x1eb   : > { %13711 = vmatpush1.msk.msra.mxu1 %vm362_vm1, %v9695_v52  ;;  %9767 = vmatprep.mubr.f32.mxu1 %v14937_v4  ;;  %v3552_v60 = vadd.f32 %v3551_v21, %v3550_v61  ;;  %v3559_v34 = vadd.f32 %v3558_v31, %v3557_v46  ;;  %v3577_v42 = vadd.f32 %v3576_v62, %v3575_v43  ;;  %v3578_v36 = vsel %vm1944_vm10, %v3569_v40, 0.0  ;;  %v17123_v18 = vpop.permute.xlu1 %10586  ;;  %v17366_v40 = vld [vmem:[%s17735_s1 + $0x50] sm:$0xff]  ;;  %v17385_v43 = vld [vmem:[%s17735_s1 + $0x58] sm:$0x3f] }
 0x1ec   : > { %14350 = vmatprep.subr.msk.mxu1 %vm362_vm1, %v16845_v33  ;;  %v3571_v19 = vsel %vm1940_vm11, %v3566_v16, 0.0  ;;  %v11997_v47 = vsel %vm870_vm4, %v17094_v15, %v17060_v1 }
 0x1ed   : > { %14358 = vmatmul.mubr.msk.f32.vlgmr.msra.gmra.mrb[26].mxu0 %vm355_vm0, %v16518_v14  ;;  %3553 = vadd.xlane.f32.xlu1 %v3552_v60  ;;  %v3572_v38 = vadd.f32 %v3571_v19, %v3570_v54  ;;  %v3579_v11 = vadd.f32 %v3578_v36, %v3577_v42 }
 0x1ee   : > { %13712 = vmatmul.mubr.msk.f32.vlgmr.msra.gmra.mrb[14].mxu1 %vm355_vm0, %v16403_v7  ;;  %13733 = vmatpush1.msk.msra.mxu0 %vm362_vm1, %v14892_v30 }
 0x1ef   : > { %14351 = vmatpush3.msk.msra.mxu1 %vm362_vm1, %v16845_v33  ;;  %9773 = vmatprep.mubr.f32.mxu1 %v14937_v4  ;;  %v11501_v33 = vsel %vm352_vm2, %v16927_v35, %v16904_v2  ;;  %v17153_v28 = vpop.permute.xlu1 %12165  ;;  %v10244_v2 = vsel %vm691_vm3, %v16971_v44, %v16943_v17 }
 0x1f0   : > { %10150 = vmatprep.mubr.f32.mxu0 %v14937_v4  ;;  %3560 = vadd.xlane.f32.xlu0 %v3559_v34  ;;  %v17419_v34 = vld [vmem:[%s17735_s1 + $0x60] sm:$0xff] }
 0x1f1   : > { %13734 = vmatmul.mubr.msk.f32.vlgmr.msra.gmra.mrb[22].mxu0 %vm355_vm0, %v17135_v37  ;;  %14360 = vmatprep.subr.msk.mxu0 %vm362_vm1, %v14894_v6 }
 0x1f2   : > { %13713 = vmatmul.mubr.msk.f32.gmra.mrb[16].mxu1 %vm355_vm0, %v16434_v9  ;;  %10156 = vmatprep.mubr.f32.mxu0 %v14937_v4 }
 0x1f3   : > { %14352 = vmatprep.mubr.msk.f32.mxu1 %vm355_vm0, %v16403_v7  ;;  %13796 = vmatprep.subr.msk.mxu1 %vm362_vm1, %v11502_v0  ;;  %v10245_v7 = vsel %vm691_vm3, %v16943_v17, %v16951_v58  ;;  %v17184_v35 = vpop.permute.xlu1 %12163  ;;  %v17195_v17 = vld [vmem:[%s17735_s1 + $0x20] sm:$0xff] }
 0x1f4   : > { %14361 = vmatpush3.msk.msra.mxu0 %vm362_vm1, %v14894_v6  ;;  %3573 = vadd.xlane.f32.xlu1 %v3572_v38  ;;  %v12169_v52 = vsel %vm1049_vm5, %v17184_v35, %v17153_v28  ;;  %v17441_v38 = vld [vmem:[%s17735_s1 + $0x68] sm:$0x3f] }
 0x1f5   : > { %13735 = vmatmul.mubr.msk.f32.gmra.mrb[24].mxu0 %vm355_vm0, %v17158_v57  ;;  %3580 = vadd.xlane.f32.xlu0 %v3579_v11 }
 0x1f6   : > { %14353 = vmatmul.mubr.msk.f32.vlgmr.msra.gmra.mrb[18].mxu1 %vm355_vm0, %v16434_v9  ;;  %14362 = vmatprep.mubr.msk.f32.mxu0 %vm355_vm0, %v17135_v37  ;;  %v17182_v9 = vpop.permute.xlu0 %12167 }
 0x1f7   : > { %13797 = vmatpush1.msk.msra.mxu1 %vm362_vm1, %v11501_v33  ;;  %11573 = vmatprep.mubr.f32.mxu1 %v14937_v4 }
 0x1f8   : > { %14400 = vmatprep.subr.msk.mxu1 %vm362_vm1, %v16914_v41  ;;  %13739 = vmatprep.subr.msk.mxu0 %vm362_vm1, %v10245_v7 }
 0x1f9   : > { %14363 = vmatmul.mubr.msk.f32.vlgmr.msra.gmra.mrb[26].mxu0 %vm355_vm0, %v17158_v57 }
 0x1fa   : > { %13798 = vmatmul.mubr.msk.f32.vlgmr.msra.gmra.mrb[20].mxu1 %vm355_vm0, %v16492_v48  ;;  %13740 = vmatpush1.msk.msra.mxu0 %vm362_vm1, %v10244_v2  ;;  %v17212_v44 = vpop.permute.xlu0 %10756 }
 0x1fb   : > { %14401 = vmatpush3.msk.msra.mxu1 %vm362_vm1, %v16914_v41  ;;  %10316 = vmatprep.mubr.f32.mxu0 %v14937_v4  ;;  %v10417_v41 = vsel %vm870_vm4, %v17025_v3, %v17028_v22 }
 0x1fc   : > { %11579 = vmatprep.mubr.f32.mxu1 %v14937_v4  ;;  %14365 = vmatprep.subr.msk.mxu0 %vm362_vm1, %v16951_v58 }
 0x1fd   : > { %13741 = vmatmul.mubr.msk.f32.vlgmr.msra.gmra.mrb[22].mxu0 %vm355_vm0, %v17195_v17  ;;  %13803 = vmatprep.subr.msk.mxu1 %vm362_vm1, %v16125_v26  ;;  %v17214_v26 = vpop.permute.xlu1 %10758 }
 0x1fe   : > { %13799 = vmatmul.mubr.msk.f32.gmra.mrb[22].mxu1 %vm355_vm0, %v16518_v14  ;;  %10322 = vmatprep.mubr.f32.mxu0 %v14937_v4  ;;  %v10755_v61 = vpop.permute.xlu0 %10754 }
 0x1ff   : > { %14402 = vmatprep.mubr.msk.f32.mxu1 %vm355_vm0, %v16492_v48  ;;  %14366 = vmatpush3.msk.msra.mxu0 %vm362_vm1, %v16951_v58  ;;  %v10416_v48 = vsel %vm870_vm4, %v17055_v10, %v17025_v3  ;;  %v14898_v58 = vld [vmem:[%s15005_s27 + $0x5c] sm:$0xf]  ;;  %v17248_v3 = vld [vmem:[%s17735_s1 + $0x30] sm:$0xff]  ;;  %v10589_v10 = vsel %vm1049_vm5, %v17121_v24, %v17123_v18  ;;  %v10760_v32 = vsel %vm1228_vm6, %v10755_v61, %v17212_v44 }
 0x200   : > { %13746 = vmatprep.subr.msk.mxu0 %vm362_vm1, %v10417_v41 }
 0x201   : > { %13742 = vmatmul.mubr.msk.f32.gmra.mrb[24].mxu0 %vm355_vm0, %v16666_v8  ;;  %v17238_v56 = vpop.permute.xlu1 %12337 }
 0x202   : > { %14403 = vmatmul.mubr.msk.f32.vlgmr.msra.gmra.mrb[24].mxu1 %vm355_vm0, %v16518_v14  ;;  %14367 = vmatprep.mubr.msk.f32.mxu0 %vm355_vm0, %v17195_v17  ;;  %v11826_v14 = vsel %vm691_vm3, %v16975_v13, %v16999_v63  ;;  %v17264_v51 = vpop.permute.xlu0 %12339  ;;  %v11998_v13 = vsel %vm870_vm4, %v17060_v1, %v17092_v59 }
 0x203   : > { %13804 = vmatpush1.msk.msra.mxu1 %vm362_vm1, %v14897_v29  ;;  %11731 = vmatprep.mubr.f32.mxu1 %v14937_v4  ;;  %v12342_v21 = vsel %vm1228_vm6, %v17238_v56, %v17264_v51 }
 0x204   : > { %14405 = vmatprep.subr.msk.mxu1 %vm362_vm1, %v14898_v58 }
 0x205   : > { %14368 = vmatmul.mubr.msk.f32.vlgmr.msra.gmra.mrb[26].mxu0 %vm355_vm0, %v16666_v8  ;;  %v17266_v54 = vpop.permute.xlu1 %12335 }
 0x206   : > { %13805 = vmatmul.mubr.msk.f32.vlgmr.msra.gmra.mrb[20].mxu1 %vm355_vm0, %v17135_v37  ;;  %13747 = vmatpush1.msk.msra.mxu0 %vm362_vm1, %v10416_v48  ;;  %v10929_v25 = vpop.permute.xlu0 %10928  ;;  %v12341_v11 = vsel %vm1228_vm6, %v17266_v54, %v17238_v56  ;;  %v17534_v54 = vld [vmem:[%s17735_s1 + $0x80] sm:$0xff] }
 0x207   : > { %10488 = vmatprep.mubr.f32.mxu0 %v14937_v4  ;;  %11737 = vmatprep.mubr.f32.mxu1 %v14937_v4 }
 0x208   : > { %14406 = vmatpush3.msk.msra.mxu1 %vm362_vm1, %v14898_v58  ;;  %14370 = vmatprep.subr.msk.mxu0 %vm362_vm1, %v17028_v22 }
 0x209   : > { %13748 = vmatmul.mubr.msk.f32.vlgmr.msra.gmra.mrb[22].mxu0 %vm355_vm0, %v17248_v3  ;;  %13810 = vmatprep.subr.msk.mxu1 %vm362_vm1, %v11826_v14  ;;  %v17297_v27 = vpop.permute.xlu1 %10930 }
 0x20a   : > { %13806 = vmatmul.mubr.msk.f32.gmra.mrb[22].mxu1 %vm355_vm0, %v17158_v57  ;;  %10494 = vmatprep.mubr.f32.mxu0 %v14937_v4  ;;  %v10927_v49 = vpop.permute.xlu0 %10926 }
 0x20b   : > { %14407 = vmatprep.mubr.msk.f32.mxu1 %vm355_vm0, %v17135_v37  ;;  %14371 = vmatpush3.msk.msra.mxu0 %vm362_vm1, %v17028_v22  ;;  %v10588_v22 = vsel %vm1049_vm5, %v17151_v20, %v17121_v24  ;;  %v10932_v16 = vsel %vm1407_vm7, %v10927_v49, %v10929_v25  ;;  %v17475_v37 = vld [vmem:[%s17735_s1 + $0x70] sm:$0xff]  ;;  %v17492_v20 = vld [vmem:[%s17735_s1 + $0x78] sm:$0x3f] }
 0x20c   : > { %13753 = vmatprep.subr.msk.mxu0 %vm362_vm1, %v10589_v10 }
 0x20d   : > { %13749 = vmatmul.mubr.msk.f32.gmra.mrb[24].mxu0 %vm355_vm0, %v17271_v45  ;;  %v17324_v12 = vpop.permute.xlu1 %12509 }
 0x20e   : > { %14408 = vmatmul.mubr.msk.f32.vlgmr.msra.gmra.mrb[24].mxu1 %vm355_vm0, %v17158_v57  ;;  %14372 = vmatprep.mubr.msk.f32.mxu0 %vm355_vm0, %v17248_v3  ;;  %v17354_v1 = vpop.permute.xlu0 %12511 }
 0x20f   : > { %13811 = vmatpush1.msk.msra.mxu1 %vm362_vm1, %v11825_v23  ;;  %11897 = vmatprep.mubr.f32.mxu1 %v14937_v4  ;;  %v12514_v24 = vsel %vm1407_vm7, %v17324_v12, %v17354_v1 }
 0x210   : > { %14410 = vmatprep.subr.msk.mxu1 %vm362_vm1, %v16999_v63 }
 0x211   : > { %14373 = vmatmul.mubr.msk.f32.vlgmr.msra.gmra.mrb[26].mxu0 %vm355_vm0, %v17271_v45  ;;  %v17356_v15 = vpop.permute.xlu1 %12507 }
 0x212   : > { %13812 = vmatmul.mubr.msk.f32.vlgmr.msra.gmra.mrb[20].mxu1 %vm355_vm0, %v17195_v17  ;;  %13754 = vmatpush1.msk.msra.mxu0 %vm362_vm1, %v10588_v22  ;;  %v11101_v46 = vpop.permute.xlu0 %11100  ;;  %v12513_v57 = vsel %vm1407_vm7, %v17356_v15, %v17324_v12 }
 0x213   : > { %14411 = vmatpush3.msk.msra.mxu1 %vm362_vm1, %v16999_v63  ;;  %10660 = vmatprep.mubr.f32.mxu0 %v14937_v4  ;;  %v10761_v63 = vsel %vm1228_vm6, %v17212_v44, %v17214_v26 }
 0x214   : > { %11903 = vmatprep.mubr.f32.mxu1 %v14937_v4  ;;  %13817 = vmatprep.subr.msk.mxu1 %vm362_vm1, %v11998_v13 }
 0x215   : > { %13755 = vmatmul.mubr.msk.f32.vlgmr.msra.gmra.mrb[22].mxu0 %vm355_vm0, %v17307_v39  ;;  %14375 = vmatprep.subr.msk.mxu0 %vm362_vm1, %v17123_v18  ;;  %v11103_v31 = vpop.permute.xlu1 %11102 }
 0x216   : > { %13813 = vmatmul.mubr.msk.f32.gmra.mrb[22].mxu1 %vm355_vm0, %v16666_v8  ;;  %10666 = vmatprep.mubr.f32.mxu0 %v14937_v4  ;;  %v11099_v62 = vpop.permute.xlu0 %11098  ;;  %v11105_v42 = vsel %vm1586_vm8, %v11101_v46, %v11103_v31 }
 0x217   : > { %14412 = vmatprep.mubr.msk.f32.mxu1 %vm355_vm0, %v17195_v17  ;;  %14376 = vmatpush3.msk.msra.mxu0 %vm362_vm1, %v17123_v18  ;;  %v11104_v30 = vsel %vm1586_vm8, %v11099_v62, %v11101_v46 }
 0x218   : > { %13760 = vmatprep.subr.msk.mxu0 %vm362_vm1, %v10761_v63 }
 0x219   : > { %13756 = vmatmul.mubr.msk.f32.gmra.mrb[24].mxu0 %vm355_vm0, %v17329_v50  ;;  %v17409_v60 = vpop.permute.xlu1 %12681 }
 0x21a   : > { %14413 = vmatmul.mubr.msk.f32.vlgmr.msra.gmra.mrb[24].mxu1 %vm355_vm0, %v16666_v8  ;;  %14377 = vmatprep.mubr.msk.f32.mxu0 %vm355_vm0, %v17307_v39  ;;  %v12170_v8 = vsel %vm1049_vm5, %v17153_v28, %v17182_v9  ;;  %v17434_v36 = vpop.permute.xlu0 %12683 }
 0x21b   : > { %13818 = vmatpush1.msk.msra.mxu1 %vm362_vm1, %v11997_v47  ;;  %12069 = vmatprep.mubr.f32.mxu1 %v14937_v4  ;;  %v12686_v29 = vsel %vm1586_vm8, %v17409_v60, %v17434_v36  ;;  %v17559_v47 = vld [vmem:[%s17735_s1 + $0x88] sm:$0x3f] }
 0x21c   : > { %14415 = vmatprep.subr.msk.mxu1 %vm362_vm1, %v17092_v59 }
 0x21d   : > { %14378 = vmatmul.mubr.msk.f32.vlgmr.msra.gmra.mrb[26].mxu0 %vm355_vm0, %v17329_v50  ;;  %v17436_v19 = vpop.permute.xlu1 %12679 }
 0x21e   : > { %13819 = vmatmul.mubr.msk.f32.vlgmr.msra.gmra.mrb[20].mxu1 %vm355_vm0, %v17248_v3  ;;  %13761 = vmatpush1.msk.msra.mxu0 %vm362_vm1, %v10760_v32  ;;  %v11273_v18 = vpop.permute.xlu0 %11272 }
 0x21f   : > { %14416 = vmatpush3.msk.msra.mxu1 %vm362_vm1, %v17092_v59  ;;  %10832 = vmatprep.mubr.f32.mxu0 %v14937_v4  ;;  %v10933_v59 = vsel %vm1407_vm7, %v10929_v25, %v17297_v27 }
 0x220   : > { %12075 = vmatprep.mubr.f32.mxu1 %v14937_v4  ;;  %13824 = vmatprep.subr.msk.mxu1 %vm362_vm1, %v12170_v8 }
 0x221   : > { %13762 = vmatmul.mubr.msk.f32.vlgmr.msra.gmra.mrb[22].mxu0 %vm355_vm0, %v17366_v40  ;;  %14380 = vmatprep.subr.msk.mxu0 %vm362_vm1, %v17214_v26  ;;  %v17465_v0 = vpop.permute.xlu1 %11274 }
 0x222   : > { %13820 = vmatmul.mubr.msk.f32.gmra.mrb[22].mxu1 %vm355_vm0, %v17271_v45  ;;  %10838 = vmatprep.mubr.f32.mxu0 %v14937_v4  ;;  %v11277_v6 = vsel %vm1765_vm9, %v11273_v18, %v17465_v0  ;;  %v11271_v33 = vpop.permute.xlu0 %11270 }
 0x223   : > { %14417 = vmatprep.mubr.msk.f32.mxu1 %vm355_vm0, %v17248_v3  ;;  %14381 = vmatpush3.msk.msra.mxu0 %vm362_vm1, %v17214_v26  ;;  %v11276_v35 = vsel %vm1765_vm9, %v11271_v33, %v11273_v18 }
 0x224   : > { %13767 = vmatprep.subr.msk.mxu0 %vm362_vm1, %v10933_v59 }
 0x225   : > { %13763 = vmatmul.mubr.msk.f32.gmra.mrb[24].mxu0 %vm355_vm0, %v17385_v43 }
 0x226   : > { %14418 = vmatmul.mubr.msk.f32.vlgmr.msra.gmra.mrb[24].mxu1 %vm355_vm0, %v17271_v45  ;;  %14382 = vmatprep.mubr.msk.f32.mxu0 %vm355_vm0, %v17366_v40 }
 0x227   : > { %13825 = vmatpush1.msk.msra.mxu1 %vm362_vm1, %v12169_v52  ;;  %12241 = vmatprep.mubr.f32.mxu1 %v14937_v4 }
 0x228   : > { %14420 = vmatprep.subr.msk.mxu1 %vm362_vm1, %v17182_v9 }
 0x229   : > { %14383 = vmatmul.mubr.msk.f32.vlgmr.msra.gmra.mrb[26].mxu0 %vm355_vm0, %v17385_v43 }
 0x22a   : > { %13826 = vmatmul.mubr.msk.f32.vlgmr.msra.gmra.mrb[20].mxu1 %vm355_vm0, %v17307_v39  ;;  %13768 = vmatpush1.msk.msra.mxu0 %vm362_vm1, %v10932_v16 }
 0x22b   : > { %14421 = vmatpush3.msk.msra.mxu1 %vm362_vm1, %v17182_v9  ;;  %11004 = vmatprep.mubr.f32.mxu0 %v14937_v4 }
 0x22c   : > { %12247 = vmatprep.mubr.f32.mxu1 %v14937_v4  ;;  %13831 = vmatprep.subr.msk.mxu1 %vm362_vm1, %v12342_v21 }
 0x22d   : > { %13769 = vmatmul.mubr.msk.f32.vlgmr.msra.gmra.mrb[22].mxu0 %vm355_vm0, %v17419_v34  ;;  %14385 = vmatprep.subr.msk.mxu0 %vm362_vm1, %v17297_v27 }
 0x22e   : > { %13827 = vmatmul.mubr.msk.f32.gmra.mrb[22].mxu1 %vm355_vm0, %v17329_v50  ;;  %11010 = vmatprep.mubr.f32.mxu0 %v14937_v4 }
 0x22f   : > { %14422 = vmatprep.mubr.msk.f32.mxu1 %vm355_vm0, %v17307_v39  ;;  %14386 = vmatpush3.msk.msra.mxu0 %vm362_vm1, %v17297_v27 }
 0x230   : > { %13774 = vmatprep.subr.msk.mxu0 %vm362_vm1, %v11105_v42 }
 0x231   : > { %13770 = vmatmul.mubr.msk.f32.gmra.mrb[24].mxu0 %vm355_vm0, %v17441_v38 }
 0x232   : > { %14423 = vmatmul.mubr.msk.f32.vlgmr.msra.gmra.mrb[24].mxu1 %vm355_vm0, %v17329_v50  ;;  %14387 = vmatprep.mubr.msk.f32.mxu0 %vm355_vm0, %v17419_v34 }
 0x233   : > { %13832 = vmatpush1.msk.msra.mxu1 %vm362_vm1, %v12341_v11  ;;  %12413 = vmatprep.mubr.f32.mxu1 %v14937_v4 }
 0x234   : > { %14425 = vmatprep.subr.msk.mxu1 %vm362_vm1, %v17264_v51 }
 0x235   : > { %14388 = vmatmul.mubr.msk.f32.vlgmr.msra.gmra.mrb[26].mxu0 %vm355_vm0, %v17441_v38 }
 0x236   : > { %13833 = vmatmul.mubr.msk.f32.vlgmr.msra.gmra.mrb[20].mxu1 %vm355_vm0, %v17366_v40  ;;  %13775 = vmatpush1.msk.msra.mxu0 %vm362_vm1, %v11104_v30 }
 0x237   : > { %14426 = vmatpush3.msk.msra.mxu1 %vm362_vm1, %v17264_v51  ;;  %11176 = vmatprep.mubr.f32.mxu0 %v14937_v4 }
 0x238   : > { %12419 = vmatprep.mubr.f32.mxu1 %v14937_v4  ;;  %13838 = vmatprep.subr.msk.mxu1 %vm362_vm1, %v12514_v24 }
 0x239   : > { %13776 = vmatmul.mubr.msk.f32.vlgmr.msra.gmra.mrb[22].mxu0 %vm355_vm0, %v17475_v37  ;;  %14390 = vmatprep.subr.msk.mxu0 %vm362_vm1, %v11103_v31 }
 0x23a   : > { %13834 = vmatmul.mubr.msk.f32.gmra.mrb[22].mxu1 %vm355_vm0, %v17385_v43  ;;  %11182 = vmatprep.mubr.f32.mxu0 %v14937_v4 }
 0x23b   : > { %14427 = vmatprep.mubr.msk.f32.mxu1 %vm355_vm0, %v17366_v40  ;;  %14391 = vmatpush3.msk.msra.mxu0 %vm362_vm1, %v11103_v31  ;;  %v12856_v31 = vpop.permute.xlu0 %12855 }
 0x23c   : > { %13781 = vmatprep.subr.msk.mxu0 %vm362_vm1, %v11277_v6 }
 0x23d   : > { %13777 = vmatmul.mubr.msk.f32.gmra.mrb[24].mxu0 %vm355_vm0, %v17492_v20  ;;  %v5026_v28 = vpop.f32.mrb[10].mxu0 }
 0x23e   : > { %14428 = vmatmul.mubr.msk.f32.vlgmr.msra.gmra.mrb[24].mxu1 %vm355_vm0, %v17385_v43  ;;  %13504 = vst [vmem:[%s16603_s7 + $0x60] sm:$0xff] %v5026_v28  ;;  %v5125_v7 = vmul.f32 %v5026_v28, %v16774_v55  ;;  %14392 = vmatprep.mubr.msk.f32.mxu0 %vm355_vm0, %v17475_v37  ;;  %v5028_v2 = vpop.f32.mrb[11].mxu0  ;;  %v12854_v43 = vpop.permute.xlu1 %12853 }
 0x23f   : > { %13839 = vmatpush1.msk.msra.mxu1 %vm362_vm1, %v12513_v57  ;;  %12585 = vmatprep.mubr.f32.mxu1 %v14937_v4  ;;  %13505 = vst [vmem:[%s16603_s7 + $0x68] sm:$0xff] %v5028_v2  ;;  %v5126_v9 = vmul.f32 %v5028_v2, %v16779_v5  ;;  %v12858_v16 = vsel %vm1765_vm9, %v12854_v43, %v12856_v31 }
 0x240   : > { %14430 = vmatprep.subr.msk.mxu1 %vm362_vm1, %v17354_v1  ;;  %v5145_v17 = vmul.f32 %v5125_v7, %v5026_v28 }
 0x241   : > { %v5131_v41 = vadd.f32 %v5126_v9, %v5125_v7  ;;  %v5146_v44 = vmul.f32 %v5126_v9, %v5028_v2  ;;  %14393 = vmatmul.mubr.msk.f32.vlgmr.msra.gmra.mrb[26].mxu0 %vm355_vm0, %v17492_v20  ;;  %v5032_v26 = vpop.f32.mrb[12].mxu0 }
 0x242   : > { %13840 = vmatmul.mubr.msk.f32.vlgmr.msra.gmra.mrb[20].mxu1 %vm355_vm0, %v17419_v34  ;;  %13507 = vst [vmem:[%s16603_s7 + $0x78] sm:$0x3f] %v5032_v26  ;;  %v5128_v48 = vmul.f32 %v5032_v26, %v16774_v55  ;;  %13782 = vmatpush1.msk.msra.mxu0 %vm362_vm1, %v11276_v35  ;;  %v5034_v58 = vpop.f32.mrb[13].mxu0  ;;  %v12852_v62 = vpop.permute.xlu1 %12851 }
 0x243   : > { %v5151_v14 = vadd.f32 %v5146_v44, %v5145_v17  ;;  %14431 = vmatpush3.msk.msra.mxu1 %vm362_vm1, %v17354_v1  ;;  %11348 = vmatprep.mubr.f32.mxu0 %v14937_v4  ;;  %13508 = vst [vmem:[%s16603_s7 + $0x80] sm:$0x3f] %v5034_v58  ;;  %v5129_v61 = vmul.f32 %v5034_v58, %v16779_v5 }
 0x244   : > { %v5136_v56 = vsel %vm1973_vm12, %v5128_v48, 0.0  ;;  %v5148_v3 = vmul.f32 %v5128_v48, %v5032_v26  ;;  %12591 = vmatprep.mubr.f32.mxu1 %v14937_v4  ;;  %13845 = vmatprep.subr.msk.mxu1 %vm362_vm1, %v12686_v29  ;;  %v12685_v1 = vsel %vm1586_vm8, %v17436_v19, %v17409_v60  ;;  %v12857_v42 = vsel %vm1765_vm9, %v12852_v62, %v12854_v43 }
 0x245   : > { %v5137_v10 = vsel %vm1973_vm12, %v5129_v61, 0.0  ;;  %v5149_v51 = vmul.f32 %v5129_v61, %v5034_v58  ;;  %13783 = vmatmul.mubr.msk.f32.vlgmr.msra.gmra.mrb[22].mxu0 %vm355_vm0, %v17534_v54  ;;  %v14219_v45 = vpop.f32.mrb[14].mxu0  ;;  %14395 = vmatprep.subr.msk.mxu0 %vm362_vm1, %v17465_v0 }
 0x246   : > { %v5156_v23 = vsel %vm1973_vm12, %v5148_v3, 0.0  ;;  %13841 = vmatmul.mubr.msk.f32.gmra.mrb[22].mxu1 %vm355_vm0, %v17441_v38  ;;  %13509 = vst.msk [vmem:[%s16603_s7 + $0x88] sm:$0x3f] %vm1944_vm10, %v14219_v45  ;;  %v5130_v22 = vmul.f32 %v14219_v45, %v16759_v53  ;;  %11354 = vmatprep.mubr.f32.mxu0 %v14937_v4  ;;  %v5103_v13 = vpop.f32.mrb[15].mxu0  ;;  %v5138_v25 = vadd.f32 %v5137_v10, %v5136_v56 }
 0x247   : > { %v5157_v27 = vsel %vm1973_vm12, %v5149_v51, 0.0  ;;  %14432 = vmatprep.mubr.msk.f32.mxu1 %vm355_vm0, %v17419_v34  ;;  %13506 = vst.msk [vmem:[%s16603_s7 + $0x70] sm:$0xff] %vm1940_vm11, %v5103_v13  ;;  %v5127_v39 = vmul.f32 %v5103_v13, %v16759_v53  ;;  %14396 = vmatpush3.msk.msra.mxu0 %vm362_vm1, %v17465_v0 }
 0x248   : > { %v5150_v63 = vmul.f32 %v14219_v45, %v5130_v22  ;;  %v5139_v49 = vsel %vm1944_vm10, %v5130_v22, 0.0  ;;  %v5158_v12 = vadd.f32 %v5157_v27, %v5156_v23 }
 0x249   : > { %v5147_v50 = vmul.f32 %v5127_v39, %v5103_v13  ;;  %13784 = vmatmul.mubr.msk.f32.gmra.mrb[24].mxu0 %vm355_vm0, %v17559_v47  ;;  %v5140_v32 = vadd.f32 %v5139_v49, %v5138_v25  ;;  %v5132_v8 = vsel %vm1940_vm11, %v5127_v39, 0.0 }
 0x24a   : > { %14433 = vmatmul.mubr.msk.f32.vlgmr.msra.gmra.mrb[24].mxu1 %vm355_vm0, %v17441_v38  ;;  %14397 = vmatprep.mubr.msk.f32.mxu0 %vm355_vm0, %v17534_v54  ;;  %v5133_v15 = vadd.f32 %v5132_v8, %v5131_v41  ;;  %v5159_v40 = vsel %vm1944_vm10, %v5150_v63, 0.0 }
 0x24b   : > { %13846 = vmatpush1.msk.msra.mxu1 %vm362_vm1, %v12685_v1  ;;  %12757 = vmatprep.mubr.f32.mxu1 %v14937_v4  ;;  %v5160_v59 = vadd.f32 %v5159_v40, %v5158_v12  ;;  %v5152_v46 = vsel %vm1940_vm11, %v5147_v50, 0.0 }
 0x24c   : > { %14435 = vmatprep.subr.msk.mxu1 %vm362_vm1, %v17434_v36  ;;  %5141 = vadd.xlane.f32.xlu0 %v5140_v32  ;;  %v5153_v52 = vadd.f32 %v5152_v46, %v5151_v14 }
 0x24d   : > { %14398 = vmatmul.mubr.msk.f32.vlgmr.msra.gmra.mrb[26].mxu0 %vm355_vm0, %v17559_v47  ;;  %5134 = vadd.xlane.f32.xlu1 %v5133_v15 }
 0x24e   : > { %13847 = vmatmul.mubr.msk.f32.vlgmr.msra.gmra.mrb[20].mxu1 %vm355_vm0, %v17475_v37 }
 0x24f   : > { %14436 = vmatpush3.msk.msra.mxu1 %vm362_vm1, %v17434_v36  ;;  %12763 = vmatprep.mubr.f32.mxu1 %v14937_v4 }
 0x250   : > { %5161 = vadd.xlane.f32.xlu0 %v5160_v59  ;;  %13852 = vmatprep.subr.msk.mxu1 %vm362_vm1, %v12858_v16 }
 0x251   : > { %5154 = vadd.xlane.f32.xlu1 %v5153_v52 }
 0x252   : > { %13848 = vmatmul.mubr.msk.f32.gmra.mrb[22].mxu1 %vm355_vm0, %v17492_v20  ;;  %v6607_v21 = vpop.f32.mrb[8].mxu1 }
 0x253   : > { %13575 = vst [vmem:[%s16603_s7 + $0x90] sm:$0xff] %v6607_v21  ;;  %v6706_v60 = vmul.f32 %v6607_v21, %v16774_v55  ;;  %14437 = vmatprep.mubr.msk.f32.mxu1 %vm355_vm0, %v17475_v37  ;;  %v6609_v34 = vpop.f32.mrb[9].mxu1 }
 0x254   : > { %13576 = vst [vmem:[%s16603_s7 + $0x98] sm:$0xff] %v6609_v34  ;;  %v6707_v36 = vmul.f32 %v6609_v34, %v16779_v5 }
 0x255   : > { %v6726_v19 = vmul.f32 %v6706_v60, %v6607_v21 }
 0x256   : > { %v6712_v38 = vadd.f32 %v6707_v36, %v6706_v60  ;;  %v6727_v11 = vmul.f32 %v6707_v36, %v6609_v34  ;;  %14438 = vmatmul.mubr.msk.f32.vlgmr.msra.gmra.mrb[24].mxu1 %vm355_vm0, %v17492_v20 }
 0x257   : > { %v6613_v30 = vpop.f32.mrb[10].mxu1  ;;  %13853 = vmatpush1.msk.msra.mxu1 %vm362_vm1, %v12857_v42  ;;  %12929 = vmatprep.mubr.f32.mxu1 %v14937_v4 }
 0x258   : > { %v6732_v24 = vadd.f32 %v6727_v11, %v6726_v19  ;;  %13578 = vst [vmem:[%s16603_s7 + $0xa8] sm:$0x3f] %v6613_v30  ;;  %v6709_v18 = vmul.f32 %v6613_v30, %v16774_v55  ;;  %v6615_v0 = vpop.f32.mrb[11].mxu1  ;;  %14440 = vmatprep.subr.msk.mxu1 %vm362_vm1, %v12856_v31 }
 0x259   : > { %13579 = vst [vmem:[%s16603_s7 + $0xb0] sm:$0x3f] %v6615_v0  ;;  %v6710_v37 = vmul.f32 %v6615_v0, %v16779_v5 }
 0x25a   : > { %v6717_v6 = vsel %vm1973_vm12, %v6709_v18, 0.0  ;;  %v6729_v33 = vmul.f32 %v6709_v18, %v6613_v30  ;;  %13854 = vmatmul.mubr.msk.f32.vlgmr.msra.gmra.mrb[20].mxu1 %vm355_vm0, %v17534_v54 }
 0x25b   : > { %v6718_v20 = vsel %vm1973_vm12, %v6710_v37, 0.0  ;;  %v6730_v28 = vmul.f32 %v6710_v37, %v6615_v0  ;;  %14441 = vmatpush3.msk.msra.mxu1 %vm362_vm1, %v12856_v31  ;;  %v14264_v57 = vpop.f32.mrb[12].mxu1  ;;  %12935 = vmatprep.mubr.f32.mxu1 %v14937_v4 }
 0x25c   : > { %v6737_v7 = vsel %vm1973_vm12, %v6729_v33, 0.0  ;;  %13580 = vst.msk [vmem:[%s16603_s7 + $0xb8] sm:$0x3f] %vm1944_vm10, %v14264_v57  ;;  %v6711_v2 = vmul.f32 %v14264_v57, %v16759_v53  ;;  %v6684_v9 = vpop.f32.mrb[13].mxu1  ;;  %v6719_v35 = vadd.f32 %v6718_v20, %v6717_v6 }
 0x25d   : > { %v6738_v17 = vsel %vm1973_vm12, %v6730_v28, 0.0  ;;  %13577 = vst.msk [vmem:[%s16603_s7 + $0xa0] sm:$0xff] %vm1940_vm11, %v6684_v9  ;;  %v6708_v41 = vmul.f32 %v6684_v9, %v16759_v53 }
 0x25e   : > { %v6731_v44 = vmul.f32 %v14264_v57, %v6711_v2  ;;  %13855 = vmatmul.mubr.msk.f32.gmra.mrb[22].mxu1 %vm355_vm0, %v17559_v47  ;;  %v6720_v4 = vsel %vm1944_vm10, %v6711_v2, 0.0  ;;  %v6739_v26 = vadd.f32 %v6738_v17, %v6737_v7 }
 0x25f   : > { %v6728_v29 = vmul.f32 %v6708_v41, %v6684_v9  ;;  %14442 = vmatprep.mubr.msk.f32.mxu1 %vm355_vm0, %v17534_v54  ;;  %v6721_v48 = vadd.f32 %v6720_v4, %v6719_v35  ;;  %v6713_v58 = vsel %vm1940_vm11, %v6708_v41, 0.0 }
 0x260   : > { %v6714_v14 = vadd.f32 %v6713_v58, %v6712_v38  ;;  %v6740_v61 = vsel %vm1944_vm10, %v6731_v44, 0.0 }
 0x261   : > { %6722 = vadd.xlane.f32.xlu0 %v6721_v48  ;;  %v6741_v56 = vadd.f32 %v6740_v61, %v6739_v26  ;;  %v6733_v3 = vsel %vm1940_vm11, %v6728_v29, 0.0 }
 0x262   : > { %14443 = vmatmul.mubr.msk.f32.vlgmr.msra.gmra.mrb[24].mxu1 %vm355_vm0, %v17559_v47  ;;  %6715 = vadd.xlane.f32.xlu1 %v6714_v14  ;;  %v6734_v10 = vadd.f32 %v6733_v3, %v6732_v24 }
 0x265   : > { %6742 = vadd.xlane.f32.xlu0 %v6741_v56 }
 0x266   : > { %6735 = vadd.xlane.f32.xlu1 %v6734_v10 }
 0x2ac   : > { %v8188_v51 = vpop.f32.mrb[16].mxu0 }
 0x2ad   : > { %13646 = vst [vmem:[%s16603_s7 + $0xc0] sm:$0xff] %v8188_v51  ;;  %v8287_v54 = vmul.f32 %v8188_v51, %v16774_v55  ;;  %v8190_v45 = vpop.f32.mrb[17].mxu0 }
 0x2ae   : > { %13647 = vst [vmem:[%s16603_s7 + $0xc8] sm:$0xff] %v8190_v45  ;;  %v8288_v23 = vmul.f32 %v8190_v45, %v16779_v5 }
 0x2af   : > { %v8307_v22 = vmul.f32 %v8287_v54, %v8188_v51 }
 0x2b0   : > { %v8293_v13 = vadd.f32 %v8288_v23, %v8287_v54  ;;  %v8308_v25 = vmul.f32 %v8288_v23, %v8190_v45  ;;  %v8194_v27 = vpop.f32.mrb[18].mxu0 }
 0x2b1   : > { %13649 = vst [vmem:[%s16603_s7 + $0xd8] sm:$0x3f] %v8194_v27  ;;  %v8290_v39 = vmul.f32 %v8194_v27, %v16774_v55  ;;  %v8196_v63 = vpop.f32.mrb[19].mxu0 }
 0x2b2   : > { %v8313_v49 = vadd.f32 %v8308_v25, %v8307_v22  ;;  %13650 = vst [vmem:[%s16603_s7 + $0xe0] sm:$0x3f] %v8196_v63  ;;  %v8291_v12 = vmul.f32 %v8196_v63, %v16779_v5 }
 0x2b3   : > { %v8298_v50 = vsel %vm1973_vm12, %v8290_v39, 0.0  ;;  %v8310_v47 = vmul.f32 %v8290_v39, %v8194_v27 }
 0x2b4   : > { %v8299_v32 = vsel %vm1973_vm12, %v8291_v12, 0.0  ;;  %v8311_v8 = vmul.f32 %v8291_v12, %v8196_v63  ;;  %v14309_v1 = vpop.f32.mrb[20].mxu0 }
 0x2b5   : > { %v8318_v15 = vsel %vm1973_vm12, %v8310_v47, 0.0  ;;  %13651 = vst.msk [vmem:[%s16603_s7 + $0xe8] sm:$0x3f] %vm1944_vm10, %v14309_v1  ;;  %v8292_v40 = vmul.f32 %v14309_v1, %v16759_v53  ;;  %v8265_v59 = vpop.f32.mrb[21].mxu0  ;;  %v8300_v46 = vadd.f32 %v8299_v32, %v8298_v50 }
 0x2b6   : > { %v8319_v31 = vsel %vm1973_vm12, %v8311_v8, 0.0  ;;  %13648 = vst.msk [vmem:[%s16603_s7 + $0xd0] sm:$0xff] %vm1940_vm11, %v8265_v59  ;;  %v8289_v43 = vmul.f32 %v8265_v59, %v16759_v53 }
 0x2b7   : > { %v8312_v52 = vmul.f32 %v14309_v1, %v8292_v40  ;;  %v8301_v16 = vsel %vm1944_vm10, %v8292_v40, 0.0  ;;  %v8320_v21 = vadd.f32 %v8319_v31, %v8318_v15 }
 0x2b8   : > { %v8309_v62 = vmul.f32 %v8289_v43, %v8265_v59  ;;  %v8302_v60 = vadd.f32 %v8301_v16, %v8300_v46  ;;  %v8294_v34 = vsel %vm1940_vm11, %v8289_v43, 0.0 }
 0x2b9   : > { %v8295_v42 = vadd.f32 %v8294_v34, %v8293_v13  ;;  %v8321_v36 = vsel %vm1944_vm10, %v8312_v52, 0.0 }
 0x2ba   : > { %8303 = vadd.xlane.f32.xlu0 %v8302_v60  ;;  %v8322_v19 = vadd.f32 %v8321_v36, %v8320_v21  ;;  %v8314_v38 = vsel %vm1940_vm11, %v8309_v62, 0.0 }
 0x2bb   : > { %8296 = vadd.xlane.f32.xlu1 %v8295_v42  ;;  %v8315_v11 = vadd.f32 %v8314_v38, %v8313_v49 }
 0x2be   : > { %8323 = vadd.xlane.f32.xlu0 %v8322_v19 }
 0x2bf   : > { %8316 = vadd.xlane.f32.xlu1 %v8315_v11 }
 0x2c1   : > { %v9769_v30 = vpop.f32.mrb[14].mxu1 }
 0x2c2   : > { %13717 = vst [vmem:[%s16603_s7 + $0xf0] sm:$0xff] %v9769_v30  ;;  %v9868_v24 = vmul.f32 %v9769_v30, %v16774_v55  ;;  %v9771_v18 = vpop.f32.mrb[15].mxu1 }
 0x2c3   : > { %13718 = vst [vmem:[%s16603_s7 + $0xf8] sm:$0xff] %v9771_v18  ;;  %v9869_v0 = vmul.f32 %v9771_v18, %v16779_v5 }
 0x2c4   : > { %v9888_v37 = vmul.f32 %v9868_v24, %v9769_v30 }
 0x2c5   : > { %v9874_v6 = vadd.f32 %v9869_v0, %v9868_v24  ;;  %v9889_v33 = vmul.f32 %v9869_v0, %v9771_v18  ;;  %v9775_v20 = vpop.f32.mrb[16].mxu1 }
 0x2c6   : > { %13720 = vst [vmem:[%s16603_s7 + $0x108] sm:$0x3f] %v9775_v20  ;;  %v9871_v28 = vmul.f32 %v9775_v20, %v16774_v55  ;;  %v9777_v57 = vpop.f32.mrb[17].mxu1 }
 0x2c7   : > { %v9894_v7 = vadd.f32 %v9889_v33, %v9888_v37  ;;  %13721 = vst [vmem:[%s16603_s7 + $0x110] sm:$0x3f] %v9777_v57  ;;  %v9872_v2 = vmul.f32 %v9777_v57, %v16779_v5 }
 0x2c8   : > { %v9879_v9 = vsel %vm1973_vm12, %v9871_v28, 0.0  ;;  %v9891_v35 = vmul.f32 %v9871_v28, %v9775_v20 }
 0x2c9   : > { %v9880_v17 = vsel %vm1973_vm12, %v9872_v2, 0.0  ;;  %v9892_v41 = vmul.f32 %v9872_v2, %v9777_v57  ;;  %v14354_v44 = vpop.f32.mrb[18].mxu1 }
 0x2ca   : > { %v9899_v4 = vsel %vm1973_vm12, %v9891_v35, 0.0  ;;  %13722 = vst.msk [vmem:[%s16603_s7 + $0x118] sm:$0x3f] %vm1944_vm10, %v14354_v44  ;;  %v9873_v26 = vmul.f32 %v14354_v44, %v16759_v53  ;;  %v9846_v29 = vpop.f32.mrb[19].mxu1  ;;  %v9881_v48 = vadd.f32 %v9880_v17, %v9879_v9 }
 0x2cb   : > { %v9900_v58 = vsel %vm1973_vm12, %v9892_v41, 0.0  ;;  %13719 = vst.msk [vmem:[%s16603_s7 + $0x100] sm:$0xff] %vm1940_vm11, %v9846_v29  ;;  %v9870_v14 = vmul.f32 %v9846_v29, %v16759_v53 }
 0x2cc   : > { %v9893_v61 = vmul.f32 %v14354_v44, %v9873_v26  ;;  %v9882_v56 = vsel %vm1944_vm10, %v9873_v26, 0.0  ;;  %v9901_v3 = vadd.f32 %v9900_v58, %v9899_v4 }
 0x2cd   : > { %v9890_v10 = vmul.f32 %v9870_v14, %v9846_v29  ;;  %v9883_v51 = vadd.f32 %v9882_v56, %v9881_v48  ;;  %v9875_v54 = vsel %vm1940_vm11, %v9870_v14, 0.0 }
 0x2ce   : > { %v9876_v45 = vadd.f32 %v9875_v54, %v9874_v6  ;;  %v9902_v23 = vsel %vm1944_vm10, %v9893_v61, 0.0 }
 0x2cf   : > { %9884 = vadd.xlane.f32.xlu0 %v9883_v51  ;;  %v9903_v22 = vadd.f32 %v9902_v23, %v9901_v3  ;;  %v9895_v13 = vsel %vm1940_vm11, %v9890_v10, 0.0 }
 0x2d0   : > { %9877 = vadd.xlane.f32.xlu1 %v9876_v45  ;;  %v9896_v25 = vadd.f32 %v9895_v13, %v9894_v7 }
 0x2d3   : > { %9904 = vadd.xlane.f32.xlu0 %v9903_v22 }
 0x2d4   : > { %9897 = vadd.xlane.f32.xlu1 %v9896_v25 }
 0x318   : > { %v11350_v27 = vpop.f32.mrb[22].mxu0 }
 0x319   : > { %13788 = vst [vmem:[%s16603_s7 + $0x120] sm:$0xff] %v11350_v27  ;;  %v11449_v39 = vmul.f32 %v11350_v27, %v16774_v55  ;;  %v11352_v63 = vpop.f32.mrb[23].mxu0 }
 0x31a   : > { %13789 = vst [vmem:[%s16603_s7 + $0x128] sm:$0xff] %v11352_v63  ;;  %v11450_v49 = vmul.f32 %v11352_v63, %v16779_v5 }
 0x31b   : > { %v11469_v12 = vmul.f32 %v11449_v39, %v11350_v27 }
 0x31c   : > { %v11455_v50 = vadd.f32 %v11450_v49, %v11449_v39  ;;  %v11470_v47 = vmul.f32 %v11450_v49, %v11352_v63  ;;  %v11356_v32 = vpop.f32.mrb[24].mxu0 }
 0x31d   : > { %13791 = vst [vmem:[%s16603_s7 + $0x138] sm:$0x3f] %v11356_v32  ;;  %v11452_v8 = vmul.f32 %v11356_v32, %v16774_v55  ;;  %v11358_v1 = vpop.f32.mrb[25].mxu0 }
 0x31e   : > { %v11475_v15 = vadd.f32 %v11470_v47, %v11469_v12  ;;  %13792 = vst [vmem:[%s16603_s7 + $0x140] sm:$0x3f] %v11358_v1  ;;  %v11453_v40 = vmul.f32 %v11358_v1, %v16779_v5 }
 0x31f   : > { %v11460_v59 = vsel %vm1973_vm12, %v11452_v8, 0.0  ;;  %v11472_v46 = vmul.f32 %v11452_v8, %v11356_v32  ;;  %v1980_v32 = vpop.xlane.xlu1 %1979 }
 0x320   : > { %v11461_v31 = vsel %vm1973_vm12, %v11453_v40, 0.0  ;;  %v11473_v43 = vmul.f32 %v11453_v40, %v11358_v1  ;;  %v14399_v52 = vpop.f32.mrb[26].mxu0 }
 0x321   : > { %v11480_v16 = vsel %vm1973_vm12, %v11472_v46, 0.0  ;;  %13793 = vst.msk [vmem:[%s16603_s7 + $0x148] sm:$0x3f] %vm1944_vm10, %v14399_v52  ;;  %v11454_v21 = vmul.f32 %v14399_v52, %v16759_v53  ;;  %v11427_v62 = vpop.f32.mrb[27].mxu0  ;;  %v11462_v60 = vadd.f32 %v11461_v31, %v11460_v59 }
 0x322   : > { %v11481_v34 = vsel %vm1973_vm12, %v11473_v43, 0.0  ;;  %13790 = vst.msk [vmem:[%s16603_s7 + $0x130] sm:$0xff] %vm1940_vm11, %v11427_v62  ;;  %v11451_v42 = vmul.f32 %v11427_v62, %v16759_v53 }
 0x323   : > { %v11474_v36 = vmul.f32 %v14399_v52, %v11454_v21  ;;  %v11463_v19 = vsel %vm1944_vm10, %v11454_v21, 0.0  ;;  %v11482_v38 = vadd.f32 %v11481_v34, %v11480_v16  ;;  %v3554_v1 = vpop.xlane.xlu1 %3553 }
 0x324   : > { %v11456_v11 = vsel %vm1940_vm11, %v11451_v42, 0.0  ;;  %v11471_v30 = vmul.f32 %v11451_v42, %v11427_v62  ;;  %v11464_v24 = vadd.f32 %v11463_v19, %v11462_v60 }
 0x325   : > { %v11457_v18 = vadd.f32 %v11456_v11, %v11455_v50  ;;  %v11483_v0 = vsel %vm1944_vm10, %v11474_v36, 0.0 }
 0x326   : > { %v11476_v37 = vsel %vm1940_vm11, %v11471_v30, 0.0  ;;  %11465 = vadd.xlane.f32.xlu0 %v11464_v24  ;;  %v11484_v6 = vadd.f32 %v11483_v0, %v11482_v38 }
 0x327   : > { %11458 = vadd.xlane.f32.xlu1 %v11457_v18  ;;  %v11477_v33 = vadd.f32 %v11476_v37, %v11475_v15  ;;  %v3574_v40 = vpop.xlane.xlu1 %3573 }
 0x32a   : > { %11485 = vadd.xlane.f32.xlu0 %v11484_v6 }
 0x32b   : > { %11478 = vadd.xlane.f32.xlu1 %v11477_v33  ;;  %v5135_v46 = vpop.xlane.xlu1 %5134 }
 0x32d   : > { %v12931_v20 = vpop.f32.mrb[20].mxu1 }
 0x32e   : > { %13859 = vst [vmem:[%s16603_s7 + $0x150] sm:$0xff] %v12931_v20  ;;  %v13030_v28 = vmul.f32 %v12931_v20, %v16774_v55  ;;  %v12933_v57 = vpop.f32.mrb[21].mxu1 }
 0x32f   : > { %13860 = vst [vmem:[%s16603_s7 + $0x158] sm:$0xff] %v12933_v57  ;;  %v13031_v7 = vmul.f32 %v12933_v57, %v16779_v5  ;;  %v5155_v43 = vpop.xlane.xlu1 %5154 }
 0x330   : > { %v13050_v2 = vmul.f32 %v13030_v28, %v12931_v20 }
 0x331   : > { %v13036_v9 = vadd.f32 %v13031_v7, %v13030_v28  ;;  %v13051_v35 = vmul.f32 %v13031_v7, %v12933_v57  ;;  %v12937_v17 = vpop.f32.mrb[22].mxu1 }
 0x332   : > { %13862 = vst [vmem:[%s16603_s7 + $0x168] sm:$0x3f] %v12937_v17  ;;  %v13033_v41 = vmul.f32 %v12937_v17, %v16774_v55  ;;  %v12939_v44 = vpop.f32.mrb[23].mxu1 }
 0x333   : > { %v13056_v4 = vadd.f32 %v13051_v35, %v13050_v2  ;;  %13863 = vst [vmem:[%s16603_s7 + $0x170] sm:$0x3f] %v12939_v44  ;;  %v13034_v26 = vmul.f32 %v12939_v44, %v16779_v5  ;;  %v6716_v16 = vpop.xlane.xlu1 %6715 }
 0x334   : > { %v13041_v29 = vsel %vm1973_vm12, %v13033_v41, 0.0  ;;  %v13053_v48 = vmul.f32 %v13033_v41, %v12937_v17 }
 0x335   : > { %v13042_v58 = vsel %vm1973_vm12, %v13034_v26, 0.0  ;;  %v13054_v14 = vmul.f32 %v13034_v26, %v12939_v44  ;;  %v14444_v61 = vpop.f32.mrb[24].mxu1 }
 0x336   : > { %v13061_v56 = vsel %vm1973_vm12, %v13053_v48, 0.0  ;;  %13864 = vst.msk [vmem:[%s16603_s7 + $0x178] sm:$0x3f] %vm1944_vm10, %v14444_v61  ;;  %v13035_v3 = vmul.f32 %v14444_v61, %v16759_v53  ;;  %v13008_v55 = vpop.f32.mrb[25].mxu1  ;;  %v13043_v10 = vadd.f32 %v13042_v58, %v13041_v29 }
 0x337   : > { %v13062_v51 = vsel %vm1973_vm12, %v13054_v14, 0.0  ;;  %13861 = vst.msk [vmem:[%s16603_s7 + $0x160] sm:$0xff] %vm1940_vm11, %v13008_v55  ;;  %v13032_v5 = vmul.f32 %v13008_v55, %v16759_v53  ;;  %v1972_v53 = vpop.xlane.xlu0 %1971  ;;  %v6736_v62 = vpop.xlane.xlu1 %6735  ;;  %s13867_s7 = sshll.u32 %s17745_s18, 4 }
 0x338   : > { %v13055_v54 = vmul.f32 %v14444_v61, %v13035_v3  ;;  %v13044_v45 = vsel %vm1944_vm10, %v13035_v3, 0.0  ;;  %v13063_v23 = vadd.f32 %v13062_v51, %v13061_v56  ;;  %v3562_v18 = vadd.f32 %v3554_v1, %v1972_v53  ;;  %s304_s6 = scalar_lea.vmem %s17738_s4, %s13867_s7  ;;  %s313_s12 = scalar_lea.vmem %s17739_s5, %s13867_s7 }
 0x339   : > { %v13037_v22 = vsel %vm1940_vm11, %v13032_v5, 0.0  ;;  %v13052_v13 = vmul.f32 %v13032_v5, %v13008_v55  ;;  %v13045_v25 = vadd.f32 %v13044_v45, %v13043_v10 }
 0x33a   : > { %v13038_v27 = vadd.f32 %v13037_v22, %v13036_v9  ;;  %v13064_v39 = vsel %vm1944_vm10, %v13055_v54, 0.0  ;;  %v5143_v33 = vadd.f32 %v5135_v46, %v3562_v18 }
 0x33b   : > { %v13057_v63 = vsel %vm1940_vm11, %v13052_v13, 0.0  ;;  %13046 = vadd.xlane.f32.xlu0 %v13045_v25  ;;  %v13065_v49 = vadd.f32 %v13064_v39, %v13063_v23  ;;  %v1993_v50 = vpop.xlane.xlu0 %1992 }
 0x33c   : > { %13039 = vadd.xlane.f32.xlu1 %v13038_v27  ;;  %v13058_v12 = vadd.f32 %v13057_v63, %v13056_v4  ;;  %v3582_v57 = vadd.f32 %v3574_v40, %v1993_v50  ;;  %v6724_v7 = vadd.f32 %v6716_v16, %v5143_v33 }
 0x33e   : > { %v5163_v35 = vadd.f32 %v5155_v43, %v3582_v57 }
 0x33f   : > { %13066 = vadd.xlane.f32.xlu0 %v13065_v49  ;;  %v2000_v47 = vpop.xlane.xlu0 %1999 }
 0x340   : > { %13059 = vadd.xlane.f32.xlu1 %v13058_v12  ;;  %v6744_v29 = vadd.f32 %v6736_v62, %v5163_v35 }
 0x343   : > { %v3561_v8 = vpop.xlane.xlu0 %3560 }
 0x344   : > { %v3563_v24 = vadd.f32 %v3561_v8, %v1980_v32 }
 0x347   : > { %v3581_v15 = vpop.xlane.xlu0 %3580 }
 0x348   : > { %v8297_v34 = vpop.xlane.xlu1 %8296  ;;  %v3583_v20 = vadd.f32 %v3581_v15, %v2000_v47 }
 0x349   : > { %v8305_v17 = vadd.f32 %v8297_v34, %v6724_v7 }
 0x34b   : > { %v5142_v59 = vpop.xlane.xlu0 %5141 }
 0x34c   : > { %v8317_v36 = vpop.xlane.xlu1 %8316  ;;  %v5144_v37 = vadd.f32 %v5142_v59, %v3563_v24 }
 0x34d   : > { %v8325_v61 = vadd.f32 %v8317_v36, %v6744_v29 }
 0x34f   : > { %v5162_v31 = vpop.xlane.xlu0 %5161 }
 0x350   : > { %v5164_v2 = vadd.f32 %v5162_v31, %v3583_v20 }
 0x353   : > { %v6723_v52 = vpop.xlane.xlu0 %6722 }
 0x354   : > { %v6725_v28 = vadd.f32 %v6723_v52, %v5144_v37 }
 0x357   : > { %v6743_v21 = vpop.xlane.xlu0 %6742 }
 0x358   : > { %v6745_v44 = vadd.f32 %v6743_v21, %v5164_v2 }
 0x35b   : > { %v8304_v60 = vpop.xlane.xlu0 %8303 }
 0x35c   : > { %v8306_v9 = vadd.f32 %v8304_v60, %v6725_v28 }
 0x35d   : > { %v9878_v38 = vpop.xlane.xlu1 %9877 }
 0x35e   : > { %v9886_v48 = vadd.f32 %v9878_v38, %v8305_v17 }
 0x35f   : > { %v8324_v42 = vpop.xlane.xlu0 %8323 }
 0x360   : > { %v8326_v58 = vadd.f32 %v8324_v42, %v6745_v44 }
 0x361   : > { %v9898_v30 = vpop.xlane.xlu1 %9897 }
 0x362   : > { %v9906_v5 = vadd.f32 %v9898_v30, %v8325_v61 }
 0x363   : > { %v9885_v19 = vpop.xlane.xlu0 %9884 }
 0x364   : > { %v9887_v4 = vadd.f32 %v9885_v19, %v8306_v9 }
 0x367   : > { %v9905_v11 = vpop.xlane.xlu0 %9904 }
 0x368   : > { %v9907_v55 = vadd.f32 %v9905_v11, %v8326_v58 }
 0x3b3   : > { %v11466_v0 = vpop.xlane.xlu0 %11465 }
 0x3b4   : > { %v11459_v6 = vpop.xlane.xlu1 %11458  ;;  %v11468_v14 = vadd.f32 %v11466_v0, %v9887_v4 }
 0x3b5   : > { %v11467_v56 = vadd.f32 %v11459_v6, %v9886_v48 }
 0x3b7   : > { %v11486_v41 = vpop.xlane.xlu0 %11485 }
 0x3b8   : > { %v11479_v26 = vpop.xlane.xlu1 %11478  ;;  %v11488_v45 = vadd.f32 %v11486_v41, %v9907_v55 }
 0x3b9   : > { %v11487_v23 = vadd.f32 %v11479_v26, %v9906_v5 }
 0x3c8   : > { %v13047_v3 = vpop.xlane.xlu0 %13046 }
 0x3c9   : > { %v13049_v10 = vadd.f32 %v13047_v3, %v11468_v14  ;;  %v13040_v51 = vpop.xlane.xlu1 %13039 }
 0x3ca   : > { %v13048_v54 = vadd.f32 %v13040_v51, %v11467_v56 }
 0x3cb   : > { %13073 = vst.msk [vmem:[%s304_s6 + $0x8] sm:$0x3f] %vm13072_vm13, %v13049_v10 }
 0x3cc   : > { %13071 = vst.msk [vmem:[%s304_s6] sm:$0xff] %vm13070_vm14, %v13048_v54  ;;  %v13067_v22 = vpop.xlane.xlu0 %13066 }
 0x3cd   : > { %v13069_v13 = vadd.f32 %v13067_v22, %v11488_v45  ;;  %v13060_v25 = vpop.xlane.xlu1 %13059 }
 0x3ce   : > { %v13068_v27 = vadd.f32 %v13060_v25, %v11487_v23 }
 0x3cf   : > { %13075 = vst.msk [vmem:[%s313_s12 + $0x8] sm:$0x3f] %vm13072_vm13, %v13069_v13 }
 0x3d0   : > { %13074 = vst.msk [vmem:[%s313_s12] sm:$0xff] %vm13070_vm14, %v13068_v27 }
 0x3d1 PF: > { %s16_s20 = sadd.s32 1, %s14933_s20   ;;  %s17740_s18 = smov %s14929_s19 }
 0x3d2   : > { %p13_p5 = scmp.ge.s32.totalorder %s16_s20, 4   ;;  %s17741_s19 = smov %s17743_s21 }
 0x3d4   :  { %15 = sbr.rel (!%p13_p5) target bundleno = 2 (0x2), region = 108 }

</bundles_post_ra>
